<compile_context>
chip_gen: v5e
topology: v5e:2x2
jax: 0.10.0
libtpu: 0.0.40
codegen_flags: <defaults>
</compile_context>

<pallas_src>
import math

import numpy as np

import jax
import jax.numpy as jnp
from jax import lax
from jax.experimental import pallas as pl
from jax.experimental.pallas import tpu as pltpu

NEG_SLOPE = 0.02
NUM_FILTERS = 48
CWT_SCALES = int(math.log2(1024)) + 1  # 11 (fixed by CWTFeatureModel filter size)


def _round_up(x, m):
    return ((x + m - 1) // m) * m


def _lrelu(v):
    # max(v, a*v) == LeakyReLU for 0 < a < 1 (cheaper than compare+select on the VPU).
    return jnp.maximum(v, NEG_SLOPE * v)


def _shift_left(v, k):
    """out[:, c] = v[:, c+k]; the last k (wrapped) columns are only ever read through
    zero rows of the expanded raw conv weight, so the wrap is harmless."""
    return jnp.concatenate([v[:, k:], v[:, :k]], axis=1)


def _dft_matrix(sws, nf_pad, dtype=jnp.bfloat16):
    """Fused [cos | sin] block-diagonal DFT matrix for the natural [t, i, j] layout.

    Input columns:  [time t (sws), spatial p (64)]            -> sws*64 rows
    Output columns: [re: freq k (nfreq), p (64)] zero-padded to nf_pad,
                    then the same for im                       -> 2*nf_pad cols
    """
    nfreq = sws // 2 + 1
    t = np.arange(sws)[:, None]
    k = np.arange(nfreq)[None, :]
    ang = 2.0 * np.pi * t * k / sws
    cos_tk = np.cos(ang)            # (sws, nfreq)
    sin_tk = -np.sin(ang)           # rfft convention: X[k] = sum x * (cos - i*sin)
    eye64 = np.eye(64)
    c = np.zeros((sws * 64, nf_pad))
    s = np.zeros((sws * 64, nf_pad))
    c[:, :nfreq * 64] = np.kron(cos_tk, eye64)
    s[:, :nfreq * 64] = np.kron(sin_tk, eye64)
    return jnp.asarray(np.concatenate([c, s], axis=1), dtype)   # (sws*64, 2*nf_pad)


def multi_features_kernel(x_ref, cwt_ref,
                          cs_ref,
                          w_raw_ref, b_raw_ref,
                          w_fft_ref, b_fft_ref,
                          w_cwt_ref, b_cwt_ref,
                          w1_ref, b1_ref,
                          w2_ref, b2_ref,
                          w3t_ref, b3_ref,
                          out_ref):
    f32 = jnp.float32
    bf16 = jnp.bfloat16

    xb = x_ref[...].astype(bf16)                      # (T, sws*64) natural [t, i, j]

    # ---- Raw branch: MaxPool3d(1,2,2) in-kernel via two lane shifts + elementwise max.
    #      Column c = t*64 + i*8 + j; valid pooled values live at even (i, j); the junk
    #      columns hit zero rows of w_raw (expanded to sws*64 x 48), so they vanish.
    m1 = jnp.maximum(xb, _shift_left(xb, 1))          # pairwise max along j
    m2 = jnp.maximum(m1, _shift_left(m1, 8))          # pairwise max along i -> 2x2 max
    raw_feat = _lrelu(
        jnp.dot(m2, w_raw_ref[...], preferred_element_type=f32) + b_raw_ref[...])   # (T, 48)

    # ---- FFT branch: one fused [cos|sin] MXU matmul, f32 magnitude (EUP sqrt), then one
    #      fused conv matmul. re/im halves are padded to nf_pad (multiple of 128) so the
    #      slices below are lane-aligned.
    reim = jnp.dot(xb, cs_ref[...], preferred_element_type=f32)   # (T, 2*nf_pad)
    nfp = reim.shape[1] // 2
    re = reim[:, :nfp]
    im = reim[:, nfp:]
    mag = jnp.sqrt(re * re + im * im).astype(bf16)                # (T, nf_pad)
    fft_feat = _lrelu(
        jnp.dot(mag, w_fft_ref[...], preferred_element_type=f32) + b_fft_ref[...])  # (T, 48)

    # ---- CWT branch: conv-as-matmul on the last-timestep scalogram (already bf16).
    cwt_feat = _lrelu(
        jnp.dot(cwt_ref[...], w_cwt_ref[...], preferred_element_type=f32)
        + b_cwt_ref[...])                                                            # (T, 48)

    # ---- Classifier head: torch.cat folded into three block matmuls (w1 is (3,48,128)).
    h1 = _lrelu(jnp.dot(raw_feat.astype(bf16), w1_ref[0], preferred_element_type=f32)
                + jnp.dot(fft_feat.astype(bf16), w1_ref[1], preferred_element_type=f32)
                + jnp.dot(cwt_feat.astype(bf16), w1_ref[2], preferred_element_type=f32)
                + b1_ref[...])                                                       # (T, 128)
    h2 = _lrelu(jnp.dot(h1.astype(bf16), w2_ref[...], preferred_element_type=f32)
                + b2_ref[...])                                                       # (T, 32)

    # ---- fc3, lane-dense: w3t is (8, 32) bf16 with row 0 = fc3 weight, rows 1..7 zero.
    #      (8,32) x (T,32)^T -> (8, T); keep row 0 -> (1, T) row vector output.
    res = lax.dot_general(w3t_ref[...], h2.astype(bf16), (((1,), (1,)), ((), ())),
                          preferred_element_type=f32)                                # (8, T)
    out_ref[...] = res[0:1, :] + b3_ref[...]                                         # (1, T)


def multi_features_forward(x_raw, x_cwt, params, tile_n=None):
    """x_raw: (N, 1, sws, 8, 8)   x_cwt: (N, 1, sws, 11, 8, 8)   ->   (N, 1) float32."""
    f32 = jnp.float32
    bf16 = jnp.bfloat16
    F = NUM_FILTERS

    N = x_raw.shape[0]
    sws = x_raw.shape[2]
    nfreq = sws // 2 + 1
    nf_pad = _round_up(nfreq * 64, 128)

    if tile_n is None:
        tile_n = max(128, min(1024, _round_up(N, 128)))
    assert tile_n % 128 == 0, "tile_n must be a multiple of 128 (lane-dense output tile)"
    n_pad = _round_up(N, tile_n)
    num_tiles = n_pad // tile_n

    # --- activations: the raw signal crosses HBM exactly once (layout-preserving reshape,
    #     the kernel reads f32 directly and casts in-VMEM); CWT keeps a cheap slice+cast.
    xr = x_raw.reshape(N, sws * 64)                                     # (N, sws*64) f32, free
    xcwt = x_cwt[:, 0, -1].reshape(N, CWT_SCALES * 64).astype(bf16)     # (N, 704) bf16

    if n_pad != N:
        xr = jnp.pad(xr, ((0, n_pad - N), (0, 0)))
        xcwt = jnp.pad(xcwt, ((0, n_pad - N), (0, 0)))

    # --- constants / weights for the kernel (all MXU operands bf16; biases stay f32)
    cs_all = _dft_matrix(sws, nf_pad, bf16)                             # (sws*64, 2*nf_pad)

    # raw conv weight expanded to (sws*64, F): original rows land at even (i, j) columns
    idx = (np.arange(sws)[:, None, None] * 64
           + np.arange(4)[None, :, None] * 16
           + np.arange(4)[None, None, :] * 2).reshape(-1)               # (sws*16,)
    w_raw_exp = jnp.zeros((sws * 64, F), f32).at[idx].set(params["w_raw"]).astype(bf16)

    # fft conv weight in natural [k, i, j] row order, zero-padded to nf_pad rows
    wf = params["w_fft"].reshape(nfreq * 64, F)
    w_fft_k = jnp.zeros((nf_pad, F), f32).at[:nfreq * 64].set(wf).astype(bf16)

    w3 = params["w_fc3"]                                                # (32, 1)
    w3t8 = jnp.zeros((8, w3.shape[0]), f32).at[0].set(w3[:, 0]).astype(bf16)   # (8, 32)

    weights = (cs_all,
               w_raw_exp, params["b_raw"],
               w_fft_k, params["b_fft"],
               params["w_cwt"].astype(bf16), params["b_cwt"],
               params["w_fc1"].astype(bf16), params["b_fc1"],
               params["w_fc2"].astype(bf16), params["b_fc2"],
               w3t8, params["b_fc3"])

    def _const_spec(a):
        zeros = (0,) * a.ndim
        return pl.BlockSpec(a.shape, lambda *_: zeros)                  # VMEM-resident weight

    in_specs = ([pl.BlockSpec((tile_n, sws * 64), lambda i: (i, 0)),
                 pl.BlockSpec((tile_n, CWT_SCALES * 64), lambda i: (i, 0))]
                + [_const_spec(w) for w in weights])

    out = pl.pallas_call(
        multi_features_kernel,
        out_shape=jax.ShapeDtypeStruct((1, n_pad), f32),
        grid=(num_tiles,),
        in_specs=in_specs,
        out_specs=pl.BlockSpec((1, tile_n), lambda i: (0, i)),
        compiler_params=pltpu.CompilerParams(
            dimension_semantics=("parallel",),
            vmem_limit_bytes=48 * 1024 * 1024),
    )(xr, xcwt, *weights)

    return out[0, :N].reshape(N, 1)


def init_params(key, sws):
    nfreq = sws // 2 + 1
    ks = jax.random.split(key, 12)
    s = 0.05
    f32 = jnp.float32
    return {
        # conv weights pre-flattened; orders documented per-branch
        "w_raw": s * jax.random.normal(ks[0], (sws * 16, NUM_FILTERS), f32),       # (t,i,j) pooled
        "b_raw": s * jax.random.normal(ks[1], (1, NUM_FILTERS), f32),
        "w_fft": s * jax.random.normal(ks[2], (nfreq, 8, 8, NUM_FILTERS), f32),    # (k,h,w,f)
        "b_fft": s * jax.random.normal(ks[3], (1, NUM_FILTERS), f32),
        "w_cwt": s * jax.random.normal(ks[4], (CWT_SCALES * 64, NUM_FILTERS), f32),  # (scale,h,w)
        "b_cwt": s * jax.random.normal(ks[5], (1, NUM_FILTERS), f32),
        # fc1: (144, 128) stored as (3, 48, 128) blocks [raw, fft, cwt]
        "w_fc1": s * jax.random.normal(ks[6], (3, NUM_FILTERS, 128), f32),
        "b_fc1": s * jax.random.normal(ks[7], (1, 128), f32),
        "w_fc2": s * jax.random.normal(ks[8], (128, 32), f32),
        "b_fc2": s * jax.random.normal(ks[9], (1, 32), f32),
        "w_fc3": s * jax.random.normal(ks[10], (32, 1), f32),
        "b_fc3": s * jax.random.normal(ks[11], (1, 1), f32),
    }


def reference_forward(x_raw, x_cwt, p):
    """Pure-JAX f32 reference mirroring the PyTorch forward in eval mode."""
    N, _, sws, _, _ = x_raw.shape
    nfreq = sws // 2 + 1
    x5 = x_raw[:, 0]
    # Raw branch
    pooled = lax.reduce_window(x5, -jnp.inf, lax.max, (1, 1, 2, 2), (1, 1, 2, 2), "VALID")
    raw = _lrelu(pooled.reshape(N, -1) @ p["w_raw"] + p["b_raw"])
    # FFT branch
    mag = jnp.abs(jnp.fft.rfft(x5, axis=1))                        # (N, nfreq, 8, 8)
    fft = _lrelu(mag.reshape(N, -1) @ p["w_fft"].reshape(nfreq * 64, NUM_FILTERS) + p["b_fft"])
    # CWT branch
    cwt = _lrelu(x_cwt[:, 0, -1].reshape(N, -1) @ p["w_cwt"] + p["b_cwt"])
    # Head
    x = jnp.concatenate([raw, fft, cwt], axis=1)                   # (N, 144)
    x = _lrelu(x @ p["w_fc1"].reshape(3 * NUM_FILTERS, 128) + p["b_fc1"])
    x = _lrelu(x @ p["w_fc2"] + p["b_fc2"])
    return x @ p["w_fc3"] + p["b_fc3"]


if __name__ == "__main__":
    N, sws = 256, 8  # n_scales for CWT must equal 11 so the conv output collapses to 48 feats
    key = jax.random.PRNGKey(0)
    k1, k2 = jax.random.split(key)
    x_raw = jax.random.normal(k1, (N, 1, sws, 8, 8), jnp.float32)
    x_cwt = jax.random.normal(k2, (N, 1, sws, CWT_SCALES, 8, 8), jnp.float32)

    params = init_params(jax.random.PRNGKey(42), sws)

    # tile_n=128 keeps shapes small while exercising a 2-step pipelined grid.
    out = multi_features_forward(x_raw, x_cwt, params, tile_n=128)
    out = jax.block_until_ready(out)

    ref = reference_forward(x_raw, x_cwt, params)
    assert out.shape == (N, 1)
    # bf16 activations, DFT constants AND weights (f32 accumulation) => ~1e-2..2e-2 deviation
    # from the pure-f32 rfft reference; allow 3e-2 slack.
    max_err = float(jnp.max(jnp.abs(out - ref)))
    assert jnp.allclose(out, ref, rtol=3e-2, atol=3e-2), ("max_abs_err", max_err)
    print("KERNEL_OK")
</pallas_src>

<mosaic_0001>
module attributes {stable_mosaic.version = 11 : i64} {
  func.func @multi_features_kernel(%arg0: i32, %arg1: memref<128x512xf32, #tpu.memory_space<vmem>>, %arg2: memref<128x704xbf16, #tpu.memory_space<vmem>>, %arg3: memref<512x768xbf16, #tpu.memory_space<vmem>>, %arg4: memref<512x48xbf16, #tpu.memory_space<vmem>>, %arg5: memref<1x48xf32, #tpu.memory_space<vmem>>, %arg6: memref<384x48xbf16, #tpu.memory_space<vmem>>, %arg7: memref<1x48xf32, #tpu.memory_space<vmem>>, %arg8: memref<704x48xbf16, #tpu.memory_space<vmem>>, %arg9: memref<1x48xf32, #tpu.memory_space<vmem>>, %arg10: memref<3x48x128xbf16, #tpu.memory_space<vmem>>, %arg11: memref<1x128xf32, #tpu.memory_space<vmem>>, %arg12: memref<128x32xbf16, #tpu.memory_space<vmem>>, %arg13: memref<1x32xf32, #tpu.memory_space<vmem>>, %arg14: memref<8x32xbf16, #tpu.memory_space<vmem>>, %arg15: memref<1x1xf32, #tpu.memory_space<vmem>>, %arg16: memref<1x128xf32, #tpu.memory_space<vmem>>) attributes {dimension_semantics = [#tpu.dimension_semantics<parallel>], iteration_bounds = array<i64: 2>, scalar_prefetch = 0 : i64, scratch_operands = 0 : i64, tpu.core_type = #tpu.core_type<tc>, window_params = [{transform_indices = @transform_0, window_bounds = array<i64: 128, 512>}, {transform_indices = @transform_1, window_bounds = array<i64: 128, 704>}, {pipeline_mode = #tpu.pipeline_mode<synchronous>, transform_indices = @transform_2, window_bounds = array<i64: 512, 768>}, {pipeline_mode = #tpu.pipeline_mode<synchronous>, transform_indices = @transform_3, window_bounds = array<i64: 512, 48>}, {pipeline_mode = #tpu.pipeline_mode<synchronous>, transform_indices = @transform_4, window_bounds = array<i64: 1, 48>}, {pipeline_mode = #tpu.pipeline_mode<synchronous>, transform_indices = @transform_5, window_bounds = array<i64: 384, 48>}, {pipeline_mode = #tpu.pipeline_mode<synchronous>, transform_indices = @transform_6, window_bounds = array<i64: 1, 48>}, {pipeline_mode = #tpu.pipeline_mode<synchronous>, transform_indices = @transform_7, window_bounds = array<i64: 704, 48>}, {pipeline_mode = #tpu.pipeline_mode<synchronous>, transform_indices = @transform_8, window_bounds = array<i64: 1, 48>}, {pipeline_mode = #tpu.pipeline_mode<synchronous>, transform_indices = @transform_9, window_bounds = array<i64: 3, 48, 128>}, {pipeline_mode = #tpu.pipeline_mode<synchronous>, transform_indices = @transform_10, window_bounds = array<i64: 1, 128>}, {pipeline_mode = #tpu.pipeline_mode<synchronous>, transform_indices = @transform_11, window_bounds = array<i64: 128, 32>}, {pipeline_mode = #tpu.pipeline_mode<synchronous>, transform_indices = @transform_12, window_bounds = array<i64: 1, 32>}, {pipeline_mode = #tpu.pipeline_mode<synchronous>, transform_indices = @transform_13, window_bounds = array<i64: 8, 32>}, {pipeline_mode = #tpu.pipeline_mode<synchronous>, transform_indices = @transform_14, window_bounds = array<i64: 1, 1>}, {transform_indices = @transform_15, window_bounds = array<i64: 1, 128>}]} {
    %c0 = arith.constant 0 : index
    %c0_0 = arith.constant 0 : index
    %0 = vector.load %arg1[%c0, %c0_0] : memref<128x512xf32, #tpu.memory_space<vmem>>, vector<128x512xf32>
    %1 = arith.truncf %0 : vector<128x512xf32> to vector<128x512xbf16>
    %2 = vector.extract_strided_slice %1 {offsets = [0, 1], sizes = [128, 511], strides = [1, 1]} : vector<128x512xbf16> to vector<128x511xbf16>
    %3 = vector.extract_strided_slice %1 {offsets = [0, 0], sizes = [128, 1], strides = [1, 1]} : vector<128x512xbf16> to vector<128x1xbf16>
    %4 = tpu.concatenate %2, %3 in 1 : vector<128x511xbf16>, vector<128x1xbf16> -> vector<128x512xbf16>
    %5 = arith.maximumf %1, %4 : vector<128x512xbf16>
    %6 = vector.extract_strided_slice %5 {offsets = [0, 8], sizes = [128, 504], strides = [1, 1]} : vector<128x512xbf16> to vector<128x504xbf16>
    %7 = vector.extract_strided_slice %5 {offsets = [0, 0], sizes = [128, 8], strides = [1, 1]} : vector<128x512xbf16> to vector<128x8xbf16>
    %8 = tpu.concatenate %6, %7 in 1 : vector<128x504xbf16>, vector<128x8xbf16> -> vector<128x512xbf16>
    %9 = arith.maximumf %5, %8 : vector<128x512xbf16>
    %c0_1 = arith.constant 0 : index
    %c0_2 = arith.constant 0 : index
    %10 = vector.load %arg4[%c0_1, %c0_2] : memref<512x48xbf16, #tpu.memory_space<vmem>>, vector<512x48xbf16>
    %cst = arith.constant dense<0.000000e+00> : vector<128x48xf32>
    %11 = tpu.matmul %9, %10, %cst {dimension_numbers = #tpu.dot_dimension_numbers<[1], [0], [0], [1], [0, 0, 1, 1], [], []>} : vector<128x512xbf16>, vector<512x48xbf16>, vector<128x48xf32> -> vector<128x48xf32>
    %c0_3 = arith.constant 0 : index
    %c0_4 = arith.constant 0 : index
    %12 = vector.load %arg5[%c0_3, %c0_4] : memref<1x48xf32, #tpu.memory_space<vmem>>, vector<1x48xf32>
    %13 = vector.broadcast %12 : vector<1x48xf32> to vector<128x48xf32>
    %14 = arith.addf %11, %13 : vector<128x48xf32>
    %cst_5 = arith.constant 2.000000e-02 : f32
    %15 = vector.broadcast %cst_5 : f32 to vector<128x48xf32>
    %16 = arith.mulf %15, %14 : vector<128x48xf32>
    %17 = arith.maximumf %14, %16 : vector<128x48xf32>
    %c0_6 = arith.constant 0 : index
    %c0_7 = arith.constant 0 : index
    %18 = vector.load %arg3[%c0_6, %c0_7] : memref<512x768xbf16, #tpu.memory_space<vmem>>, vector<512x768xbf16>
    %cst_8 = arith.constant dense<0.000000e+00> : vector<128x768xf32>
    %19 = tpu.matmul %1, %18, %cst_8 {dimension_numbers = #tpu.dot_dimension_numbers<[1], [0], [0], [1], [0, 0, 1, 1], [], []>} : vector<128x512xbf16>, vector<512x768xbf16>, vector<128x768xf32> -> vector<128x768xf32>
    %20 = vector.extract_strided_slice %19 {offsets = [0, 0], sizes = [128, 384], strides = [1, 1]} : vector<128x768xf32> to vector<128x384xf32>
    %21 = vector.extract_strided_slice %19 {offsets = [0, 384], sizes = [128, 384], strides = [1, 1]} : vector<128x768xf32> to vector<128x384xf32>
    %22 = arith.mulf %20, %20 : vector<128x384xf32>
    %23 = arith.mulf %21, %21 : vector<128x384xf32>
    %24 = arith.addf %22, %23 : vector<128x384xf32>
    %25 = math.sqrt %24 : vector<128x384xf32>
    %26 = arith.truncf %25 : vector<128x384xf32> to vector<128x384xbf16>
    %c0_9 = arith.constant 0 : index
    %c0_10 = arith.constant 0 : index
    %27 = vector.load %arg6[%c0_9, %c0_10] : memref<384x48xbf16, #tpu.memory_space<vmem>>, vector<384x48xbf16>
    %cst_11 = arith.constant dense<0.000000e+00> : vector<128x48xf32>
    %28 = tpu.matmul %26, %27, %cst_11 {dimension_numbers = #tpu.dot_dimension_numbers<[1], [0], [0], [1], [0, 0, 1, 1], [], []>} : vector<128x384xbf16>, vector<384x48xbf16>, vector<128x48xf32> -> vector<128x48xf32>
    %c0_12 = arith.constant 0 : index
    %c0_13 = arith.constant 0 : index
    %29 = vector.load %arg7[%c0_12, %c0_13] : memref<1x48xf32, #tpu.memory_space<vmem>>, vector<1x48xf32>
    %30 = vector.broadcast %29 : vector<1x48xf32> to vector<128x48xf32>
    %31 = arith.addf %28, %30 : vector<128x48xf32>
    %cst_14 = arith.constant 2.000000e-02 : f32
    %32 = vector.broadcast %cst_14 : f32 to vector<128x48xf32>
    %33 = arith.mulf %32, %31 : vector<128x48xf32>
    %34 = arith.maximumf %31, %33 : vector<128x48xf32>
    %c0_15 = arith.constant 0 : index
    %c0_16 = arith.constant 0 : index
    %35 = vector.load %arg2[%c0_15, %c0_16] : memref<128x704xbf16, #tpu.memory_space<vmem>>, vector<128x704xbf16>
    %c0_17 = arith.constant 0 : index
    %c0_18 = arith.constant 0 : index
    %36 = vector.load %arg8[%c0_17, %c0_18] : memref<704x48xbf16, #tpu.memory_space<vmem>>, vector<704x48xbf16>
    %cst_19 = arith.constant dense<0.000000e+00> : vector<128x48xf32>
    %37 = tpu.matmul %35, %36, %cst_19 {dimension_numbers = #tpu.dot_dimension_numbers<[1], [0], [0], [1], [0, 0, 1, 1], [], []>} : vector<128x704xbf16>, vector<704x48xbf16>, vector<128x48xf32> -> vector<128x48xf32>
    %c0_20 = arith.constant 0 : index
    %c0_21 = arith.constant 0 : index
    %38 = vector.load %arg9[%c0_20, %c0_21] : memref<1x48xf32, #tpu.memory_space<vmem>>, vector<1x48xf32>
    %39 = vector.broadcast %38 : vector<1x48xf32> to vector<128x48xf32>
    %40 = arith.addf %37, %39 : vector<128x48xf32>
    %cst_22 = arith.constant 2.000000e-02 : f32
    %41 = vector.broadcast %cst_22 : f32 to vector<128x48xf32>
    %42 = arith.mulf %41, %40 : vector<128x48xf32>
    %43 = arith.maximumf %40, %42 : vector<128x48xf32>
    %44 = arith.truncf %17 : vector<128x48xf32> to vector<128x48xbf16>
    %c0_23 = arith.constant 0 : index
    %c0_24 = arith.constant 0 : index
    %c0_25 = arith.constant 0 : index
    %45 = vector.load %arg10[%c0_23, %c0_24, %c0_25] : memref<3x48x128xbf16, #tpu.memory_space<vmem>>, vector<1x48x128xbf16>
    %46 = vector.shape_cast %45 : vector<1x48x128xbf16> to vector<48x128xbf16>
    %cst_26 = arith.constant dense<0.000000e+00> : vector<128x128xf32>
    %47 = tpu.matmul %44, %46, %cst_26 {dimension_numbers = #tpu.dot_dimension_numbers<[1], [0], [0], [1], [0, 0, 1, 1], [], []>} : vector<128x48xbf16>, vector<48x128xbf16>, vector<128x128xf32> -> vector<128x128xf32>
    %48 = arith.truncf %34 : vector<128x48xf32> to vector<128x48xbf16>
    %c1 = arith.constant 1 : index
    %c0_27 = arith.constant 0 : index
    %c0_28 = arith.constant 0 : index
    %49 = vector.load %arg10[%c1, %c0_27, %c0_28] : memref<3x48x128xbf16, #tpu.memory_space<vmem>>, vector<1x48x128xbf16>
    %50 = vector.shape_cast %49 : vector<1x48x128xbf16> to vector<48x128xbf16>
    %cst_29 = arith.constant dense<0.000000e+00> : vector<128x128xf32>
    %51 = tpu.matmul %48, %50, %cst_29 {dimension_numbers = #tpu.dot_dimension_numbers<[1], [0], [0], [1], [0, 0, 1, 1], [], []>} : vector<128x48xbf16>, vector<48x128xbf16>, vector<128x128xf32> -> vector<128x128xf32>
    %52 = arith.addf %47, %51 : vector<128x128xf32>
    %53 = arith.truncf %43 : vector<128x48xf32> to vector<128x48xbf16>
    %c2 = arith.constant 2 : index
    %c0_30 = arith.constant 0 : index
    %c0_31 = arith.constant 0 : index
    %54 = vector.load %arg10[%c2, %c0_30, %c0_31] : memref<3x48x128xbf16, #tpu.memory_space<vmem>>, vector<1x48x128xbf16>
    %55 = vector.shape_cast %54 : vector<1x48x128xbf16> to vector<48x128xbf16>
    %cst_32 = arith.constant dense<0.000000e+00> : vector<128x128xf32>
    %56 = tpu.matmul %53, %55, %cst_32 {dimension_numbers = #tpu.dot_dimension_numbers<[1], [0], [0], [1], [0, 0, 1, 1], [], []>} : vector<128x48xbf16>, vector<48x128xbf16>, vector<128x128xf32> -> vector<128x128xf32>
    %57 = arith.addf %52, %56 : vector<128x128xf32>
    %c0_33 = arith.constant 0 : index
    %c0_34 = arith.constant 0 : index
    %58 = vector.load %arg11[%c0_33, %c0_34] : memref<1x128xf32, #tpu.memory_space<vmem>>, vector<1x128xf32>
    %59 = vector.broadcast %58 : vector<1x128xf32> to vector<128x128xf32>
    %60 = arith.addf %57, %59 : vector<128x128xf32>
    %cst_35 = arith.constant 2.000000e-02 : f32
    %61 = vector.broadcast %cst_35 : f32 to vector<128x128xf32>
    %62 = arith.mulf %61, %60 : vector<128x128xf32>
    %63 = arith.maximumf %60, %62 : vector<128x128xf32>
    %64 = arith.truncf %63 : vector<128x128xf32> to vector<128x128xbf16>
    %c0_36 = arith.constant 0 : index
    %c0_37 = arith.constant 0 : index
    %65 = vector.load %arg12[%c0_36, %c0_37] : memref<128x32xbf16, #tpu.memory_space<vmem>>, vector<128x32xbf16>
    %cst_38 = arith.constant dense<0.000000e+00> : vector<128x32xf32>
    %66 = tpu.matmul %64, %65, %cst_38 {dimension_numbers = #tpu.dot_dimension_numbers<[1], [0], [0], [1], [0, 0, 1, 1], [], []>} : vector<128x128xbf16>, vector<128x32xbf16>, vector<128x32xf32> -> vector<128x32xf32>
    %c0_39 = arith.constant 0 : index
    %c0_40 = arith.constant 0 : index
    %67 = vector.load %arg13[%c0_39, %c0_40] : memref<1x32xf32, #tpu.memory_space<vmem>>, vector<1x32xf32>
    %68 = vector.broadcast %67 : vector<1x32xf32> to vector<128x32xf32>
    %69 = arith.addf %66, %68 : vector<128x32xf32>
    %cst_41 = arith.constant 2.000000e-02 : f32
    %70 = vector.broadcast %cst_41 : f32 to vector<128x32xf32>
    %71 = arith.mulf %70, %69 : vector<128x32xf32>
    %72 = arith.maximumf %69, %71 : vector<128x32xf32>
    %c0_42 = arith.constant 0 : index
    %c0_43 = arith.constant 0 : index
    %73 = vector.load %arg14[%c0_42, %c0_43] : memref<8x32xbf16, #tpu.memory_space<vmem>>, vector<8x32xbf16>
    %74 = arith.truncf %72 : vector<128x32xf32> to vector<128x32xbf16>
    %cst_44 = arith.constant dense<0.000000e+00> : vector<8x128xf32>
    %75 = tpu.matmul %73, %74, %cst_44 {dimension_numbers = #tpu.dot_dimension_numbers<[1], [1], [0], [0], [0, 0, 1, 0], [], []>} : vector<8x32xbf16>, vector<128x32xbf16>, vector<8x128xf32> -> vector<8x128xf32>
    %76 = vector.extract_strided_slice %75 {offsets = [0, 0], sizes = [1, 128], strides = [1, 1]} : vector<8x128xf32> to vector<1x128xf32>
    %c0_45 = arith.constant 0 : index
    %c0_46 = arith.constant 0 : index
    %77 = vector.load %arg15[%c0_45, %c0_46] : memref<1x1xf32, #tpu.memory_space<vmem>>, vector<1x1xf32>
    %78 = vector.broadcast %77 : vector<1x1xf32> to vector<1x128xf32>
    %79 = arith.addf %76, %78 : vector<1x128xf32>
    %c0_47 = arith.constant 0 : index
    %c0_48 = arith.constant 0 : index
    %80 = vector.load %arg16[%c0_47, %c0_48] : memref<1x128xf32, #tpu.memory_space<vmem>>, vector<1x128xf32>
    tpu.vector_store %arg16[%c0_47, %c0_48], %79 {strides = array<i32>} : memref<1x128xf32, #tpu.memory_space<vmem>>, vector<1x128xf32>,
    return
  }
  func.func @transform_0(%arg0: i32) -> (i32, i32) {
    %c0_i32 = arith.constant 0 : i32
    %c0_i32_0 = arith.constant 0 : i32
    return %arg0, %c0_i32 : i32, i32
  }
  func.func @transform_1(%arg0: i32) -> (i32, i32) {
    %c0_i32 = arith.constant 0 : i32
    %c0_i32_0 = arith.constant 0 : i32
    return %arg0, %c0_i32 : i32, i32
  }
  func.func @transform_2(%arg0: i32) -> (i32, i32) {
    %c0_i32 = arith.constant 0 : i32
    %c0_i32_0 = arith.constant 0 : i32
    %c0_i32_1 = arith.constant 0 : i32
    return %c0_i32, %c0_i32_0 : i32, i32
  }
  func.func @transform_3(%arg0: i32) -> (i32, i32) {
    %c0_i32 = arith.constant 0 : i32
    %c0_i32_0 = arith.constant 0 : i32
    %c0_i32_1 = arith.constant 0 : i32
    return %c0_i32, %c0_i32_0 : i32, i32
  }
  func.func @transform_4(%arg0: i32) -> (i32, i32) {
    %c0_i32 = arith.constant 0 : i32
    %c0_i32_0 = arith.constant 0 : i32
    %c0_i32_1 = arith.constant 0 : i32
    return %c0_i32, %c0_i32_0 : i32, i32
  }
  func.func @transform_5(%arg0: i32) -> (i32, i32) {
    %c0_i32 = arith.constant 0 : i32
    %c0_i32_0 = arith.constant 0 : i32
    %c0_i32_1 = arith.constant 0 : i32
    return %c0_i32, %c0_i32_0 : i32, i32
  }
  func.func @transform_6(%arg0: i32) -> (i32, i32) {
    %c0_i32 = arith.constant 0 : i32
    %c0_i32_0 = arith.constant 0 : i32
    %c0_i32_1 = arith.constant 0 : i32
    return %c0_i32, %c0_i32_0 : i32, i32
  }
  func.func @transform_7(%arg0: i32) -> (i32, i32) {
    %c0_i32 = arith.constant 0 : i32
    %c0_i32_0 = arith.constant 0 : i32
    %c0_i32_1 = arith.constant 0 : i32
    return %c0_i32, %c0_i32_0 : i32, i32
  }
  func.func @transform_8(%arg0: i32) -> (i32, i32) {
    %c0_i32 = arith.constant 0 : i32
    %c0_i32_0 = arith.constant 0 : i32
    %c0_i32_1 = arith.constant 0 : i32
    return %c0_i32, %c0_i32_0 : i32, i32
  }
  func.func @transform_9(%arg0: i32) -> (i32, i32, i32) {
    %c0_i32 = arith.constant 0 : i32
    %c0_i32_0 = arith.constant 0 : i32
    %c0_i32_1 = arith.constant 0 : i32
    %c0_i32_2 = arith.constant 0 : i32
    return %c0_i32, %c0_i32_0, %c0_i32_1 : i32, i32, i32
  }
  func.func @transform_10(%arg0: i32) -> (i32, i32) {
    %c0_i32 = arith.constant 0 : i32
    %c0_i32_0 = arith.constant 0 : i32
    %c0_i32_1 = arith.constant 0 : i32
    return %c0_i32, %c0_i32_0 : i32, i32
  }
  func.func @transform_11(%arg0: i32) -> (i32, i32) {
    %c0_i32 = arith.constant 0 : i32
    %c0_i32_0 = arith.constant 0 : i32
    %c0_i32_1 = arith.constant 0 : i32
    return %c0_i32, %c0_i32_0 : i32, i32
  }
  func.func @transform_12(%arg0: i32) -> (i32, i32) {
    %c0_i32 = arith.constant 0 : i32
    %c0_i32_0 = arith.constant 0 : i32
    %c0_i32_1 = arith.constant 0 : i32
    return %c0_i32, %c0_i32_0 : i32, i32
  }
  func.func @transform_13(%arg0: i32) -> (i32, i32) {
    %c0_i32 = arith.constant 0 : i32
    %c0_i32_0 = arith.constant 0 : i32
    %c0_i32_1 = arith.constant 0 : i32
    return %c0_i32, %c0_i32_0 : i32, i32
  }
  func.func @transform_14(%arg0: i32) -> (i32, i32) {
    %c0_i32 = arith.constant 0 : i32
    %c0_i32_0 = arith.constant 0 : i32
    %c0_i32_1 = arith.constant 0 : i32
    return %c0_i32, %c0_i32_0 : i32, i32
  }
  func.func @transform_15(%arg0: i32) -> (i32, i32) {
    %c0_i32 = arith.constant 0 : i32
    %c0_i32_0 = arith.constant 0 : i32
    return %c0_i32, %arg0 : i32, i32
  }
}

</mosaic_0001>

<bundles_post_ra>
// kernel: tpu_custom_call.1
= control target key start
LH: loop header
LB: loop body
LE: loop exit
PB: predicated region body
PF: predicated region fallthrough
CT: control target
= control target key end

     0   :  { %s13889_s0 = inlined_call_operand.hbm [shape: f32[256,512], index: 0, kind: input, shape index: {}]   ;;  %s13890_s1 = inlined_call_operand.vmem [shape: bf16[256,704], index: 1, kind: input, shape index: {}]   ;;  %s13891_s2 = inlined_call_operand.vmem [shape: bf16[512,768], index: 2, kind: input, shape index: {}]   ;;  %s13892_s3 = inlined_call_operand.vmem [shape: bf16[512,48], index: 3, kind: input, shape index: {}]   ;;  %s13893_s4 = inlined_call_operand.vmem [shape: f32[1,48], index: 4, kind: input, shape index: {}]   ;;  %s13894_s5 = inlined_call_operand.vmem [shape: bf16[384,48], index: 5, kind: input, shape index: {}]   ;;  %s13895_s6 = inlined_call_operand.vmem [shape: f32[1,48], index: 6, kind: input, shape index: {}]   ;;  %s13896_s7 = inlined_call_operand.vmem [shape: bf16[704,48], index: 7, kind: input, shape index: {}]   ;;  %s13897_s8 = inlined_call_operand.vmem [shape: f32[1,48], index: 8, kind: input, shape index: {}]   ;;  %s13898_s9 = inlined_call_operand.vmem [shape: bf16[3,48,128], index: 9, kind: input, shape index: {}]   ;;  %s13899_s10 = inlined_call_operand.vmem [shape: f32[1,128], index: 10, kind: input, shape index: {}]   ;;  %s13900_s11 = inlined_call_operand.vmem [shape: bf16[128,32], index: 11, kind: input, shape index: {}]   ;;  %s13901_s12 = inlined_call_operand.vmem [shape: f32[1,32], index: 12, kind: input, shape index: {}]   ;;  %s13902_s13 = inlined_call_operand.vmem [shape: bf16[8,32], index: 13, kind: input, shape index: {}]   ;;  %s13903_s14 = inlined_call_operand.<no memory space> [shape: f32[1,1], index: 14, kind: input, shape index: {}]   ;;  %s13904_s15 = inlined_call_operand.hbm [shape: f32[1,256], index: 15, kind: output, shape index: {}]  }
   0x1   :  { %14019 = sst [smem:[#allocation100_spill]] %s13902_s13  ;;  %v20_v0 = vstv %s13903_s14 }
   0x2   :  { %14020 = sst [smem:[#allocation101_spill]] %s13904_s15  ;;  %21 = vst [vmem:[#allocation2] sm:$0x1] %v20_v0 }
   0x3   :  { %22 = vsyncpa [#allocation4], 0 }
   0x4   :  { %24 = vsyncpa [#allocation4 + $0x1], 0 }
   0x5   :  { %25 = vsyncpa [#allocation5], 0 }
   0x6   :  { %27 = vsyncpa [#allocation5 + $0x1], 0  ;;  %s9508_s20 = smov 0   ;;  %s9510_s21 = smov 0  }
   0x7   :  { %s9512_s22 = smov 0   ;;  %s9514_s23 = smov 0  }
   0x8 LB: > { %14021 = sst [smem:[#allocation9_spill]] %s9406_s20  ;;  %s9529_s14 = sadd.s32 4294967295, %s9418_s23   ;;  %s9418_s23 = sphi %s9514_s23, %s14377_s23   ;;  %s9414_s22 = sphi %s9512_s22, %s14382_s22   ;;  %s9410_s21 = sphi %s9510_s21, %s14381_s21   ;;  %s9406_s20 = sphi %s9508_s20, %s14380_s20  }
   0x9   : > { %14022 = sst [smem:[#allocation10_spill]] %s9414_s22  ;;  %s7283_s24 = sadd.s32 4294967294, %s9418_s23  }
   0xa   : > { %s9533_s25 = sadd.s32 1, %s9418_s23   ;;  %s40_s26 = sadd.s32 1, %s9414_s22 }
   0xb   : > { %14023 = sst [smem:[#allocation11_spill]] %s9533_s25  ;;  %s37_s27 = ssub.s32 %s9418_s23, %s9533_s25 }
   0xc   : > { %p47_p0 = scmp.ne.s32.totalorder %s9414_s22, %s9410_s21  ;;  %p38_p1 = scmp.eq.s32.totalorder %s37_s27, 0 }
   0xd   : > { %p48_p2 = scmp.eq.s32.totalorder %s9418_s23, 0  ;;  %p53_p3 = scmp.ne.s32.totalorder %s9410_s21, %s9406_s20 }
   0xe   : > { %p54_p4 = scmp.eq.s32.totalorder %s9529_s14, 0  ;;  %p376_p7 = scmp.eq.s32.totalorder %s9529_s14, 1 }
   0xf   : > { %s9545_s28 = scalar_select %p38_p1, %s9414_s22, %s40_s26  }
  0x10   : > { %p9547_p5 = por %p48_p2, %p47_p0  ;;  %p9551_p6 = por %p54_p4, %p53_p3 }
  0x11   : > { %14024 = sst [smem:[#allocation12_spill]] %s9545_s28  ;;  %p382_p8 = scmp.eq.s32.totalorder %s7283_s24, 1 }
  0x12   : > { %p9157_p10 = scmp.lt.s32.totalorder %s9418_s23, 2  ;;  %p9558_p11 = por %p376_p7, %p47_p0 }
  0x13   : > { %p9562_p12 = por %p382_p8, %p53_p3  ;;  %s441_s18 = sand.u32 1, %s9414_s22  }
  0x14   : > { %s14027_s16 = scalar_select %p9558_p11, 1, 0 }
  0x15   : > { %s14029_s17 = scalar_select %p9562_p12, 1, 0 }
  0x16   : > { %14028 = sst [smem:[#allocation13_spill]] %s14027_s16  ;;  %s8770_s19 = sshll.u32 %s9418_s23, 9 }
  0x17   : > { %14030 = sst [smem:[#allocation14_spill]] %s14029_s17  ;;  %s7286_s26 = sshll.u32 %s441_s18, 9 }
  0x18   : > { %s451_s25 = scalar_lea.hbm %s13889_s0, %s8770_s19  ;;  %s445_s24 = scalar_lea.vmem [#allocation3], %s7286_s26 }
  0x19   : > { %s452_s20 = sshll.u32 %s451_s25, 4  ;;  %s454_s15 = sshll.u32 %s445_s24, 4  ;;  %s453_s20 = int_to_ptr.hbm [resolvable:$true] %s452_s20  ;;  %s455_s15 = int_to_ptr.vmem [resolvable:$true] %s454_s15 }
  0x1a   : > { %p9573_p13 = pnand %p9157_p10, %p9547_p5  ;;  %p7290_p0 = scmp.ge.s32.totalorder %s9418_s23, 1 }
  0x1b   : > { %p472_p1 = scmp.lt.s32.totalorder %s9418_s23, 3  ;;  %s442_s22 = scalar_lea.sflag [#allocation4], %s441_s18 }
  0x1c   : > { %s9322_s17 = sshra.s32 %s453_s20, 4  ;;  %p9326_p3 = pneg %p9573_p13  ;;  %s9323_s17 = int_to_ptr.hbm [resolvable:$true] %s9322_s17 }
  0x1d   : > { %s9324_s16 = scalar_lea.hbm %s9323_s17, 512  ;;  %s9329_s29 = scalar_lea.hbm %s13889_s0, 1024 }
  0x1e   : > { %p9325_p2 = scmp.ne.s32.totalorder %s9323_s17, %s9324_s16  ;;  %p9330_p5 = scmp.lt.s32.totalorder %s9323_s17, %s13889_s0 }
  0x1f   : > { %p9331_p8 = scmp.lt.s32.totalorder %s9329_s29, %s9324_s16 }
  0x20   : > { %p9327_p4 = pnand %p9326_p3, %p9325_p2 }
  0x21   : > { %p9332_p10 = por %p9331_p8, %p9330_p5 }
  0x22   : > { %p9328_p7 = pneg %p9327_p4 }
  0x24   : > { %p9333_p9 = pnand %p9332_p10, %p9328_p7 }
  0x26   : > { %9336 = shalt.err (!%p9333_p9)
}
  0x27   : > { %s9420_s18 = smov 512   ;;  %s9421_s27 = smov 32  }
  0x28   : > { %9152 = dma.hbm_to_vmem [thread:$0]  (!%p9573_p13), %s453_s20, 8192, %s455_s15, %s442_s22, %s9420_s18, %s9420_s18, %s9421_s27  }
  0x29   : > { %p473_p2 = pnand %p7290_p0, %p472_p1 }
  0x2b   : > { %476 = sbr.rel (%p473_p2) target bundleno = 2334 (0x91e), region = 80 }
  0x30   : > { %s9594_s24 = sand.u32 1, %s9410_s21  }
  0x31   : > { %s7291_s16 = sshll.u32 %s9594_s24, 9  ;;  %s479_s17 = scalar_lea.sflag [#allocation4], %s9594_s24 }
  0x32   : > { %s9598_s25 = scalar_lea.vmem [#allocation3], %s7291_s16 }
  0x33   : > { %9397 = dma.done.wait (%p9551_p6), %s479_s17, 8192  }
  0x34   : > { %9399 = vsyncadd (%p9551_p6), %s479_s17, 4294959104  ;;  %v586_v1 = vld [vmem:[%s9598_s25 + $0x150] sm:$0xff]  ;;  %v587_v2 = vld [vmem:[%s9598_s25 + $0x158] sm:$0xff]  ;;  %s9422_s13 = smov 127   ;;  %vm832_vm0 = vcmask 1039360   ;;  %s9423_s15 = smov 120  }
  0x35   : > { %v590_v3 = vld [vmem:[%s9598_s25 + $0x170] sm:$0xff]  ;;  %v591_v4 = vld [vmem:[%s9598_s25 + $0x178] sm:$0xff]  ;;  %v9608_v5 = vpack.c.bf16 %v587_v2, %v586_v1  ;;  %v9611_v6 = vld [vmem:[%s9598_s25 + $0x140] sm:$0xff]  ;;  %vm1330_vm1 = vcmask 982016   ;;  %s14371_s29 = sld [smem:[#allocation100_spill]]  ;;  %s534_s26 = scalar_lea.vmem [#allocation6], %s9594_s24 }
  0x36   : > { %v9614_v7 = vld [vmem:[%s9598_s25 + $0x148] sm:$0xff]  ;;  %v9616_v8 = vpack.c.bf16 %v591_v4, %v590_v3  ;;  %v9619_v9 = vld [vmem:[%s9598_s25 + $0x160] sm:$0xff]  ;;  %v570_v31 = vld [vmem:[%s9598_s25 + $0xd0] sm:$0xff]  ;;  %s14372_s19 = sld [smem:[#allocation101_spill]]  ;;  %s7203_s18 = sshll.u32 %s534_s26, 4  ;;  %s7204_s18 = int_to_ptr.vmem [resolvable:$true] %s7203_s18 }
  0x37   : > { %v9622_v10 = vld [vmem:[%s9598_s25 + $0x168] sm:$0xff]  ;;  %v628_v11 = vpack.c.bf16 %v9614_v7, %v9611_v6  ;;  %v9627_v12 = vld [vmem:[%s9598_s25 + $0xc0] sm:$0xff]  ;;  %v714_v13 = vunpack.c.l.b16 %v9608_v5  ;;  %v571_v36 = vld [vmem:[%s9598_s25 + $0xd8] sm:$0xff]  ;;  %s7193_s17 = scalar_lea.sflag [#allocation5], %s9594_s24 }
  0x38   : > { %v630_v14 = vpack.c.bf16 %v9622_v10, %v9619_v9  ;;  %v9633_v15 = vld [vmem:[%s9598_s25 + $0xc8] sm:$0xff]  ;;  %v9636_v16 = vld [vmem:[%s9598_s25 + $0xe0] sm:$0xff]  ;;  %v718_v18 = vunpack.c.l.b16 %v9616_v8  ;;  %v574_v37 = vld [vmem:[%s9598_s25 + $0xf0] sm:$0xff]  ;;  %v9678_v43 = vpack.c.bf16 %v571_v36, %v570_v31 }
  0x39   : > { %v9639_v17 = vld [vmem:[%s9598_s25 + $0xe8] sm:$0xff]  ;;  %v712_v19 = vunpack.c.l.b16 %v628_v11  ;;  %v620_v20 = vpack.c.bf16 %v9633_v15, %v9627_v12  ;;  %v9651_v25 = vld [vmem:[%s9598_s25 + $0x180] sm:$0xff]  ;;  %v713_v32 = vunpack.c.h.b16 %v628_v11  ;;  %v575_v38 = vld [vmem:[%s9598_s25 + $0xf8] sm:$0xff] }
  0x3a   : > { %v716_v21 = vunpack.c.l.b16 %v630_v14  ;;  %v622_v22 = vpack.c.bf16 %v9639_v17, %v9636_v16  ;;  %v9646_v23 = vpack.c.b16 %v718_v18, %v714_v13  ;;  %v9654_v26 = vld [vmem:[%s9598_s25 + $0x188] sm:$0xff]  ;;  %v9659_v29 = vld [vmem:[%s9598_s25 + $0x1a0] sm:$0xff]  ;;  %v717_v33 = vunpack.c.h.b16 %v630_v14  ;;  %v594_v45 = vld [vmem:[%s9598_s25 + $0x190] sm:$0xff] }
  0x3b   : > { %v696_v27 = vunpack.c.l.b16 %v620_v20  ;;  %v9662_v30 = vld [vmem:[%s9598_s25 + $0x1a8] sm:$0xff]  ;;  %v697_v34 = vunpack.c.h.b16 %v620_v20  ;;  %v632_v39 = vpack.c.bf16 %v9654_v26, %v9651_v25  ;;  %v9680_v44 = vpack.c.bf16 %v575_v38, %v574_v37  ;;  %v595_v46 = vld [vmem:[%s9598_s25 + $0x198] sm:$0xff]  ;;  %v598_v48 = vld [vmem:[%s9598_s25 + $0x1b0] sm:$0xff] }
  0x3c   : > { %14032 = vst [vmem:[#allocation15_spill] sm:$0xff] %v9646_v23  ;;  %v9648_v24 = vpack.c.b16 %v716_v21, %v712_v19  ;;  %812 = vrot.lane.b32.xlu1 %v9646_v23, %s9422_s13  ;;  %v700_v28 = vunpack.c.l.b16 %v622_v22  ;;  %v701_v35 = vunpack.c.h.b16 %v622_v22  ;;  %v634_v42 = vpack.c.bf16 %v9662_v30, %v9659_v29  ;;  %v599_v51 = vld [vmem:[%s9598_s25 + $0x1b8] sm:$0xff]  ;;  %v9695_v55 = vld [vmem:[%s9598_s25 + $0x100] sm:$0xff]  ;;  %v9700_v57 = vld [vmem:[%s9598_s25 + $0x108] sm:$0xff] }
  0x3d   : > { %v9684_v47 = vpack.c.b16 %v717_v33, %v713_v32  ;;  %v698_v49 = vunpack.c.l.b16 %v9678_v43  ;;  %v702_v50 = vunpack.c.l.b16 %v9680_v44  ;;  %v720_v52 = vunpack.c.l.b16 %v632_v39  ;;  %v9703_v58 = vld [vmem:[%s9598_s25 + $0x120] sm:$0xff]  ;;  %v9706_v59 = vld [vmem:[%s9598_s25 + $0x128] sm:$0xff]  ;;  %v578_v11 = vld [vmem:[%s9598_s25 + $0x110] sm:$0xff] }
  0x3e   : > { %14033 = vst [vmem:[#allocation16_spill] sm:$0xff] %v9648_v24  ;;  %808 = vrot.lane.b32.xlu0 %v9648_v24, %s9422_s13  ;;  %v9672_v40 = vpack.c.b16 %v701_v35, %v697_v34  ;;  %v9674_v41 = vpack.c.b16 %v700_v28, %v696_v27  ;;  %v721_v53 = vunpack.c.h.b16 %v632_v39  ;;  %v725_v54 = vunpack.c.h.b16 %v634_v42  ;;  %v579_v13 = vld [vmem:[%s9598_s25 + $0x118] sm:$0xff]  ;;  %v582_v14 = vld [vmem:[%s9598_s25 + $0x130] sm:$0xff]  ;;  %v9733_v22 = vld [vmem:[%s9598_s25 + $0x1c0] sm:$0xff] }
  0x3f   : > { %14036 = vst [vmem:[#allocation19_spill] sm:$0xff] %v9684_v47  ;;  %v724_v56 = vunpack.c.l.b16 %v634_v42  ;;  %v9708_v60 = vpack.c.b16 %v702_v50, %v698_v49  ;;  %v9710_v61 = vpack.c.bf16 %v595_v46, %v594_v45  ;;  %v9712_v62 = vpack.c.bf16 %v599_v51, %v598_v48  ;;  %v583_v18 = vld [vmem:[%s9598_s25 + $0x138] sm:$0xff]  ;;  %v9738_v28 = vld [vmem:[%s9598_s25 + $0x1c8] sm:$0xff]  ;;  %v9741_v31 = vld [vmem:[%s9598_s25 + $0x1e0] sm:$0xff] }
  0x40   : > { %14034 = vst [vmem:[#allocation17_spill] sm:$0xff] %v9672_v40  ;;  %794 = vrot.lane.b32.xlu2 %v9672_v40, %s9422_s13  ;;  %v9714_v63 = vpack.c.b16 %v725_v54, %v721_v53  ;;  %v624_v0 = vpack.c.bf16 %v9700_v57, %v9695_v55  ;;  %v626_v1 = vpack.c.bf16 %v9706_v59, %v9703_v58  ;;  %v9744_v32 = vld [vmem:[%s9598_s25 + $0x1e8] sm:$0xff]  ;;  %v602_v46 = vld [vmem:[%s9598_s25 + $0x1d0] sm:$0xff]  ;;  %v603_v48 = vld [vmem:[%s9598_s25 + $0x1d8] sm:$0xff] }
  0x41   : > { %14035 = vst [vmem:[#allocation18_spill] sm:$0xff] %v9674_v41  ;;  %v9720_v2 = vpack.c.b16 %v724_v56, %v720_v52  ;;  %v722_v3 = vunpack.c.l.b16 %v9710_v61  ;;  %v726_v4 = vunpack.c.l.b16 %v9712_v62  ;;  %v9748_v34 = vpack.c.bf16 %v579_v13, %v578_v11  ;;  %v606_v49 = vld [vmem:[%s9598_s25 + $0x1f0] sm:$0xff]  ;;  %v607_v50 = vld [vmem:[%s9598_s25 + $0x1f8] sm:$0xff] }
  0x42   : > { %14037 = vst [vmem:[#allocation20_spill] sm:$0xff] %v9708_v60  ;;  %v704_v19 = vunpack.c.l.b16 %v624_v0  ;;  %v705_v20 = vunpack.c.h.b16 %v624_v0  ;;  %v709_v21 = vunpack.c.h.b16 %v626_v1  ;;  %v708_v27 = vunpack.c.l.b16 %v626_v1  ;;  %v9771_v56 = vld [vmem:[%s9598_s25 + $0x10] sm:$0xff]  ;;  %v9774_v0 = vld [vmem:[%s9598_s25 + $0x18] sm:$0xff] }
  0x43   : > { %14038 = vst [vmem:[#allocation21_spill] sm:$0xff] %v9710_v61  ;;  %v9746_v33 = vpack.c.b16 %v726_v4, %v722_v3  ;;  %v9750_v35 = vpack.c.bf16 %v583_v18, %v582_v14  ;;  %v636_v37 = vpack.c.bf16 %v9738_v28, %v9733_v22  ;;  %v638_v38 = vpack.c.bf16 %v9744_v32, %v9741_v31  ;;  %v9779_v1 = vld [vmem:[%s9598_s25 + $0x30] sm:$0xff]  ;;  %v9782_v3 = vld [vmem:[%s9598_s25 + $0x38] sm:$0xff]  ;;  %v9785_v4 = vld [vmem:[%s9598_s25] sm:$0xff] }
  0x44   : > { %792 = vrot.lane.b32.xlu1 %v9674_v41, %s9422_s13  ;;  %14039 = vst [vmem:[#allocation22_spill] sm:$0xff] %v9712_v62  ;;  %v9752_v36 = vpack.c.b16 %v709_v21, %v705_v20  ;;  %v9758_v39 = vpack.c.b16 %v708_v27, %v704_v19  ;;  %v706_v42 = vunpack.c.l.b16 %v9748_v34  ;;  %v9789_v13 = vpack.c.bf16 %v603_v48, %v602_v46  ;;  %v9794_v18 = vld [vmem:[%s9598_s25 + $0x8] sm:$0xff]  ;;  %v9797_v19 = vld [vmem:[%s9598_s25 + $0x20] sm:$0xff]  ;;  %v9834_v23 = vld [vmem:[%s9598_s25 + $0x78] sm:$0xff] }
  0x45   : > { %14040 = vst [vmem:[#allocation23_spill] sm:$0xff] %v9714_v63  ;;  %v710_v45 = vunpack.c.l.b16 %v9750_v35  ;;  %v728_v51 = vunpack.c.l.b16 %v636_v37  ;;  %v732_v52 = vunpack.c.l.b16 %v638_v38  ;;  %v729_v53 = vunpack.c.h.b16 %v636_v37  ;;  %v9800_v20 = vld [vmem:[%s9598_s25 + $0x28] sm:$0xff] }
  0x46   : > { %810 = vrot.lane.b32.xlu0 %v9684_v47, %s9422_s13  ;;  %14041 = vst [vmem:[#allocation24_spill] sm:$0xff] %v9720_v2  ;;  %v733_v54 = vunpack.c.h.b16 %v638_v38  ;;  %v9791_v14 = vpack.c.bf16 %v607_v50, %v606_v49  ;;  %v609_v37 = vpack.c.bf16 %v9774_v0, %v9771_v56  ;;  %v611_v38 = vpack.c.bf16 %v9782_v3, %v9779_v1 }
  0x47   : > { %14042 = vst [vmem:[#allocation25_spill] sm:$0xff] %v9746_v33  ;;  %v9787_v11 = vpack.c.b16 %v710_v45, %v706_v42  ;;  %v9802_v21 = vpack.c.b16 %v732_v52, %v728_v51  ;;  %v608_v42 = vpack.c.bf16 %v9794_v18, %v9785_v4  ;;  %v610_v45 = vpack.c.bf16 %v9800_v20, %v9797_v19  ;;  %v9821_v51 = vld [vmem:[%s9598_s25 + $0x50] sm:$0xff] }
  0x48   : > { %796 = vrot.lane.b32.xlu2 %v9708_v60, %s9422_s13  ;;  %14043 = vst [vmem:[#allocation26_spill] sm:$0xff] %v9752_v36  ;;  %v9804_v27 = vpack.c.b16 %v733_v54, %v729_v53  ;;  %v730_v46 = vunpack.c.l.b16 %v9789_v13  ;;  %v734_v48 = vunpack.c.l.b16 %v9791_v14  ;;  %v674_v49 = vunpack.c.l.b16 %v609_v37 }
  0x49   : > { %14044 = vst [vmem:[#allocation27_spill] sm:$0xff] %v9758_v39  ;;  %v678_v50 = vunpack.c.l.b16 %v611_v38  ;;  %v672_v52 = vunpack.c.l.b16 %v608_v42  ;;  %v676_v53 = vunpack.c.l.b16 %v610_v45 }
  0x4a   : > { %14045 = vst [vmem:[#allocation28_spill] sm:$0xff] %v9787_v11  ;;  %v9825_v54 = vpack.c.b16 %v734_v48, %v730_v46  ;;  %v675_v48 = vunpack.c.h.b16 %v609_v37  ;;  %v9862_v37 = vld [vmem:[%s9598_s25 + $0x68] sm:$0xff] }
  0x4b   : > { %14046 = vst [vmem:[#allocation29_spill] sm:$0xff] %v9789_v13  ;;  %v9842_v46 = vpack.c.b16 %v676_v53, %v672_v52  ;;  %v9856_v52 = vld [vmem:[%s9598_s25 + $0x48] sm:$0xff]  ;;  %v9859_v53 = vld [vmem:[%s9598_s25 + $0x60] sm:$0xff] }
  0x4c   : > { %818 = vrot.lane.b32.xlu1 %v9714_v63, %s9422_s13  ;;  %14047 = vst [vmem:[#allocation30_spill] sm:$0xff] %v9791_v14  ;;  %v9831_v63 = vld [vmem:[%s9598_s25 + $0x70] sm:$0xff] }
  0x4d   : > { %14048 = vst [vmem:[#allocation31_spill] sm:$0xff] %v9802_v21 }
  0x4e   : > { %816 = vrot.lane.b32.xlu0 %v9720_v2, %s9422_s13  ;;  %14049 = vst [vmem:[#allocation32_spill] sm:$0xff] %v9804_v27 }
  0x4f   : > { %14050 = vst [vmem:[#allocation33_spill] sm:$0xff] %v9825_v54 }
  0x50   : > { %820 = vrot.lane.b32.xlu2 %v9746_v33, %s9422_s13  ;;  %v9828_v33 = vld [vmem:[%s9598_s25 + $0x58] sm:$0xff]  ;;  %14052 = vst [vmem:[#allocation35_spill] sm:$0xff] %v9842_v46 }
  0x51   : > { %v613_v47 = vpack.c.bf16 %v9828_v33, %v9821_v51 }
  0x53   : > { %v682_v60 = vunpack.c.l.b16 %v613_v47 }
  0x54   : > { %802 = vrot.lane.b32.xlu1 %v9752_v36, %s9422_s13  ;;  %v679_v36 = vunpack.c.h.b16 %v611_v38 }
  0x56   : > { %800 = vrot.lane.b32.xlu0 %v9758_v39, %s9422_s13  ;;  %v9853_v2 = vpack.c.b16 %v679_v36, %v675_v48  ;;  %v683_v36 = vunpack.c.h.b16 %v613_v47 }
  0x58   : > { %804 = vrot.lane.b32.xlu2 %v9787_v11, %s9422_s13  ;;  %v615_v11 = vpack.c.bf16 %v9834_v23, %v9831_v63  ;;  %14053 = vst [vmem:[#allocation36_spill] sm:$0xff] %v9853_v2 }
  0x5a   : > { %v686_v40 = vunpack.c.l.b16 %v615_v11  ;;  %v687_v48 = vunpack.c.h.b16 %v615_v11 }
  0x5c   : > { %826 = vrot.lane.b32.xlu1 %v9804_v27, %s9422_s13  ;;  %v9836_v27 = vpack.c.b16 %v678_v50, %v674_v49  ;;  %v673_v49 = vunpack.c.h.b16 %v608_v42  ;;  %v677_v50 = vunpack.c.h.b16 %v610_v45  ;;  %v614_v45 = vpack.c.bf16 %v9862_v37, %v9859_v53 }
  0x5e   : > { %824 = vrot.lane.b32.xlu0 %v9802_v21, %s9422_s13  ;;  %14051 = vst [vmem:[#allocation34_spill] sm:$0xff] %v9836_v27  ;;  %v9851_v21 = vld [vmem:[%s9598_s25 + $0x40] sm:$0xff]  ;;  %v9864_v38 = vpack.c.b16 %v677_v50, %v673_v49  ;;  %v9878_v49 = vpack.c.b16 %v687_v48, %v683_v36  ;;  %v685_v11 = vunpack.c.h.b16 %v614_v45  ;;  %v9897_v36 = vld [vmem:[%s9598_s25 + $0xb0] sm:$0xff]  ;;  %v9900_v48 = vld [vmem:[%s9598_s25 + $0xb8] sm:$0xff] }
  0x5f   : > { %v612_v42 = vpack.c.bf16 %v9856_v52, %v9851_v21  ;;  %14061 = vst [vmem:[#allocation44_spill] sm:$0xff] %v9897_v36 }
  0x60   : > { %828 = vrot.lane.b32.xlu2 %v9825_v54, %s9422_s13  ;;  %14054 = vst [vmem:[#allocation37_spill] sm:$0xff] %v9864_v38  ;;  %v9866_v54 = vpack.c.b16 %v686_v40, %v682_v60  ;;  %v684_v60 = vunpack.c.l.b16 %v614_v45 }
  0x61   : > { %v680_v40 = vunpack.c.l.b16 %v612_v42  ;;  %14056 = vst [vmem:[#allocation39_spill] sm:$0xff] %v9878_v49  ;;  %v681_v47 = vunpack.c.h.b16 %v612_v42  ;;  %v9908_v42 = vpack.c.bf16 %v9900_v48, %v9897_v36 }
  0x62   : > { %14055 = vst [vmem:[#allocation38_spill] sm:$0xff] %v9866_v54 }
  0x63   : > { %v9880_v50 = vpack.c.b16 %v684_v60, %v680_v40  ;;  %14062 = vst [vmem:[#allocation45_spill] sm:$0xff] %v9900_v48  ;;  %v694_v60 = vunpack.c.l.b16 %v9908_v42 }
  0x64   : > { %772 = vrot.lane.b32.xlu1 %v9836_v27, %s9422_s13  ;;  %v9886_v27 = vpack.c.b16 %v685_v11, %v681_v47 }
  0x65   : > { %14057 = vst [vmem:[#allocation40_spill] sm:$0xff] %v9880_v50 }
  0x66   : > { %768 = vrot.lane.b32.xlu0 %v9842_v46, %s9422_s13  ;;  %14058 = vst [vmem:[#allocation41_spill] sm:$0xff] %v9886_v27 }
  0x68   : > { %774 = vrot.lane.b32.xlu2 %v9853_v2, %s9422_s13 }
  0x6c   : > { %780 = vrot.lane.b32.xlu1 %v9866_v54, %s9422_s13  ;;  %v9891_v54 = vld [vmem:[%s9598_s25 + $0x90] sm:$0xff] }
  0x6d   : > { %14059 = vst [vmem:[#allocation42_spill] sm:$0xff] %v9891_v54 }
  0x6e   : > { %770 = vrot.lane.b32.xlu0 %v9864_v38, %s9422_s13  ;;  %v9894_v38 = vld [vmem:[%s9598_s25 + $0x98] sm:$0xff] }
  0x6f   : > { %14060 = vst [vmem:[#allocation43_spill] sm:$0xff] %v9894_v38  ;;  %v9904_v40 = vpack.c.bf16 %v9894_v38, %v9891_v54 }
  0x70   : > { %782 = vrot.lane.b32.xlu2 %v9878_v49, %s9422_s13 }
  0x71   : > { %v690_v45 = vunpack.c.l.b16 %v9904_v40 }
  0x73   : > { %v9912_v11 = vpack.c.b16 %v694_v60, %v690_v45 }
  0x75   : > { %14063 = vst [vmem:[#allocation46_spill] sm:$0xff] %v9912_v11 }
  0x76   : > { %776 = vrot.lane.b32.xlu0 %v9880_v50, %s9422_s13 }
  0x7e   : > { %778 = vrot.lane.b32.xlu0 %v9886_v27, %s9422_s13 }
  0x86   : > { %788 = vrot.lane.b32.xlu0 %v9912_v11, %s9422_s13 }
  0x9a   : > { %v795_v47 = vpop.permute.xlu2 %794 }
  0xa2   : > { %v9916_v27 = vpop.permute.xlu2 %796 }
  0xa3   : > { %14064 = vst [vmem:[#allocation47_spill] sm:$0xff] %v9916_v27  ;;  %v843_v24 = vsel %vm832_vm0, %v795_v47, %v9916_v27 }
  0xa4   : > { %v1003_v39 = vunpack.c.l.bf16 %v843_v24  ;;  %v1007_v60 = vunpack.c.h.bf16 %v843_v24 }
  0xa6   : > { %v9935_v38 = vmax.f32 %v9633_v15, %v1003_v39 }
  0xa8   : > { %14069 = vst [vmem:[#allocation52_spill] sm:$0xff] %v9935_v38 }
  0xaa   : > { %v9926_v50 = vpop.permute.xlu2 %820 }
  0xab   : > { %14068 = vst [vmem:[#allocation51_spill] sm:$0xff] %v9926_v50 }
  0xae   : > { %v9918_v49 = vpop.permute.xlu1 %812 }
  0xaf   : > { %14065 = vst [vmem:[#allocation48_spill] sm:$0xff] %v9918_v49 }
  0xb0   : > { %v9920_v2 = vpop.permute.xlu0 %808 }
  0xb1   : > { %14066 = vst [vmem:[#allocation49_spill] sm:$0xff] %v9920_v2 }
  0xb6   : > { %v9924_v41 = vpop.permute.xlu1 %792 }
  0xb7   : > { %14067 = vst [vmem:[#allocation50_spill] sm:$0xff] %v9924_v41  ;;  %v842_v11 = vsel %vm832_vm0, %v9924_v41, %v795_v47 }
  0xb8   : > { %v811_v45 = vpop.permute.xlu0 %810  ;;  %v1002_v13 = vunpack.c.l.bf16 %v842_v11  ;;  %v1006_v62 = vunpack.c.h.bf16 %v842_v11 }
  0xb9   : > { %v848_v46 = vsel %vm832_vm0, %v9920_v2, %v811_v45  ;;  %v849_v14 = vsel %vm832_vm0, %v811_v45, %v9918_v49 }
  0xba   : > { %v1018_v61 = vunpack.c.l.bf16 %v848_v46  ;;  %v1019_v27 = vunpack.c.l.bf16 %v849_v14  ;;  %v1022_v48 = vunpack.c.h.bf16 %v848_v46  ;;  %v1023_v36 = vunpack.c.h.bf16 %v849_v14 }
  0xbb   : > { %v9938_v24 = vmax.f32 %v9627_v12, %v1002_v13  ;;  %v9957_v12 = vmax.f32 %v9639_v17, %v1007_v60 }
  0xbc   : > { %v9941_v47 = vmax.f32 %v9611_v6, %v1018_v61  ;;  %v9944_v41 = vmax.f32 %v9614_v7, %v1019_v27  ;;  %v9947_v45 = vmax.f32 %v9619_v9, %v1022_v48  ;;  %v9950_v11 = vmax.f32 %v9622_v10, %v1023_v36  ;;  %v9970_v36 = vpop.permute.xlu2 %804 }
  0xbd   : > { %14072 = vst [vmem:[#allocation55_spill] sm:$0xff] %v9957_v12  ;;  %v9960_v6 = vmax.f32 %v9636_v16, %v1006_v62  ;;  %v1118_v7 = vpack.c.bf16 %v9935_v38, %v9938_v24 }
  0xbe   : > { %14070 = vst [vmem:[#allocation53_spill] sm:$0xff] %v9944_v41  ;;  %v1126_v14 = vpack.c.bf16 %v9944_v41, %v9941_v47  ;;  %v1128_v15 = vpack.c.bf16 %v9950_v11, %v9947_v45  ;;  %v819_v9 = vpop.permute.xlu1 %818 }
  0xbf   : > { %14071 = vst [vmem:[#allocation54_spill] sm:$0xff] %v9950_v11  ;;  %v852_v10 = vsel %vm832_vm0, %v819_v9, %v9926_v50  ;;  %v1120_v48 = vpack.c.bf16 %v9957_v12, %v9960_v6  ;;  %v9988_v12 = vld [vmem:[%s9598_s25 + $0x80] sm:$0xff] }
  0xc0   : > { %14073 = vst [vmem:[#allocation56_spill] sm:$0xff] %v9960_v6  ;;  %v9964_v61 = vpop.permute.xlu0 %816  ;;  %v1211_v39 = vunpack.c.h.b16 %v1126_v14  ;;  %v1215_v13 = vunpack.c.h.b16 %v1128_v15  ;;  %v1210_v27 = vunpack.c.l.b16 %v1126_v14  ;;  %v1027_v17 = vunpack.c.l.bf16 %v852_v10 }
  0xc1   : > { %14074 = vst [vmem:[#allocation57_spill] sm:$0xff] %v9964_v61  ;;  %v851_v46 = vsel %vm832_vm0, %v9964_v61, %v819_v9  ;;  %v1031_v16 = vunpack.c.h.bf16 %v852_v10  ;;  %v1214_v62 = vunpack.c.l.b16 %v1128_v15 }
  0xc2   : > { %14075 = vst [vmem:[#allocation58_spill] sm:$0xff] %v9970_v36  ;;  %v1026_v60 = vunpack.c.l.bf16 %v851_v46  ;;  %v1030_v11 = vunpack.c.h.bf16 %v851_v46  ;;  %v1255_v41 = vpack.c.b16 %v1215_v13, %v1211_v39  ;;  %v9975_v14 = vmax.f32 %v9654_v26, %v1027_v17  ;;  %v9991_v46 = vld [vmem:[%s9598_s25 + $0x88] sm:$0xff]  ;;  %v9995_v26 = vld [vmem:[%s9598_s25 + $0xa0] sm:$0xff] }
  0xc3   : > { %v9978_v9 = vmax.f32 %v9662_v30, %v1031_v16  ;;  %v1254_v38 = vpack.c.b16 %v1214_v62, %v1210_v27  ;;  %v9998_v30 = vld [vmem:[%s9598_s25 + $0xa8] sm:$0xff]  ;;  %v1199_v39 = vunpack.c.h.b16 %v1120_v48  ;;  %v1198_v27 = vunpack.c.l.b16 %v1120_v48 }
  0xc4   : > { %14076 = vst [vmem:[#allocation59_spill] sm:$0xff] %v9975_v14  ;;  %v9981_v10 = vmax.f32 %v9651_v25, %v1026_v60  ;;  %v9984_v15 = vmax.f32 %v9659_v29, %v1030_v11  ;;  %1308 = vrot.lane.b32.xlu2 %v1255_v41, %s9423_s15  ;;  %v1195_v11 = vunpack.c.h.b16 %v1118_v7  ;;  %v1194_v41 = vunpack.c.l.b16 %v1118_v7 }
  0xc5   : > { %14077 = vst [vmem:[#allocation60_spill] sm:$0xff] %v9978_v9  ;;  %1306 = vrot.lane.b32.xlu1 %v1254_v38, %s9423_s15  ;;  %v616_v17 = vpack.c.bf16 %v9991_v46, %v9988_v12 }
  0xc6   : > { %14078 = vst [vmem:[#allocation61_spill] sm:$0xff] %v9981_v10  ;;  %v1130_v25 = vpack.c.bf16 %v9975_v14, %v9981_v10  ;;  %v1132_v29 = vpack.c.bf16 %v9978_v9, %v9984_v15  ;;  %v803_v13 = vpop.permute.xlu1 %802  ;;  %v618_v14 = vpack.c.bf16 %v9998_v30, %v9995_v26  ;;  %v1247_v2 = vpack.c.b16 %v1199_v39, %v1195_v11  ;;  %v10020_v10 = vpop.permute.xlu2 %828 }
  0xc7   : > { %14079 = vst [vmem:[#allocation62_spill] sm:$0xff] %v9984_v15  ;;  %v846_v38 = vsel %vm832_vm0, %v803_v13, %v9970_v36  ;;  %v1246_v36 = vpack.c.b16 %v1198_v27, %v1194_v41 }
  0xc8   : > { %v10006_v16 = vpop.permute.xlu0 %800  ;;  %v1218_v62 = vunpack.c.l.b16 %v1130_v25  ;;  %v1222_v60 = vunpack.c.l.b16 %v1132_v29  ;;  %v1011_v61 = vunpack.c.l.bf16 %v846_v38  ;;  %v1015_v50 = vunpack.c.h.bf16 %v846_v38 }
  0xc9   : > { %v845_v9 = vsel %vm832_vm0, %v10006_v16, %v803_v13  ;;  %v692_v11 = vunpack.c.l.b16 %v618_v14 }
  0xca   : > { %v1010_v7 = vunpack.c.l.bf16 %v845_v9  ;;  %v1014_v48 = vunpack.c.h.bf16 %v845_v9  ;;  %v1258_v49 = vpack.c.b16 %v1222_v60, %v1218_v62  ;;  %v10015_v54 = vmax.f32 %v9700_v57, %v1011_v61 }
  0xcb   : > { %v10018_v15 = vmax.f32 %v9706_v59, %v1015_v50  ;;  %v688_v9 = vunpack.c.l.b16 %v616_v17  ;;  %v1219_v57 = vunpack.c.h.b16 %v1130_v25  ;;  %v1223_v59 = vunpack.c.h.b16 %v1132_v29 }
  0xcc   : > { %v10023_v6 = vmax.f32 %v9695_v55, %v1010_v7  ;;  %v10026_v13 = vmax.f32 %v9703_v58, %v1014_v48  ;;  %1292 = vrot.lane.b32.xlu2 %v1247_v2, %s9423_s15  ;;  %1314 = vrot.lane.b32.xlu0 %v1258_v49, %s9423_s15 }
  0xcd   : > { %14080 = vst [vmem:[#allocation63_spill] sm:$0xff] %v10018_v15  ;;  %1290 = vrot.lane.b32.xlu1 %v1246_v36, %s9423_s15  ;;  %v10043_v49 = vpack.c.b16 %v692_v11, %v688_v9  ;;  %v1259_v27 = vpack.c.b16 %v1223_v59, %v1219_v57  ;;  %v689_v57 = vunpack.c.h.b16 %v616_v17  ;;  %v693_v59 = vunpack.c.h.b16 %v618_v14 }
  0xce   : > { %v10033_v50 = vpack.c.bf16 %v10015_v54, %v10023_v6  ;;  %v10037_v55 = vpack.c.bf16 %v10018_v15, %v10026_v13  ;;  %v827_v58 = vpop.permute.xlu1 %826 }
  0xcf   : > { %v855_v2 = vsel %vm832_vm0, %v827_v58, %v10020_v10  ;;  %14081 = vst [vmem:[#allocation64_spill] sm:$0xff] %v10043_v49 }
  0xd0   : > { %v10039_v61 = vpop.permute.xlu0 %824  ;;  %v1202_v36 = vunpack.c.l.b16 %v10033_v50  ;;  %v1206_v25 = vunpack.c.l.b16 %v10037_v55  ;;  %v1035_v39 = vunpack.c.l.bf16 %v855_v2  ;;  %v1039_v41 = vunpack.c.h.bf16 %v855_v2 }
  0xd1   : > { %v854_v29 = vsel %vm832_vm0, %v10039_v61, %v827_v58  ;;  %v691_v58 = vunpack.c.h.b16 %v9904_v40 }
  0xd2   : > { %v1034_v38 = vunpack.c.l.bf16 %v854_v29  ;;  %v1038_v62 = vunpack.c.h.bf16 %v854_v29  ;;  %v1250_v60 = vpack.c.b16 %v1206_v25, %v1202_v36  ;;  %v10050_v7 = vmax.f32 %v9738_v28, %v1035_v39  ;;  %v775_v28 = vpop.permute.xlu2 %774 }
  0xd3   : > { %v10053_v48 = vmax.f32 %v9744_v32, %v1039_v41  ;;  %v695_v32 = vunpack.c.h.b16 %v9908_v42  ;;  %v10072_v29 = vpack.c.b16 %v693_v59, %v689_v57 }
  0xd4   : > { %14082 = vst [vmem:[#allocation65_spill] sm:$0xff] %v10050_v7  ;;  %v10056_v9 = vmax.f32 %v9733_v22, %v1034_v38  ;;  %v10059_v11 = vmax.f32 %v9741_v31, %v1038_v62  ;;  %784 = vrot.lane.b32.xlu2 %v10043_v49, %s9422_s13  ;;  %1298 = vrot.lane.b32.xlu0 %v1250_v60, %s9423_s15 }
  0xd5   : > { %14083 = vst [vmem:[#allocation66_spill] sm:$0xff] %v10053_v48  ;;  %1316 = vrot.lane.b32.xlu1 %v1259_v27, %s9423_s15  ;;  %v10075_v27 = vpack.c.b16 %v695_v32, %v691_v58 }
  0xd6   : > { %v1134_v22 = vpack.c.bf16 %v10050_v7, %v10056_v9  ;;  %v1136_v31 = vpack.c.bf16 %v10053_v48, %v10059_v11  ;;  %v773_v2 = vpop.permute.xlu1 %772  ;;  %14084 = vst [vmem:[#allocation67_spill] sm:$0xff] %v10072_v29 }
  0xd7   : > { %v835_v36 = vsel %vm832_vm0, %v773_v2, %v775_v28  ;;  %14085 = vst [vmem:[#allocation68_spill] sm:$0xff] %v10075_v27 }
  0xd8   : > { %v769_v25 = vpop.permute.xlu0 %768  ;;  %v1227_v14 = vunpack.c.h.b16 %v1134_v22  ;;  %v1231_v17 = vunpack.c.h.b16 %v1136_v31  ;;  %v980_v39 = vunpack.c.l.bf16 %v835_v36  ;;  %v984_v41 = vunpack.c.h.bf16 %v835_v36 }
  0xd9   : > { %v884_v40 = vsel %vm832_vm0, %v775_v28, %v769_v25  ;;  %v1226_v28 = vunpack.c.l.b16 %v1134_v22  ;;  %v1230_v58 = vunpack.c.l.b16 %v1136_v31 }
  0xda   : > { %v981_v42 = vunpack.c.l.bf16 %v884_v40  ;;  %v985_v38 = vunpack.c.h.bf16 %v884_v40  ;;  %v1263_v62 = vpack.c.b16 %v1231_v17, %v1227_v14  ;;  %v10078_v60 = vmax.f32 %v9771_v56, %v980_v39  ;;  %v783_v32 = vpop.permute.xlu2 %782 }
  0xdb   : > { %v10081_v48 = vmax.f32 %v9779_v1, %v984_v41  ;;  %v1203_v56 = vunpack.c.h.b16 %v10033_v50  ;;  %v1207_v1 = vunpack.c.h.b16 %v10037_v55  ;;  %v1262_v14 = vpack.c.b16 %v1230_v58, %v1226_v28 }
  0xdc   : > { %v10084_v57 = vmax.f32 %v9774_v0, %v981_v42  ;;  %v10087_v59 = vmax.f32 %v9782_v3, %v985_v38  ;;  %786 = vrot.lane.b32.xlu2 %v10072_v29, %s9422_s13  ;;  %1324 = vrot.lane.b32.xlu0 %v1263_v62, %s9423_s15  ;;  %v699_v58 = vunpack.c.h.b16 %v9678_v43 }
  0xdd   : > { %790 = vrot.lane.b32.xlu1 %v10075_v27, %s9422_s13  ;;  %v1251_v40 = vpack.c.b16 %v1207_v1, %v1203_v56  ;;  %v707_v56 = vunpack.c.h.b16 %v9748_v34 }
  0xde   : > { %v1107_v0 = vpack.c.bf16 %v10084_v57, %v10078_v60  ;;  %v1109_v3 = vpack.c.bf16 %v10087_v59, %v10081_v48  ;;  %v781_v22 = vpop.permute.xlu1 %780 }
  0xdf   : > { %v838_v7 = vsel %vm832_vm0, %v781_v22, %v783_v32 }
  0xe0   : > { %v771_v36 = vpop.permute.xlu0 %770  ;;  %v1173_v17 = vunpack.c.h.b16 %v1107_v0  ;;  %v1177_v39 = vunpack.c.h.b16 %v1109_v3  ;;  %v1172_v29 = vunpack.c.l.b16 %v1107_v0  ;;  %v1176_v27 = vunpack.c.l.b16 %v1109_v3 }
  0xe1   : > { %v833_v31 = vsel %vm832_vm0, %v769_v25, %v771_v36  ;;  %v834_v41 = vsel %vm832_vm0, %v771_v36, %v773_v2  ;;  %v988_v1 = vunpack.c.l.bf16 %v838_v7 }
  0xe2   : > { %v978_v50 = vunpack.c.l.bf16 %v833_v31  ;;  %v979_v42 = vunpack.c.l.bf16 %v834_v41  ;;  %v982_v55 = vunpack.c.h.bf16 %v833_v31  ;;  %v983_v38 = vunpack.c.h.bf16 %v834_v41 }
  0xe3   : > { %v1237_v62 = vpack.c.b16 %v1177_v39, %v1173_v17  ;;  %v1236_v36 = vpack.c.b16 %v1176_v27, %v1172_v29 }
  0xe4   : > { %v10104_v49 = vmax.f32 %v9785_v4, %v978_v50  ;;  %v10107_v28 = vmax.f32 %v9794_v18, %v979_v42  ;;  %v10110_v25 = vmax.f32 %v9797_v19, %v982_v55  ;;  %v10113_v2 = vmax.f32 %v9800_v20, %v983_v38  ;;  %1322 = vrot.lane.b32.xlu2 %v1262_v14, %s9423_s15 }
  0xe5   : > { %1300 = vrot.lane.b32.xlu1 %v1251_v40, %s9423_s15  ;;  %1272 = vrot.lane.b32.xlu0 %v1237_v62, %s9423_s15  ;;  %v703_v4 = vunpack.c.h.b16 %v9680_v44  ;;  %v711_v18 = vunpack.c.h.b16 %v9750_v35  ;;  %v992_v19 = vunpack.c.h.bf16 %v838_v7  ;;  %v10132_v35 = vmax.f32 %v9821_v51, %v988_v1 }
  0xe6   : > { %v1106_v20 = vpack.c.bf16 %v10107_v28, %v10104_v49  ;;  %v1108_v0 = vpack.c.bf16 %v10113_v2, %v10110_v25 }
  0xe7   : > { %v10126_v14 = vpack.c.b16 %v703_v4, %v699_v58  ;;  %v10128_v17 = vpack.c.b16 %v711_v18, %v707_v56  ;;  %v10135_v7 = vmax.f32 %v9831_v63, %v992_v19 }
  0xe8   : > { %v777_v3 = vpop.permute.xlu0 %776  ;;  %v1171_v27 = vunpack.c.h.b16 %v1106_v20  ;;  %v1175_v31 = vunpack.c.h.b16 %v1108_v0  ;;  %v1170_v51 = vunpack.c.l.b16 %v1106_v20 }
  0xe9   : > { %14086 = vst [vmem:[#allocation69_spill] sm:$0xff] %v10126_v14  ;;  %v888_v43 = vsel %vm832_vm0, %v783_v32, %v777_v3  ;;  %v1174_v32 = vunpack.c.l.b16 %v1108_v0 }
  0xea   : > { %14087 = vst [vmem:[#allocation70_spill] sm:$0xff] %v10128_v17  ;;  %v989_v44 = vunpack.c.l.bf16 %v888_v43  ;;  %v993_v34 = vunpack.c.h.bf16 %v888_v43  ;;  %v1235_v40 = vpack.c.b16 %v1175_v31, %v1171_v27 }
  0xeb   : > { %v1234_v42 = vpack.c.b16 %v1174_v32, %v1170_v51  ;;  %v8778_v51 = vld [vmem:[%s13892_s3 + $0x38] sm:$0xff] }
  0xec   : > { %1270 = vrot.lane.b32.xlu2 %v1236_v36, %s9423_s15  ;;  %v10139_v39 = vmax.f32 %v9828_v33, %v989_v44  ;;  %v10142_v29 = vmax.f32 %v9834_v23, %v993_v34  ;;  %v719_v34 = vunpack.c.h.b16 %v9616_v8  ;;  %9129 = vmatpush.bf16.msra.mxu3 %v8778_v51  ;;  %v8775_v8 = vld [vmem:[%s13892_s3 + $0x20] sm:$0xff] }
  0xed   : > { %798 = vrot.lane.b32.xlu1 %v10126_v14, %s9422_s13  ;;  %806 = vrot.lane.b32.xlu0 %v10128_v17, %s9422_s13 }
  0xee   : > { %v1111_v63 = vpack.c.bf16 %v10139_v39, %v10132_v35  ;;  %v1113_v33 = vpack.c.bf16 %v10142_v29, %v10135_v7  ;;  %9128 = vmatpush.bf16.msra.mxu2 %v8778_v51  ;;  %1896 = vmatpush.bf16.msra.mxu0 %v8778_v51  ;;  %v8792_v51 = vld [vmem:[%s13892_s3 + $0xa8] sm:$0xff] }
  0xf0   : > { %v779_v41 = vpop.permute.xlu0 %778  ;;  %v1181_v4 = vunpack.c.h.b16 %v1111_v63  ;;  %v1185_v56 = vunpack.c.h.b16 %v1113_v33  ;;  %v1184_v0 = vunpack.c.l.b16 %v1113_v33 }
  0xf1   : > { %v836_v23 = vsel %vm832_vm0, %v777_v3, %v779_v41  ;;  %v837_v50 = vsel %vm832_vm0, %v779_v41, %v781_v22  ;;  %v1180_v22 = vunpack.c.l.b16 %v1111_v63  ;;  %v8777_v63 = vld [vmem:[%s13892_s3 + $0x30] sm:$0xff]  ;;  %v8774_v41 = vld [vmem:[%s13892_s3 + $0x18] sm:$0xff] }
  0xf2   : > { %v986_v55 = vunpack.c.l.bf16 %v836_v23  ;;  %v987_v38 = vunpack.c.l.bf16 %v837_v50  ;;  %v990_v62 = vunpack.c.h.bf16 %v836_v23  ;;  %v991_v58 = vunpack.c.h.bf16 %v837_v50  ;;  %9131 = vmatpush.bf16.msra.mxu3 %v8777_v63  ;;  %9130 = vmatpush.bf16.msra.mxu2 %v8777_v63  ;;  %v8772_v23 = vld [vmem:[%s13892_s3 + $0x8] sm:$0xff]  ;;  %v8786_v50 = vld [vmem:[%s13892_s3 + $0x78] sm:$0xff] }
  0xf3   : > { %1897 = vmatpush.bf16.msra.mxu0 %v8777_v63  ;;  %1945 = vmatpush.bf16.msra.mxu1 %v8786_v50  ;;  %v8800_v63 = vld [vmem:[%s13892_s3 + $0xe8] sm:$0xff] }
  0xf4   : > { %v10155_v18 = vmax.f32 %v9851_v21, %v986_v55  ;;  %v10158_v1 = vmax.f32 %v9856_v52, %v987_v38  ;;  %v10161_v19 = vmax.f32 %v9859_v53, %v990_v62  ;;  %v10164_v20 = vmax.f32 %v9862_v37, %v991_v58  ;;  %1268 = vrot.lane.b32.xlu2 %v1235_v40, %s9423_s15  ;;  %v8773_v40 = vld [vmem:[%s13892_s3 + $0x10] sm:$0xff]  ;;  %v8784_v62 = vld [vmem:[%s13892_s3 + $0x68] sm:$0xff]  ;;  %v8783_v58 = vld [vmem:[%s13892_s3 + $0x60] sm:$0xff] }
  0xf5   : > { %1266 = vrot.lane.b32.xlu1 %v1234_v42, %s9423_s15  ;;  %v1241_v52 = vpack.c.b16 %v1185_v56, %v1181_v4  ;;  %v1240_v53 = vpack.c.b16 %v1184_v0, %v1180_v22  ;;  %v715_v37 = vunpack.c.h.b16 %v9608_v5  ;;  %v8776_v5 = vld [vmem:[%s13892_s3 + $0x28] sm:$0xff]  ;;  %v8771_v42 = vld [vmem:[%s13892_s3] sm:$0xff]  ;;  %v8785_v55 = vld [vmem:[%s13892_s3 + $0x70] sm:$0xff] }
  0xf6   : > { %v1110_v3 = vpack.c.bf16 %v10158_v1, %v10155_v18  ;;  %v1112_v21 = vpack.c.bf16 %v10164_v20, %v10161_v19  ;;  %9133 = vmatpush.bf16.msra.mxu3 %v8776_v5  ;;  %9132 = vmatpush.bf16.msra.mxu2 %v8776_v5  ;;  %v8782_v56 = vld [vmem:[%s13892_s3 + $0x58] sm:$0xff]  ;;  %v8781_v22 = vld [vmem:[%s13892_s3 + $0x50] sm:$0xff] }
  0xf7   : > { %v10180_v32 = vpack.c.b16 %v719_v34, %v715_v37  ;;  %1898 = vmatpush.bf16.msra.mxu0 %v8776_v5  ;;  %1946 = vmatpush.bf16.msra.mxu1 %v8785_v55 }
  0xf8   : > { %v1178_v36 = vunpack.c.l.b16 %v1110_v3  ;;  %v1182_v43 = vunpack.c.l.b16 %v1112_v21  ;;  %v1179_v27 = vunpack.c.h.b16 %v1110_v3  ;;  %v1183_v31 = vunpack.c.h.b16 %v1112_v21  ;;  %v8780_v3 = vld [vmem:[%s13892_s3 + $0x48] sm:$0xff]  ;;  %v8794_v21 = vld [vmem:[%s13892_s3 + $0xb8] sm:$0xff] }
  0xf9   : > { %14088 = vst [vmem:[#allocation71_spill] sm:$0xff] %v10180_v32 }
  0xfa   : > { %v1238_v44 = vpack.c.b16 %v1182_v43, %v1178_v36  ;;  %v1239_v33 = vpack.c.b16 %v1183_v31, %v1179_v27  ;;  %9135 = vmatpush.bf16.msra.mxu3 %v8775_v8  ;;  %9134 = vmatpush.bf16.msra.mxu2 %v8775_v8  ;;  %v8779_v36 = vld [vmem:[%s13892_s3 + $0x40] sm:$0xff]  ;;  %v8793_v43 = vld [vmem:[%s13892_s3 + $0xb0] sm:$0xff] }
  0xfb   : > { %1899 = vmatpush.bf16.msra.mxu0 %v8775_v8  ;;  %1947 = vmatpush.bf16.msra.mxu1 %v8784_v62 }
  0xfc   : > { %1280 = vrot.lane.b32.xlu2 %v1241_v52, %s9423_s15  ;;  %1274 = vrot.lane.b32.xlu0 %v1238_v44, %s9423_s15  ;;  %v8802_v52 = vld [vmem:[%s13892_s3 + $0xf8] sm:$0xff]  ;;  %v10248_v44 = vpop.permute.xlu0 %788 }
  0xfd   : > { %1278 = vrot.lane.b32.xlu1 %v1240_v53, %s9423_s15  ;;  %v8801_v53 = vld [vmem:[%s13892_s3 + $0xf0] sm:$0xff] }
  0xfe   : > { %9137 = vmatpush.bf16.msra.mxu3 %v8774_v41  ;;  %9136 = vmatpush.bf16.msra.mxu2 %v8774_v41 }
  0xff   : > { %1900 = vmatpush.bf16.msra.mxu0 %v8774_v41  ;;  %1948 = vmatpush.bf16.msra.mxu1 %v8783_v58 }
 0x102   : > { %9139 = vmatpush.bf16.msra.mxu3 %v8773_v40  ;;  %9138 = vmatpush.bf16.msra.mxu2 %v8773_v40 }
 0x103   : > { %1901 = vmatpush.bf16.msra.mxu0 %v8773_v40  ;;  %1949 = vmatpush.bf16.msra.mxu1 %v8782_v56 }
 0x104   : > { %814 = vrot.lane.b32.xlu2 %v10180_v32, %s9422_s13 }
 0x105   : > { %1276 = vrot.lane.b32.xlu1 %v1239_v33, %s9423_s15 }
 0x106   : > { %9141 = vmatpush.bf16.msra.mxu3 %v8772_v23  ;;  %9140 = vmatpush.bf16.msra.mxu2 %v8772_v23 }
 0x107   : > { %1902 = vmatpush.bf16.msra.mxu0 %v8772_v23  ;;  %1950 = vmatpush.bf16.msra.mxu1 %v8781_v22 }
 0x10a   : > { %9143 = vmatpush.bf16.msra.mxu3 %v8771_v42  ;;  %9142 = vmatpush.bf16.msra.mxu2 %v8771_v42 }
 0x10b   : > { %1903 = vmatpush.bf16.msra.mxu0 %v8771_v42  ;;  %1951 = vmatpush.bf16.msra.mxu1 %v8780_v3  ;;  %v8791_v3 = vld [vmem:[%s13892_s3 + $0xa0] sm:$0xff] }
 0x10e   : > { %1994 = vmatpush.bf16.msrb.mxu2 %v8794_v21  ;;  %2043 = vmatpush.bf16.msrb.mxu3 %v8802_v52 }
 0x10f   : > { %1952 = vmatpush.bf16.msra.mxu1 %v8779_v36 }
 0x112   : > { %1995 = vmatpush.bf16.msrb.mxu2 %v8793_v43  ;;  %2044 = vmatpush.bf16.msrb.mxu3 %v8801_v53 }
 0x116   : > { %1996 = vmatpush.bf16.msrb.mxu2 %v8792_v51  ;;  %2045 = vmatpush.bf16.msrb.mxu3 %v8800_v63  ;;  %v14093_v51 = vld [vmem:[#allocation56_spill] sm:$0xff] }
 0x11a   : > { %1997 = vmatpush.bf16.msrb.mxu2 %v8791_v3 }
 0x11e   : > { %v10212_v38 = vpop.permute.xlu2 %1308 }
 0x11f   : > { %14089 = vst [vmem:[#allocation72_spill] sm:$0xff] %v10212_v38 }
 0x126   : > { %v10220_v4 = vpop.permute.xlu2 %1292 }
 0x12e   : > { %v10228_v0 = vpop.permute.xlu2 %784 }
 0x136   : > { %v787_v37 = vpop.permute.xlu2 %786 }
 0x137   : > { %v839_v34 = vsel %vm832_vm0, %v10228_v0, %v787_v37  ;;  %v10252_v27 = vpop.permute.xlu1 %1306  ;;  %v840_v31 = vsel %vm832_vm0, %v787_v37, %v10248_v44 }
 0x138   : > { %14090 = vst [vmem:[#allocation73_spill] sm:$0xff] %v10252_v27  ;;  %v994_v33 = vunpack.c.l.bf16 %v839_v34  ;;  %v998_v5 = vunpack.c.h.bf16 %v839_v34  ;;  %v1346_v8 = vsel %vm1330_vm1, %v10252_v27, %v10212_v38  ;;  %v995_v41 = vunpack.c.l.bf16 %v840_v31 }
 0x139   : > { %v1516_v40 = vunpack.c.l.bf16 %v1346_v8  ;;  %v1520_v23 = vunpack.c.h.bf16 %v1346_v8  ;;  %v999_v50 = vunpack.c.h.bf16 %v840_v31 }
 0x13a   : > { %v10266_v42 = vmax.f32 %v9988_v12, %v994_v33  ;;  %v10269_v55 = vmax.f32 %v9995_v26, %v998_v5  ;;  %v10272_v62 = vmax.f32 %v9991_v46, %v995_v41  ;;  %v8799_v12 = vld [vmem:[%s13892_s3 + $0xe0] sm:$0xff]  ;;  %v8790_v33 = vld [vmem:[%s13892_s3 + $0x98] sm:$0xff] }
 0x13b   : > { %v10275_v58 = vmax.f32 %v9998_v30, %v999_v50  ;;  %v1580_v56 = vmax.f32 %v9941_v47, %v1516_v40  ;;  %v1584_v22 = vmax.f32 %v9947_v45, %v1520_v23  ;;  %2046 = vmatpush.bf16.msrb.mxu3 %v8799_v12  ;;  %v8798_v5 = vld [vmem:[%s13892_s3 + $0xd8] sm:$0xff]  ;;  %1998 = vmatpush.bf16.msrb.mxu2 %v8790_v33  ;;  %v8789_v23 = vld [vmem:[%s13892_s3 + $0x90] sm:$0xff]  ;;  %v8787_v33 = vld [vmem:[%s13892_s3 + $0x80] sm:$0xff] }
 0x13c   : > { %v10287_v46 = vpack.c.bf16 %v10272_v62, %v10266_v42  ;;  %v8797_v50 = vld [vmem:[%s13892_s3 + $0xd0] sm:$0xff] }
 0x13d   : > { %v10291_v26 = vpack.c.bf16 %v10275_v58, %v10269_v55  ;;  %v1624_v30 = vpack.c.bf16 %v1584_v22, %v1580_v56  ;;  %v14095_v12 = vld [vmem:[#allocation61_spill] sm:$0xff] }
 0x13e   : > { %v10293_v47 = vpop.permute.xlu2 %1322  ;;  %v10295_v45 = vpop.permute.xlu0 %1314  ;;  %v1186_v21 = vunpack.c.l.b16 %v10287_v46 }
 0x13f   : > { %14091 = vst [vmem:[#allocation74_spill] sm:$0xff] %v10293_v47  ;;  %1929 = vmatmul.bf16.vlgmr.msra.gmra.mxu3 %v1624_v30  ;;  %v10298_v52 = vpop.permute.xlu1 %1290  ;;  %v1190_v36 = vunpack.c.l.b16 %v10291_v26  ;;  %1999 = vmatpush.bf16.msrb.mxu2 %v8789_v23 }
 0x140   : > { %14092 = vst [vmem:[#allocation75_spill] sm:$0xff] %v10295_v45  ;;  %v1340_v43 = vsel %vm1330_vm1, %v10298_v52, %v10220_v4  ;;  %2047 = vmatpush.bf16.msrb.mxu3 %v8798_v5  ;;  %v8795_v5 = vld [vmem:[%s13892_s3 + $0xc0] sm:$0xff] }
 0x141   : > { %v1500_v53 = vunpack.c.l.bf16 %v1340_v43  ;;  %v1504_v37 = vunpack.c.h.bf16 %v1340_v43  ;;  %v1242_v34 = vpack.c.b16 %v1190_v36, %v1186_v21  ;;  %v14096_v21 = vld [vmem:[#allocation62_spill] sm:$0xff]  ;;  %v8788_v43 = vld [vmem:[%s13892_s3 + $0x88] sm:$0xff] }
 0x143   : > { %v1564_v31 = vmax.f32 %v9938_v24, %v1500_v53  ;;  %v1568_v63 = vmax.f32 %v14093_v51, %v1504_v37  ;;  %1282 = vrot.lane.b32.xlu2 %v1242_v34, %s9423_s15  ;;  %v8796_v53 = vld [vmem:[%s13892_s3 + $0xc8] sm:$0xff]  ;;  %2000 = vmatpush.bf16.msrb.mxu2 %v8788_v43 }
 0x144   : > { %2048 = vmatpush.bf16.msrb.mxu3 %v8797_v50 }
 0x145   : > { %v1616_v8 = vpack.c.bf16 %v1568_v63, %v1564_v31 }
 0x146   : > { %v1271_v41 = vpop.permute.xlu2 %1270  ;;  %v10313_v40 = vpop.permute.xlu0 %1298 }
 0x147   : > { %1919 = vmatmul.bf16.vlgmr.msra.gmra.mxu2 %v1616_v8  ;;  %v10315_v24 = vpop.permute.xlu1 %1316 }
 0x148   : > { %14094 = vst [vmem:[#allocation56_spill] sm:$0xff] %v10315_v24  ;;  %v1349_v56 = vsel %vm1330_vm1, %v10295_v45, %v10315_v24  ;;  %2049 = vmatpush.bf16.msrb.mxu3 %v8796_v53  ;;  %2001 = vmatpush.bf16.msrb.mxu2 %v8787_v33  ;;  %v14105_v45 = vld [vmem:[#allocation30_spill] sm:$0xff] }
 0x149   : > { %v1524_v22 = vunpack.c.l.bf16 %v1349_v56  ;;  %v1528_v3 = vunpack.c.h.bf16 %v1349_v56  ;;  %v735_v38 = vunpack.c.h.b16 %v14105_v45 }
 0x14b   : > { %v1588_v30 = vmax.f32 %v14095_v12, %v1524_v22  ;;  %v1592_v36 = vmax.f32 %v14096_v21, %v1528_v3 }
 0x14c   : > { %2050 = vmatpush.bf16.msrb.mxu3 %v8795_v5 }
 0x14d   : > { %v1628_v37 = vpack.c.bf16 %v1592_v36, %v1588_v30 }
 0x14e   : > { %v10334_v34 = vpop.permute.xlu2 %1268  ;;  %v10336_v31 = vpop.permute.xlu0 %1324 }
 0x14f   : > { %14097 = vst [vmem:[#allocation61_spill] sm:$0xff] %v10336_v31  ;;  %v791_v51 = vpop.permute.xlu1 %790  ;;  %v1332_v63 = vsel %vm1330_vm1, %v10334_v34, %v1271_v41  ;;  %1934 = vmatmul.bf16.gmra.mxu3 %v1628_v37  ;;  %v1352_v21 = vsel %vm1330_vm1, %v10293_v47, %v10336_v31 }
 0x150   : > { %v841_v8 = vsel %vm832_vm0, %v10248_v44, %v791_v51  ;;  %v892_v23 = vsel %vm832_vm0, %v791_v51, %v10228_v0  ;;  %v1477_v50 = vunpack.c.l.bf16 %v1332_v63  ;;  %v1481_v56 = vunpack.c.h.bf16 %v1332_v63  ;;  %v14098_v44 = vld [vmem:[#allocation42_spill] sm:$0xff]  ;;  %v14099_v0 = vld [vmem:[#allocation43_spill] sm:$0xff]  ;;  %v14100_v51 = vld [vmem:[#allocation44_spill] sm:$0xff] }
 0x151   : > { %v996_v22 = vunpack.c.l.bf16 %v841_v8  ;;  %v997_v3 = vunpack.c.l.bf16 %v892_v23  ;;  %v1000_v12 = vunpack.c.h.bf16 %v841_v8  ;;  %v1001_v30 = vunpack.c.h.bf16 %v892_v23  ;;  %v14101_v8 = vld [vmem:[#allocation45_spill] sm:$0xff] }
 0x152   : > { %v1541_v36 = vmax.f32 %v10107_v28, %v1477_v50  ;;  %v1545_v43 = vmax.f32 %v10113_v2, %v1481_v56  ;;  %v1532_v2 = vunpack.c.l.bf16 %v1352_v21  ;;  %v1536_v50 = vunpack.c.h.bf16 %v1352_v21 }
 0x153   : > { %v10356_v53 = vmax.f32 %v14098_v44, %v996_v22  ;;  %v10359_v37 = vmax.f32 %v14099_v0, %v997_v3  ;;  %v10362_v63 = vmax.f32 %v14100_v51, %v1000_v12  ;;  %v10365_v33 = vmax.f32 %v14101_v8, %v1001_v30  ;;  %v14102_v8 = vld [vmem:[#allocation21_spill] sm:$0xff] }
 0x154   : > { %v1605_v5 = vpack.c.bf16 %v1545_v43, %v1541_v36  ;;  %v1187_v22 = vunpack.c.h.b16 %v10287_v46  ;;  %v1191_v3 = vunpack.c.h.b16 %v10291_v26  ;;  %v14103_v46 = vld [vmem:[#allocation22_spill] sm:$0xff]  ;;  %v1596_v14 = vmax.f32 %v10056_v9, %v1532_v2 }
 0x155   : > { %v1115_v23 = vpack.c.bf16 %v10359_v37, %v10356_v53  ;;  %v1117_v28 = vpack.c.bf16 %v10365_v33, %v10362_v63  ;;  %v727_v32 = vunpack.c.h.b16 %v14103_v46  ;;  %v1600_v31 = vmax.f32 %v10059_v11, %v1536_v50 }
 0x156   : > { %1953 = vmatmul.bf16.vlgmr.msra.gmra.mxu1 %v1605_v5  ;;  %v10371_v56 = vpop.permute.xlu2 %1280  ;;  %v723_v5 = vunpack.c.h.b16 %v14102_v8  ;;  %v1243_v11 = vpack.c.b16 %v1191_v3, %v1187_v22 }
 0x157   : > { %v10375_v12 = vpop.permute.xlu1 %1300  ;;  %v10377_v30 = vpop.permute.xlu0 %1272  ;;  %v1189_v36 = vunpack.c.h.b16 %v1115_v23  ;;  %v1193_v43 = vunpack.c.h.b16 %v1117_v28  ;;  %v1188_v44 = vunpack.c.l.b16 %v1115_v23  ;;  %v1192_v0 = vunpack.c.l.b16 %v1117_v28  ;;  %v14104_v28 = vld [vmem:[#allocation29_spill] sm:$0xff] }
 0x158   : > { %v1343_v51 = vsel %vm1330_vm1, %v10313_v40, %v10375_v12  ;;  %v1333_v21 = vsel %vm1330_vm1, %v1271_v41, %v10377_v30  ;;  %v731_v24 = vunpack.c.h.b16 %v14104_v28  ;;  %v1632_v8 = vpack.c.bf16 %v1600_v31, %v1596_v14  ;;  %v9301_v28 = vld [vmem:[%s9598_s25 + $0xd0] sm:$0xff] }
 0x159   : > { %v1508_v26 = vunpack.c.l.bf16 %v1343_v51  ;;  %v1512_v17 = vunpack.c.h.bf16 %v1343_v51  ;;  %v1245_v47 = vpack.c.b16 %v1193_v43, %v1189_v36  ;;  %v1244_v23 = vpack.c.b16 %v1192_v0, %v1188_v44 }
 0x15a   : > { %v1478_v27 = vunpack.c.l.bf16 %v1333_v21  ;;  %v10394_v2 = vpack.c.b16 %v727_v32, %v723_v5  ;;  %v10396_v50 = vpack.c.b16 %v735_v38, %v731_v24  ;;  %v1482_v36 = vunpack.c.h.bf16 %v1333_v21  ;;  %v14110_v32 = vld [vmem:[#allocation50_spill] sm:$0xff]  ;;  %v9299_v5 = vld [vmem:[%s9598_s25 + $0x150] sm:$0xff] }
 0x15b   : > { %v1572_v15 = vmax.f32 %v10023_v6, %v1508_v26  ;;  %v1576_v41 = vmax.f32 %v10026_v13, %v1512_v17  ;;  %1288 = vrot.lane.b32.xlu1 %v1245_v47, %s9423_s15  ;;  %1286 = vrot.lane.b32.xlu0 %v1244_v23, %s9423_s15  ;;  %v14107_v6 = vld [vmem:[#allocation48_spill] sm:$0xff]  ;;  %v14108_v17 = vld [vmem:[#allocation49_spill] sm:$0xff] }
 0x15c   : > { %14106 = vst [vmem:[#allocation62_spill] sm:$0xff] %v10394_v2  ;;  %v10399_v45 = vmax.f32 %v10078_v60, %v1478_v27  ;;  %v9300_v26 = vld [vmem:[%s9598_s25 + $0x158] sm:$0xff] }
 0x15d   : > { %v1620_v51 = vpack.c.bf16 %v1576_v41, %v1572_v15  ;;  %v14109_v15 = vld [vmem:[#allocation47_spill] sm:$0xff] }
 0x15e   : > { %v815_v9 = vpop.permute.xlu2 %814 }
 0x15f   : > { %v799_v43 = vpop.permute.xlu1 %798  ;;  %v850_v13 = vsel %vm832_vm0, %v14107_v6, %v815_v9  ;;  %v904_v47 = vsel %vm832_vm0, %v815_v9, %v14108_v17  ;;  %1924 = vmatmul.bf16.gmra.mxu2 %v1620_v51  ;;  %1939 = vmatmul.bf16.gmra.mxu3 %v1632_v8  ;;  %v807_v44 = vpop.permute.xlu0 %806  ;;  %v9302_v51 = vld [vmem:[%s9598_s25 + $0xd8] sm:$0xff]  ;;  %v9303_v9 = vld [vmem:[%s9598_s25 + $0xf0] sm:$0xff] }
 0x160   : > { %v844_v14 = vsel %vm832_vm0, %v14109_v15, %v799_v43  ;;  %v896_v38 = vsel %vm832_vm0, %v799_v43, %v14110_v32  ;;  %v1020_v60 = vunpack.c.l.bf16 %v850_v13  ;;  %v1021_v27 = vunpack.c.l.bf16 %v904_v47  ;;  %v9304_v6 = vld [vmem:[%s9598_s25 + $0xf8] sm:$0xff] }
 0x161   : > { %v1004_v24 = vunpack.c.l.bf16 %v844_v14  ;;  %v1005_v31 = vunpack.c.l.bf16 %v896_v38  ;;  %v1008_v22 = vunpack.c.h.bf16 %v844_v14  ;;  %v1009_v3 = vunpack.c.h.bf16 %v896_v38  ;;  %v9306_v14 = vld [vmem:[%s9598_s25 + $0x178] sm:$0xff] }
 0x162   : > { %v1024_v0 = vunpack.c.h.bf16 %v850_v13  ;;  %v1025_v21 = vunpack.c.h.bf16 %v904_v47  ;;  %v10410_v46 = vmax.f32 %v9299_v5, %v1020_v60  ;;  %v10413_v23 = vmax.f32 %v9300_v26, %v1021_v27  ;;  %v9305_v47 = vld [vmem:[%s9598_s25 + $0x170] sm:$0xff]  ;;  %v14111_v38 = vld [vmem:[#allocation58_spill] sm:$0xff] }
 0x163   : > { %v10416_v41 = vmax.f32 %v9301_v28, %v1004_v24  ;;  %v10419_v8 = vmax.f32 %v9302_v51, %v1005_v31  ;;  %v10422_v43 = vmax.f32 %v9303_v9, %v1008_v22  ;;  %v10425_v17 = vmax.f32 %v9304_v6, %v1009_v3  ;;  %822 = vrot.lane.b32.xlu1 %v10394_v2, %s9422_s13  ;;  %v9308_v6 = vld [vmem:[%s9598_s25 + $0x118] sm:$0xff] }
 0x164   : > { %v1546_v13 = vmax.f32 %v10081_v48, %v1482_v36  ;;  %v10429_v15 = vmax.f32 %v9305_v47, %v1024_v0  ;;  %v10432_v32 = vmax.f32 %v9306_v14, %v1025_v21  ;;  %v847_v60 = vsel %vm832_vm0, %v14111_v38, %v807_v44  ;;  %1284 = vrot.lane.b32.xlu0 %v1243_v11, %s9423_s15  ;;  %v9307_v21 = vld [vmem:[%s9598_s25 + $0x110] sm:$0xff]  ;;  %v9310_v11 = vld [vmem:[%s9598_s25 + $0x138] sm:$0xff] }
 0x165   : > { %v1119_v27 = vpack.c.bf16 %v10419_v8, %v10416_v41  ;;  %v1121_v48 = vpack.c.bf16 %v10425_v17, %v10422_v43  ;;  %v900_v36 = vsel %vm832_vm0, %v807_v44, %v10006_v16  ;;  %v1012_v24 = vunpack.c.l.bf16 %v847_v60  ;;  %v9309_v44 = vld [vmem:[%s9598_s25 + $0x130] sm:$0xff] }
 0x166   : > { %v10447_v31 = vpack.c.bf16 %v10413_v23, %v10410_v46  ;;  %v1013_v22 = vunpack.c.l.bf16 %v900_v36  ;;  %v1016_v3 = vunpack.c.h.bf16 %v847_v60  ;;  %v1017_v0 = vunpack.c.h.bf16 %v900_v36 }
 0x167   : > { %v10450_v5 = vmax.f32 %v9307_v21, %v1012_v24  ;;  %v1267_v26 = vpop.permute.xlu1 %1266  ;;  %v1197_v28 = vunpack.c.h.b16 %v1119_v27  ;;  %v1201_v51 = vunpack.c.h.b16 %v1121_v48  ;;  %v1196_v9 = vunpack.c.l.b16 %v1119_v27 }
 0x168   : > { %v10453_v16 = vmax.f32 %v9308_v6, %v1013_v22  ;;  %v10456_v47 = vmax.f32 %v9309_v44, %v1016_v3  ;;  %v10459_v14 = vmax.f32 %v9310_v11, %v1017_v0  ;;  %v1331_v38 = vsel %vm1330_vm1, %v1267_v26, %v10334_v34 }
 0x169   : > { %v1382_v60 = vsel %vm1330_vm1, %v10377_v30, %v1267_v26  ;;  %v1476_v36 = vunpack.c.l.bf16 %v1331_v38  ;;  %v1480_v24 = vunpack.c.h.bf16 %v1331_v38  ;;  %v1249_v21 = vpack.c.b16 %v1201_v51, %v1197_v28 }
 0x16a   : > { %v1129_v27 = vpack.c.bf16 %v10432_v32, %v10429_v15  ;;  %v1123_v22 = vpack.c.bf16 %v10453_v16, %v10450_v5  ;;  %v1479_v3 = vunpack.c.l.bf16 %v1382_v60  ;;  %v1483_v6 = vunpack.c.h.bf16 %v1382_v60 }
 0x16b   : > { %v1125_v0 = vpack.c.bf16 %v10459_v14, %v10456_v47  ;;  %v1200_v44 = vunpack.c.l.b16 %v1121_v48  ;;  %v1540_v34 = vmax.f32 %v10104_v49, %v1476_v36  ;;  %v1544_v11 = vmax.f32 %v10110_v25, %v1480_v24  ;;  %830 = vrot.lane.b32.xlu1 %v10396_v50, %s9422_s13  ;;  %s7292_s13 = sshll.u32 %s9529_s14, 4 }
 0x16c   : > { %v1543_v30 = vmax.f32 %v10084_v57, %v1479_v3  ;;  %v1547_v26 = vmax.f32 %v10087_v59, %v1483_v6  ;;  %1296 = vrot.lane.b32.xlu0 %v1249_v21, %s9423_s15  ;;  %v1606_v38 = vpack.c.bf16 %v1546_v13, %v10399_v45  ;;  %v1212_v48 = vunpack.c.l.b16 %v10447_v31  ;;  %p12952_p6 = scmp.lt.s32.totalorder %s7292_s13, 31 }
 0x16d   : > { %v1248_v28 = vpack.c.b16 %v1200_v44, %v1196_v9  ;;  %v1604_v51 = vpack.c.bf16 %v1544_v11, %v1540_v34  ;;  %v1216_v2 = vunpack.c.l.b16 %v1129_v27  ;;  %v1205_v57 = vunpack.c.h.b16 %v1123_v22 }
 0x16e   : > { %v1607_v60 = vpack.c.bf16 %v1547_v26, %v1543_v30  ;;  %v1209_v25 = vunpack.c.h.b16 %v1125_v0  ;;  %v1275_v59 = vpop.permute.xlu0 %1274  ;;  %v1204_v36 = vunpack.c.l.b16 %v1123_v22  ;;  %v1208_v24 = vunpack.c.l.b16 %v1125_v0  ;;  %s14384_s13 = smov (!%p12952_p6, %s7292_s13), 31 }
 0x16f   : > { %1294 = vrot.lane.b32.xlu2 %v1248_v28, %s9423_s15  ;;  %1904 = vmatmul.bf16.vlgmr.msra.gmra.mxu0 %v1604_v51  ;;  %v1279_v49 = vpop.permute.xlu1 %1278  ;;  %v1256_v21 = vpack.c.b16 %v1216_v2, %v1212_v48  ;;  %v1386_v45 = vsel %vm1330_vm1, %v10371_v56, %v1275_v59  ;;  %v1213_v30 = vunpack.c.h.b16 %v10447_v31  ;;  %s9144_s30 = smul.u32 24, %s14384_s13 }
 0x170   : > { %2002 = vmatmul.bf16.vlgmr.msrb.gmra.mxu2 %v1606_v38  ;;  %2051 = vmatmul.bf16.vlgmr.msrb.gmra.mxu3 %v1607_v60  ;;  %v1336_v9 = vsel %vm1330_vm1, %v1279_v49, %v10371_v56  ;;  %v1253_v13 = vpack.c.b16 %v1209_v25, %v1205_v57  ;;  %v1252_v3 = vpack.c.b16 %v1208_v24, %v1204_v36  ;;  %v1487_v34 = vunpack.c.l.bf16 %v1386_v45 }
 0x171   : > { %v1486_v6 = vunpack.c.l.bf16 %v1336_v9  ;;  %v1490_v44 = vunpack.c.h.bf16 %v1336_v9  ;;  %v1491_v11 = vunpack.c.h.bf16 %v1386_v45  ;;  %v1217_v56 = vunpack.c.h.b16 %v1129_v27  ;;  %v8836_v45 = vld [vmem:[%s13891_s2 + $0x104] sm:$0xf0]  ;;  %s13020_s27 = scalar_lea.vmem %s13890_s1, %s9144_s30 }
 0x172   : > { %v1551_v57 = vmax.f32 %v10139_v39, %v1487_v34  ;;  %v8848_v39 = vld [vmem:[%s13891_s2 + $0x164] sm:$0xf0] }
 0x173   : > { %1310 = vrot.lane.b32.xlu1 %v1256_v21, %s9423_s15  ;;  %v1550_v60 = vmax.f32 %v10132_v35, %v1486_v6  ;;  %v1554_v48 = vmax.f32 %v10135_v7, %v1490_v44  ;;  %v1555_v25 = vmax.f32 %v10142_v29, %v1491_v11  ;;  %v1257_v27 = vpack.c.b16 %v1217_v56, %v1213_v30  ;;  %v7592_v7 = vld [vmem:[%s13891_s2 + $0x150] sm:$0xf]  ;;  %v7568_v29 = vld [vmem:[%s13891_s2 + $0x120] sm:$0xf]  ;;  %v8830_v6 = vld [vmem:[%s13891_s2 + $0xd4] sm:$0xf0] }
 0x174   : > { %1304 = vrot.lane.b32.xlu0 %v1253_v13, %s9423_s15  ;;  %v7496_v11 = vld [vmem:[%s13891_s2 + $0x90] sm:$0xf]  ;;  %v8818_v30 = vld [vmem:[%s13891_s2 + $0x74] sm:$0xf0] }
 0x175   : > { %v1610_v9 = vpack.c.bf16 %v1554_v48, %v1550_v60  ;;  %v1611_v35 = vpack.c.bf16 %v1555_v25, %v1551_v57 }
 0x177   : > { %1302 = vrot.lane.b32.xlu2 %v1252_v3, %s9423_s15  ;;  %v1277_v22 = vpop.permute.xlu1 %1276  ;;  %v7520_v3 = vld [vmem:[%s13891_s2 + $0xc0] sm:$0xf] }
 0x178   : > { %v1334_v2 = vsel %vm1330_vm1, %v1275_v59, %v1277_v22  ;;  %v1335_v0 = vsel %vm1330_vm1, %v1277_v22, %v1279_v49  ;;  %v7521_v44 = vor.u32 %v8830_v6, %v7520_v3  ;;  %v8824_v22 = vld [vmem:[%s13891_s2 + $0xa4] sm:$0xf0]  ;;  %v14114_v6 = vld [vmem:[#allocation57_spill] sm:$0xff] }
 0x179   : > { %v1484_v26 = vunpack.c.l.bf16 %v1334_v2  ;;  %v1485_v28 = vunpack.c.l.bf16 %v1335_v0  ;;  %v1488_v51 = vunpack.c.h.bf16 %v1334_v2  ;;  %v1489_v38 = vunpack.c.h.bf16 %v1335_v0  ;;  %v7472_v0 = vld [vmem:[%s13891_s2 + $0x60] sm:$0xf] }
 0x17a   : > { %v7497_v2 = vor.u32 %v8824_v22, %v7496_v11  ;;  %v7473_v56 = vor.u32 %v8818_v30, %v7472_v0  ;;  %v9311_v30 = vld [vmem:[%s9598_s25 + $0x190] sm:$0xff] }
 0x17b   : > { %v1548_v36 = vmax.f32 %v10155_v18, %v1484_v26  ;;  %v1552_v59 = vmax.f32 %v10161_v19, %v1488_v51  ;;  %v1549_v49 = vmax.f32 %v10158_v1, %v1485_v28  ;;  %v1553_v31 = vmax.f32 %v10164_v20, %v1489_v38  ;;  %v8842_v1 = vld [vmem:[%s13891_s2 + $0x134] sm:$0xf0]  ;;  %v7544_v20 = vld [vmem:[%s13891_s2 + $0xf0] sm:$0xf]  ;;  %v8812_v51 = vld [vmem:[%s13891_s2 + $0x44] sm:$0xf0] }
 0x17c   : > { %v7593_v18 = vor.u32 %v8848_v39, %v7592_v7  ;;  %v7569_v19 = vor.u32 %v8842_v1, %v7568_v29  ;;  %v7545_v13 = vor.u32 %v8836_v45, %v7544_v20  ;;  %v7448_v28 = vld [vmem:[%s13891_s2 + $0x30] sm:$0xf] }
 0x17d   : > { %v1608_v24 = vpack.c.bf16 %v1552_v59, %v1548_v36  ;;  %v1609_v21 = vpack.c.bf16 %v1553_v31, %v1549_v49  ;;  %v7449_v38 = vor.u32 %v8812_v51, %v7448_v28  ;;  %v7424_v59 = vld [vmem:[%s13891_s2] sm:$0xf]  ;;  %v8806_v49 = vld [vmem:[%s13891_s2 + $0x14] sm:$0xf0] }
 0x17e   : > { %3308 = vmatpush.bf16.msrb.mxu0 %v7593_v18  ;;  %v9312_v28 = vld [vmem:[%s9598_s25 + $0x198] sm:$0xff] }
 0x17f   : > { %1312 = vrot.lane.b32.xlu2 %v1257_v27, %s9423_s15  ;;  %1909 = vmatmul.bf16.gmra.mxu0 %v1608_v24 }
 0x180   : > { %1958 = vmatmul.bf16.gmra.mxu1 %v1609_v21  ;;  %2007 = vmatmul.bf16.gmra.mxu2 %v1610_v9 }
 0x181   : > { %2056 = vmatmul.bf16.gmra.mxu3 %v1611_v35  ;;  %v7425_v35 = vor.u32 %v8806_v49, %v7424_v59 }
 0x182   : > { %3309 = vmatpush.bf16.msrb.mxu0 %v7569_v19 }
 0x186   : > { %3310 = vmatpush.bf16.msrb.mxu0 %v7545_v13  ;;  %v14113_v13 = vld [vmem:[#allocation51_spill] sm:$0xff] }
 0x18a   : > { %3311 = vmatpush.bf16.msrb.mxu0 %v7521_v44 }
 0x18e   : > { %3312 = vmatpush.bf16.msrb.mxu0 %v7497_v2 }
 0x192   : > { %3313 = vmatpush.bf16.msrb.mxu0 %v7473_v56 }
 0x196   : > { %3314 = vmatpush.bf16.msrb.mxu0 %v7449_v38  ;;  %v9313_v38 = vld [vmem:[%s9598_s25 + $0x1b0] sm:$0xff] }
 0x19a   : > { %3315 = vmatpush.bf16.msrb.mxu0 %v7425_v35 }
 0x19d   : > { %v1283_v60 = vpop.permute.xlu2 %1282 }
 0x1c2   : > { %v10524_v34 = vpop.f32.mrf.mxu3 }
 0x1ca   : > { %v10538_v26 = vpop.f32.mrf.mxu3  ;;  %v10554_v31 = vpop.f32.mrf.mxu2 }
 0x1cb   : > { %14112 = vst [vmem:[#allocation42_spill] sm:$0xff] %v10538_v26 }
 0x1cd   : > { %v1289_v48 = vpop.permute.xlu1 %1288  ;;  %v1287_v57 = vpop.permute.xlu0 %1286 }
 0x1ce   : > { %v1390_v25 = vsel %vm1330_vm1, %v1289_v48, %v1283_v60  ;;  %v1339_v36 = vsel %vm1330_vm1, %v1287_v57, %v1289_v48 }
 0x1cf   : > { %v1495_v27 = vunpack.c.l.bf16 %v1390_v25  ;;  %v1499_v24 = vunpack.c.h.bf16 %v1390_v25  ;;  %v1494_v21 = vunpack.c.l.bf16 %v1339_v36  ;;  %v1498_v9 = vunpack.c.h.bf16 %v1339_v36  ;;  %v9314_v25 = vld [vmem:[%s9598_s25 + $0x1b8] sm:$0xff] }
 0x1d1   : > { %v1558_v39 = vmax.f32 %v10356_v53, %v1494_v21  ;;  %v1562_v29 = vmax.f32 %v10362_v63, %v1498_v9  ;;  %v1559_v18 = vmax.f32 %v10359_v37, %v1495_v27  ;;  %v1563_v19 = vmax.f32 %v10365_v33, %v1499_v24 }
 0x1d2   : > { %v10556_v7 = vpop.f32.mrf.mxu3  ;;  %v10568_v0 = vpop.f32.mrf.mxu2 }
 0x1d3   : > { %v1614_v1 = vpack.c.bf16 %v1562_v29, %v1558_v39  ;;  %v1615_v45 = vpack.c.bf16 %v1563_v19, %v1559_v18  ;;  %14115 = vst [vmem:[#allocation43_spill] sm:$0xff] %v10568_v0 }
 0x1d5   : > { %v823_v20 = vpop.permute.xlu1 %822  ;;  %2012 = vmatmul.bf16.gmra.mxu2 %v1614_v1  ;;  %2061 = vmatmul.bf16.gmra.mxu3 %v1615_v45 }
 0x1d6   : > { %v853_v3 = vsel %vm832_vm0, %v14113_v13, %v823_v20  ;;  %v908_v53 = vsel %vm832_vm0, %v823_v20, %v14114_v6  ;;  %v1285_v63 = vpop.permute.xlu0 %1284 }
 0x1d7   : > { %v1028_v44 = vunpack.c.l.bf16 %v853_v3  ;;  %v1029_v37 = vunpack.c.l.bf16 %v908_v53  ;;  %v1032_v11 = vunpack.c.h.bf16 %v853_v3  ;;  %v1033_v22 = vunpack.c.h.bf16 %v908_v53 }
 0x1d8   : > { %v1337_v33 = vsel %vm1330_vm1, %v1283_v60, %v1285_v63  ;;  %v1338_v2 = vsel %vm1330_vm1, %v1285_v63, %v1287_v57 }
 0x1d9   : > { %v10571_v56 = vmax.f32 %v9311_v30, %v1028_v44  ;;  %v10574_v51 = vmax.f32 %v9312_v28, %v1029_v37  ;;  %v10577_v48 = vmax.f32 %v9313_v38, %v1032_v11  ;;  %v10580_v36 = vmax.f32 %v9314_v25, %v1033_v22  ;;  %v9315_v11 = vld [vmem:[%s9598_s25 + $0x1d0] sm:$0xff]  ;;  %v9318_v28 = vld [vmem:[%s9598_s25 + $0x1f8] sm:$0xff] }
 0x1da   : > { %v10582_v59 = vpop.f32.mrf.mxu3  ;;  %v1492_v49 = vunpack.c.l.bf16 %v1337_v33  ;;  %v1493_v60 = vunpack.c.l.bf16 %v1338_v2  ;;  %v1496_v27 = vunpack.c.h.bf16 %v1337_v33  ;;  %v1497_v21 = vunpack.c.h.bf16 %v1338_v2  ;;  %v9317_v2 = vld [vmem:[%s9598_s25 + $0x1f0] sm:$0xff] }
 0x1db   : > { %v1131_v57 = vpack.c.bf16 %v10574_v51, %v10571_v56  ;;  %v1133_v24 = vpack.c.bf16 %v10580_v36, %v10577_v48 }
 0x1dc   : > { %v1556_v9 = vmax.f32 %v10266_v42, %v1492_v49  ;;  %v1560_v35 = vmax.f32 %v10269_v55, %v1496_v27  ;;  %v1557_v29 = vmax.f32 %v10272_v62, %v1493_v60  ;;  %v1561_v3 = vmax.f32 %v10275_v58, %v1497_v21  ;;  %v1295_v55 = vpop.permute.xlu2 %1294  ;;  %v9316_v58 = vld [vmem:[%s9598_s25 + $0x1d8] sm:$0xff] }
 0x1dd   : > { %v831_v39 = vpop.permute.xlu1 %830  ;;  %v1221_v18 = vunpack.c.h.b16 %v1131_v57  ;;  %v1225_v1 = vunpack.c.h.b16 %v1133_v24  ;;  %v1220_v19 = vunpack.c.l.b16 %v1131_v57 }
 0x1de   : > { %v856_v20 = vsel %vm832_vm0, %v10020_v10, %v831_v39  ;;  %v912_v45 = vsel %vm832_vm0, %v831_v39, %v10039_v61  ;;  %v1612_v13 = vpack.c.bf16 %v1560_v35, %v1556_v9  ;;  %v1297_v42 = vpop.permute.xlu0 %1296  ;;  %v1613_v44 = vpack.c.bf16 %v1561_v3, %v1557_v29 }
 0x1df   : > { %v1036_v6 = vunpack.c.l.bf16 %v856_v20  ;;  %v1037_v62 = vunpack.c.l.bf16 %v912_v45  ;;  %v1040_v53 = vunpack.c.h.bf16 %v856_v20  ;;  %v1041_v63 = vunpack.c.h.bf16 %v912_v45 }
 0x1e0   : > { %1914 = vmatmul.bf16.gmra.mxu0 %v1612_v13  ;;  %v1342_v37 = vsel %vm1330_vm1, %v1295_v55, %v1297_v42  ;;  %v1394_v10 = vsel %vm1330_vm1, %v1297_v42, %v10298_v52  ;;  %v1261_v61 = vpack.c.b16 %v1225_v1, %v1221_v18  ;;  %1963 = vmatmul.bf16.gmra.mxu1 %v1613_v44  ;;  %v1224_v35 = vunpack.c.l.b16 %v1133_v24 }
 0x1e1   : > { %v10600_v22 = vmax.f32 %v9315_v11, %v1036_v6  ;;  %v10603_v33 = vmax.f32 %v9316_v58, %v1037_v62  ;;  %v10606_v30 = vmax.f32 %v9317_v2, %v1040_v53  ;;  %v10609_v38 = vmax.f32 %v9318_v28, %v1041_v63  ;;  %v14117_v11 = vld [vmem:[#allocation52_spill] sm:$0xff]  ;;  %v14118_v2 = vld [vmem:[#allocation55_spill] sm:$0xff] }
 0x1e2   : > { %v10611_v25 = vpop.f32.mrf.mxu2  ;;  %v10613_v49 = vpop.f32.mrf.mxu3  ;;  %v1502_v60 = vunpack.c.l.bf16 %v1342_v37  ;;  %v1503_v52 = vunpack.c.l.bf16 %v1394_v10  ;;  %v1506_v27 = vunpack.c.h.bf16 %v1342_v37  ;;  %v1507_v57 = vunpack.c.h.bf16 %v1394_v10  ;;  %1320 = vrot.lane.b32.xlu1 %v1261_v61, %s9423_s15 }
 0x1e3   : > { %v1135_v21 = vpack.c.bf16 %v10603_v33, %v10600_v22  ;;  %v1137_v9 = vpack.c.bf16 %v10609_v38, %v10606_v30  ;;  %v1341_v1 = vsel %vm1330_vm1, %v10220_v4, %v1295_v55  ;;  %v1260_v20 = vpack.c.b16 %v1224_v35, %v1220_v19  ;;  %v10634_v4 = vld [vmem:[%s13893_s4] ss:$0 sm:$0xff]  ;;  %v1954_v55 = vpop.f32.mrf.mxu1 }
 0x1e4   : > { %v1566_v39 = vmax.f32 %v10416_v41, %v1502_v60  ;;  %v1570_v29 = vmax.f32 %v10422_v43, %v1506_v27  ;;  %v1567_v18 = vmax.f32 %v10419_v8, %v1503_v52  ;;  %v1571_v45 = vmax.f32 %v10425_v17, %v1507_v57  ;;  %v1303_v17 = vpop.permute.xlu2 %1302 }
 0x1e5   : > { %1318 = vrot.lane.b32.xlu0 %v1260_v20, %s9423_s15  ;;  %v1229_v3 = vunpack.c.h.b16 %v1135_v21  ;;  %v1233_v42 = vunpack.c.h.b16 %v1137_v9  ;;  %v1501_v6 = vunpack.c.l.bf16 %v1341_v1  ;;  %v1505_v62 = vunpack.c.h.bf16 %v1341_v1 }
 0x1e6   : > { %v1618_v13 = vpack.c.bf16 %v1570_v29, %v1566_v39  ;;  %v1619_v24 = vpack.c.bf16 %v1571_v45, %v1567_v18  ;;  %v1305_v41 = vpop.permute.xlu0 %1304  ;;  %v1228_v53 = vunpack.c.l.b16 %v1135_v21  ;;  %v1232_v19 = vunpack.c.l.b16 %v1137_v9  ;;  %v14119_v39 = vld [vmem:[#allocation35_spill] sm:$0xff] }
 0x1e7   : > { %v1345_v63 = vsel %vm1330_vm1, %v1303_v17, %v1305_v41  ;;  %v1265_v44 = vpack.c.b16 %v1233_v42, %v1229_v3  ;;  %v1565_v58 = vmax.f32 %v14117_v11, %v1501_v6  ;;  %v1569_v28 = vmax.f32 %v14118_v2, %v1505_v62 }
 0x1e8   : > { %2017 = vmatmul.bf16.gmra.mxu2 %v1618_v13  ;;  %2066 = vmatmul.bf16.gmra.mxu3 %v1619_v24  ;;  %v1264_v10 = vpack.c.b16 %v1232_v19, %v1228_v53  ;;  %v1398_v60 = vsel %vm1330_vm1, %v1305_v41, %v10313_v40  ;;  %v1510_v52 = vunpack.c.l.bf16 %v1345_v63  ;;  %v1514_v27 = vunpack.c.h.bf16 %v1345_v63 }
 0x1e9   : > { %v1511_v21 = vunpack.c.l.bf16 %v1398_v60  ;;  %v1515_v9 = vunpack.c.h.bf16 %v1398_v60  ;;  %v1617_v35 = vpack.c.bf16 %v1569_v28, %v1565_v58  ;;  %v1344_v42 = vsel %vm1330_vm1, %v10375_v12, %v1303_v17 }
 0x1ea   : > { %v10627_v43 = vpop.f32.mrf.mxu2  ;;  %v10629_v8 = vpop.f32.mrf.mxu3  ;;  %1326 = vrot.lane.b32.xlu2 %v1264_v10, %s9423_s15  ;;  %v1574_v1 = vmax.f32 %v10450_v5, %v1510_v52  ;;  %v1578_v20 = vmax.f32 %v10456_v47, %v1514_v27  ;;  %v1509_v41 = vunpack.c.l.bf16 %v1344_v42  ;;  %v1513_v53 = vunpack.c.h.bf16 %v1344_v42  ;;  %v14126_v10 = vld [vmem:[#allocation73_spill] sm:$0xff] }
 0x1eb   : > { %14116 = vst [vmem:[#allocation44_spill] sm:$0xff] %v10627_v43  ;;  %v1575_v13 = vmax.f32 %v10453_v16, %v1511_v21  ;;  %v1579_v3 = vmax.f32 %v10459_v14, %v1515_v9  ;;  %v10653_v6 = vpop.f32.mrf.mxu1  ;;  %v1311_v5 = vpop.permute.xlu1 %1310 }
 0x1ec   : > { %v1905_v37 = vpop.f32.mrf.mxu0  ;;  %14121 = vst [vmem:[#allocation21_spill] sm:$0xff] %v10653_v6  ;;  %v1622_v24 = vpack.c.bf16 %v1578_v20, %v1574_v1  ;;  %v1313_v19 = vpop.permute.xlu2 %1312  ;;  %v1573_v17 = vmax.f32 %v10015_v54, %v1509_v41  ;;  %v14128_v20 = vld [vmem:[#allocation72_spill] sm:$0xff] }
 0x1ed   : > { %v1906_v61 = vadd.f32 %v10634_v4, %v1905_v37  ;;  %1328 = vrot.lane.b32.xlu0 %v1265_v44, %s9423_s15  ;;  %v1623_v47 = vpack.c.bf16 %v1579_v3, %v1575_v13  ;;  %v1348_v14 = vsel %vm1330_vm1, %v1311_v5, %v1313_v19  ;;  %v14125_v44 = vld [vmem:[#allocation63_spill] sm:$0xff]  ;;  %s7201_s15 = scalar_lea.hbm %s14372_s19, %s9529_s14  ;;  %s9372_s14 = scalar_lea.hbm %s14372_s19, 2 }
 0x1ee   : > { %v1577_v37 = vmax.f32 %v14125_v44, %v1513_v53  ;;  %v1518_v58 = vunpack.c.l.bf16 %v1348_v14  ;;  %v1522_v2 = vunpack.c.h.bf16 %v1348_v14  ;;  %v14132_v14 = vld [vmem:[#allocation64_spill] sm:$0xff]  ;;  %s7205_s16 = sshll.u32 %s7201_s15, 4  ;;  %s7206_s16 = int_to_ptr.hbm [resolvable:$true] %s7205_s16 }
 0x1ef   : > { %v1955_v57 = vadd.f32 %v1954_v55, %v1906_v61  ;;  %v1402_v61 = vsel %vm1330_vm1, %v1313_v19, %v14126_v10  ;;  %v7784_v44 = vld [vmem:[%s13891_s2 + $0x2d0] sm:$0xf]  ;;  %v8896_v10 = vld [vmem:[%s13891_s2 + $0x2e4] sm:$0xf0]  ;;  %s9366_s20 = sshra.s32 %s7206_s16, 4  ;;  %s9367_s20 = int_to_ptr.hbm [resolvable:$true] %s9366_s20 }
 0x1f0   : > { %3316 = vmatmul.bf16.vlgmr.msrb.gmra.mxu0 %v14119_v39  ;;  %1968 = vmatmul.bf16.gmra.mxu1 %v1617_v35  ;;  %v1519_v60 = vunpack.c.l.bf16 %v1402_v61  ;;  %v1523_v52 = vunpack.c.h.bf16 %v1402_v61  ;;  %v1621_v27 = vpack.c.bf16 %v1577_v37, %v1573_v17  ;;  %v1582_v9 = vmax.f32 %v10410_v46, %v1518_v58  ;;  %v14130_v46 = vld [vmem:[#allocation53_spill] sm:$0xff]  ;;  %v8992_v17 = vld [vmem:[%s13891_s2 + $0x5e4] sm:$0xf0]  ;;  %s9368_s22 = scalar_lea.hbm %s9367_s20, 1  ;;  %p9373_p1 = scmp.lt.s32.totalorder %s9367_s20, %s14372_s19 }
 0x1f1   : > { %v1586_v54 = vmax.f32 %v10429_v15, %v1522_v2  ;;  %v14131_v15 = vld [vmem:[#allocation54_spill] sm:$0xff]  ;;  %v7785_v61 = vor.u32 %v8896_v10, %v7784_v44  ;;  %v7498_v44 = vld [vmem:[%s13891_s2 + $0xa8] sm:$0xf0]  ;;  %p9369_p9 = scmp.ne.s32.totalorder %s9367_s20, %s9368_s22  ;;  %p9374_p3 = scmp.lt.s32.totalorder %s9372_s14, %s9368_s22 }
 0x1f2   : > { %v1587_v1 = vmax.f32 %v10432_v32, %v1523_v52  ;;  %v8944_v32 = vld [vmem:[%s13891_s2 + $0x464] sm:$0xf0]  ;;  %v8938_v58 = vld [vmem:[%s13891_s2 + $0x434] sm:$0xf0] }
 0x1f3   : > { %v2003_v29 = vpop.f32.mrf.mxu2  ;;  %v2052_v18 = vpop.f32.mrf.mxu3  ;;  %v1626_v3 = vpack.c.bf16 %v1586_v54, %v1582_v9  ;;  %3357 = vmatpush.bf16.msrb.mxu1 %v7785_v61  ;;  %v8986_v52 = vld [vmem:[%s13891_s2 + $0x5b4] sm:$0xf0]  ;;  %v7594_v9 = vld [vmem:[%s13891_s2 + $0x168] sm:$0xf0]  ;;  %v7760_v54 = vld [vmem:[%s13891_s2 + $0x2a0] sm:$0xf]  ;;  %p9370_p13 = pnand %p9369_p9, %p9558_p11  ;;  %p9375_p4 = por %p9374_p3, %p9373_p1 }
 0x1f4   : > { %v2004_v40 = vadd.f32 %v2003_v29, %v1955_v57  ;;  %v10647_v45 = vpop.f32.mrf.mxu0  ;;  %v14127_v57 = vld [vmem:[#allocation40_spill] sm:$0xff] }
 0x1f5   : > { %14120 = vst [vmem:[#allocation45_spill] sm:$0xff] %v10647_v45  ;;  %v8884_v61 = vld [vmem:[%s13891_s2 + $0x284] sm:$0xf0]  ;;  %p9371_p0 = pneg %p9370_p13 }
 0x1f6   : > { %v10655_v62 = vadd.f32 %v2052_v18, %v2004_v40  ;;  %v1583_v18 = vmax.f32 %v10413_v23, %v1519_v60  ;;  %v1347_v40 = vsel %vm1330_vm1, %v14128_v20, %v1311_v5  ;;  %v7976_v23 = vld [vmem:[%s13891_s2 + $0x450] sm:$0xf]  ;;  %v8144_v60 = vld [vmem:[%s13891_s2 + $0x5a0] sm:$0xf]  ;;  %v7570_v20 = vld [vmem:[%s13891_s2 + $0x138] sm:$0xf0] }
 0x1f7   : > { %v1517_v42 = vunpack.c.l.bf16 %v1347_v40  ;;  %v7977_v5 = vor.u32 %v8944_v32, %v7976_v23  ;;  %v8120_v23 = vld [vmem:[%s13891_s2 + $0x570] sm:$0xf]  ;;  %v8980_v32 = vld [vmem:[%s13891_s2 + $0x584] sm:$0xf0]  ;;  %p9376_p7 = pnand %p9375_p4, %p9371_p0 }
 0x1f8   : > { %14122 = vst [vmem:[#allocation22_spill] sm:$0xff] %v10655_v62  ;;  %2022 = vmatmul.bf16.gmra.mxu2 %v1622_v24  ;;  %2071 = vmatmul.bf16.gmra.mxu3 %v1623_v47  ;;  %v1521_v24 = vunpack.c.h.bf16 %v1347_v40  ;;  %v1627_v41 = vpack.c.bf16 %v1587_v1, %v1583_v18  ;;  %v8839_v1 = vld [vmem:[%s13891_s2 + $0x124] sm:$0xf] }
 0x1f9   : > { %v1581_v53 = vmax.f32 %v14130_v46, %v1517_v42  ;;  %3406 = vmatpush.bf16.msra.mxu2 %v7977_v5  ;;  %v7573_v40 = vor.u32 %v8839_v1, %v7570_v20  ;;  %v7546_v42 = vld [vmem:[%s13891_s2 + $0x108] sm:$0xf0]  ;;  %v8827_v46 = vld [vmem:[%s13891_s2 + $0xc4] sm:$0xf]  ;;  %v7904_v1 = vld [vmem:[%s13891_s2 + $0x3c0] sm:$0xf] }
 0x1fa   : > { %v1585_v47 = vmax.f32 %v14131_v15, %v1521_v24  ;;  %v7928_v15 = vld [vmem:[%s13891_s2 + $0x3f0] sm:$0xf]  ;;  %v8926_v20 = vld [vmem:[%s13891_s2 + $0x3d4] sm:$0xf0] }
 0x1fb   : > { %v10657_v55 = vpop.f32.mrf.mxu2  ;;  %v10659_v16 = vpop.f32.mrf.mxu3 }
 0x1fc   : > { %14123 = vst [vmem:[#allocation29_spill] sm:$0xff] %v10657_v55  ;;  %v1910_v63 = vpop.f32.mrf.mxu0  ;;  %v1625_v19 = vpack.c.bf16 %v1585_v47, %v1581_v53  ;;  %v7522_v53 = vld [vmem:[%s13891_s2 + $0xd8] sm:$0xf0]  ;;  %v8857_v55 = vld [vmem:[%s13891_s2 + $0x1b4] sm:$0xf] }
 0x1fd   : > { %14124 = vst [vmem:[#allocation30_spill] sm:$0xff] %v10659_v16  ;;  %v1911_v12 = vadd.f32 %v10634_v4, %v1910_v63  ;;  %v1959_v11 = vpop.f32.mrf.mxu1  ;;  %v14133_v63 = vld [vmem:[#allocation18_spill] sm:$0xff]  ;;  %v7525_v47 = vor.u32 %v8827_v46, %v7522_v53 }
 0x1ff   : > { %v1960_v28 = vadd.f32 %v1959_v11, %v1911_v12  ;;  %v8168_v12 = vld [vmem:[%s13891_s2 + $0x5d0] sm:$0xf]  ;;  %v7952_v11 = vld [vmem:[%s13891_s2 + $0x420] sm:$0xf] }
 0x200   : > { %3321 = vmatmul.bf16.gmra.mxu0 %v14127_v57  ;;  %1973 = vmatmul.bf16.gmra.mxu1 %v1621_v27  ;;  %v8169_v37 = vor.u32 %v8992_v17, %v8168_v12  ;;  %v7953_v2 = vor.u32 %v8938_v58, %v7952_v11  ;;  %v8845_v27 = vld [vmem:[%s13891_s2 + $0x154] sm:$0xf]  ;;  %v8121_v12 = vor.u32 %v8980_v32, %v8120_v23 }
 0x201   : > { %v8821_v17 = vld [vmem:[%s13891_s2 + $0x94] sm:$0xf] }
 0x202   : > { %3455 = vmatpush.bf16.msra.mxu3 %v8169_v37  ;;  %3407 = vmatpush.bf16.msra.mxu2 %v7953_v2  ;;  %v7736_v37 = vld [vmem:[%s13891_s2 + $0x270] sm:$0xf]  ;;  %v7501_v10 = vor.u32 %v8821_v17, %v7498_v44 }
 0x203   : > { %v2008_v21 = vpop.f32.mrf.mxu2  ;;  %v7737_v11 = vor.u32 %v8884_v61, %v7736_v37  ;;  %v14137_v2 = vld [vmem:[#allocation24_spill] sm:$0xff]  ;;  %v8803_v37 = vld [vmem:[%s13891_s2 + $0x4] sm:$0xf] }
 0x204   : > { %v2009_v35 = vadd.f32 %v2008_v21, %v1960_v28  ;;  %v2057_v29 = vpop.f32.mrf.mxu3  ;;  %v14134_v28 = vld [vmem:[#allocation27_spill] sm:$0xff]  ;;  %v8145_v21 = vor.u32 %v8986_v52, %v8144_v60  ;;  %v7474_v52 = vld [vmem:[%s13891_s2 + $0x78] sm:$0xf0]  ;;  %v7688_v61 = vld [vmem:[%s13891_s2 + $0x210] sm:$0xf] }
 0x205   : > { %v8815_v60 = vld [vmem:[%s13891_s2 + $0x64] sm:$0xf] }
 0x206   : > { %v10674_v13 = vadd.f32 %v2057_v29, %v2009_v35  ;;  %v8890_v35 = vld [vmem:[%s13891_s2 + $0x2b4] sm:$0xf0]  ;;  %v7597_v29 = vor.u32 %v8845_v27, %v7594_v9  ;;  %3456 = vmatpush.bf16.msra.mxu3 %v8145_v21  ;;  %v8809_v27 = vld [vmem:[%s13891_s2 + $0x34] sm:$0xf]  ;;  %v7477_v21 = vor.u32 %v8815_v60, %v7474_v52  ;;  %v7450_v9 = vld [vmem:[%s13891_s2 + $0x48] sm:$0xf0] }
 0x207   : > { %v7761_v18 = vor.u32 %v8890_v35, %v7760_v54  ;;  %v7712_v54 = vld [vmem:[%s13891_s2 + $0x240] sm:$0xf]  ;;  %v8878_v35 = vld [vmem:[%s13891_s2 + $0x254] sm:$0xf0]  ;;  %v8920_v52 = vld [vmem:[%s13891_s2 + $0x3a4] sm:$0xf0] }
 0x208   : > { %14129 = vst [vmem:[#allocation48_spill] sm:$0xff] %v10674_v13  ;;  %2027 = vmatmul.bf16.gmra.mxu2 %v1626_v3  ;;  %2076 = vmatmul.bf16.gmra.mxu3 %v1627_v41  ;;  %v8833_v3 = vld [vmem:[%s13891_s2 + $0xf4] sm:$0xf]  ;;  %v14135_v41 = vld [vmem:[#allocation16_spill] sm:$0xff]  ;;  %v14178_v13 = vld [vmem:[#allocation15_spill] sm:$0xff] }
 0x209   : > { %3504 = vmatpush.bf16.msra.mxu0 %v7597_v29  ;;  %3358 = vmatpush.bf16.msrb.mxu1 %v7761_v18  ;;  %v7549_v24 = vor.u32 %v8833_v3, %v7546_v42  ;;  %v7713_v18 = vor.u32 %v8878_v35, %v7712_v54  ;;  %v7453_v3 = vor.u32 %v8809_v27, %v7450_v9  ;;  %v14142_v27 = vld [vmem:[#allocation56_spill] sm:$0xff] }
 0x20a   : > { %3457 = vmatpush.bf16.msra.mxu3 %v8121_v12  ;;  %v7905_v42 = vor.u32 %v8926_v20, %v7904_v1  ;;  %v8072_v1 = vld [vmem:[%s13891_s2 + $0x510] sm:$0xf]  ;;  %v8968_v20 = vld [vmem:[%s13891_s2 + $0x524] sm:$0xf0] }
 0x20b   : > { %v10766_v58 = vpop.f32.mrf.mxu2 }
 0x20c   : > { %14136 = vst [vmem:[#allocation49_spill] sm:$0xff] %v10766_v58  ;;  %v10787_v29 = vpop.f32.mrf.mxu3 }
 0x20d   : > { %3505 = vmatpush.bf16.msra.mxu0 %v7573_v40  ;;  %3359 = vmatpush.bf16.msrb.mxu1 %v7737_v11  ;;  %14138 = vst [vmem:[#allocation47_spill] sm:$0xff] %v10787_v29  ;;  %v8096_v40 = vld [vmem:[%s13891_s2 + $0x540] sm:$0xf] }
 0x210   : > { %3326 = vmatmul.bf16.gmra.mxu0 %v14132_v14  ;;  %1978 = vmatmul.bf16.gmra.mxu1 %v1625_v19  ;;  %v8932_v19 = vld [vmem:[%s13891_s2 + $0x404] sm:$0xf0] }
 0x211   : > { %3506 = vmatpush.bf16.msra.mxu0 %v7549_v24  ;;  %v7929_v5 = vor.u32 %v8932_v19, %v7928_v15  ;;  %v8974_v24 = vld [vmem:[%s13891_s2 + $0x554] sm:$0xf0]  ;;  %3360 = vmatpush.bf16.msrb.mxu1 %v7713_v18  ;;  %v10801_v15 = vpop.f32.mrf.mxu0 }
 0x212   : > { %v8097_v53 = vor.u32 %v8974_v24, %v8096_v40  ;;  %14139 = vst [vmem:[#allocation50_spill] sm:$0xff] %v10801_v15  ;;  %v7664_v40 = vld [vmem:[%s13891_s2 + $0x1e0] sm:$0xf] }
 0x213   : > { %3408 = vmatpush.bf16.msra.mxu2 %v7929_v5  ;;  %v10805_v5 = vpop.f32.mrf.mxu1 }
 0x214   : > { %3458 = vmatpush.bf16.msra.mxu3 %v8097_v53  ;;  %14141 = vst [vmem:[#allocation58_spill] sm:$0xff] %v10805_v5  ;;  %v8866_v53 = vld [vmem:[%s13891_s2 + $0x1f4] sm:$0xf0] }
 0x215   : > { %3507 = vmatpush.bf16.msra.mxu0 %v7525_v47  ;;  %v14140_v47 = vld [vmem:[#allocation75_spill] sm:$0xff] }
 0x217   : > { %3409 = vmatpush.bf16.msra.mxu2 %v7905_v42 }
 0x219   : > { %3508 = vmatpush.bf16.msra.mxu0 %v7501_v10  ;;  %v7426_v10 = vld [vmem:[%s13891_s2 + $0x18] sm:$0xf0] }
 0x21a   : > { %v7429_v60 = vor.u32 %v8803_v37, %v7426_v10  ;;  %v8962_v37 = vld [vmem:[%s13891_s2 + $0x4f4] sm:$0xf0] }
 0x21d   : > { %3509 = vmatpush.bf16.msra.mxu0 %v7477_v21 }
 0x220   : > { %3331 = vmatmul.bf16.gmra.mxu0 %v14133_v63 }
 0x221   : > { %3510 = vmatpush.bf16.msra.mxu0 %v7453_v3 }
 0x225   : > { %3511 = vmatpush.bf16.msra.mxu0 %v7429_v60  ;;  %v14144_v60 = vld [vmem:[#allocation60_spill] sm:$0xff] }
 0x230   : > { %3336 = vmatmul.bf16.gmra.mxu0 %v14134_v28 }
 0x240   : > { %3341 = vmatmul.bf16.gmra.mxu0 %v14135_v41 }
 0x250   : > { %3346 = vmatmul.bf16.gmra.mxu0 %v14137_v2 }
 0x254   : > { %v1321_v46 = vpop.permute.xlu1 %1320 }
 0x255   : > { %v1406_v19 = vsel %vm1330_vm1, %v1321_v46, %v14140_v47  ;;  %v7856_v47 = vld [vmem:[%s13891_s2 + $0x360] sm:$0xf] }
 0x256   : > { %v1527_v23 = vunpack.c.l.bf16 %v1406_v19  ;;  %v1531_v32 = vunpack.c.h.bf16 %v1406_v19  ;;  %v8914_v19 = vld [vmem:[%s13891_s2 + $0x374] sm:$0xf0] }
 0x257   : > { %v1319_v11 = vpop.permute.xlu0 %1318 }
 0x258   : > { %v2013_v12 = vpop.f32.mrf.mxu2  ;;  %v1591_v17 = vmax.f32 %v10574_v51, %v1527_v23  ;;  %v1595_v44 = vmax.f32 %v10580_v36, %v1531_v32  ;;  %v8872_v51 = vld [vmem:[%s13891_s2 + $0x224] sm:$0xf0]  ;;  %v7880_v36 = vld [vmem:[%s13891_s2 + $0x390] sm:$0xf]  ;;  %v1350_v21 = vsel %vm1330_vm1, %v14142_v27, %v1319_v11  ;;  %v1351_v9 = vsel %vm1330_vm1, %v1319_v11, %v1321_v46  ;;  %v10830_v54 = vpop.f32.mrf.mxu3 }
 0x259   : > { %v7689_v18 = vor.u32 %v8872_v51, %v7688_v61  ;;  %v1525_v3 = vunpack.c.l.bf16 %v1350_v21  ;;  %v1526_v42 = vunpack.c.l.bf16 %v1351_v9  ;;  %v1529_v24 = vunpack.c.h.bf16 %v1350_v21  ;;  %v14143_v61 = vld [vmem:[#allocation59_spill] sm:$0xff] }
 0x25a   : > { %v1631_v35 = vpack.c.bf16 %v1595_v44, %v1591_v17  ;;  %v1530_v46 = vunpack.c.h.bf16 %v1351_v9  ;;  %v7881_v23 = vor.u32 %v8920_v52, %v7880_v36  ;;  %v8073_v32 = vor.u32 %v8968_v20, %v8072_v1  ;;  %v8048_v44 = vld [vmem:[%s13891_s2 + $0x4e0] sm:$0xf]  ;;  %v1327_v20 = vpop.permute.xlu2 %1326 }
 0x25b   : > { %3361 = vmatpush.bf16.msrb.mxu1 %v7689_v18  ;;  %v7665_v17 = vor.u32 %v8866_v53, %v7664_v40  ;;  %v1589_v11 = vmax.f32 %v14143_v61, %v1525_v3  ;;  %v1593_v51 = vmax.f32 %v14144_v60, %v1529_v24  ;;  %v1590_v27 = vmax.f32 %v10571_v56, %v1526_v42  ;;  %v14145_v53 = vld [vmem:[#allocation31_spill] sm:$0xff]  ;;  %v7640_v56 = vld [vmem:[%s13891_s2 + $0x1b0] sm:$0xf] }
 0x25c   : > { %2081 = vmatmul.bf16.gmra.mxu3 %v1631_v35  ;;  %v1594_v21 = vmax.f32 %v10577_v48, %v1530_v46  ;;  %3410 = vmatpush.bf16.msra.mxu2 %v7881_v23  ;;  %v7857_v52 = vor.u32 %v8914_v19, %v7856_v47  ;;  %v8049_v9 = vor.u32 %v8962_v37, %v8048_v44  ;;  %v8860_v48 = vld [vmem:[%s13891_s2 + $0x1c4] sm:$0xf0]  ;;  %v7832_v3 = vld [vmem:[%s13891_s2 + $0x330] sm:$0xf]  ;;  %v7616_v37 = vld [vmem:[%s13891_s2 + $0x180] sm:$0xf] }
 0x25d   : > { %v1915_v10 = vpop.f32.mrf.mxu0  ;;  %3459 = vmatpush.bf16.msra.mxu3 %v8073_v32  ;;  %v1964_v35 = vpop.f32.mrf.mxu1  ;;  %v1629_v18 = vpack.c.bf16 %v1593_v51, %v1589_v11  ;;  %v7641_v46 = vor.u32 %v8860_v48, %v7640_v56  ;;  %v8908_v47 = vld [vmem:[%s13891_s2 + $0x344] sm:$0xf0]  ;;  %v8024_v19 = vld [vmem:[%s13891_s2 + $0x4b0] sm:$0xf]  ;;  %v7808_v61 = vld [vmem:[%s13891_s2 + $0x300] sm:$0xf] }
 0x25e   : > { %v1916_v36 = vadd.f32 %v10634_v4, %v1915_v10  ;;  %v1630_v1 = vpack.c.bf16 %v1594_v21, %v1590_v27  ;;  %v8956_v23 = vld [vmem:[%s13891_s2 + $0x4c4] sm:$0xf0]  ;;  %v8854_v10 = vld [vmem:[%s13891_s2 + $0x194] sm:$0xf0] }
 0x25f   : > { %3362 = vmatpush.bf16.msrb.mxu1 %v7665_v17  ;;  %v1329_v42 = vpop.permute.xlu0 %1328  ;;  %v14146_v17 = vld [vmem:[#allocation74_spill] sm:$0xff]  ;;  %v14147_v11 = vld [vmem:[#allocation61_spill] sm:$0xff] }
 0x260   : > { %v1965_v40 = vadd.f32 %v1964_v35, %v1916_v36  ;;  %3351 = vmatmul.bf16.gmra.mxu0 %v14145_v53  ;;  %1983 = vmatmul.bf16.gmra.mxu1 %v1629_v18  ;;  %v2015_v24 = vpop.f32.mrf.mxu2  ;;  %v1410_v44 = vsel %vm1330_vm1, %v1329_v42, %v14146_v17  ;;  %v1354_v60 = vsel %vm1330_vm1, %v1327_v20, %v1329_v42  ;;  %v2064_v21 = vpop.f32.mrf.mxu3  ;;  %v8902_v36 = vld [vmem:[%s13891_s2 + $0x314] sm:$0xf0] }
 0x261   : > { %2032 = vmatmul.bf16.gmra.mxu2 %v1630_v1  ;;  %3460 = vmatpush.bf16.msra.mxu3 %v8049_v9  ;;  %v1535_v51 = vunpack.c.l.bf16 %v1410_v44  ;;  %v1539_v27 = vunpack.c.h.bf16 %v1410_v44  ;;  %v8950_v9 = vld [vmem:[%s13891_s2 + $0x494] sm:$0xf0]  ;;  %v7833_v18 = vor.u32 %v8908_v47, %v7832_v3  ;;  %v8025_v1 = vor.u32 %v8956_v23, %v8024_v19 }
 0x262   : > { %v2014_v32 = vadd.f32 %v2013_v12, %v1965_v40  ;;  %3411 = vmatpush.bf16.msra.mxu2 %v7857_v52  ;;  %v1353_v12 = vsel %vm1330_vm1, %v14147_v11, %v1327_v20  ;;  %v8000_v52 = vld [vmem:[%s13891_s2 + $0x480] sm:$0xf]  ;;  %v7617_v20 = vor.u32 %v8854_v10, %v7616_v37  ;;  %v7809_v17 = vor.u32 %v8902_v36, %v7808_v61  ;;  %v14148_v19 = vld [vmem:[#allocation65_spill] sm:$0xff] }
 0x263   : > { %3363 = vmatpush.bf16.msrb.mxu1 %v7641_v46  ;;  %v1599_v56 = vmax.f32 %v10603_v33, %v1535_v51  ;;  %v1603_v48 = vmax.f32 %v10609_v38, %v1539_v27  ;;  %v8001_v44 = vor.u32 %v8950_v9, %v8000_v52  ;;  %v1533_v11 = vunpack.c.l.bf16 %v1353_v12  ;;  %v14149_v23 = vld [vmem:[#allocation66_spill] sm:$0xff] }
 0x264   : > { %v2063_v35 = vadd.f32 %v10830_v54, %v2014_v32  ;;  %v1537_v26 = vunpack.c.h.bf16 %v1353_v12  ;;  %v1534_v43 = vunpack.c.l.bf16 %v1354_v60  ;;  %v1538_v0 = vunpack.c.h.bf16 %v1354_v60 }
 0x265   : > { %v1917_v40 = vpop.f32.mrf.mxu0  ;;  %3461 = vmatpush.bf16.msra.mxu3 %v8025_v1  ;;  %v1966_v54 = vpop.f32.mrf.mxu1  ;;  %v1635_v47 = vpack.c.bf16 %v1603_v48, %v1599_v56  ;;  %v1597_v38 = vmax.f32 %v14148_v19, %v1533_v11  ;;  %v1926_v48 = vadd.f32 %v10634_v4, %v10611_v25  ;;  %v14156_v11 = vld [vmem:[#allocation37_spill] sm:$0xff]  ;;  %v14162_v25 = vld [vmem:[#allocation39_spill] sm:$0xff] }
 0x266   : > { %v1918_v42 = vadd.f32 %v10634_v4, %v1917_v40  ;;  %3412 = vmatpush.bf16.msra.mxu2 %v7833_v18  ;;  %v1601_v32 = vmax.f32 %v14149_v23, %v1537_v26  ;;  %v1598_v37 = vmax.f32 %v10600_v22, %v1534_v43  ;;  %v1602_v10 = vmax.f32 %v10606_v30, %v1538_v0 }
 0x267   : > { %3364 = vmatpush.bf16.msrb.mxu1 %v7617_v20  ;;  %v2096_v61 = vmul.f32 0.02, %v2063_v35 }
 0x268   : > { %v1967_v46 = vadd.f32 %v1966_v54, %v1918_v42  ;;  %v1633_v52 = vpack.c.bf16 %v1601_v32, %v1597_v38  ;;  %v1634_v9 = vpack.c.bf16 %v1602_v10, %v1598_v37  ;;  %v14157_v54 = vld [vmem:[#allocation34_spill] sm:$0xff]  ;;  %v1931_v32 = vadd.f32 %v10634_v4, %v10524_v34  ;;  %v14167_v34 = vld [vmem:[#allocation67_spill] sm:$0xff] }
 0x269   : > { %3462 = vmatpush.bf16.msra.mxu3 %v8001_v44  ;;  %v2112_v18 = vmax.f32 %v2063_v35, %v2096_v61  ;;  %v14155_v35 = vld [vmem:[#allocation36_spill] sm:$0xff] }
 0x26a   : > { %v2016_v3 = vadd.f32 %v2015_v24, %v1967_v46  ;;  %3413 = vmatpush.bf16.msra.mxu2 %v7809_v17  ;;  %v1921_v24 = vadd.f32 %v10634_v4, %v10554_v31 }
 0x26b   : > { %v2018_v33 = vpop.f32.mrf.mxu2  ;;  %v2067_v60 = vpop.f32.mrf.mxu3 }
 0x26c   : > { %v2065_v12 = vadd.f32 %v2064_v21, %v2016_v3  ;;  %2086 = vmatmul.bf16.gmra.mxu3 %v1635_v47 }
 0x26d   : > { %v10911_v51 = vpop.f32.mrf.mxu0  ;;  %v1969_v36 = vpop.f32.mrf.mxu1 }
 0x26e   : > { %v2097_v27 = vmul.f32 0.02, %v2065_v12  ;;  %v1970_v26 = vadd.f32 %v1969_v36, %v1921_v24 }
 0x270   : > { %v2113_v1 = vmax.f32 %v2065_v12, %v2097_v27  ;;  %3512 = vmatmul.bf16.vlgmr.msra.gmra.mxu0 %v14119_v39  ;;  %1988 = vmatmul.bf16.gmra.mxu1 %v1633_v52  ;;  %v2019_v0 = vadd.f32 %v2018_v33, %v1970_v26  ;;  %v14163_v12 = vld [vmem:[#allocation41_spill] sm:$0xff] }
 0x271   : > { %2037 = vmatmul.bf16.gmra.mxu2 %v1634_v9  ;;  %v14166_v9 = vld [vmem:[#allocation68_spill] sm:$0xff]  ;;  %v8941_v26 = vld [vmem:[%s13891_s2 + $0x454] sm:$0xf] }
 0x272   : > { %v10916_v22 = vpack.c.bf16 %v2113_v1, %v2112_v18  ;;  %v10920_v43 = vadd.f32 %v2067_v60, %v2019_v0  ;;  %v14164_v60 = vld [vmem:[#allocation38_spill] sm:$0xff]  ;;  %v7978_v0 = vld [vmem:[%s13891_s2 + $0x468] sm:$0xf0] }
 0x273   : > { %v10918_v30 = vpop.f32.mrf.mxu2  ;;  %v10922_v21 = vpop.f32.mrf.mxu3  ;;  %v14168_v1 = vld [vmem:[#allocation46_spill] sm:$0xff] }
 0x274   : > { %14150 = vst [vmem:[#allocation51_spill] sm:$0xff] %v10916_v22 }
 0x275   : > { %14151 = vst [vmem:[#allocation57_spill] sm:$0xff] %v10918_v30  ;;  %v10924_v31 = vpop.f32.mrf.mxu0  ;;  %v10926_v20 = vpop.f32.mrf.mxu1 }
 0x276   : > { %14152 = vst [vmem:[#allocation52_spill] sm:$0xff] %v10920_v43 }
 0x277   : > { %14153 = vst [vmem:[#allocation55_spill] sm:$0xff] %v10922_v21 }
 0x278   : > { %14154 = vst [vmem:[#allocation35_spill] sm:$0xff] %v10926_v20  ;;  %v14177_v20 = vld [vmem:[#allocation19_spill] sm:$0xff] }
 0x27b   : > { %v2023_v40 = vpop.f32.mrf.mxu2  ;;  %v2072_v42 = vpop.f32.mrf.mxu3 }
 0x27c   : > { %3463 = vmatmul.bf16.vlgmr.msra.gmra.mxu3 %v14155_v35 }
 0x27d   : > { %v10929_v56 = vpop.f32.mrf.mxu0  ;;  %v1974_v17 = vpop.f32.mrf.mxu1 }
 0x27e   : > { %v1975_v44 = vadd.f32 %v1974_v17, %v1926_v48  ;;  %v7981_v48 = vor.u32 %v8941_v26, %v7978_v0  ;;  %v8893_v17 = vld [vmem:[%s13891_s2 + $0x2d4] sm:$0xf]  ;;  %v8935_v26 = vld [vmem:[%s13891_s2 + $0x424] sm:$0xf]  ;;  %v7954_v0 = vld [vmem:[%s13891_s2 + $0x438] sm:$0xf0] }
 0x280   : > { %3517 = vmatmul.bf16.gmra.mxu0 %v14127_v57  ;;  %3365 = vmatmul.bf16.vlgmr.msrb.gmra.mxu1 %v14156_v11  ;;  %v2024_v46 = vadd.f32 %v2023_v40, %v1975_v44  ;;  %v8989_v40 = vld [vmem:[%s13891_s2 + $0x5d4] sm:$0xf]  ;;  %v7786_v44 = vld [vmem:[%s13891_s2 + $0x2e8] sm:$0xf0] }
 0x281   : > { %3414 = vmatmul.bf16.vlgmr.msra.gmra.mxu2 %v14157_v54 }
 0x282   : > { %v10936_v3 = vadd.f32 %v2072_v42, %v2024_v46  ;;  %v8170_v42 = vld [vmem:[%s13891_s2 + $0x5e8] sm:$0xf0]  ;;  %3602 = vmatpush.bf16.msrb.mxu2 %v7981_v48  ;;  %v7957_v48 = vor.u32 %v8935_v26, %v7954_v0  ;;  %v7762_v26 = vld [vmem:[%s13891_s2 + $0x2b8] sm:$0xf0] }
 0x283   : > { %v10940_v33 = vpop.f32.mrf.mxu2  ;;  %v10944_v38 = vpop.f32.mrf.mxu3  ;;  %v8173_v46 = vor.u32 %v8989_v40, %v8170_v42  ;;  %v8983_v40 = vld [vmem:[%s13891_s2 + $0x5a4] sm:$0xf]  ;;  %v8146_v42 = vld [vmem:[%s13891_s2 + $0x5b8] sm:$0xf0] }
 0x284   : > { %14158 = vst [vmem:[#allocation63_spill] sm:$0xff] %v10936_v3 }
 0x285   : > { %v10938_v47 = vpop.f32.mrf.mxu0  ;;  %14159 = vst [vmem:[#allocation73_spill] sm:$0xff] %v10940_v33  ;;  %v10942_v19 = vpop.f32.mrf.mxu1  ;;  %3651 = vmatpush.bf16.msrb.mxu3 %v8173_v46  ;;  %v8149_v46 = vor.u32 %v8983_v40, %v8146_v42  ;;  %v8843_v40 = vld [vmem:[%s13891_s2 + $0x13c] sm:$0xf0]  ;;  %v7504_v33 = vld [vmem:[%s13891_s2 + $0x98] sm:$0xf] }
 0x286   : > { %14160 = vst [vmem:[#allocation40_spill] sm:$0xff] %v10942_v19  ;;  %3603 = vmatpush.bf16.msrb.mxu2 %v7957_v48  ;;  %v14175_v19 = vld [vmem:[#allocation71_spill] sm:$0xff] }
 0x287   : > { %14161 = vst [vmem:[#allocation72_spill] sm:$0xff] %v10944_v38  ;;  %v7576_v38 = vld [vmem:[%s13891_s2 + $0x128] sm:$0xf] }
 0x288   : > { %v7577_v42 = vor.u32 %v8843_v40, %v7576_v38  ;;  %v8831_v38 = vld [vmem:[%s13891_s2 + $0xdc] sm:$0xf0]  ;;  %v14174_v40 = vld [vmem:[#allocation28_spill] sm:$0xff] }
 0x289   : > { %3652 = vmatpush.bf16.msrb.mxu3 %v8149_v46 }
 0x28b   : > { %v2028_v61 = vpop.f32.mrf.mxu2  ;;  %v2077_v27 = vpop.f32.mrf.mxu3 }
 0x28c   : > { %3468 = vmatmul.bf16.gmra.mxu3 %v14162_v25 }
 0x28d   : > { %v10947_v23 = vpop.f32.mrf.mxu0  ;;  %v1979_v37 = vpop.f32.mrf.mxu1 }
 0x28e   : > { %v1980_v10 = vadd.f32 %v1979_v37, %v1931_v32  ;;  %v7789_v32 = vor.u32 %v8893_v17, %v7786_v44  ;;  %v7600_v17 = vld [vmem:[%s13891_s2 + $0x158] sm:$0xf]  ;;  %v8849_v44 = vld [vmem:[%s13891_s2 + $0x16c] sm:$0xf0] }
 0x290   : > { %3522 = vmatmul.bf16.gmra.mxu0 %v14132_v14  ;;  %3370 = vmatmul.bf16.gmra.mxu1 %v14163_v12  ;;  %v2029_v24 = vadd.f32 %v2028_v61, %v1980_v10  ;;  %v14169_v10 = vld [vmem:[#allocation69_spill] sm:$0xff] }
 0x291   : > { %3419 = vmatmul.bf16.gmra.mxu2 %v14164_v60  ;;  %3553 = vmatpush.bf16.msra.mxu1 %v7789_v32  ;;  %v7601_v32 = vor.u32 %v8849_v44, %v7600_v17  ;;  %v7552_v17 = vld [vmem:[%s13891_s2 + $0xf8] sm:$0xf] }
 0x292   : > { %v10954_v36 = vadd.f32 %v2077_v27, %v2029_v24  ;;  %v14170_v24 = vld [vmem:[#allocation17_spill] sm:$0xff]  ;;  %v14171_v27 = vld [vmem:[#allocation20_spill] sm:$0xff]  ;;  %v14172_v44 = vld [vmem:[#allocation70_spill] sm:$0xff] }
 0x293   : > { %3700 = vmatpush.bf16.msrb.mxu0 %v7601_v32  ;;  %v7528_v32 = vld [vmem:[%s13891_s2 + $0xc8] sm:$0xf] }
 0x294   : > { %14165 = vst [vmem:[#allocation53_spill] sm:$0xff] %v10954_v36  ;;  %v8887_v36 = vld [vmem:[%s13891_s2 + $0x2a4] sm:$0xf] }
 0x295   : > { %v10956_v52 = vpop.f32.mrf.mxu0  ;;  %v7765_v0 = vor.u32 %v8887_v36, %v7762_v26  ;;  %v8837_v36 = vld [vmem:[%s13891_s2 + $0x10c] sm:$0xf0]  ;;  %v7529_v26 = vor.u32 %v8831_v38, %v7528_v32  ;;  %v8977_v32 = vld [vmem:[%s13891_s2 + $0x574] sm:$0xf]  ;;  %v8122_v38 = vld [vmem:[%s13891_s2 + $0x588] sm:$0xf0] }
 0x296   : > { %v7553_v48 = vor.u32 %v8837_v36, %v7552_v17  ;;  %v7930_v17 = vld [vmem:[%s13891_s2 + $0x408] sm:$0xf0]  ;;  %v8125_v43 = vor.u32 %v8977_v32, %v8122_v38  ;;  %v7480_v32 = vld [vmem:[%s13891_s2 + $0x68] sm:$0xf]  ;;  %v8819_v38 = vld [vmem:[%s13891_s2 + $0x7c] sm:$0xf0] }
 0x297   : > { %3554 = vmatpush.bf16.msra.mxu1 %v7765_v0  ;;  %3701 = vmatpush.bf16.msrb.mxu0 %v7577_v42  ;;  %v14173_v0 = vld [vmem:[#allocation26_spill] sm:$0xff]  ;;  %v8929_v42 = vld [vmem:[%s13891_s2 + $0x3f4] sm:$0xf]  ;;  %v7481_v30 = vor.u32 %v8819_v38, %v7480_v32  ;;  %v11100_v38 = vpop.f32.mrf.mxu3 }
 0x298   : > { %v7933_v36 = vor.u32 %v8929_v42, %v7930_v17  ;;  %v8881_v42 = vld [vmem:[%s13891_s2 + $0x274] sm:$0xf]  ;;  %v7738_v17 = vld [vmem:[%s13891_s2 + $0x288] sm:$0xf0]  ;;  %3653 = vmatpush.bf16.msrb.mxu3 %v8125_v43  ;;  %v8813_v43 = vld [vmem:[%s13891_s2 + $0x4c] sm:$0xf0] }
 0x299   : > { %v7741_v22 = vor.u32 %v8881_v42, %v7738_v17  ;;  %v8923_v17 = vld [vmem:[%s13891_s2 + $0x3c4] sm:$0xf]  ;;  %v7906_v32 = vld [vmem:[%s13891_s2 + $0x3d8] sm:$0xf0]  ;;  %14181 = vst [vmem:[#allocation27_spill] sm:$0xff] %v11100_v38 }
 0x29a   : > { %3604 = vmatpush.bf16.msrb.mxu2 %v7933_v36  ;;  %v7909_v58 = vor.u32 %v8923_v17, %v7906_v32  ;;  %v8807_v38 = vld [vmem:[%s13891_s2 + $0x1c] sm:$0xf0] }
 0x29b   : > { %3702 = vmatpush.bf16.msrb.mxu0 %v7553_v48  ;;  %3555 = vmatpush.bf16.msra.mxu1 %v7741_v22  ;;  %v8875_v22 = vld [vmem:[%s13891_s2 + $0x244] sm:$0xf] }
 0x29c   : > { %3473 = vmatmul.bf16.gmra.mxu3 %v14166_v9 }
 0x29d   : > { %v10959_v18 = vpop.f32.mrf.mxu0 }
 0x29e   : > { %3605 = vmatpush.bf16.msrb.mxu2 %v7909_v58  ;;  %v8074_v58 = vld [vmem:[%s13891_s2 + $0x528] sm:$0xf0] }
 0x29f   : > { %3703 = vmatpush.bf16.msrb.mxu0 %v7529_v26  ;;  %v8825_v26 = vld [vmem:[%s13891_s2 + $0xac] sm:$0xf0] }
 0x2a0   : > { %3527 = vmatmul.bf16.gmra.mxu0 %v14133_v63  ;;  %3375 = vmatmul.bf16.gmra.mxu1 %v14167_v34  ;;  %v7505_v21 = vor.u32 %v8825_v26, %v7504_v33  ;;  %v7456_v26 = vld [vmem:[%s13891_s2 + $0x38] sm:$0xf] }
 0x2a1   : > { %3424 = vmatmul.bf16.gmra.mxu2 %v14168_v1  ;;  %v7457_v42 = vor.u32 %v8813_v43, %v7456_v26  ;;  %v8971_v26 = vld [vmem:[%s13891_s2 + $0x544] sm:$0xf]  ;;  %v8098_v43 = vld [vmem:[%s13891_s2 + $0x558] sm:$0xf0] }
 0x2a2   : > { %v8101_v5 = vor.u32 %v8971_v26, %v8098_v43  ;;  %v7882_v26 = vld [vmem:[%s13891_s2 + $0x3a8] sm:$0xf0]  ;;  %v8965_v43 = vld [vmem:[%s13891_s2 + $0x514] sm:$0xf] }
 0x2a3   : > { %3704 = vmatpush.bf16.msrb.mxu0 %v7505_v21  ;;  %v11089_v21 = vpop.f32.mrf.mxu1 }
 0x2a4   : > { %14180 = vst [vmem:[#allocation18_spill] sm:$0xff] %v11089_v21  ;;  %v7432_v21 = vld [vmem:[%s13891_s2 + $0x8] sm:$0xf]  ;;  %3654 = vmatpush.bf16.msrb.mxu3 %v8101_v5  ;;  %v14183_v5 = vld [vmem:[#allocation62_spill] sm:$0xff] }
 0x2a5   : > { %v10982_v37 = vpop.f32.mrf.mxu0  ;;  %v7433_v17 = vor.u32 %v8807_v38, %v7432_v21  ;;  %v8863_v21 = vld [vmem:[%s13891_s2 + $0x1e4] sm:$0xf]  ;;  %v7666_v38 = vld [vmem:[%s13891_s2 + $0x1f8] sm:$0xf0] }
 0x2a7   : > { %3705 = vmatpush.bf16.msrb.mxu0 %v7481_v30  ;;  %v7714_v30 = vld [vmem:[%s13891_s2 + $0x258] sm:$0xf0] }
 0x2a8   : > { %v7717_v29 = vor.u32 %v8875_v22, %v7714_v30  ;;  %v8869_v22 = vld [vmem:[%s13891_s2 + $0x214] sm:$0xf]  ;;  %v7690_v30 = vld [vmem:[%s13891_s2 + $0x228] sm:$0xf0] }
 0x2a9   : > { %v7693_v32 = vor.u32 %v8869_v22, %v7690_v30  ;;  %v8911_v22 = vld [vmem:[%s13891_s2 + $0x364] sm:$0xf]  ;;  %v11141_v30 = vpop.f32.mrf.mxu2 }
 0x2aa   : > { %3556 = vmatpush.bf16.msra.mxu1 %v7717_v29  ;;  %v8077_v29 = vor.u32 %v8965_v43, %v8074_v58  ;;  %14182 = vst [vmem:[#allocation16_spill] sm:$0xff] %v11141_v30  ;;  %v8050_v43 = vld [vmem:[%s13891_s2 + $0x4f8] sm:$0xf0]  ;;  %v1936_v58 = vadd.f32 %v10634_v4, %v10556_v7  ;;  %v7669_v30 = vor.u32 %v8863_v21, %v7666_v38  ;;  %v8905_v7 = vld [vmem:[%s13891_s2 + $0x334] sm:$0xf]  ;;  %v14185_v21 = vld [vmem:[#allocation23_spill] sm:$0xff] }
 0x2ab   : > { %3706 = vmatpush.bf16.msrb.mxu0 %v7457_v42  ;;  %v8917_v42 = vld [vmem:[%s13891_s2 + $0x394] sm:$0xf] }
 0x2ac   : > { %3478 = vmatmul.bf16.gmra.mxu3 %v14169_v10  ;;  %v7885_v15 = vor.u32 %v8917_v42, %v7882_v26  ;;  %v7858_v42 = vld [vmem:[%s13891_s2 + $0x378] sm:$0xf0]  ;;  %v8959_v26 = vld [vmem:[%s13891_s2 + $0x4e4] sm:$0xf]  ;;  %v14186_v38 = vld [vmem:[#allocation25_spill] sm:$0xff] }
 0x2ad   : > { %v10985_v61 = vpop.f32.mrf.mxu0  ;;  %3655 = vmatpush.bf16.msrb.mxu3 %v8077_v29  ;;  %v7861_v16 = vor.u32 %v8911_v22, %v7858_v42  ;;  %v8026_v29 = vld [vmem:[%s13891_s2 + $0x4c8] sm:$0xf0] }
 0x2ae   : > { %3557 = vmatpush.bf16.msra.mxu1 %v7693_v32  ;;  %3606 = vmatpush.bf16.msrb.mxu2 %v7885_v15  ;;  %v7834_v15 = vld [vmem:[%s13891_s2 + $0x348] sm:$0xf0]  ;;  %v8953_v32 = vld [vmem:[%s13891_s2 + $0x4b4] sm:$0xf] }
 0x2af   : > { %3707 = vmatpush.bf16.msrb.mxu0 %v7433_v17  ;;  %v7837_v42 = vor.u32 %v8905_v7, %v7834_v15 }
 0x2b0   : > { %3532 = vmatmul.bf16.gmra.mxu0 %v14134_v28  ;;  %3380 = vmatmul.bf16.gmra.mxu1 %v14170_v24 }
 0x2b1   : > { %3429 = vmatmul.bf16.gmra.mxu2 %v14171_v27 }
 0x2b2   : > { %3558 = vmatpush.bf16.msra.mxu1 %v7669_v30  ;;  %3607 = vmatpush.bf16.msrb.mxu2 %v7861_v16  ;;  %v8899_v16 = vld [vmem:[%s13891_s2 + $0x304] sm:$0xf]  ;;  %v8002_v30 = vld [vmem:[%s13891_s2 + $0x498] sm:$0xf0] }
 0x2b5   : > { %v11014_v3 = vpop.f32.mrf.mxu0 }
 0x2b6   : > { %3608 = vmatpush.bf16.msrb.mxu2 %v7837_v42  ;;  %v1941_v42 = vadd.f32 %v10634_v4, %v10613_v49 }
 0x2bc   : > { %3483 = vmatmul.bf16.gmra.mxu3 %v14172_v44 }
 0x2bd   : > { %v11029_v46 = vpop.f32.mrf.mxu0 }
 0x2c0   : > { %3537 = vmatmul.bf16.gmra.mxu0 %v14135_v41  ;;  %3385 = vmatmul.bf16.gmra.mxu1 %v14173_v0 }
 0x2c1   : > { %3434 = vmatmul.bf16.gmra.mxu2 %v14174_v40 }
 0x2c5   : > { %v11046_v48 = vpop.f32.mrf.mxu0 }
 0x2cc   : > { %3488 = vmatmul.bf16.gmra.mxu3 %v14175_v19 }
 0x2cd   : > { %v11067_v36 = vpop.f32.mrf.mxu0 }
 0x2ce   : > { %14176 = vst [vmem:[#allocation54_spill] sm:$0xff] %v11067_v36  ;;  %v7642_v36 = vld [vmem:[%s13891_s2 + $0x1c8] sm:$0xf0] }
 0x2cf   : > { %v7645_v22 = vor.u32 %v8857_v55, %v7642_v36 }
 0x2d0   : > { %3542 = vmatmul.bf16.gmra.mxu0 %v14137_v2  ;;  %3390 = vmatmul.bf16.gmra.mxu1 %v14177_v20 }
 0x2d1   : > { %3439 = vmatmul.bf16.gmra.mxu2 %v14178_v13  ;;  %3559 = vmatpush.bf16.msra.mxu1 %v7645_v22 }
 0x2d5   : > { %v11078_v33 = vpop.f32.mrf.mxu0 }
 0x2d6   : > { %14179 = vst [vmem:[#allocation64_spill] sm:$0xff] %v11078_v33  ;;  %v8053_v33 = vor.u32 %v8959_v26, %v8050_v43  ;;  %v8029_v26 = vor.u32 %v8953_v32, %v8026_v29 }
 0x2d8   : > { %3656 = vmatpush.bf16.msrb.mxu3 %v8053_v33  ;;  %v8947_v33 = vld [vmem:[%s13891_s2 + $0x484] sm:$0xf] }
 0x2d9   : > { %v8005_v29 = vor.u32 %v8947_v33, %v8002_v30 }
 0x2dc   : > { %3493 = vmatmul.bf16.gmra.mxu3 %v14183_v5 }
 0x2dd   : > { %v11155_v62 = vpop.f32.mrf.mxu0  ;;  %v1984_v17 = vpop.f32.mrf.mxu1  ;;  %3657 = vmatpush.bf16.msrb.mxu3 %v8029_v26 }
 0x2de   : > { %14184 = vst [vmem:[#allocation24_spill] sm:$0xff] %v11155_v62  ;;  %v1985_v6 = vadd.f32 %v1984_v17, %v1936_v58  ;;  %v8851_v62 = vld [vmem:[%s13891_s2 + $0x184] sm:$0xf] }
 0x2df   : > { %v2082_v45 = vpop.f32.mrf.mxu3 }
 0x2e0   : > { %3547 = vmatmul.bf16.gmra.mxu0 %v14145_v53  ;;  %3395 = vmatmul.bf16.gmra.mxu1 %v14185_v21  ;;  %v7618_v21 = vld [vmem:[%s13891_s2 + $0x198] sm:$0xf0] }
 0x2e1   : > { %3444 = vmatmul.bf16.gmra.mxu2 %v14186_v38  ;;  %v7621_v36 = vor.u32 %v8851_v62, %v7618_v21  ;;  %v1938_v62 = vadd.f32 %v10634_v4, %v10582_v59  ;;  %3658 = vmatpush.bf16.msrb.mxu3 %v8005_v29 }
 0x2e3   : > { %3560 = vmatpush.bf16.msra.mxu1 %v7621_v36  ;;  %v14188_v36 = vld [vmem:[#allocation32_spill] sm:$0xff] }
 0x2e4   : > { %v2033_v43 = vpop.f32.mrf.mxu2 }
 0x2e5   : > { %v2034_v58 = vadd.f32 %v2033_v43, %v1985_v6  ;;  %v11178_v17 = vpop.f32.mrf.mxu0  ;;  %v1986_v55 = vpop.f32.mrf.mxu1  ;;  %v7810_v6 = vld [vmem:[%s13891_s2 + $0x318] sm:$0xf0] }
 0x2e6   : > { %14187 = vst [vmem:[#allocation75_spill] sm:$0xff] %v11178_v17  ;;  %v7813_v32 = vor.u32 %v8899_v16, %v7810_v6  ;;  %v1987_v21 = vadd.f32 %v1986_v55, %v1938_v62  ;;  %v14189_v55 = vld [vmem:[#allocation33_spill] sm:$0xff] }
 0x2e7   : > { %v2083_v7 = vadd.f32 %v2082_v45, %v2034_v58  ;;  %v2084_v15 = vpop.f32.mrf.mxu3 }
 0x2e8   : > { %3609 = vmatpush.bf16.msrb.mxu2 %v7813_v32 }
 0x2e9   : > { %v2104_v26 = vmul.f32 0.02, %v2083_v7 }
 0x2eb   : > { %v2120_v33 = vmax.f32 %v2083_v7, %v2104_v26 }
 0x2ec   : > { %v2035_v22 = vpop.f32.mrf.mxu2  ;;  %3498 = vmatmul.bf16.gmra.mxu3 %v10396_v50 }
 0x2ed   : > { %v2036_v43 = vadd.f32 %v2035_v22, %v1987_v21  ;;  %v11203_v17 = vpop.f32.mrf.mxu0  ;;  %v1989_v45 = vpop.f32.mrf.mxu1  ;;  %v9319_v22 = vld [vmem:[%s13893_s4] ss:$0 sm:$0xff] }
 0x2ee   : > { %v1990_v16 = vadd.f32 %v1989_v45, %v1941_v42  ;;  %v1943_v42 = vadd.f32 %v9319_v22, %v10629_v8 }
 0x2ef   : > { %v2085_v58 = vadd.f32 %v2084_v15, %v2036_v43  ;;  %v2087_v6 = vpop.f32.mrf.mxu3 }
 0x2f0   : > { %3708 = vmatmul.bf16.vlgmr.msrb.gmra.mxu0 %v14119_v39  ;;  %3400 = vmatmul.bf16.gmra.mxu1 %v14188_v36 }
 0x2f1   : > { %v2105_v59 = vmul.f32 0.02, %v2085_v58  ;;  %3449 = vmatmul.bf16.gmra.mxu2 %v14189_v55 }
 0x2f3   : > { %v2121_v30 = vmax.f32 %v2085_v58, %v2105_v59 }
 0x2f4   : > { %v2038_v32 = vpop.f32.mrf.mxu2 }
 0x2f5   : > { %v11208_v29 = vpack.c.bf16 %v2121_v30, %v2120_v33  ;;  %v2039_v49 = vadd.f32 %v2038_v32, %v1990_v16  ;;  %v11210_v4 = vpop.f32.mrf.mxu0  ;;  %v1991_v62 = vpop.f32.mrf.mxu1 }
 0x2f6   : > { %v1992_v43 = vadd.f32 %v1991_v62, %v1943_v42 }
 0x2f7   : > { %14190 = vst [vmem:[#allocation56_spill] sm:$0xff] %v11208_v29  ;;  %v2088_v21 = vadd.f32 %v2087_v6, %v2039_v49  ;;  %v2089_v15 = vpop.f32.mrf.mxu3 }
 0x2f9   : > { %v2106_v16 = vmul.f32 0.02, %v2088_v21 }
 0x2fb   : > { %v2122_v30 = vmax.f32 %v2088_v21, %v2106_v16 }
 0x2fc   : > { %v2040_v45 = vpop.f32.mrf.mxu2  ;;  %3659 = vmatmul.bf16.vlgmr.msrb.gmra.mxu3 %v14155_v35 }
 0x2fd   : > { %v2041_v7 = vadd.f32 %v2040_v45, %v1992_v43  ;;  %v11217_v26 = vpop.f32.mrf.mxu0  ;;  %v3366_v58 = vpop.f32.mrf.mxu1 }
 0x2fe   : > { %14191 = vst [vmem:[#allocation59_spill] sm:$0xff] %v11217_v26  ;;  %v3367_v32 = vadd.f32 %v3366_v58, %v10911_v51 }
 0x2ff   : > { %v2090_v59 = vadd.f32 %v2089_v15, %v2041_v7  ;;  %v3464_v33 = vpop.f32.mrf.mxu3 }
 0x300   : > { %3713 = vmatmul.bf16.gmra.mxu0 %v14127_v57  ;;  %3561 = vmatmul.bf16.vlgmr.msra.gmra.mxu1 %v14156_v11 }
 0x301   : > { %v2107_v6 = vmul.f32 0.02, %v2090_v59  ;;  %3610 = vmatmul.bf16.vlgmr.msrb.gmra.mxu2 %v14157_v54 }
 0x303   : > { %v2123_v8 = vmax.f32 %v2090_v59, %v2107_v6 }
 0x304   : > { %v3415_v49 = vpop.f32.mrf.mxu2 }
 0x305   : > { %v11223_v62 = vpack.c.bf16 %v2123_v8, %v2122_v30  ;;  %v3416_v22 = vadd.f32 %v3415_v49, %v3367_v32  ;;  %v11225_v42 = vpop.f32.mrf.mxu0  ;;  %v3368_v43 = vpop.f32.mrf.mxu1 }
 0x306   : > { %v3369_v7 = vadd.f32 %v3368_v43, %v10924_v31 }
 0x307   : > { %14192 = vst [vmem:[#allocation60_spill] sm:$0xff] %v11223_v62  ;;  %v11227_v15 = vadd.f32 %v3464_v33, %v3416_v22  ;;  %v3466_v45 = vpop.f32.mrf.mxu3 }
 0x309   : > { %14193 = vst [vmem:[#allocation31_spill] sm:$0xff] %v11227_v15 }
 0x30c   : > { %v3417_v29 = vpop.f32.mrf.mxu2  ;;  %3664 = vmatmul.bf16.gmra.mxu3 %v14162_v25 }
 0x30d   : > { %v3418_v26 = vadd.f32 %v3417_v29, %v3369_v7  ;;  %v11231_v21 = vpop.f32.mrf.mxu0  ;;  %v3371_v16 = vpop.f32.mrf.mxu1  ;;  %v8945_v7 = vld [vmem:[%s13891_s2 + $0x46c] sm:$0xf0] }
 0x30e   : > { %v3372_v59 = vadd.f32 %v3371_v16, %v10929_v56 }
 0x30f   : > { %v11233_v51 = vadd.f32 %v3466_v45, %v3418_v26  ;;  %v3469_v58 = vpop.f32.mrf.mxu3 }
 0x310   : > { %3718 = vmatmul.bf16.gmra.mxu0 %v14132_v14  ;;  %3566 = vmatmul.bf16.gmra.mxu1 %v14163_v12 }
 0x311   : > { %14194 = vst [vmem:[#allocation74_spill] sm:$0xff] %v11233_v51  ;;  %3615 = vmatmul.bf16.gmra.mxu2 %v14164_v60  ;;  %v7672_v51 = vld [vmem:[%s13891_s2 + $0x1e8] sm:$0xf] }
 0x314   : > { %v3420_v33 = vpop.f32.mrf.mxu2 }
 0x315   : > { %v3421_v31 = vadd.f32 %v3420_v33, %v3372_v59  ;;  %v11239_v6 = vpop.f32.mrf.mxu0  ;;  %v3373_v30 = vpop.f32.mrf.mxu1 }
 0x316   : > { %v3374_v26 = vadd.f32 %v3373_v30, %v10938_v47  ;;  %v7984_v47 = vld [vmem:[%s13891_s2 + $0x458] sm:$0xf] }
 0x317   : > { %v11241_v29 = vadd.f32 %v3469_v58, %v3421_v31  ;;  %v3471_v8 = vpop.f32.mrf.mxu3  ;;  %v7985_v16 = vor.u32 %v8945_v7, %v7984_v47  ;;  %v8897_v47 = vld [vmem:[%s13891_s2 + $0x2ec] sm:$0xf0] }
 0x319   : > { %14195 = vst [vmem:[#allocation61_spill] sm:$0xff] %v11241_v29  ;;  %3798 = vmatpush.bf16.msra.mxu2 %v7985_v16 }
 0x31c   : > { %v3422_v32 = vpop.f32.mrf.mxu2  ;;  %3669 = vmatmul.bf16.gmra.mxu3 %v14166_v9 }
 0x31d   : > { %v3423_v49 = vadd.f32 %v3422_v32, %v3374_v26  ;;  %v11245_v22 = vpop.f32.mrf.mxu0  ;;  %v3376_v43 = vpop.f32.mrf.mxu1  ;;  %v8176_v32 = vld [vmem:[%s13891_s2 + $0x5d8] sm:$0xf] }
 0x31e   : > { %v3377_v58 = vadd.f32 %v3376_v43, %v10947_v23  ;;  %v7792_v23 = vld [vmem:[%s13891_s2 + $0x2d8] sm:$0xf] }
 0x31f   : > { %v11247_v45 = vadd.f32 %v3471_v8, %v3423_v49  ;;  %v3474_v56 = vpop.f32.mrf.mxu3  ;;  %v8993_v49 = vld [vmem:[%s13891_s2 + $0x5ec] sm:$0xf0]  ;;  %v7793_v7 = vor.u32 %v8897_v47, %v7792_v23 }
 0x320   : > { %3723 = vmatmul.bf16.gmra.mxu0 %v14133_v63  ;;  %3571 = vmatmul.bf16.gmra.mxu1 %v14167_v34  ;;  %v8177_v43 = vor.u32 %v8993_v49, %v8176_v32 }
 0x321   : > { %14196 = vst [vmem:[#allocation65_spill] sm:$0xff] %v11247_v45  ;;  %3620 = vmatmul.bf16.gmra.mxu2 %v14168_v1  ;;  %3749 = vmatpush.bf16.msrb.mxu1 %v7793_v7 }
 0x322   : > { %3847 = vmatpush.bf16.msra.mxu3 %v8177_v43 }
 0x324   : > { %v3425_v59 = vpop.f32.mrf.mxu2 }
 0x325   : > { %v3426_v33 = vadd.f32 %v3425_v59, %v3377_v58  ;;  %v11259_v31 = vpop.f32.mrf.mxu0  ;;  %v3378_v30 = vpop.f32.mrf.mxu1 }
 0x327   : > { %v11261_v8 = vadd.f32 %v3474_v56, %v3426_v33  ;;  %v3476_v26 = vpop.f32.mrf.mxu3  ;;  %v3379_v56 = vadd.f32 %v3378_v30, %v10956_v52  ;;  %v7960_v52 = vld [vmem:[%s13891_s2 + $0x428] sm:$0xf]  ;;  %v8939_v30 = vld [vmem:[%s13891_s2 + $0x43c] sm:$0xf0] }
 0x328   : > { %v7961_v32 = vor.u32 %v8939_v30, %v7960_v52  ;;  %v7602_v52 = vld [vmem:[%s13891_s2 + $0x170] sm:$0xf0]  ;;  %v8891_v30 = vld [vmem:[%s13891_s2 + $0x2bc] sm:$0xf0] }
 0x329   : > { %14197 = vst [vmem:[#allocation66_spill] sm:$0xff] %v11261_v8 }
 0x32a   : > { %3799 = vmatpush.bf16.msra.mxu2 %v7961_v32 }
 0x32c   : > { %v3427_v16 = vpop.f32.mrf.mxu2  ;;  %3674 = vmatmul.bf16.gmra.mxu3 %v14169_v10 }
 0x32d   : > { %v3428_v58 = vadd.f32 %v3427_v16, %v3379_v56  ;;  %v11277_v59 = vpop.f32.mrf.mxu0  ;;  %v3381_v33 = vpop.f32.mrf.mxu1  ;;  %v8152_v16 = vld [vmem:[%s13891_s2 + $0x5a8] sm:$0xf] }
 0x32e   : > { %v3382_v49 = vadd.f32 %v3381_v33, %v10959_v18  ;;  %v8846_v18 = vld [vmem:[%s13891_s2 + $0x15c] sm:$0xf] }
 0x32f   : > { %v11279_v62 = vadd.f32 %v3476_v26, %v3428_v58  ;;  %v3479_v8 = vpop.f32.mrf.mxu3  ;;  %v8987_v58 = vld [vmem:[%s13891_s2 + $0x5bc] sm:$0xf0] }
 0x330   : > { %3728 = vmatmul.bf16.gmra.mxu0 %v14134_v28  ;;  %3576 = vmatmul.bf16.gmra.mxu1 %v14170_v24  ;;  %v8153_v33 = vor.u32 %v8987_v58, %v8152_v16  ;;  %v7578_v16 = vld [vmem:[%s13891_s2 + $0x140] sm:$0xf0] }
 0x331   : > { %14198 = vst [vmem:[#allocation36_spill] sm:$0xff] %v11279_v62  ;;  %3625 = vmatmul.bf16.gmra.mxu2 %v14171_v27 }
 0x332   : > { %3848 = vmatpush.bf16.msra.mxu3 %v8153_v33  ;;  %v7554_v33 = vld [vmem:[%s13891_s2 + $0x110] sm:$0xf0] }
 0x334   : > { %v3430_v26 = vpop.f32.mrf.mxu2 }
 0x335   : > { %v3431_v23 = vadd.f32 %v3430_v26, %v3382_v49  ;;  %v11291_v43 = vpop.f32.mrf.mxu0  ;;  %v3383_v47 = vpop.f32.mrf.mxu1  ;;  %v7605_v49 = vor.u32 %v8846_v18, %v7602_v52  ;;  %v8834_v52 = vld [vmem:[%s13891_s2 + $0xfc] sm:$0xf] }
 0x336   : > { %v3384_v32 = vadd.f32 %v3383_v47, %v10982_v37 }
 0x337   : > { %v11293_v56 = vadd.f32 %v3479_v8, %v3431_v23  ;;  %v3481_v7 = vpop.f32.mrf.mxu3  ;;  %v7768_v8 = vld [vmem:[%s13891_s2 + $0x2a8] sm:$0xf]  ;;  %v8840_v23 = vld [vmem:[%s13891_s2 + $0x12c] sm:$0xf]  ;;  %3896 = vmatpush.bf16.msra.mxu0 %v7605_v49  ;;  %v7530_v49 = vld [vmem:[%s13891_s2 + $0xe0] sm:$0xf0] }
 0x338   : > { %v7769_v26 = vor.u32 %v8891_v30, %v7768_v8  ;;  %v7581_v37 = vor.u32 %v8840_v23, %v7578_v16  ;;  %v7557_v8 = vor.u32 %v8834_v52, %v7554_v33 }
 0x339   : > { %14199 = vst [vmem:[#allocation37_spill] sm:$0xff] %v11293_v56 }
 0x33a   : > { %3750 = vmatpush.bf16.msrb.mxu1 %v7769_v26 }
 0x33b   : > { %3897 = vmatpush.bf16.msra.mxu0 %v7581_v37 }
 0x33c   : > { %v3432_v58 = vpop.f32.mrf.mxu2  ;;  %3679 = vmatmul.bf16.gmra.mxu3 %v14172_v44 }
 0x33d   : > { %v3433_v56 = vadd.f32 %v3432_v58, %v3384_v32  ;;  %v11321_v62 = vpop.f32.mrf.mxu0  ;;  %v3386_v45 = vpop.f32.mrf.mxu1  ;;  %v8828_v32 = vld [vmem:[%s13891_s2 + $0xcc] sm:$0xf] }
 0x33e   : > { %v3387_v30 = vadd.f32 %v3386_v45, %v10985_v61  ;;  %v7533_v52 = vor.u32 %v8828_v32, %v7530_v49  ;;  %v8128_v45 = vld [vmem:[%s13891_s2 + $0x578] sm:$0xf] }
 0x33f   : > { %v11323_v47 = vadd.f32 %v3481_v7, %v3433_v56  ;;  %v3484_v18 = vpop.f32.mrf.mxu3  ;;  %v7936_v56 = vld [vmem:[%s13891_s2 + $0x3f8] sm:$0xf]  ;;  %v8933_v7 = vld [vmem:[%s13891_s2 + $0x40c] sm:$0xf0]  ;;  %3898 = vmatpush.bf16.msra.mxu0 %v7557_v8 }
 0x340   : > { %3733 = vmatmul.bf16.gmra.mxu0 %v14135_v41  ;;  %3581 = vmatmul.bf16.gmra.mxu1 %v14173_v0  ;;  %v7937_v26 = vor.u32 %v8933_v7, %v7936_v56  ;;  %v8822_v56 = vld [vmem:[%s13891_s2 + $0x9c] sm:$0xf]  ;;  %v7744_v8 = vld [vmem:[%s13891_s2 + $0x278] sm:$0xf] }
 0x341   : > { %14200 = vst [vmem:[#allocation34_spill] sm:$0xff] %v11323_v47  ;;  %3630 = vmatmul.bf16.gmra.mxu2 %v14174_v40  ;;  %v8981_v47 = vld [vmem:[%s13891_s2 + $0x58c] sm:$0xf0] }
 0x342   : > { %3800 = vmatpush.bf16.msra.mxu2 %v7937_v26  ;;  %v8129_v7 = vor.u32 %v8981_v47, %v8128_v45  ;;  %v8816_v47 = vld [vmem:[%s13891_s2 + $0x6c] sm:$0xf] }
 0x343   : > { %3899 = vmatpush.bf16.msra.mxu0 %v7533_v52 }
 0x344   : > { %v3435_v23 = vpop.f32.mrf.mxu2  ;;  %3849 = vmatpush.bf16.msra.mxu3 %v8129_v7  ;;  %v7458_v7 = vld [vmem:[%s13891_s2 + $0x50] sm:$0xf0] }
 0x345   : > { %v3436_v16 = vadd.f32 %v3435_v23, %v3387_v30  ;;  %v11347_v58 = vpop.f32.mrf.mxu0  ;;  %v3388_v37 = vpop.f32.mrf.mxu1  ;;  %v8885_v30 = vld [vmem:[%s13891_s2 + $0x28c] sm:$0xf0]  ;;  %v7482_v23 = vld [vmem:[%s13891_s2 + $0x80] sm:$0xf0] }
 0x346   : > { %v3389_v32 = vadd.f32 %v3388_v37, %v11014_v3  ;;  %v7745_v26 = vor.u32 %v8885_v30, %v7744_v8  ;;  %v7485_v3 = vor.u32 %v8816_v47, %v7482_v23  ;;  %v8879_v30 = vld [vmem:[%s13891_s2 + $0x25c] sm:$0xf0] }
 0x347   : > { %v11349_v33 = vadd.f32 %v3484_v18, %v3436_v16  ;;  %v3486_v61 = vpop.f32.mrf.mxu3  ;;  %v7506_v18 = vld [vmem:[%s13891_s2 + $0xb0] sm:$0xf0] }
 0x348   : > { %v7509_v49 = vor.u32 %v8822_v56, %v7506_v18  ;;  %3751 = vmatpush.bf16.msrb.mxu1 %v7745_v26  ;;  %v8810_v18 = vld [vmem:[%s13891_s2 + $0x3c] sm:$0xf] }
 0x349   : > { %14201 = vst [vmem:[#allocation39_spill] sm:$0xff] %v11349_v33  ;;  %v7461_v8 = vor.u32 %v8810_v18, %v7458_v7 }
 0x34a   : > { %3900 = vmatpush.bf16.msra.mxu0 %v7509_v49  ;;  %v8927_v49 = vld [vmem:[%s13891_s2 + $0x3dc] sm:$0xf0] }
 0x34c   : > { %v3437_v16 = vpop.f32.mrf.mxu2  ;;  %3684 = vmatmul.bf16.gmra.mxu3 %v14175_v19 }
 0x34d   : > { %v3438_v52 = vadd.f32 %v3437_v16, %v3389_v32  ;;  %v11377_v45 = vpop.f32.mrf.mxu0  ;;  %v3391_v33 = vpop.f32.mrf.mxu1  ;;  %v7912_v32 = vld [vmem:[%s13891_s2 + $0x3c8] sm:$0xf] }
 0x34e   : > { %14202 = vst [vmem:[#allocation41_spill] sm:$0xff] %v11377_v45  ;;  %3901 = vmatpush.bf16.msra.mxu0 %v7485_v3  ;;  %v3392_v26 = vadd.f32 %v3391_v33, %v11029_v46  ;;  %v7913_v23 = vor.u32 %v8927_v49, %v7912_v32  ;;  %v8104_v16 = vld [vmem:[%s13891_s2 + $0x548] sm:$0xf]  ;;  %v8804_v3 = vld [vmem:[%s13891_s2 + $0xc] sm:$0xf] }
 0x34f   : > { %v11379_v37 = vadd.f32 %v3486_v61, %v3438_v52  ;;  %v3489_v56 = vpop.f32.mrf.mxu3  ;;  %v7720_v61 = vld [vmem:[%s13891_s2 + $0x248] sm:$0xf]  ;;  %v8975_v52 = vld [vmem:[%s13891_s2 + $0x55c] sm:$0xf0]  ;;  %v7434_v46 = vld [vmem:[%s13891_s2 + $0x20] sm:$0xf0] }
 0x350   : > { %3738 = vmatmul.bf16.gmra.mxu0 %v14137_v2  ;;  %3586 = vmatmul.bf16.gmra.mxu1 %v14177_v20  ;;  %v7721_v47 = vor.u32 %v8879_v30, %v7720_v61  ;;  %v8105_v7 = vor.u32 %v8975_v52, %v8104_v16  ;;  %v7696_v33 = vld [vmem:[%s13891_s2 + $0x218] sm:$0xf]  ;;  %v8873_v61 = vld [vmem:[%s13891_s2 + $0x22c] sm:$0xf0] }
 0x351   : > { %14203 = vst [vmem:[#allocation38_spill] sm:$0xff] %v11379_v37  ;;  %3635 = vmatmul.bf16.gmra.mxu2 %v14178_v13  ;;  %v7697_v49 = vor.u32 %v8873_v61, %v7696_v33  ;;  %v7888_v16 = vld [vmem:[%s13891_s2 + $0x398] sm:$0xf]  ;;  %v8921_v52 = vld [vmem:[%s13891_s2 + $0x3ac] sm:$0xf0] }
 0x352   : > { %3752 = vmatpush.bf16.msrb.mxu1 %v7721_v47  ;;  %3801 = vmatpush.bf16.msra.mxu2 %v7913_v23  ;;  %v8080_v37 = vld [vmem:[%s13891_s2 + $0x518] sm:$0xf]  ;;  %v8969_v47 = vld [vmem:[%s13891_s2 + $0x52c] sm:$0xf0] }
 0x353   : > { %3902 = vmatpush.bf16.msra.mxu0 %v7461_v8  ;;  %3850 = vmatpush.bf16.msra.mxu3 %v8105_v7  ;;  %v8081_v61 = vor.u32 %v8969_v47, %v8080_v37  ;;  %v8867_v8 = vld [vmem:[%s13891_s2 + $0x1fc] sm:$0xf0]  ;;  %v8056_v7 = vld [vmem:[%s13891_s2 + $0x4e8] sm:$0xf]  ;;  %v8957_v47 = vld [vmem:[%s13891_s2 + $0x4cc] sm:$0xf0] }
 0x354   : > { %v3440_v18 = vpop.f32.mrf.mxu2  ;;  %v8915_v37 = vld [vmem:[%s13891_s2 + $0x37c] sm:$0xf0] }
 0x355   : > { %v3441_v30 = vadd.f32 %v3440_v18, %v3392_v26  ;;  %v11421_v32 = vpop.f32.mrf.mxu0  ;;  %v3393_v29 = vpop.f32.mrf.mxu1  ;;  %v7437_v26 = vor.u32 %v8804_v3, %v7434_v46  ;;  %v7889_v18 = vor.u32 %v8921_v52, %v7888_v16  ;;  %v7864_v3 = vld [vmem:[%s13891_s2 + $0x368] sm:$0xf]  ;;  %v8963_v46 = vld [vmem:[%s13891_s2 + $0x4fc] sm:$0xf0]  ;;  %v8861_v52 = vld [vmem:[%s13891_s2 + $0x1cc] sm:$0xf0] }
 0x356   : > { %14204 = vst [vmem:[#allocation68_spill] sm:$0xff] %v11421_v32  ;;  %3753 = vmatpush.bf16.msrb.mxu1 %v7697_v49  ;;  %v7865_v49 = vor.u32 %v8915_v37, %v7864_v3  ;;  %v8057_v16 = vor.u32 %v8963_v46, %v8056_v7  ;;  %v14208_v32 = vld [vmem:[#allocation23_spill] sm:$0xff] }
 0x357   : > { %v11435_v23 = vadd.f32 %v3489_v56, %v3441_v30  ;;  %v3491_v33 = vpop.f32.mrf.mxu3  ;;  %3802 = vmatpush.bf16.msra.mxu2 %v7889_v18  ;;  %3903 = vmatpush.bf16.msra.mxu0 %v7437_v26  ;;  %v7673_v56 = vor.u32 %v8867_v8, %v7672_v51  ;;  %v3394_v30 = vadd.f32 %v3393_v29, %v11046_v48  ;;  %v7648_v51 = vld [vmem:[%s13891_s2 + $0x1b8] sm:$0xf]  ;;  %v8909_v48 = vld [vmem:[%s13891_s2 + $0x34c] sm:$0xf0] }
 0x358   : > { %3851 = vmatpush.bf16.msra.mxu3 %v8081_v61  ;;  %v7840_v26 = vld [vmem:[%s13891_s2 + $0x338] sm:$0xf]  ;;  %v7649_v37 = vor.u32 %v8861_v52, %v7648_v51  ;;  %v8008_v51 = vld [vmem:[%s13891_s2 + $0x488] sm:$0xf]  ;;  %v8951_v52 = vld [vmem:[%s13891_s2 + $0x49c] sm:$0xf0] }
 0x359   : > { %14205 = vst [vmem:[#allocation67_spill] sm:$0xff] %v11435_v23  ;;  %v8032_v29 = vld [vmem:[%s13891_s2 + $0x4b8] sm:$0xf]  ;;  %v7841_v7 = vor.u32 %v8909_v48, %v7840_v26 }
 0x35a   : > { %3754 = vmatpush.bf16.msrb.mxu1 %v7673_v56  ;;  %v8033_v15 = vor.u32 %v8957_v47, %v8032_v29  ;;  %v8855_v56 = vld [vmem:[%s13891_s2 + $0x19c] sm:$0xf0]  ;;  %v8009_v29 = vor.u32 %v8951_v52, %v8008_v51 }
 0x35b   : > { %3803 = vmatpush.bf16.msra.mxu2 %v7865_v49  ;;  %v14209_v26 = vld [vmem:[#allocation54_spill] sm:$0xff] }
 0x35c   : > { %v3442_v18 = vpop.f32.mrf.mxu2  ;;  %3689 = vmatmul.bf16.gmra.mxu3 %v14183_v5 }
 0x35d   : > { %v3443_v61 = vadd.f32 %v3442_v18, %v3394_v30  ;;  %v11475_v8 = vpop.f32.mrf.mxu0  ;;  %v3396_v3 = vpop.f32.mrf.mxu1  ;;  %3852 = vmatpush.bf16.msra.mxu3 %v8057_v16  ;;  %v7624_v30 = vld [vmem:[%s13891_s2 + $0x188] sm:$0xf]  ;;  %v8903_v16 = vld [vmem:[%s13891_s2 + $0x31c] sm:$0xf0] }
 0x35e   : > { %14206 = vst [vmem:[#allocation46_spill] sm:$0xff] %v11475_v8  ;;  %3755 = vmatpush.bf16.msrb.mxu1 %v7649_v37  ;;  %v7625_v49 = vor.u32 %v8855_v56, %v7624_v30  ;;  %v3397_v18 = vadd.f32 %v3396_v3, %v14209_v26 }
 0x35f   : > { %v11477_v46 = vadd.f32 %v3491_v33, %v3443_v61  ;;  %v3494_v23 = vpop.f32.mrf.mxu3  ;;  %v7816_v33 = vld [vmem:[%s13891_s2 + $0x308] sm:$0xf]  ;;  %3804 = vmatpush.bf16.msra.mxu2 %v7841_v7 }
 0x360   : > { %3743 = vmatmul.bf16.gmra.mxu0 %v14145_v53  ;;  %3591 = vmatmul.bf16.gmra.mxu1 %v14208_v32  ;;  %v7817_v48 = vor.u32 %v8903_v16, %v7816_v33 }
 0x361   : > { %14207 = vst [vmem:[#allocation17_spill] sm:$0xff] %v11477_v46  ;;  %3640 = vmatmul.bf16.gmra.mxu2 %v14186_v38  ;;  %3853 = vmatpush.bf16.msra.mxu3 %v8033_v15  ;;  %v14211_v46 = vld [vmem:[#allocation64_spill] sm:$0xff] }
 0x362   : > { %3756 = vmatpush.bf16.msrb.mxu1 %v7625_v49 }
 0x363   : > { %3805 = vmatpush.bf16.msra.mxu2 %v7817_v48  ;;  %v14215_v48 = vld [vmem:[#allocation75_spill] sm:$0xff] }
 0x364   : > { %v3445_v47 = vpop.f32.mrf.mxu2 }
 0x365   : > { %v3446_v61 = vadd.f32 %v3445_v47, %v3397_v18  ;;  %v11501_v37 = vpop.f32.mrf.mxu0  ;;  %v3398_v7 = vpop.f32.mrf.mxu1  ;;  %3854 = vmatpush.bf16.msra.mxu3 %v8009_v29 }
 0x366   : > { %v3399_v8 = vadd.f32 %v3398_v7, %v14211_v46 }
 0x367   : > { %v11503_v30 = vadd.f32 %v3494_v23, %v3446_v61  ;;  %v3496_v56 = vpop.f32.mrf.mxu3  ;;  %v14213_v23 = vld [vmem:[#allocation24_spill] sm:$0xff] }
 0x369   : > { %14210 = vst [vmem:[#allocation20_spill] sm:$0xff] %v11503_v30 }
 0x36c   : > { %v3447_v45 = vpop.f32.mrf.mxu2  ;;  %3694 = vmatmul.bf16.gmra.mxu3 %v10396_v50 }
 0x36d   : > { %v3448_v3 = vadd.f32 %v3447_v45, %v3399_v8  ;;  %v11507_v15 = vpop.f32.mrf.mxu0  ;;  %v3401_v33 = vpop.f32.mrf.mxu1 }
 0x36e   : > { %v3402_v49 = vadd.f32 %v3401_v33, %v14213_v23 }
 0x36f   : > { %v11509_v16 = vadd.f32 %v3496_v56, %v3448_v3  ;;  %v3499_v51 = vpop.f32.mrf.mxu3 }
 0x370   : > { %3904 = vmatmul.bf16.vlgmr.msra.gmra.mxu0 %v14119_v39  ;;  %3596 = vmatmul.bf16.gmra.mxu1 %v14188_v36 }
 0x371   : > { %14212 = vst [vmem:[#allocation70_spill] sm:$0xff] %v11509_v16  ;;  %3645 = vmatmul.bf16.gmra.mxu2 %v14189_v55 }
 0x374   : > { %v3450_v52 = vpop.f32.mrf.mxu2 }
 0x375   : > { %v3451_v46 = vadd.f32 %v3450_v52, %v3402_v49  ;;  %v11515_v26 = vpop.f32.mrf.mxu0  ;;  %v3403_v18 = vpop.f32.mrf.mxu1 }
 0x376   : > { %v3404_v29 = vadd.f32 %v3403_v18, %v14215_v48 }
 0x377   : > { %v11517_v45 = vadd.f32 %v3499_v51, %v3451_v46  ;;  %v3501_v8 = vpop.f32.mrf.mxu3 }
 0x379   : > { %14214 = vst [vmem:[#allocation26_spill] sm:$0xff] %v11517_v45 }
 0x37c   : > { %v3452_v47 = vpop.f32.mrf.mxu2  ;;  %3855 = vmatmul.bf16.vlgmr.msra.gmra.mxu3 %v14155_v35 }
 0x37d   : > { %v3453_v61 = vadd.f32 %v3452_v47, %v3404_v29  ;;  %v11521_v7 = vpop.f32.mrf.mxu0  ;;  %v3562_v56 = vpop.f32.mrf.mxu1 }
 0x37e   : > { %v3563_v51 = vadd.f32 %v3562_v56, %v11203_v17  ;;  %v14219_v56 = vld [vmem:[#allocation59_spill] sm:$0xff] }
 0x37f   : > { %v11523_v3 = vadd.f32 %v3501_v8, %v3453_v61  ;;  %v3660_v33 = vpop.f32.mrf.mxu3 }
 0x380   : > { %3909 = vmatmul.bf16.gmra.mxu0 %v14127_v57  ;;  %3757 = vmatmul.bf16.vlgmr.msrb.gmra.mxu1 %v14156_v11 }
 0x381   : > { %14216 = vst [vmem:[#allocation28_spill] sm:$0xff] %v11523_v3  ;;  %3806 = vmatmul.bf16.vlgmr.msra.gmra.mxu2 %v14157_v54 }
 0x384   : > { %v3611_v23 = vpop.f32.mrf.mxu2 }
 0x385   : > { %v3612_v49 = vadd.f32 %v3611_v23, %v3563_v51  ;;  %v11529_v52 = vpop.f32.mrf.mxu0  ;;  %v3564_v46 = vpop.f32.mrf.mxu1 }
 0x386   : > { %v3565_v8 = vadd.f32 %v3564_v46, %v11210_v4 }
 0x387   : > { %v11531_v18 = vadd.f32 %v3660_v33, %v3612_v49  ;;  %v3662_v48 = vpop.f32.mrf.mxu3 }
 0x389   : > { %14217 = vst [vmem:[#allocation32_spill] sm:$0xff] %v11531_v18 }
 0x38c   : > { %v3613_v29 = vpop.f32.mrf.mxu2  ;;  %3860 = vmatmul.bf16.gmra.mxu3 %v14162_v25 }
 0x38d   : > { %v3614_v47 = vadd.f32 %v3613_v29, %v3565_v8  ;;  %v11535_v61 = vpop.f32.mrf.mxu0  ;;  %v3567_v3 = vpop.f32.mrf.mxu1 }
 0x38e   : > { %v3568_v33 = vadd.f32 %v3567_v3, %v14219_v56 }
 0x38f   : > { %v11537_v45 = vadd.f32 %v3662_v48, %v3614_v47  ;;  %v3665_v17 = vpop.f32.mrf.mxu3 }
 0x390   : > { %3914 = vmatmul.bf16.gmra.mxu0 %v14132_v14  ;;  %3762 = vmatmul.bf16.gmra.mxu1 %v14163_v12 }
 0x391   : > { %14218 = vst [vmem:[#allocation33_spill] sm:$0xff] %v11537_v45  ;;  %3811 = vmatmul.bf16.gmra.mxu2 %v14164_v60 }
 0x394   : > { %v3616_v51 = vpop.f32.mrf.mxu2 }
 0x395   : > { %v3617_v4 = vadd.f32 %v3616_v51, %v3568_v33  ;;  %v11543_v23 = vpop.f32.mrf.mxu0  ;;  %v3569_v49 = vpop.f32.mrf.mxu1 }
 0x396   : > { %v3570_v48 = vadd.f32 %v3569_v49, %v11225_v42  ;;  %v8942_v42 = vld [vmem:[%s13891_s2 + $0x45c] sm:$0xf] }
 0x397   : > { %v11545_v46 = vadd.f32 %v3665_v17, %v3617_v4  ;;  %v3667_v8 = vpop.f32.mrf.mxu3  ;;  %v7986_v17 = vld [vmem:[%s13891_s2 + $0x470] sm:$0xf0] }
 0x398   : > { %v7989_v56 = vor.u32 %v8942_v42, %v7986_v17  ;;  %v7794_v42 = vld [vmem:[%s13891_s2 + $0x2f0] sm:$0xf0] }
 0x399   : > { %14220 = vst [vmem:[#allocation23_spill] sm:$0xff] %v11545_v46 }
 0x39a   : > { %3994 = vmatpush.bf16.msrb.mxu2 %v7989_v56 }
 0x39c   : > { %v3618_v29 = vpop.f32.mrf.mxu2  ;;  %3865 = vmatmul.bf16.gmra.mxu3 %v14166_v9 }
 0x39d   : > { %v3619_v47 = vadd.f32 %v3618_v29, %v3570_v48  ;;  %v11549_v45 = vpop.f32.mrf.mxu0  ;;  %v3572_v18 = vpop.f32.mrf.mxu1 }
 0x39e   : > { %v3573_v33 = vadd.f32 %v3572_v18, %v11231_v21  ;;  %v8894_v21 = vld [vmem:[%s13891_s2 + $0x2dc] sm:$0xf] }
 0x39f   : > { %v11551_v16 = vadd.f32 %v3667_v8, %v3619_v47  ;;  %v3670_v3 = vpop.f32.mrf.mxu3  ;;  %v8990_v47 = vld [vmem:[%s13891_s2 + $0x5dc] sm:$0xf]  ;;  %v7797_v17 = vor.u32 %v8894_v21, %v7794_v42 }
 0x3a0   : > { %3919 = vmatmul.bf16.gmra.mxu0 %v14133_v63  ;;  %3767 = vmatmul.bf16.gmra.mxu1 %v14167_v34 }
 0x3a1   : > { %14221 = vst [vmem:[#allocation54_spill] sm:$0xff] %v11551_v16  ;;  %3816 = vmatmul.bf16.gmra.mxu2 %v14168_v1  ;;  %v8178_v16 = vld [vmem:[%s13891_s2 + $0x5f0] sm:$0xf0]  ;;  %3945 = vmatpush.bf16.msra.mxu1 %v7797_v17 }
 0x3a2   : > { %v8181_v18 = vor.u32 %v8990_v47, %v8178_v16  ;;  %v7962_v16 = vld [vmem:[%s13891_s2 + $0x440] sm:$0xf0] }
 0x3a4   : > { %v3621_v51 = vpop.f32.mrf.mxu2  ;;  %4043 = vmatpush.bf16.msrb.mxu3 %v8181_v18 }
 0x3a5   : > { %v3622_v4 = vadd.f32 %v3621_v51, %v3573_v33  ;;  %v11563_v49 = vpop.f32.mrf.mxu0  ;;  %v3574_v8 = vpop.f32.mrf.mxu1 }
 0x3a7   : > { %v11565_v48 = vadd.f32 %v3670_v3, %v3622_v4  ;;  %v3672_v29 = vpop.f32.mrf.mxu3  ;;  %v3575_v3 = vadd.f32 %v3574_v8, %v11239_v6  ;;  %v8936_v6 = vld [vmem:[%s13891_s2 + $0x42c] sm:$0xf] }
 0x3a8   : > { %v7965_v8 = vor.u32 %v8936_v6, %v7962_v16  ;;  %v8850_v6 = vld [vmem:[%s13891_s2 + $0x174] sm:$0xf0]  ;;  %v7770_v16 = vld [vmem:[%s13891_s2 + $0x2c0] sm:$0xf0] }
 0x3a9   : > { %14222 = vst [vmem:[#allocation64_spill] sm:$0xff] %v11565_v48 }
 0x3aa   : > { %3995 = vmatpush.bf16.msrb.mxu2 %v7965_v8 }
 0x3ac   : > { %v3623_v56 = vpop.f32.mrf.mxu2  ;;  %3870 = vmatmul.bf16.gmra.mxu3 %v14169_v10 }
 0x3ad   : > { %v3624_v33 = vadd.f32 %v3623_v56, %v3575_v3  ;;  %v11581_v51 = vpop.f32.mrf.mxu0  ;;  %v3577_v4 = vpop.f32.mrf.mxu1  ;;  %v8984_v56 = vld [vmem:[%s13891_s2 + $0x5ac] sm:$0xf] }
 0x3ae   : > { %v3578_v47 = vadd.f32 %v3577_v4, %v11245_v22  ;;  %v7608_v22 = vld [vmem:[%s13891_s2 + $0x160] sm:$0xf] }
 0x3af   : > { %v11583_v48 = vadd.f32 %v3672_v29, %v3624_v33  ;;  %v3675_v46 = vpop.f32.mrf.mxu3  ;;  %v8154_v33 = vld [vmem:[%s13891_s2 + $0x5c0] sm:$0xf0] }
 0x3b0   : > { %3924 = vmatmul.bf16.gmra.mxu0 %v14134_v28  ;;  %3772 = vmatmul.bf16.gmra.mxu1 %v14170_v24  ;;  %v8157_v4 = vor.u32 %v8984_v56, %v8154_v33  ;;  %v8844_v56 = vld [vmem:[%s13891_s2 + $0x144] sm:$0xf0] }
 0x3b1   : > { %14223 = vst [vmem:[#allocation24_spill] sm:$0xff] %v11583_v48  ;;  %3821 = vmatmul.bf16.gmra.mxu2 %v14171_v27 }
 0x3b2   : > { %4044 = vmatpush.bf16.msrb.mxu3 %v8157_v4  ;;  %v8838_v4 = vld [vmem:[%s13891_s2 + $0x114] sm:$0xf0] }
 0x3b4   : > { %v3626_v29 = vpop.f32.mrf.mxu2 }
 0x3b5   : > { %v3627_v21 = vadd.f32 %v3626_v29, %v3578_v47  ;;  %v11595_v18 = vpop.f32.mrf.mxu0  ;;  %v3579_v42 = vpop.f32.mrf.mxu1  ;;  %v7609_v47 = vor.u32 %v8850_v6, %v7608_v22  ;;  %v7560_v6 = vld [vmem:[%s13891_s2 + $0x100] sm:$0xf] }
 0x3b6   : > { %v3580_v8 = vadd.f32 %v3579_v42, %v11259_v31 }
 0x3b7   : > { %v11597_v3 = vadd.f32 %v3675_v46, %v3627_v21  ;;  %v3677_v17 = vpop.f32.mrf.mxu3  ;;  %v8888_v46 = vld [vmem:[%s13891_s2 + $0x2ac] sm:$0xf]  ;;  %v7584_v21 = vld [vmem:[%s13891_s2 + $0x130] sm:$0xf]  ;;  %4092 = vmatpush.bf16.msrb.mxu0 %v7609_v47  ;;  %v8832_v47 = vld [vmem:[%s13891_s2 + $0xe4] sm:$0xf0] }
 0x3b8   : > { %v7773_v29 = vor.u32 %v8888_v46, %v7770_v16  ;;  %v7585_v31 = vor.u32 %v8844_v56, %v7584_v21  ;;  %v7561_v46 = vor.u32 %v8838_v4, %v7560_v6 }
 0x3b9   : > { %14224 = vst [vmem:[#allocation75_spill] sm:$0xff] %v11597_v3 }
 0x3ba   : > { %3946 = vmatpush.bf16.msra.mxu1 %v7773_v29 }
 0x3bb   : > { %4093 = vmatpush.bf16.msrb.mxu0 %v7585_v31 }
 0x3bc   : > { %v3628_v33 = vpop.f32.mrf.mxu2  ;;  %3875 = vmatmul.bf16.gmra.mxu3 %v14172_v44 }
 0x3bd   : > { %v3629_v3 = vadd.f32 %v3628_v33, %v3580_v8  ;;  %v11625_v48 = vpop.f32.mrf.mxu0  ;;  %v3582_v30 = vpop.f32.mrf.mxu1  ;;  %v7536_v8 = vld [vmem:[%s13891_s2 + $0xd0] sm:$0xf] }
 0x3be   : > { %v3583_v16 = vadd.f32 %v3582_v30, %v11277_v59  ;;  %v7537_v6 = vor.u32 %v8832_v47, %v7536_v8  ;;  %v8978_v30 = vld [vmem:[%s13891_s2 + $0x57c] sm:$0xf] }
 0x3bf   : > { %v11627_v42 = vadd.f32 %v3677_v17, %v3629_v3  ;;  %v3680_v22 = vpop.f32.mrf.mxu3  ;;  %v8930_v3 = vld [vmem:[%s13891_s2 + $0x3fc] sm:$0xf]  ;;  %v7938_v17 = vld [vmem:[%s13891_s2 + $0x410] sm:$0xf0]  ;;  %4094 = vmatpush.bf16.msrb.mxu0 %v7561_v46 }
 0x3c0   : > { %3929 = vmatmul.bf16.gmra.mxu0 %v14135_v41  ;;  %3777 = vmatmul.bf16.gmra.mxu1 %v14173_v0  ;;  %v7941_v29 = vor.u32 %v8930_v3, %v7938_v17  ;;  %v7512_v3 = vld [vmem:[%s13891_s2 + $0xa0] sm:$0xf]  ;;  %v8882_v46 = vld [vmem:[%s13891_s2 + $0x27c] sm:$0xf] }
 0x3c1   : > { %14225 = vst [vmem:[#allocation59_spill] sm:$0xff] %v11627_v42  ;;  %3826 = vmatmul.bf16.gmra.mxu2 %v14174_v40  ;;  %v8130_v42 = vld [vmem:[%s13891_s2 + $0x590] sm:$0xf0] }
 0x3c2   : > { %3996 = vmatpush.bf16.msrb.mxu2 %v7941_v29  ;;  %v8133_v17 = vor.u32 %v8978_v30, %v8130_v42  ;;  %v7488_v42 = vld [vmem:[%s13891_s2 + $0x70] sm:$0xf] }
 0x3c3   : > { %4095 = vmatpush.bf16.msrb.mxu0 %v7537_v6 }
 0x3c4   : > { %v3631_v21 = vpop.f32.mrf.mxu2  ;;  %4045 = vmatpush.bf16.msrb.mxu3 %v8133_v17  ;;  %v8814_v17 = vld [vmem:[%s13891_s2 + $0x54] sm:$0xf0] }
 0x3c5   : > { %v3632_v56 = vadd.f32 %v3631_v21, %v3583_v16  ;;  %v11651_v33 = vpop.f32.mrf.mxu0  ;;  %v3584_v31 = vpop.f32.mrf.mxu1  ;;  %v7746_v16 = vld [vmem:[%s13891_s2 + $0x290] sm:$0xf0]  ;;  %v8820_v21 = vld [vmem:[%s13891_s2 + $0x84] sm:$0xf0] }
 0x3c6   : > { %v3585_v8 = vadd.f32 %v3584_v31, %v11291_v43  ;;  %v7749_v29 = vor.u32 %v8882_v46, %v7746_v16  ;;  %v7489_v43 = vor.u32 %v8820_v21, %v7488_v42  ;;  %v7722_v16 = vld [vmem:[%s13891_s2 + $0x260] sm:$0xf0] }
 0x3c7   : > { %v11653_v4 = vadd.f32 %v3680_v22, %v3632_v56  ;;  %v3682_v59 = vpop.f32.mrf.mxu3  ;;  %v8826_v22 = vld [vmem:[%s13891_s2 + $0xb4] sm:$0xf0] }
 0x3c8   : > { %v7513_v47 = vor.u32 %v8826_v22, %v7512_v3  ;;  %3947 = vmatpush.bf16.msra.mxu1 %v7749_v29  ;;  %v7464_v22 = vld [vmem:[%s13891_s2 + $0x40] sm:$0xf] }
 0x3c9   : > { %14226 = vst [vmem:[#allocation76_spill] sm:$0xff] %v11653_v4  ;;  %v7465_v46 = vor.u32 %v8814_v17, %v7464_v22 }
 0x3ca   : > { %4096 = vmatpush.bf16.msrb.mxu0 %v7513_v47  ;;  %v7914_v47 = vld [vmem:[%s13891_s2 + $0x3e0] sm:$0xf0] }
 0x3cc   : > { %v3633_v56 = vpop.f32.mrf.mxu2  ;;  %3880 = vmatmul.bf16.gmra.mxu3 %v14175_v19 }
 0x3cd   : > { %v3634_v6 = vadd.f32 %v3633_v56, %v3585_v8  ;;  %v11681_v30 = vpop.f32.mrf.mxu0  ;;  %v3587_v4 = vpop.f32.mrf.mxu1  ;;  %v8924_v8 = vld [vmem:[%s13891_s2 + $0x3cc] sm:$0xf] }
 0x3ce   : > { %14227 = vst [vmem:[#allocation77_spill] sm:$0xff] %v11681_v30  ;;  %4097 = vmatpush.bf16.msrb.mxu0 %v7489_v43  ;;  %v3588_v29 = vadd.f32 %v3587_v4, %v11321_v62  ;;  %v7917_v21 = vor.u32 %v8924_v8, %v7914_v47  ;;  %v8972_v56 = vld [vmem:[%s13891_s2 + $0x54c] sm:$0xf]  ;;  %v7440_v43 = vld [vmem:[%s13891_s2 + $0x10] sm:$0xf] }
 0x3cf   : > { %v11683_v31 = vadd.f32 %v3682_v59, %v3634_v6  ;;  %v3685_v3 = vpop.f32.mrf.mxu3  ;;  %v8876_v59 = vld [vmem:[%s13891_s2 + $0x24c] sm:$0xf]  ;;  %v8106_v6 = vld [vmem:[%s13891_s2 + $0x560] sm:$0xf0]  ;;  %v8808_v62 = vld [vmem:[%s13891_s2 + $0x24] sm:$0xf0] }
 0x3d0   : > { %3934 = vmatmul.bf16.gmra.mxu0 %v14137_v2  ;;  %3782 = vmatmul.bf16.gmra.mxu1 %v14177_v20  ;;  %v7725_v42 = vor.u32 %v8876_v59, %v7722_v16  ;;  %v8109_v17 = vor.u32 %v8972_v56, %v8106_v6  ;;  %v8870_v4 = vld [vmem:[%s13891_s2 + $0x21c] sm:$0xf]  ;;  %v7698_v59 = vld [vmem:[%s13891_s2 + $0x230] sm:$0xf0] }
 0x3d1   : > { %14228 = vst [vmem:[#allocation78_spill] sm:$0xff] %v11683_v31  ;;  %3831 = vmatmul.bf16.gmra.mxu2 %v14178_v13  ;;  %v7701_v47 = vor.u32 %v8870_v4, %v7698_v59  ;;  %v8918_v56 = vld [vmem:[%s13891_s2 + $0x39c] sm:$0xf]  ;;  %v7890_v6 = vld [vmem:[%s13891_s2 + $0x3b0] sm:$0xf0] }
 0x3d2   : > { %3948 = vmatpush.bf16.msra.mxu1 %v7725_v42  ;;  %3997 = vmatpush.bf16.msrb.mxu2 %v7917_v21  ;;  %v8966_v31 = vld [vmem:[%s13891_s2 + $0x51c] sm:$0xf]  ;;  %v8082_v42 = vld [vmem:[%s13891_s2 + $0x530] sm:$0xf0] }
 0x3d3   : > { %4098 = vmatpush.bf16.msrb.mxu0 %v7465_v46  ;;  %4046 = vmatpush.bf16.msrb.mxu3 %v8109_v17  ;;  %v8085_v59 = vor.u32 %v8966_v31, %v8082_v42  ;;  %v7674_v46 = vld [vmem:[%s13891_s2 + $0x200] sm:$0xf0]  ;;  %v8960_v17 = vld [vmem:[%s13891_s2 + $0x4ec] sm:$0xf]  ;;  %v8034_v42 = vld [vmem:[%s13891_s2 + $0x4d0] sm:$0xf0] }
 0x3d4   : > { %v3636_v22 = vpop.f32.mrf.mxu2  ;;  %v7866_v31 = vld [vmem:[%s13891_s2 + $0x380] sm:$0xf0] }
 0x3d5   : > { %v3637_v16 = vadd.f32 %v3636_v22, %v3588_v29  ;;  %v11725_v8 = vpop.f32.mrf.mxu0  ;;  %v3589_v30 = vpop.f32.mrf.mxu1  ;;  %v7441_v29 = vor.u32 %v8808_v62, %v7440_v43  ;;  %v7893_v22 = vor.u32 %v8918_v56, %v7890_v6  ;;  %v8912_v43 = vld [vmem:[%s13891_s2 + $0x36c] sm:$0xf]  ;;  %v8058_v62 = vld [vmem:[%s13891_s2 + $0x500] sm:$0xf0]  ;;  %v7650_v6 = vld [vmem:[%s13891_s2 + $0x1d0] sm:$0xf0] }
 0x3d6   : > { %14229 = vst [vmem:[#allocation79_spill] sm:$0xff] %v11725_v8  ;;  %3949 = vmatpush.bf16.msra.mxu1 %v7701_v47  ;;  %v8864_v8 = vld [vmem:[%s13891_s2 + $0x1ec] sm:$0xf]  ;;  %v7869_v47 = vor.u32 %v8912_v43, %v7866_v31  ;;  %v8061_v56 = vor.u32 %v8960_v17, %v8058_v62 }
 0x3d7   : > { %v11739_v21 = vadd.f32 %v3685_v3, %v3637_v16  ;;  %v3687_v4 = vpop.f32.mrf.mxu3  ;;  %3998 = vmatpush.bf16.msrb.mxu2 %v7893_v22  ;;  %4099 = vmatpush.bf16.msrb.mxu0 %v7441_v29  ;;  %v7677_v3 = vor.u32 %v8864_v8, %v7674_v46  ;;  %v3590_v16 = vadd.f32 %v3589_v30, %v11347_v58  ;;  %v8858_v8 = vld [vmem:[%s13891_s2 + $0x1bc] sm:$0xf]  ;;  %v7842_v58 = vld [vmem:[%s13891_s2 + $0x350] sm:$0xf0] }
 0x3d8   : > { %4047 = vmatpush.bf16.msrb.mxu3 %v8085_v59  ;;  %v8906_v29 = vld [vmem:[%s13891_s2 + $0x33c] sm:$0xf]  ;;  %v7653_v31 = vor.u32 %v8858_v8, %v7650_v6  ;;  %v8948_v8 = vld [vmem:[%s13891_s2 + $0x48c] sm:$0xf]  ;;  %v8010_v6 = vld [vmem:[%s13891_s2 + $0x4a0] sm:$0xf0] }
 0x3d9   : > { %14230 = vst [vmem:[#allocation80_spill] sm:$0xff] %v11739_v21  ;;  %v8954_v30 = vld [vmem:[%s13891_s2 + $0x4bc] sm:$0xf]  ;;  %v7845_v17 = vor.u32 %v8906_v29, %v7842_v58  ;;  %v14233_v29 = vld [vmem:[#allocation41_spill] sm:$0xff] }
 0x3da   : > { %3950 = vmatpush.bf16.msra.mxu1 %v7677_v3  ;;  %v7626_v3 = vld [vmem:[%s13891_s2 + $0x1a0] sm:$0xf0] }
 0x3db   : > { %3999 = vmatpush.bf16.msrb.mxu2 %v7869_v47 }
 0x3dc   : > { %v3638_v22 = vpop.f32.mrf.mxu2  ;;  %3885 = vmatmul.bf16.gmra.mxu3 %v14183_v5  ;;  %v8037_v5 = vor.u32 %v8954_v30, %v8034_v42  ;;  %v8013_v30 = vor.u32 %v8948_v8, %v8010_v6 }
 0x3dd   : > { %v3639_v59 = vadd.f32 %v3638_v22, %v3590_v16  ;;  %v11779_v46 = vpop.f32.mrf.mxu0  ;;  %v3592_v43 = vpop.f32.mrf.mxu1  ;;  %4048 = vmatpush.bf16.msrb.mxu3 %v8061_v56  ;;  %v8852_v16 = vld [vmem:[%s13891_s2 + $0x18c] sm:$0xf]  ;;  %v7818_v56 = vld [vmem:[%s13891_s2 + $0x320] sm:$0xf0] }
 0x3de   : > { %14231 = vst [vmem:[#allocation81_spill] sm:$0xff] %v11779_v46  ;;  %3951 = vmatpush.bf16.msra.mxu1 %v7653_v31  ;;  %v7629_v47 = vor.u32 %v8852_v16, %v7626_v3  ;;  %v3593_v22 = vadd.f32 %v3592_v43, %v14233_v29 }
 0x3df   : > { %v11781_v62 = vadd.f32 %v3687_v4, %v3639_v59  ;;  %v3690_v21 = vpop.f32.mrf.mxu3  ;;  %v8900_v4 = vld [vmem:[%s13891_s2 + $0x30c] sm:$0xf]  ;;  %4000 = vmatpush.bf16.msrb.mxu2 %v7845_v17 }
 0x3e0   : > { %3939 = vmatmul.bf16.gmra.mxu0 %v14145_v53  ;;  %3787 = vmatmul.bf16.gmra.mxu1 %v14208_v32  ;;  %v7821_v58 = vor.u32 %v8900_v4, %v7818_v56 }
 0x3e1   : > { %14232 = vst [vmem:[#allocation82_spill] sm:$0xff] %v11781_v62  ;;  %3836 = vmatmul.bf16.gmra.mxu2 %v14186_v38  ;;  %4049 = vmatpush.bf16.msrb.mxu3 %v8037_v5  ;;  %v14235_v62 = vld [vmem:[#allocation68_spill] sm:$0xff] }
 0x3e2   : > { %3952 = vmatpush.bf16.msra.mxu1 %v7629_v47 }
 0x3e3   : > { %4001 = vmatpush.bf16.msrb.mxu2 %v7821_v58 }
 0x3e4   : > { %v3641_v42 = vpop.f32.mrf.mxu2 }
 0x3e5   : > { %v3642_v59 = vadd.f32 %v3641_v42, %v3593_v22  ;;  %v11805_v31 = vpop.f32.mrf.mxu0  ;;  %v3594_v17 = vpop.f32.mrf.mxu1  ;;  %4050 = vmatpush.bf16.msrb.mxu3 %v8013_v30 }
 0x3e6   : > { %v3595_v46 = vadd.f32 %v3594_v17, %v14235_v62 }
 0x3e7   : > { %v11807_v16 = vadd.f32 %v3690_v21, %v3642_v59  ;;  %v3692_v3 = vpop.f32.mrf.mxu3  ;;  %v14237_v21 = vld [vmem:[#allocation46_spill] sm:$0xff] }
 0x3e9   : > { %14234 = vst [vmem:[#allocation41_spill] sm:$0xff] %v11807_v16  ;;  %v7680_v16 = vld [vmem:[%s13891_s2 + $0x1f0] sm:$0xf] }
 0x3ec   : > { %v3643_v38 = vpop.f32.mrf.mxu2  ;;  %3890 = vmatmul.bf16.gmra.mxu3 %v10396_v50 }
 0x3ed   : > { %v3644_v43 = vadd.f32 %v3643_v38, %v3595_v46  ;;  %v11811_v5 = vpop.f32.mrf.mxu0  ;;  %v3597_v4 = vpop.f32.mrf.mxu1 }
 0x3ee   : > { %v3598_v47 = vadd.f32 %v3597_v4, %v14237_v21 }
 0x3ef   : > { %v11813_v56 = vadd.f32 %v3692_v3, %v3644_v43  ;;  %v3695_v8 = vpop.f32.mrf.mxu3 }
 0x3f0   : > { %4100 = vmatmul.bf16.vlgmr.msrb.gmra.mxu0 %v14119_v39  ;;  %3792 = vmatmul.bf16.gmra.mxu1 %v14188_v36 }
 0x3f1   : > { %14236 = vst [vmem:[#allocation68_spill] sm:$0xff] %v11813_v56  ;;  %3841 = vmatmul.bf16.gmra.mxu2 %v14189_v55 }
 0x3f4   : > { %v3646_v6 = vpop.f32.mrf.mxu2 }
 0x3f5   : > { %v3647_v62 = vadd.f32 %v3646_v6, %v3598_v47  ;;  %v11819_v29 = vpop.f32.mrf.mxu0  ;;  %v3599_v22 = vpop.f32.mrf.mxu1 }
 0x3f6   : > { %v3600_v58 = vadd.f32 %v3599_v22, %v11501_v37 }
 0x3f7   : > { %v11821_v38 = vadd.f32 %v3695_v8, %v3647_v62  ;;  %v3697_v46 = vpop.f32.mrf.mxu3 }
 0x3f9   : > { %14238 = vst [vmem:[#allocation46_spill] sm:$0xff] %v11821_v38 }
 0x3fc   : > { %v3648_v30 = vpop.f32.mrf.mxu2  ;;  %4051 = vmatmul.bf16.vlgmr.msrb.gmra.mxu3 %v14155_v35 }
 0x3fd   : > { %v3649_v42 = vadd.f32 %v3648_v30, %v3600_v58  ;;  %v11825_v59 = vpop.f32.mrf.mxu0  ;;  %v3758_v17 = vpop.f32.mrf.mxu1 }
 0x3fe   : > { %v3759_v4 = vadd.f32 %v3758_v17, %v11507_v15 }
 0x3ff   : > { %v11827_v3 = vadd.f32 %v3697_v46, %v3649_v42  ;;  %v3856_v43 = vpop.f32.mrf.mxu3 }
 0x400   : > { %4105 = vmatmul.bf16.gmra.mxu0 %v14127_v57  ;;  %3953 = vmatmul.bf16.vlgmr.msra.gmra.mxu1 %v14156_v11 }
 0x401   : > { %14239 = vst [vmem:[#allocation83_spill] sm:$0xff] %v11827_v3  ;;  %4002 = vmatmul.bf16.vlgmr.msrb.gmra.mxu2 %v14157_v54 }
 0x404   : > { %v3807_v8 = vpop.f32.mrf.mxu2 }
 0x405   : > { %v3808_v37 = vadd.f32 %v3807_v8, %v3759_v4  ;;  %v11833_v21 = vpop.f32.mrf.mxu0  ;;  %v3760_v47 = vpop.f32.mrf.mxu1 }
 0x406   : > { %v3761_v22 = vadd.f32 %v3760_v47, %v11515_v26 }
 0x407   : > { %v11835_v6 = vadd.f32 %v3856_v43, %v3808_v37  ;;  %v3858_v62 = vpop.f32.mrf.mxu3 }
 0x409   : > { %14240 = vst [vmem:[#allocation84_spill] sm:$0xff] %v11835_v6 }
 0x40c   : > { %v3809_v46 = vpop.f32.mrf.mxu2  ;;  %4056 = vmatmul.bf16.gmra.mxu3 %v14162_v25 }
 0x40d   : > { %v3810_v58 = vadd.f32 %v3809_v46, %v3761_v22  ;;  %v11839_v30 = vpop.f32.mrf.mxu0  ;;  %v3763_v42 = vpop.f32.mrf.mxu1 }
 0x40e   : > { %v3764_v17 = vadd.f32 %v3763_v42, %v11521_v7  ;;  %v8946_v42 = vld [vmem:[%s13891_s2 + $0x474] sm:$0xf0] }
 0x40f   : > { %v11841_v3 = vadd.f32 %v3858_v62, %v3810_v58  ;;  %v3861_v15 = vpop.f32.mrf.mxu3 }
 0x410   : > { %4110 = vmatmul.bf16.gmra.mxu0 %v14132_v14  ;;  %3958 = vmatmul.bf16.gmra.mxu1 %v14163_v12 }
 0x411   : > { %14241 = vst [vmem:[#allocation85_spill] sm:$0xff] %v11841_v3  ;;  %4007 = vmatmul.bf16.gmra.mxu2 %v14164_v60 }
 0x414   : > { %v3812_v43 = vpop.f32.mrf.mxu2 }
 0x415   : > { %v3813_v26 = vadd.f32 %v3812_v43, %v3764_v17  ;;  %v11847_v4 = vpop.f32.mrf.mxu0  ;;  %v3765_v8 = vpop.f32.mrf.mxu1 }
 0x416   : > { %v3766_v62 = vadd.f32 %v3765_v8, %v11529_v52  ;;  %v7992_v52 = vld [vmem:[%s13891_s2 + $0x460] sm:$0xf] }
 0x417   : > { %v11849_v37 = vadd.f32 %v3861_v15, %v3813_v26  ;;  %v3863_v47 = vpop.f32.mrf.mxu3  ;;  %v7993_v15 = vor.u32 %v8946_v42, %v7992_v52  ;;  %v8898_v52 = vld [vmem:[%s13891_s2 + $0x2f4] sm:$0xf0] }
 0x419   : > { %14242 = vst [vmem:[#allocation86_spill] sm:$0xff] %v11849_v37  ;;  %4190 = vmatpush.bf16.msra.mxu2 %v7993_v15 }
 0x41c   : > { %v3814_v22 = vpop.f32.mrf.mxu2  ;;  %4061 = vmatmul.bf16.gmra.mxu3 %v14166_v9 }
 0x41d   : > { %v3815_v46 = vadd.f32 %v3814_v22, %v3766_v62  ;;  %v11853_v58 = vpop.f32.mrf.mxu0  ;;  %v3768_v3 = vpop.f32.mrf.mxu1 }
 0x41e   : > { %v3769_v17 = vadd.f32 %v3768_v3, %v11535_v61  ;;  %v7800_v61 = vld [vmem:[%s13891_s2 + $0x2e0] sm:$0xf] }
 0x41f   : > { %v11855_v6 = vadd.f32 %v3863_v47, %v3815_v46  ;;  %v3866_v7 = vpop.f32.mrf.mxu3  ;;  %v8184_v46 = vld [vmem:[%s13891_s2 + $0x5e0] sm:$0xf]  ;;  %v7801_v42 = vor.u32 %v8898_v52, %v7800_v61 }
 0x420   : > { %4115 = vmatmul.bf16.gmra.mxu0 %v14133_v63  ;;  %3963 = vmatmul.bf16.gmra.mxu1 %v14167_v34 }
 0x421   : > { %14243 = vst [vmem:[#allocation87_spill] sm:$0xff] %v11855_v6  ;;  %4012 = vmatmul.bf16.gmra.mxu2 %v14168_v1  ;;  %v8994_v6 = vld [vmem:[%s13891_s2 + $0x5f4] sm:$0xf0]  ;;  %4141 = vmatpush.bf16.msrb.mxu1 %v7801_v42 }
 0x422   : > { %v8185_v3 = vor.u32 %v8994_v6, %v8184_v46  ;;  %v8940_v6 = vld [vmem:[%s13891_s2 + $0x444] sm:$0xf0] }
 0x424   : > { %v3817_v43 = vpop.f32.mrf.mxu2  ;;  %4239 = vmatpush.bf16.msra.mxu3 %v8185_v3 }
 0x425   : > { %v3818_v26 = vadd.f32 %v3817_v43, %v3769_v17  ;;  %v11867_v8 = vpop.f32.mrf.mxu0  ;;  %v3770_v47 = vpop.f32.mrf.mxu1 }
 0x427   : > { %v11869_v62 = vadd.f32 %v3866_v7, %v3818_v26  ;;  %v3868_v22 = vpop.f32.mrf.mxu3  ;;  %v3771_v7 = vadd.f32 %v3770_v47, %v11543_v23  ;;  %v7968_v23 = vld [vmem:[%s13891_s2 + $0x430] sm:$0xf] }
 0x428   : > { %v7969_v47 = vor.u32 %v8940_v6, %v7968_v23  ;;  %v7610_v23 = vld [vmem:[%s13891_s2 + $0x178] sm:$0xf0]  ;;  %v8892_v6 = vld [vmem:[%s13891_s2 + $0x2c4] sm:$0xf0] }
 0x429   : > { %14244 = vst [vmem:[#allocation88_spill] sm:$0xff] %v11869_v62 }
 0x42a   : > { %4191 = vmatpush.bf16.msra.mxu2 %v7969_v47 }
 0x42c   : > { %v3819_v15 = vpop.f32.mrf.mxu2  ;;  %4066 = vmatmul.bf16.gmra.mxu3 %v14169_v10 }
 0x42d   : > { %v3820_v17 = vadd.f32 %v3819_v15, %v3771_v7  ;;  %v11885_v43 = vpop.f32.mrf.mxu0  ;;  %v3773_v26 = vpop.f32.mrf.mxu1  ;;  %v8160_v15 = vld [vmem:[%s13891_s2 + $0x5b0] sm:$0xf] }
 0x42e   : > { %v3774_v46 = vadd.f32 %v3773_v26, %v11549_v45  ;;  %v8847_v45 = vld [vmem:[%s13891_s2 + $0x164] sm:$0xf] }
 0x42f   : > { %v11887_v62 = vadd.f32 %v3868_v22, %v3820_v17  ;;  %v3871_v37 = vpop.f32.mrf.mxu3  ;;  %v8988_v17 = vld [vmem:[%s13891_s2 + $0x5c4] sm:$0xf0] }
 0x430   : > { %4120 = vmatmul.bf16.gmra.mxu0 %v14134_v28  ;;  %3968 = vmatmul.bf16.gmra.mxu1 %v14170_v24  ;;  %v8161_v26 = vor.u32 %v8988_v17, %v8160_v15  ;;  %v7586_v15 = vld [vmem:[%s13891_s2 + $0x148] sm:$0xf0] }
 0x431   : > { %14245 = vst [vmem:[#allocation89_spill] sm:$0xff] %v11887_v62  ;;  %4017 = vmatmul.bf16.gmra.mxu2 %v14171_v27 }
 0x432   : > { %4240 = vmatpush.bf16.msra.mxu3 %v8161_v26  ;;  %v7562_v26 = vld [vmem:[%s13891_s2 + $0x118] sm:$0xf0] }
 0x434   : > { %v3822_v22 = vpop.f32.mrf.mxu2 }
 0x435   : > { %v3823_v61 = vadd.f32 %v3822_v22, %v3774_v46  ;;  %v11899_v3 = vpop.f32.mrf.mxu0  ;;  %v3775_v52 = vpop.f32.mrf.mxu1  ;;  %v7613_v46 = vor.u32 %v8847_v45, %v7610_v23  ;;  %v8835_v23 = vld [vmem:[%s13891_s2 + $0x104] sm:$0xf] }
 0x436   : > { %v3776_v47 = vadd.f32 %v3775_v52, %v11563_v49 }
 0x437   : > { %v11901_v7 = vadd.f32 %v3871_v37, %v3823_v61  ;;  %v3873_v42 = vpop.f32.mrf.mxu3  ;;  %v7776_v37 = vld [vmem:[%s13891_s2 + $0x2b0] sm:$0xf]  ;;  %v8841_v61 = vld [vmem:[%s13891_s2 + $0x134] sm:$0xf]  ;;  %4288 = vmatpush.bf16.msra.mxu0 %v7613_v46  ;;  %v7538_v46 = vld [vmem:[%s13891_s2 + $0xe8] sm:$0xf0] }
 0x438   : > { %v7777_v22 = vor.u32 %v8892_v6, %v7776_v37  ;;  %v7589_v49 = vor.u32 %v8841_v61, %v7586_v15  ;;  %v7565_v37 = vor.u32 %v8835_v23, %v7562_v26 }
 0x439   : > { %14246 = vst [vmem:[#allocation90_spill] sm:$0xff] %v11901_v7 }
 0x43a   : > { %4142 = vmatpush.bf16.msrb.mxu1 %v7777_v22 }
 0x43b   : > { %4289 = vmatpush.bf16.msra.mxu0 %v7589_v49 }
 0x43c   : > { %v3824_v17 = vpop.f32.mrf.mxu2  ;;  %4071 = vmatmul.bf16.gmra.mxu3 %v14172_v44 }
 0x43d   : > { %v3825_v7 = vadd.f32 %v3824_v17, %v3776_v47  ;;  %v11929_v62 = vpop.f32.mrf.mxu0  ;;  %v3778_v38 = vpop.f32.mrf.mxu1  ;;  %v8829_v47 = vld [vmem:[%s13891_s2 + $0xd4] sm:$0xf] }
 0x43e   : > { %v3779_v6 = vadd.f32 %v3778_v38, %v11581_v51  ;;  %v7541_v23 = vor.u32 %v8829_v47, %v7538_v46  ;;  %v8136_v38 = vld [vmem:[%s13891_s2 + $0x580] sm:$0xf] }
 0x43f   : > { %v11931_v52 = vadd.f32 %v3873_v42, %v3825_v7  ;;  %v3876_v45 = vpop.f32.mrf.mxu3  ;;  %v7944_v7 = vld [vmem:[%s13891_s2 + $0x400] sm:$0xf]  ;;  %v8934_v42 = vld [vmem:[%s13891_s2 + $0x414] sm:$0xf0]  ;;  %4290 = vmatpush.bf16.msra.mxu0 %v7565_v37 }
 0x440   : > { %4125 = vmatmul.bf16.gmra.mxu0 %v14135_v41  ;;  %3973 = vmatmul.bf16.gmra.mxu1 %v14173_v0  ;;  %v7945_v22 = vor.u32 %v8934_v42, %v7944_v7  ;;  %v8823_v7 = vld [vmem:[%s13891_s2 + $0xa4] sm:$0xf]  ;;  %v7752_v37 = vld [vmem:[%s13891_s2 + $0x280] sm:$0xf] }
 0x441   : > { %14247 = vst [vmem:[#allocation91_spill] sm:$0xff] %v11931_v52  ;;  %4022 = vmatmul.bf16.gmra.mxu2 %v14174_v40  ;;  %v8982_v52 = vld [vmem:[%s13891_s2 + $0x594] sm:$0xf0] }
 0x442   : > { %4192 = vmatpush.bf16.msra.mxu2 %v7945_v22  ;;  %v8137_v42 = vor.u32 %v8982_v52, %v8136_v38  ;;  %v8817_v52 = vld [vmem:[%s13891_s2 + $0x74] sm:$0xf] }
 0x443   : > { %4291 = vmatpush.bf16.msra.mxu0 %v7541_v23 }
 0x444   : > { %v3827_v61 = vpop.f32.mrf.mxu2  ;;  %4241 = vmatpush.bf16.msra.mxu3 %v8137_v42  ;;  %v7466_v42 = vld [vmem:[%s13891_s2 + $0x58] sm:$0xf0] }
 0x445   : > { %v3828_v15 = vadd.f32 %v3827_v61, %v3779_v6  ;;  %v11955_v17 = vpop.f32.mrf.mxu0  ;;  %v3780_v49 = vpop.f32.mrf.mxu1  ;;  %v8886_v6 = vld [vmem:[%s13891_s2 + $0x294] sm:$0xf0]  ;;  %v7490_v61 = vld [vmem:[%s13891_s2 + $0x88] sm:$0xf0] }
 0x446   : > { %v3781_v47 = vadd.f32 %v3780_v49, %v11595_v18  ;;  %v7753_v22 = vor.u32 %v8886_v6, %v7752_v37  ;;  %v7493_v18 = vor.u32 %v8817_v52, %v7490_v61  ;;  %v8880_v6 = vld [vmem:[%s13891_s2 + $0x264] sm:$0xf0] }
 0x447   : > { %v11957_v26 = vadd.f32 %v3876_v45, %v3828_v15  ;;  %v3878_v51 = vpop.f32.mrf.mxu3  ;;  %v7514_v45 = vld [vmem:[%s13891_s2 + $0xb8] sm:$0xf0] }
 0x448   : > { %v7517_v46 = vor.u32 %v8823_v7, %v7514_v45  ;;  %4143 = vmatpush.bf16.msrb.mxu1 %v7753_v22  ;;  %v8811_v45 = vld [vmem:[%s13891_s2 + $0x44] sm:$0xf] }
 0x449   : > { %14248 = vst [vmem:[#allocation92_spill] sm:$0xff] %v11957_v26  ;;  %v7469_v37 = vor.u32 %v8811_v45, %v7466_v42 }
 0x44a   : > { %4292 = vmatpush.bf16.msra.mxu0 %v7517_v46  ;;  %v8928_v46 = vld [vmem:[%s13891_s2 + $0x3e4] sm:$0xf0] }
 0x44c   : > { %v3829_v15 = vpop.f32.mrf.mxu2  ;;  %4076 = vmatmul.bf16.gmra.mxu3 %v14175_v19 }
 0x44d   : > { %v3830_v23 = vadd.f32 %v3829_v15, %v3781_v47  ;;  %v11985_v38 = vpop.f32.mrf.mxu0  ;;  %v3783_v26 = vpop.f32.mrf.mxu1  ;;  %v7920_v47 = vld [vmem:[%s13891_s2 + $0x3d0] sm:$0xf] }
 0x44e   : > { %14249 = vst [vmem:[#allocation93_spill] sm:$0xff] %v11985_v38  ;;  %4293 = vmatpush.bf16.msra.mxu0 %v7493_v18  ;;  %v3784_v22 = vadd.f32 %v3783_v26, %v11625_v48  ;;  %v7921_v61 = vor.u32 %v8928_v46, %v7920_v47  ;;  %v8112_v15 = vld [vmem:[%s13891_s2 + $0x550] sm:$0xf]  ;;  %v8805_v18 = vld [vmem:[%s13891_s2 + $0x14] sm:$0xf] }
 0x44f   : > { %v11987_v49 = vadd.f32 %v3878_v51, %v3830_v23  ;;  %v3881_v7 = vpop.f32.mrf.mxu3  ;;  %v7728_v51 = vld [vmem:[%s13891_s2 + $0x250] sm:$0xf]  ;;  %v8976_v23 = vld [vmem:[%s13891_s2 + $0x564] sm:$0xf0]  ;;  %v7442_v48 = vld [vmem:[%s13891_s2 + $0x28] sm:$0xf0] }
 0x450   : > { %4130 = vmatmul.bf16.gmra.mxu0 %v14137_v2  ;;  %3978 = vmatmul.bf16.gmra.mxu1 %v14177_v20  ;;  %v7729_v52 = vor.u32 %v8880_v6, %v7728_v51  ;;  %v8113_v42 = vor.u32 %v8976_v23, %v8112_v15  ;;  %v7704_v26 = vld [vmem:[%s13891_s2 + $0x220] sm:$0xf]  ;;  %v8874_v51 = vld [vmem:[%s13891_s2 + $0x234] sm:$0xf0] }
 0x451   : > { %14250 = vst [vmem:[#allocation94_spill] sm:$0xff] %v11987_v49  ;;  %4027 = vmatmul.bf16.gmra.mxu2 %v14178_v13  ;;  %v7705_v46 = vor.u32 %v8874_v51, %v7704_v26  ;;  %v7896_v15 = vld [vmem:[%s13891_s2 + $0x3a0] sm:$0xf]  ;;  %v8922_v23 = vld [vmem:[%s13891_s2 + $0x3b4] sm:$0xf0] }
 0x452   : > { %4144 = vmatpush.bf16.msrb.mxu1 %v7729_v52  ;;  %4193 = vmatpush.bf16.msra.mxu2 %v7921_v61  ;;  %v8088_v49 = vld [vmem:[%s13891_s2 + $0x520] sm:$0xf]  ;;  %v8970_v52 = vld [vmem:[%s13891_s2 + $0x534] sm:$0xf0] }
 0x453   : > { %4294 = vmatpush.bf16.msra.mxu0 %v7469_v37  ;;  %4242 = vmatpush.bf16.msra.mxu3 %v8113_v42  ;;  %v8089_v51 = vor.u32 %v8970_v52, %v8088_v49  ;;  %v8868_v37 = vld [vmem:[%s13891_s2 + $0x204] sm:$0xf0]  ;;  %v8064_v42 = vld [vmem:[%s13891_s2 + $0x4f0] sm:$0xf]  ;;  %v14253_v52 = vld [vmem:[#allocation62_spill] sm:$0xff] }
 0x454   : > { %v3832_v45 = vpop.f32.mrf.mxu2  ;;  %v8916_v49 = vld [vmem:[%s13891_s2 + $0x384] sm:$0xf0] }
 0x455   : > { %v3833_v6 = vadd.f32 %v3832_v45, %v3784_v22  ;;  %v12029_v47 = vpop.f32.mrf.mxu0  ;;  %v3785_v56 = vpop.f32.mrf.mxu1  ;;  %v7445_v22 = vor.u32 %v8805_v18, %v7442_v48  ;;  %v7897_v45 = vor.u32 %v8922_v23, %v7896_v15  ;;  %v7872_v18 = vld [vmem:[%s13891_s2 + $0x370] sm:$0xf]  ;;  %v8964_v48 = vld [vmem:[%s13891_s2 + $0x504] sm:$0xf0]  ;;  %v8862_v23 = vld [vmem:[%s13891_s2 + $0x1d4] sm:$0xf0] }
 0x456   : > { %14251 = vst [vmem:[#allocation95_spill] sm:$0xff] %v12029_v47  ;;  %4145 = vmatpush.bf16.msrb.mxu1 %v7705_v46  ;;  %v7873_v46 = vor.u32 %v8916_v49, %v7872_v18  ;;  %v8065_v15 = vor.u32 %v8964_v48, %v8064_v42 }
 0x457   : > { %v12043_v61 = vadd.f32 %v3881_v7, %v3833_v6  ;;  %v3883_v26 = vpop.f32.mrf.mxu3  ;;  %4194 = vmatpush.bf16.msra.mxu2 %v7897_v45  ;;  %4295 = vmatpush.bf16.msra.mxu0 %v7445_v22  ;;  %v7681_v7 = vor.u32 %v8868_v37, %v7680_v16  ;;  %v3786_v6 = vadd.f32 %v3785_v56, %v11651_v33  ;;  %v7656_v16 = vld [vmem:[%s13891_s2 + $0x1c0] sm:$0xf]  ;;  %v8910_v33 = vld [vmem:[%s13891_s2 + $0x354] sm:$0xf0] }
 0x458   : > { %4243 = vmatpush.bf16.msra.mxu3 %v8089_v51  ;;  %v7848_v22 = vld [vmem:[%s13891_s2 + $0x340] sm:$0xf]  ;;  %v8958_v51 = vld [vmem:[%s13891_s2 + $0x4d4] sm:$0xf0]  ;;  %v7657_v42 = vor.u32 %v8862_v23, %v7656_v16  ;;  %v8016_v16 = vld [vmem:[%s13891_s2 + $0x490] sm:$0xf] }
 0x459   : > { %14252 = vst [vmem:[#allocation96_spill] sm:$0xff] %v12043_v61  ;;  %v8040_v56 = vld [vmem:[%s13891_s2 + $0x4c0] sm:$0xf]  ;;  %v7849_v48 = vor.u32 %v8910_v33, %v7848_v22  ;;  %v8952_v23 = vld [vmem:[%s13891_s2 + $0x4a4] sm:$0xf0]  ;;  %v14257_v22 = vld [vmem:[#allocation77_spill] sm:$0xff] }
 0x45a   : > { %4146 = vmatpush.bf16.msrb.mxu1 %v7681_v7  ;;  %v8041_v38 = vor.u32 %v8958_v51, %v8040_v56  ;;  %v8856_v7 = vld [vmem:[%s13891_s2 + $0x1a4] sm:$0xf0]  ;;  %v8017_v56 = vor.u32 %v8952_v23, %v8016_v16 }
 0x45b   : > { %4195 = vmatpush.bf16.msra.mxu2 %v7873_v46 }
 0x45c   : > { %v3834_v45 = vpop.f32.mrf.mxu2  ;;  %4081 = vmatmul.bf16.gmra.mxu3 %v14253_v52  ;;  %v14256_v52 = vld [vmem:[#allocation25_spill] sm:$0xff] }
 0x45d   : > { %v3835_v37 = vadd.f32 %v3834_v45, %v3786_v6  ;;  %v12083_v18 = vpop.f32.mrf.mxu0  ;;  %v3788_v49 = vpop.f32.mrf.mxu1  ;;  %4244 = vmatpush.bf16.msra.mxu3 %v8065_v15  ;;  %v7632_v6 = vld [vmem:[%s13891_s2 + $0x190] sm:$0xf]  ;;  %v8904_v15 = vld [vmem:[%s13891_s2 + $0x324] sm:$0xf0] }
 0x45e   : > { %14254 = vst [vmem:[#allocation97_spill] sm:$0xff] %v12083_v18  ;;  %4147 = vmatpush.bf16.msrb.mxu1 %v7657_v42  ;;  %v7633_v46 = vor.u32 %v8856_v7, %v7632_v6  ;;  %v3789_v45 = vadd.f32 %v3788_v49, %v14257_v22 }
 0x45f   : > { %v12085_v61 = vadd.f32 %v3883_v26, %v3835_v37  ;;  %v3886_v47 = vpop.f32.mrf.mxu3  ;;  %v7824_v26 = vld [vmem:[%s13891_s2 + $0x310] sm:$0xf]  ;;  %4196 = vmatpush.bf16.msra.mxu2 %v7849_v48 }
 0x460   : > { %4135 = vmatmul.bf16.gmra.mxu0 %v14145_v53  ;;  %3983 = vmatmul.bf16.gmra.mxu1 %v14208_v32  ;;  %v7825_v33 = vor.u32 %v8904_v15, %v7824_v26 }
 0x461   : > { %14255 = vst [vmem:[#allocation98_spill] sm:$0xff] %v12085_v61  ;;  %4032 = vmatmul.bf16.gmra.mxu2 %v14256_v52  ;;  %4245 = vmatpush.bf16.msra.mxu3 %v8041_v38  ;;  %v14259_v61 = vld [vmem:[#allocation79_spill] sm:$0xff] }
 0x462   : > { %4148 = vmatpush.bf16.msrb.mxu1 %v7633_v46 }
 0x463   : > { %4197 = vmatpush.bf16.msra.mxu2 %v7825_v33 }
 0x464   : > { %v3837_v51 = vpop.f32.mrf.mxu2 }
 0x465   : > { %v3838_v37 = vadd.f32 %v3837_v51, %v3789_v45  ;;  %v12109_v42 = vpop.f32.mrf.mxu0  ;;  %v3790_v48 = vpop.f32.mrf.mxu1  ;;  %4246 = vmatpush.bf16.msra.mxu3 %v8017_v56 }
 0x466   : > { %v3791_v18 = vadd.f32 %v3790_v48, %v14259_v61 }
 0x467   : > { %v12111_v6 = vadd.f32 %v3886_v47, %v3838_v37  ;;  %v3888_v7 = vpop.f32.mrf.mxu3  ;;  %v14261_v47 = vld [vmem:[#allocation81_spill] sm:$0xff] }
 0x469   : > { %14258 = vst [vmem:[#allocation77_spill] sm:$0xff] %v12111_v6 }
 0x46c   : > { %v3839_v52 = vpop.f32.mrf.mxu2  ;;  %4086 = vmatmul.bf16.gmra.mxu3 %v10396_v50 }
 0x46d   : > { %v3840_v49 = vadd.f32 %v3839_v52, %v3791_v18  ;;  %v12115_v38 = vpop.f32.mrf.mxu0  ;;  %v3793_v26 = vpop.f32.mrf.mxu1 }
 0x46e   : > { %v3794_v46 = vadd.f32 %v3793_v26, %v14261_v47 }
 0x46f   : > { %v12117_v15 = vadd.f32 %v3888_v7, %v3840_v49  ;;  %v3891_v16 = vpop.f32.mrf.mxu3 }
 0x470   : > { %4296 = vmatmul.bf16.vlgmr.msra.gmra.mxu0 %v14119_v39  ;;  %3988 = vmatmul.bf16.gmra.mxu1 %v14188_v36 }
 0x471   : > { %14260 = vst [vmem:[#allocation79_spill] sm:$0xff] %v12117_v15  ;;  %4037 = vmatmul.bf16.gmra.mxu2 %v14189_v55 }
 0x474   : > { %v3842_v23 = vpop.f32.mrf.mxu2 }
 0x475   : > { %v3843_v61 = vadd.f32 %v3842_v23, %v3794_v46  ;;  %v12123_v22 = vpop.f32.mrf.mxu0  ;;  %v3795_v45 = vpop.f32.mrf.mxu1 }
 0x476   : > { %v3796_v33 = vadd.f32 %v3795_v45, %v11805_v31 }
 0x477   : > { %v12125_v52 = vadd.f32 %v3891_v16, %v3843_v61  ;;  %v3893_v18 = vpop.f32.mrf.mxu3  ;;  %v14264_v61 = vld [vmem:[#allocation31_spill] sm:$0xff] }
 0x478   : > { %v4484_v45 = vmul.f32 %v14264_v61, %v14264_v61 }
 0x479   : > { %14262 = vst [vmem:[#allocation81_spill] sm:$0xff] %v12125_v52 }
 0x47c   : > { %v3844_v56 = vpop.f32.mrf.mxu2  ;;  %4247 = vmatmul.bf16.vlgmr.msra.gmra.mxu3 %v14155_v35 }
 0x47d   : > { %v3845_v39 = vadd.f32 %v3844_v56, %v3796_v33  ;;  %v12129_v51 = vpop.f32.mrf.mxu0  ;;  %v3954_v37 = vpop.f32.mrf.mxu1 }
 0x47e   : > { %v3955_v49 = vadd.f32 %v3954_v37, %v11811_v5 }
 0x47f   : > { %v12131_v48 = vadd.f32 %v3893_v18, %v3845_v39  ;;  %v4052_v7 = vpop.f32.mrf.mxu3 }
 0x480   : > { %4301 = vmatmul.bf16.gmra.mxu0 %v14127_v57  ;;  %4149 = vmatmul.bf16.vlgmr.msrb.gmra.mxu1 %v14156_v11 }
 0x481   : > { %14263 = vst [vmem:[#allocation99_spill] sm:$0xff] %v12131_v48  ;;  %4198 = vmatmul.bf16.vlgmr.msra.gmra.mxu2 %v14157_v54  ;;  %v14266_v48 = vld [vmem:[#allocation61_spill] sm:$0xff] }
 0x482   : > { %v4490_v52 = vmul.f32 %v14266_v48, %v14266_v48 }
 0x484   : > { %v4003_v26 = vpop.f32.mrf.mxu2 }
 0x485   : > { %v4004_v31 = vadd.f32 %v4003_v26, %v3955_v49  ;;  %v12137_v16 = vpop.f32.mrf.mxu0  ;;  %v3956_v47 = vpop.f32.mrf.mxu1  ;;  %v14265_v26 = vld [vmem:[#allocation74_spill] sm:$0xff] }
 0x486   : > { %v3957_v57 = vadd.f32 %v3956_v47, %v11819_v29 }
 0x487   : > { %v4053_v46 = vadd.f32 %v4052_v7, %v4004_v31  ;;  %v4054_v23 = vpop.f32.mrf.mxu3  ;;  %v4487_v31 = vmul.f32 %v14265_v26, %v14265_v26 }
 0x489   : > { %v4532_v18 = vmul.f32 %v4053_v46, %v4053_v46 }
 0x48b   : > { %v12141_v33 = vadd.f32 %v4532_v18, %v4484_v45 }
 0x48c   : > { %v4005_v56 = vpop.f32.mrf.mxu2  ;;  %4252 = vmatmul.bf16.gmra.mxu3 %v14162_v25 }
 0x48d   : > { %9203 = vrsqrt.f32 %v12141_v33  ;;  %v4006_v5 = vadd.f32 %v4005_v56, %v3957_v57  ;;  %v12146_v39 = vpop.f32.mrf.mxu0  ;;  %v3959_v37 = vpop.f32.mrf.mxu1  ;;  %vm4635_vm2 = vcmp.eq.f32.partialorder %v12141_v33, inf  ;;  %vm4637_vm4 = vcmp.eq.f32.partialorder %v12141_v33, 0.0 }
 0x48e   : > { %v3960_v61 = vadd.f32 %v3959_v37, %v11825_v59 }
 0x48f   : > { %v4055_v49 = vadd.f32 %v4054_v23, %v4006_v5  ;;  %v4057_v7 = vpop.f32.mrf.mxu3 }
 0x490   : > { %4306 = vmatmul.bf16.gmra.mxu0 %v14132_v14  ;;  %4154 = vmatmul.bf16.gmra.mxu1 %v14163_v12 }
 0x491   : > { %v4535_v46 = vmul.f32 %v4055_v49, %v4055_v49  ;;  %4203 = vmatmul.bf16.gmra.mxu2 %v14164_v60 }
 0x493   : > { %v9204_v29 = vpop.eup %9203  ;;  %v12153_v47 = vadd.f32 %v4535_v46, %v4487_v31 }
 0x494   : > { %v4008_v45 = vpop.f32.mrf.mxu2  ;;  %v4629_v18 = vmul.f32 %v9204_v29, %v12141_v33 }
 0x495   : > { %9205 = vrsqrt.f32 %v12153_v47  ;;  %v4009_v23 = vadd.f32 %v4008_v45, %v3960_v61  ;;  %v12158_v14 = vpop.f32.mrf.mxu0  ;;  %v3961_v57 = vpop.f32.mrf.mxu1  ;;  %vm4671_vm3 = vcmp.eq.f32.partialorder %v12153_v47, inf  ;;  %vm4673_vm5 = vcmp.eq.f32.partialorder %v12153_v47, 0.0 }
 0x496   : > { %v4630_v56 = vmul.f32 %v9204_v29, %v4629_v18  ;;  %v3962_v37 = vadd.f32 %v3961_v57, %v11833_v21 }
 0x497   : > { %v4058_v5 = vadd.f32 %v4057_v7, %v4009_v23  ;;  %v4059_v49 = vpop.f32.mrf.mxu3 }
 0x498   : > { %v4631_v26 = vmul.f32 0.5, %v4630_v56 }
 0x499   : > { %v4538_v31 = vmul.f32 %v4058_v5, %v4058_v5 }
 0x49a   : > { %v4632_v46 = vsub.f32 1.5, %v4631_v26  ;;  %v14268_v26 = vld [vmem:[#allocation65_spill] sm:$0xff] }
 0x49b   : > { %v9206_v15 = vpop.eup %9205  ;;  %v12162_v59 = vadd.f32 %v4538_v31, %v4490_v52  ;;  %v4493_v21 = vmul.f32 %v14268_v26, %v14268_v26 }
 0x49c   : > { %v4010_v6 = vpop.f32.mrf.mxu2  ;;  %4257 = vmatmul.bf16.gmra.mxu3 %v14166_v9  ;;  %v4665_v61 = vmul.f32 %v9206_v15, %v12153_v47  ;;  %v4633_v23 = vmul.f32 %v9204_v29, %v4632_v46 }
 0x49d   : > { %9207 = vrsqrt.f32 %v12162_v59  ;;  %v4011_v7 = vadd.f32 %v4010_v6, %v3962_v37  ;;  %v12168_v45 = vpop.f32.mrf.mxu0  ;;  %v3964_v18 = vpop.f32.mrf.mxu1  ;;  %vm4707_vm6 = vcmp.eq.f32.partialorder %v12162_v59, inf  ;;  %vm4709_vm8 = vcmp.eq.f32.partialorder %v12162_v59, 0.0 }
 0x49e   : > { %14267 = vst [vmem:[#allocation31_spill] sm:$0xff] %v12168_v45  ;;  %v4666_v48 = vmul.f32 %v9206_v15, %v4665_v61  ;;  %v4634_v6 = vmul.f32 %v4633_v23, %v12141_v33  ;;  %v3965_v29 = vadd.f32 %v3964_v18, %v11839_v30  ;;  %v7994_v23 = vld [vmem:[%s13891_s2 + $0x478] sm:$0xf0] }
 0x49f   : > { %v4060_v56 = vadd.f32 %v4059_v49, %v4011_v7  ;;  %v4062_v5 = vpop.f32.mrf.mxu3 }
 0x4a0   : > { %4311 = vmatmul.bf16.gmra.mxu0 %v14133_v63  ;;  %v4667_v52 = vmul.f32 0.5, %v4666_v48  ;;  %4159 = vmatmul.bf16.gmra.mxu1 %v14167_v34  ;;  %v8943_v48 = vld [vmem:[%s13891_s2 + $0x464] sm:$0xf] }
 0x4a1   : > { %v4541_v57 = vmul.f32 %v4060_v56, %v4060_v56  ;;  %4208 = vmatmul.bf16.gmra.mxu2 %v14168_v1  ;;  %v7997_v18 = vor.u32 %v8943_v48, %v7994_v23  ;;  %v14272_v48 = vld [vmem:[#allocation36_spill] sm:$0xff] }
 0x4a2   : > { %v4668_v31 = vsub.f32 1.5, %v4667_v52 }
 0x4a3   : > { %v9208_v37 = vpop.eup %9207  ;;  %v12176_v45 = vadd.f32 %v4541_v57, %v4493_v21  ;;  %v4638_v57 = vand.u32 2147483648, %v12141_v33  ;;  %4386 = vmatpush.bf16.msrb.mxu2 %v7997_v18 }
 0x4a4   : > { %v4013_v49 = vpop.f32.mrf.mxu2  ;;  %v4669_v46 = vmul.f32 %v9206_v15, %v4668_v31  ;;  %v4701_v63 = vmul.f32 %v9208_v37, %v12162_v59  ;;  %v4636_v15 = vsel %vm4635_vm2, %v12141_v33, %v4634_v6  ;;  %v4674_v31 = vand.u32 2147483648, %v12153_v47  ;;  %v14270_v6 = vld [vmem:[#allocation66_spill] sm:$0xff] }
 0x4a5   : > { %9209 = vrsqrt.f32 %v12176_v45  ;;  %v4014_v61 = vadd.f32 %v4013_v49, %v3965_v29  ;;  %v12181_v7 = vpop.f32.mrf.mxu0  ;;  %v3966_v30 = vpop.f32.mrf.mxu1  ;;  %vm4743_vm7 = vcmp.eq.f32.partialorder %v12176_v45, inf  ;;  %vm4745_vm9 = vcmp.eq.f32.partialorder %v12176_v45, 0.0 }
 0x4a6   : > { %14269 = vst [vmem:[#allocation74_spill] sm:$0xff] %v12181_v7  ;;  %v4670_v56 = vmul.f32 %v4669_v46, %v12153_v47  ;;  %v4702_v52 = vmul.f32 %v9208_v37, %v4701_v63  ;;  %v4496_v46 = vmul.f32 %v14270_v6, %v14270_v6  ;;  %v3967_v33 = vadd.f32 %v3966_v30, %v11847_v4  ;;  %v8895_v4 = vld [vmem:[%s13891_s2 + $0x2e4] sm:$0xf] }
 0x4a7   : > { %v4063_v26 = vadd.f32 %v4062_v5, %v4014_v61  ;;  %v4064_v21 = vpop.f32.mrf.mxu3  ;;  %v12200_v5 = vsel %vm4637_vm4, %v4638_v57, %v4636_v15  ;;  %v8186_v57 = vld [vmem:[%s13891_s2 + $0x5f8] sm:$0xf0] }
 0x4a8   : > { %v4672_v29 = vsel %vm4671_vm3, %v12153_v47, %v4670_v56  ;;  %v4703_v49 = vmul.f32 0.5, %v4702_v52 }
 0x4a9   : > { %v4544_v63 = vmul.f32 %v4063_v26, %v4063_v26  ;;  %v12202_v61 = vsel %vm4673_vm5, %v4674_v31, %v4672_v29  ;;  %v8991_v26 = vld [vmem:[%s13891_s2 + $0x5e4] sm:$0xf]  ;;  %v7802_v29 = vld [vmem:[%s13891_s2 + $0x2f8] sm:$0xf0] }
 0x4aa   : > { %v4704_v23 = vsub.f32 1.5, %v4703_v49  ;;  %v8189_v31 = vor.u32 %v8991_v26, %v8186_v57 }
 0x4ab   : > { %v9210_v18 = vpop.eup %9209  ;;  %v12206_v7 = vadd.f32 %v4544_v63, %v4496_v46 }
 0x4ac   : > { %v4015_v56 = vpop.f32.mrf.mxu2  ;;  %4262 = vmatmul.bf16.gmra.mxu3 %v14169_v10  ;;  %v4737_v47 = vmul.f32 %v9210_v18, %v12176_v45  ;;  %v4705_v49 = vmul.f32 %v9208_v37, %v4704_v23 }
 0x4ad   : > { %9211 = vrsqrt.f32 %v12206_v7  ;;  %v4016_v15 = vadd.f32 %v4015_v56, %v3967_v33  ;;  %v12212_v52 = vpop.f32.mrf.mxu0  ;;  %v3969_v30 = vpop.f32.mrf.mxu1  ;;  %v7805_v33 = vor.u32 %v8895_v4, %v7802_v29  ;;  %4435 = vmatpush.bf16.msrb.mxu3 %v8189_v31  ;;  %v8937_v31 = vld [vmem:[%s13891_s2 + $0x434] sm:$0xf]  ;;  %vm4779_vm10 = vcmp.eq.f32.partialorder %v12206_v7, inf }
 0x4ae   : > { %14271 = vst [vmem:[#allocation61_spill] sm:$0xff] %v12212_v52  ;;  %v4738_v6 = vmul.f32 %v9210_v18, %v4737_v47  ;;  %v4499_v52 = vmul.f32 %v14272_v48, %v14272_v48  ;;  %v4706_v26 = vmul.f32 %v4705_v49, %v12162_v59  ;;  %v3970_v47 = vadd.f32 %v3969_v30, %v11853_v58 }
 0x4af   : > { %v4065_v46 = vadd.f32 %v4064_v21, %v4016_v15  ;;  %v4067_v63 = vpop.f32.mrf.mxu3  ;;  %4337 = vmatpush.bf16.msra.mxu1 %v7805_v33  ;;  %v4746_v33 = vand.u32 2147483648, %v12176_v45  ;;  %vm4781_vm12 = vcmp.eq.f32.partialorder %v12206_v7, 0.0 }
 0x4b0   : > { %4316 = vmatmul.bf16.gmra.mxu0 %v14134_v28  ;;  %v4739_v56 = vmul.f32 0.5, %v4738_v6  ;;  %4164 = vmatmul.bf16.gmra.mxu1 %v14170_v24 }
 0x4b1   : > { %v4547_v10 = vmul.f32 %v4065_v46, %v4065_v46  ;;  %4213 = vmatmul.bf16.gmra.mxu2 %v14171_v27  ;;  %v4710_v46 = vand.u32 2147483648, %v12162_v59 }
 0x4b2   : > { %v4740_v37 = vsub.f32 1.5, %v4739_v56 }
 0x4b3   : > { %v9212_v23 = vpop.eup %9211  ;;  %v12232_v21 = vadd.f32 %v4547_v10, %v4499_v52  ;;  %v7970_v10 = vld [vmem:[%s13891_s2 + $0x448] sm:$0xf0] }
 0x4b4   : > { %v4018_v28 = vpop.f32.mrf.mxu2  ;;  %v4741_v15 = vmul.f32 %v9210_v18, %v4740_v37  ;;  %v4773_v57 = vmul.f32 %v9212_v23, %v12206_v7  ;;  %v7973_v52 = vor.u32 %v8937_v31, %v7970_v10  ;;  %v4708_v18 = vsel %vm4707_vm6, %v12162_v59, %v4706_v26  ;;  %v14273_v26 = vld [vmem:[#allocation37_spill] sm:$0xff] }
 0x4b5   : > { %9213 = vrsqrt.f32 %v12232_v21  ;;  %v4019_v48 = vadd.f32 %v4018_v28, %v3970_v47  ;;  %v12237_v4 = vpop.f32.mrf.mxu0  ;;  %v3971_v58 = vpop.f32.mrf.mxu1  ;;  %v4502_v47 = vmul.f32 %v14273_v26, %v14273_v26  ;;  %vm4815_vm11 = vcmp.eq.f32.partialorder %v12232_v21, inf }
 0x4b6   : > { %v4742_v30 = vmul.f32 %v4741_v15, %v12176_v45  ;;  %v4774_v29 = vmul.f32 %v9212_v23, %v4773_v57  ;;  %4387 = vmatpush.bf16.msrb.mxu2 %v7973_v52  ;;  %v3972_v59 = vadd.f32 %v3971_v58, %v11867_v8  ;;  %v9002_v8 = vld [vmem:[%s13894_s5 + $0x38] sm:$0xff]  ;;  %vm4817_vm13 = vcmp.eq.f32.partialorder %v12232_v21, 0.0 }
 0x4b7   : > { %v4068_v49 = vadd.f32 %v4067_v63, %v4019_v48  ;;  %v4069_v6 = vpop.f32.mrf.mxu3  ;;  %v12256_v63 = vsel %vm4709_vm8, %v4710_v46, %v4708_v18  ;;  %5424 = vmatpush.bf16.msrb.mxu0 %v9002_v8 }
 0x4b8   : > { %v4744_v56 = vsel %vm4743_vm7, %v12176_v45, %v4742_v30  ;;  %v4775_v37 = vmul.f32 0.5, %v4774_v29  ;;  %v8985_v29 = vld [vmem:[%s13891_s2 + $0x5b4] sm:$0xf] }
 0x4b9   : > { %v4550_v28 = vmul.f32 %v4068_v49, %v4068_v49  ;;  %v12258_v15 = vsel %vm4745_vm9, %v4746_v33, %v4744_v56  ;;  %v8162_v49 = vld [vmem:[%s13891_s2 + $0x5c8] sm:$0xf0]  ;;  %v8889_v33 = vld [vmem:[%s13891_s2 + $0x2b4] sm:$0xf] }
 0x4ba   : > { %v4776_v48 = vsub.f32 1.5, %v4775_v37  ;;  %v8165_v46 = vor.u32 %v8985_v29, %v8162_v49  ;;  %v7778_v56 = vld [vmem:[%s13891_s2 + $0x2c8] sm:$0xf0]  ;;  %v14275_v49 = vld [vmem:[#allocation34_spill] sm:$0xff] }
 0x4bb   : > { %v9214_v31 = vpop.eup %9213  ;;  %v12262_v10 = vadd.f32 %v4550_v28, %v4502_v47  ;;  %v4505_v57 = vmul.f32 %v14275_v49, %v14275_v49 }
 0x4bc   : > { %v4020_v52 = vpop.f32.mrf.mxu2  ;;  %4267 = vmatmul.bf16.gmra.mxu3 %v14172_v44  ;;  %v4809_v45 = vmul.f32 %v9214_v31, %v12232_v21  ;;  %v4777_v37 = vmul.f32 %v9212_v23, %v4776_v48 }
 0x4bd   : > { %9215 = vrsqrt.f32 %v12262_v10  ;;  %v4021_v18 = vadd.f32 %v4020_v52, %v3972_v59  ;;  %v12268_v30 = vpop.f32.mrf.mxu0  ;;  %v3974_v58 = vpop.f32.mrf.mxu1  ;;  %v7781_v59 = vor.u32 %v8889_v33, %v7778_v56  ;;  %v9001_v52 = vld [vmem:[%s13894_s5 + $0x30] sm:$0xff]  ;;  %4436 = vmatpush.bf16.msrb.mxu3 %v8165_v46  ;;  %vm4851_vm14 = vcmp.eq.f32.partialorder %v12262_v10, inf }
 0x4be   : > { %14274 = vst [vmem:[#allocation65_spill] sm:$0xff] %v12268_v30  ;;  %v4810_v26 = vmul.f32 %v9214_v31, %v4809_v45  ;;  %v4778_v23 = vmul.f32 %v4777_v37, %v12206_v7  ;;  %5425 = vmatpush.bf16.msrb.mxu0 %v9001_v52  ;;  %v9000_v37 = vld [vmem:[%s13894_s5 + $0x28] sm:$0xff]  ;;  %vm4853_vm15 = vcmp.eq.f32.partialorder %v12262_v10, 0.0 }
 0x4bf   : > { %v4070_v47 = vadd.f32 %v4069_v6, %v4021_v18  ;;  %v4072_v28 = vpop.f32.mrf.mxu3  ;;  %4338 = vmatpush.bf16.msra.mxu1 %v7781_v59  ;;  %v3975_v18 = vadd.f32 %v3974_v58, %v11885_v43  ;;  %v4782_v58 = vand.u32 2147483648, %v12206_v7 }
 0x4c0   : > { %4321 = vmatmul.bf16.gmra.mxu0 %v14135_v41  ;;  %v4811_v29 = vmul.f32 0.5, %v4810_v26  ;;  %4169 = vmatmul.bf16.gmra.mxu1 %v14173_v0 }
 0x4c1   : > { %v4553_v30 = vmul.f32 %v4070_v47, %v4070_v47  ;;  %4218 = vmatmul.bf16.gmra.mxu2 %v14174_v40 }
 0x4c2   : > { %v4812_v6 = vsub.f32 1.5, %v4811_v29  ;;  %5426 = vmatpush.bf16.msrb.mxu0 %v9000_v37  ;;  %v8999_v29 = vld [vmem:[%s13894_s5 + $0x20] sm:$0xff] }
 0x4c3   : > { %v9216_v48 = vpop.eup %9215  ;;  %v12294_v45 = vadd.f32 %v4553_v30, %v4505_v57  ;;  %v8931_v57 = vld [vmem:[%s13891_s2 + $0x404] sm:$0xf]  ;;  %v4780_v30 = vsel %vm4779_vm10, %v12206_v7, %v4778_v23 }
 0x4c4   : > { %v4023_v41 = vpop.f32.mrf.mxu2  ;;  %v4813_v8 = vmul.f32 %v9214_v31, %v4812_v6  ;;  %v4845_v46 = vmul.f32 %v9216_v48, %v12262_v10  ;;  %v7946_v31 = vld [vmem:[%s13891_s2 + $0x418] sm:$0xf0]  ;;  %v4818_v6 = vand.u32 2147483648, %v12232_v21  ;;  %v8995_v37 = vld [vmem:[%s13894_s5] sm:$0xff] }
 0x4c5   : > { %9217 = vrsqrt.f32 %v12294_v45  ;;  %v4024_v33 = vadd.f32 %v4023_v41, %v3975_v18  ;;  %v12299_v56 = vpop.f32.mrf.mxu0  ;;  %v3976_v43 = vpop.f32.mrf.mxu1  ;;  %v7949_v49 = vor.u32 %v8931_v57, %v7946_v31  ;;  %v14277_v41 = vld [vmem:[#allocation39_spill] sm:$0xff]  ;;  %vm4887_vm0 = vcmp.eq.f32.partialorder %v12294_v45, inf }
 0x4c6   : > { %14276 = vst [vmem:[#allocation66_spill] sm:$0xff] %v12299_v56  ;;  %v4814_v26 = vmul.f32 %v4813_v8, %v12232_v21  ;;  %v4846_v47 = vmul.f32 %v9216_v48, %v4845_v46  ;;  %v12324_v46 = vsel %vm4781_vm12, %v4782_v58, %v4780_v30  ;;  %5427 = vmatpush.bf16.msrb.mxu0 %v8999_v29  ;;  %vm4889_vm1 = vcmp.eq.f32.partialorder %v12294_v45, 0.0  ;;  %v8967_v56 = vld [vmem:[%s13891_s2 + $0x524] sm:$0xf] }
 0x4c7   : > { %v4073_v59 = vadd.f32 %v4072_v28, %v4024_v33  ;;  %v4074_v52 = vpop.f32.mrf.mxu3  ;;  %v4508_v28 = vmul.f32 %v14277_v41, %v14277_v41  ;;  %4388 = vmatpush.bf16.msrb.mxu2 %v7949_v49  ;;  %v8138_v49 = vld [vmem:[%s13891_s2 + $0x598] sm:$0xf0] }
 0x4c8   : > { %v4816_v23 = vsel %vm4815_vm11, %v12232_v21, %v4814_v26  ;;  %v4847_v18 = vmul.f32 0.5, %v4846_v47  ;;  %v3977_v26 = vadd.f32 %v3976_v43, %v11899_v3  ;;  %v8998_v3 = vld [vmem:[%s13894_s5 + $0x18] sm:$0xff] }
 0x4c9   : > { %v4556_v8 = vmul.f32 %v4073_v59, %v4073_v59  ;;  %v12326_v33 = vsel %vm4817_vm13, %v4818_v6, %v4816_v23  ;;  %v8979_v59 = vld [vmem:[%s13891_s2 + $0x584] sm:$0xf] }
 0x4ca   : > { %v4848_v57 = vsub.f32 1.5, %v4847_v18  ;;  %v8141_v6 = vor.u32 %v8979_v59, %v8138_v49  ;;  %v8883_v23 = vld [vmem:[%s13891_s2 + $0x284] sm:$0xf]  ;;  %v7754_v18 = vld [vmem:[%s13891_s2 + $0x298] sm:$0xf0]  ;;  %5428 = vmatpush.bf16.msrb.mxu0 %v8998_v3 }
 0x4cb   : > { %v9218_v31 = vpop.eup %9217  ;;  %v12330_v7 = vadd.f32 %v4556_v8, %v4508_v28 }
 0x4cc   : > { %v4025_v21 = vpop.f32.mrf.mxu2  ;;  %4272 = vmatmul.bf16.gmra.mxu3 %v14175_v19  ;;  %v4881_v47 = vmul.f32 %v9218_v31, %v12294_v45  ;;  %v4849_v43 = vmul.f32 %v9216_v48, %v4848_v57  ;;  %v14279_v57 = vld [vmem:[#allocation38_spill] sm:$0xff] }
 0x4cd   : > { %9219 = vrsqrt.f32 %v12330_v7  ;;  %v4026_v30 = vadd.f32 %v4025_v21, %v3977_v26  ;;  %v12336_v58 = vpop.f32.mrf.mxu0  ;;  %v3979_v29 = vpop.f32.mrf.mxu1  ;;  %v7757_v26 = vor.u32 %v8883_v23, %v7754_v18  ;;  %v8997_v21 = vld [vmem:[%s13894_s5 + $0x10] sm:$0xff]  ;;  %4437 = vmatpush.bf16.msrb.mxu3 %v8141_v6  ;;  %v4511_v59 = vmul.f32 %v14279_v57, %v14279_v57 }
 0x4ce   : > { %14278 = vst [vmem:[#allocation36_spill] sm:$0xff] %v12336_v58  ;;  %v4882_v41 = vmul.f32 %v9218_v31, %v4881_v47  ;;  %5429 = vmatpush.bf16.msrb.mxu0 %v8997_v21  ;;  %v4854_v23 = vand.u32 2147483648, %v12262_v10  ;;  %v8925_v57 = vld [vmem:[%s13891_s2 + $0x3d4] sm:$0xf]  ;;  %v14281_v58 = vld [vmem:[#allocation67_spill] sm:$0xff]  ;;  %vm4923_vm2 = vcmp.eq.f32.partialorder %v12330_v7, inf }
 0x4cf   : > { %v4075_v28 = vadd.f32 %v4074_v52, %v4026_v30  ;;  %v4077_v8 = vpop.f32.mrf.mxu3  ;;  %v4850_v52 = vmul.f32 %v4849_v43, %v12262_v10  ;;  %4339 = vmatpush.bf16.msra.mxu1 %v7757_v26  ;;  %vm4925_vm4 = vcmp.eq.f32.partialorder %v12330_v7, 0.0 }
 0x4d0   : > { %4326 = vmatmul.bf16.gmra.mxu0 %v14137_v2  ;;  %v4883_v48 = vmul.f32 0.5, %v4882_v41  ;;  %4174 = vmatmul.bf16.gmra.mxu1 %v14177_v20  ;;  %v3980_v2 = vadd.f32 %v3979_v29, %v11929_v62  ;;  %v8996_v62 = vld [vmem:[%s13894_s5 + $0x8] sm:$0xff]  ;;  %v8877_v29 = vld [vmem:[%s13891_s2 + $0x254] sm:$0xf] }
 0x4d1   : > { %v4559_v49 = vmul.f32 %v4075_v28, %v4075_v28  ;;  %4223 = vmatmul.bf16.gmra.mxu2 %v14178_v13  ;;  %v4852_v26 = vsel %vm4851_vm14, %v12262_v10, %v4850_v52  ;;  %v8090_v13 = vld [vmem:[%s13891_s2 + $0x538] sm:$0xf0] }
 0x4d2   : > { %v4884_v47 = vsub.f32 1.5, %v4883_v48  ;;  %5430 = vmatpush.bf16.msrb.mxu0 %v8996_v62  ;;  %v8919_v62 = vld [vmem:[%s13891_s2 + $0x3a4] sm:$0xf] }
 0x4d3   : > { %v12362_v30 = vpop.eup %9219  ;;  %v12364_v3 = vadd.f32 %v4559_v49, %v4511_v59  ;;  %v7922_v59 = vld [vmem:[%s13891_s2 + $0x3e8] sm:$0xf0]  ;;  %v8973_v49 = vld [vmem:[%s13891_s2 + $0x554] sm:$0xf] }
 0x4d4   : > { %v4028_v6 = vpop.f32.mrf.mxu2  ;;  %v4885_v18 = vmul.f32 %v9218_v31, %v4884_v47  ;;  %v4917_v43 = vmul.f32 %v12362_v30, %v12330_v7  ;;  %v7730_v31 = vld [vmem:[%s13891_s2 + $0x268] sm:$0xf0] }
 0x4d5   : > { %9221 = vrsqrt.f32 %v12364_v3  ;;  %v4029_v41 = vadd.f32 %v4028_v6, %v3980_v2  ;;  %v12374_v28 = vpop.f32.mrf.mxu0  ;;  %v3981_v21 = vpop.f32.mrf.mxu1  ;;  %v7733_v48 = vor.u32 %v8877_v29, %v7730_v31  ;;  %v7925_v29 = vor.u32 %v8925_v57, %v7922_v59  ;;  %v8114_v31 = vld [vmem:[%s13891_s2 + $0x568] sm:$0xf0]  ;;  %v7898_v57 = vld [vmem:[%s13891_s2 + $0x3b8] sm:$0xf0] }
 0x4d6   : > { %14280 = vst [vmem:[#allocation37_spill] sm:$0xff] %v12374_v28  ;;  %v4886_v47 = vmul.f32 %v4885_v18, %v12294_v45  ;;  %v4918_v52 = vmul.f32 %v12362_v30, %v4917_v43  ;;  %v8871_v28 = vld [vmem:[%s13891_s2 + $0x224] sm:$0xf]  ;;  %v4890_v18 = vand.u32 2147483648, %v12294_v45  ;;  %v8117_v43 = vor.u32 %v8973_v49, %v8114_v31  ;;  %5431 = vmatpush.bf16.msrb.mxu0 %v8995_v37  ;;  %v8913_v37 = vld [vmem:[%s13891_s2 + $0x374] sm:$0xf] }
 0x4d7   : > { %v4078_v2 = vadd.f32 %v4077_v8, %v4029_v41  ;;  %v4079_v6 = vpop.f32.mrf.mxu3  ;;  %v4514_v8 = vmul.f32 %v14281_v58, %v14281_v58  ;;  %4340 = vmatpush.bf16.msra.mxu1 %v7733_v48  ;;  %v7706_v41 = vld [vmem:[%s13891_s2 + $0x238] sm:$0xf0]  ;;  %v12421_v59 = vsel %vm4853_vm15, %v4854_v23, %v4852_v26  ;;  %4389 = vmatpush.bf16.msrb.mxu2 %v7925_v29  ;;  %vm4959_vm3 = vcmp.eq.f32.partialorder %v12364_v3, inf }
 0x4d8   : > { %v4888_v58 = vsel %vm4887_vm0, %v12294_v45, %v4886_v47  ;;  %v7709_v49 = vor.u32 %v8871_v28, %v7706_v41  ;;  %v7901_v31 = vor.u32 %v8919_v62, %v7898_v57  ;;  %4438 = vmatpush.bf16.msrb.mxu3 %v8117_v43  ;;  %v8093_v23 = vor.u32 %v8967_v56, %v8090_v13  ;;  %v14282_v62 = vld [vmem:[#allocation62_spill] sm:$0xff]  ;;  %v8961_v43 = vld [vmem:[%s13891_s2 + $0x4f4] sm:$0xf] }
 0x4d9   : > { %v4562_v48 = vmul.f32 %v4078_v2, %v4078_v2  ;;  %v12434_v10 = vsel %vm4889_vm1, %v4890_v18, %v4888_v58  ;;  %v4919_v47 = vmul.f32 0.5, %v4918_v52  ;;  %v3982_v29 = vadd.f32 %v3981_v21, %v11955_v17  ;;  %v8865_v52 = vld [vmem:[%s13891_s2 + $0x1f4] sm:$0xf]  ;;  %v7682_v17 = vld [vmem:[%s13891_s2 + $0x208] sm:$0xf0] }
 0x4da   : > { %v7685_v18 = vor.u32 %v8865_v52, %v7682_v17  ;;  %v8066_v58 = vld [vmem:[%s13891_s2 + $0x508] sm:$0xf0]  ;;  %v8907_v52 = vld [vmem:[%s13891_s2 + $0x344] sm:$0xf]  ;;  %v8042_v17 = vld [vmem:[%s13891_s2 + $0x4d8] sm:$0xf0] }
 0x4db   : > { %v9222_v28 = vpop.eup %9221  ;;  %v12438_v2 = vadd.f32 %v4562_v48, %v4514_v8  ;;  %4341 = vmatpush.bf16.msra.mxu1 %v7709_v49  ;;  %v4920_v57 = vsub.f32 1.5, %v4919_v47  ;;  %4390 = vmatpush.bf16.msrb.mxu2 %v7901_v31  ;;  %v7874_v8 = vld [vmem:[%s13891_s2 + $0x388] sm:$0xf0]  ;;  %vm4961_vm5 = vcmp.eq.f32.partialorder %v12364_v3, 0.0 }
 0x4dc   : > { %v4030_v41 = vpop.f32.mrf.mxu2  ;;  %4277 = vmatmul.bf16.gmra.mxu3 %v14282_v62  ;;  %v4953_v45 = vmul.f32 %v9222_v28, %v12364_v3  ;;  %v7877_v47 = vor.u32 %v8913_v37, %v7874_v8  ;;  %v14284_v8 = vld [vmem:[#allocation17_spill] sm:$0xff] }
 0x4dd   : > { %9223 = vrsqrt.f32 %v12438_v2  ;;  %v4031_v13 = vadd.f32 %v4030_v41, %v3982_v29  ;;  %v12444_v56 = vpop.f32.mrf.mxu0  ;;  %v3984_v21 = vpop.f32.mrf.mxu1  ;;  %4439 = vmatpush.bf16.msrb.mxu3 %v8093_v23  ;;  %v8069_v29 = vor.u32 %v8961_v43, %v8066_v58  ;;  %v8859_v23 = vld [vmem:[%s13891_s2 + $0x1c4] sm:$0xf]  ;;  %v7658_v41 = vld [vmem:[%s13891_s2 + $0x1d8] sm:$0xf0]  ;;  %v4921_v37 = vmul.f32 %v12362_v30, %v4920_v57  ;;  %v14286_v62 = vld [vmem:[#allocation93_spill] sm:$0xff] }
 0x4de   : > { %14283 = vst [vmem:[#allocation34_spill] sm:$0xff] %v12444_v56  ;;  %v4954_v48 = vmul.f32 %v9222_v28, %v4953_v45  ;;  %v7661_v45 = vor.u32 %v8859_v23, %v7658_v41  ;;  %v4517_v43 = vmul.f32 %v14284_v8, %v14284_v8  ;;  %v3985_v20 = vadd.f32 %v3984_v21, %v14286_v62  ;;  %v7634_v62 = vld [vmem:[%s13891_s2 + $0x1a8] sm:$0xf0]  ;;  %v8901_v21 = vld [vmem:[%s13891_s2 + $0x314] sm:$0xf] }
 0x4df   : > { %v4080_v49 = vadd.f32 %v4079_v6, %v4031_v13  ;;  %v4082_v31 = vpop.f32.mrf.mxu3  ;;  %4342 = vmatpush.bf16.msra.mxu1 %v7685_v18  ;;  %v7850_v6 = vld [vmem:[%s13891_s2 + $0x358] sm:$0xf0]  ;;  %v8955_v13 = vld [vmem:[%s13891_s2 + $0x4c4] sm:$0xf]  ;;  %v14285_v18 = vld [vmem:[#allocation25_spill] sm:$0xff]  ;;  %4391 = vmatpush.bf16.msrb.mxu2 %v7877_v47  ;;  %v4922_v57 = vmul.f32 %v4921_v37, %v12330_v7  ;;  %vm4995_vm6 = vcmp.eq.f32.partialorder %v12438_v2, inf }
 0x4e0   : > { %4331 = vmatmul.bf16.gmra.mxu0 %v14145_v53  ;;  %4179 = vmatmul.bf16.gmra.mxu1 %v14208_v32  ;;  %v4955_v58 = vmul.f32 0.5, %v4954_v48  ;;  %v7853_v23 = vor.u32 %v8907_v52, %v7850_v6  ;;  %v8045_v41 = vor.u32 %v8955_v13, %v8042_v17  ;;  %v8853_v47 = vld [vmem:[%s13891_s2 + $0x194] sm:$0xf]  ;;  %v8018_v13 = vld [vmem:[%s13891_s2 + $0x4a8] sm:$0xf0]  ;;  %vm4997_vm8 = vcmp.eq.f32.partialorder %v12438_v2, 0.0 }
 0x4e1   : > { %v4565_v53 = vmul.f32 %v4080_v49, %v4080_v49  ;;  %4228 = vmatmul.bf16.gmra.mxu2 %v14285_v18  ;;  %4440 = vmatpush.bf16.msrb.mxu3 %v8069_v29  ;;  %v8949_v6 = vld [vmem:[%s13891_s2 + $0x494] sm:$0xf] }
 0x4e2   : > { %v4956_v19 = vsub.f32 1.5, %v4955_v58 }
 0x4e3   : > { %v9224_v26 = vpop.eup %9223  ;;  %v12488_v56 = vadd.f32 %v4565_v53, %v4517_v43  ;;  %4343 = vmatpush.bf16.msra.mxu1 %v7661_v45  ;;  %4392 = vmatpush.bf16.msrb.mxu2 %v7853_v23  ;;  %v7637_v45 = vor.u32 %v8853_v47, %v7634_v62  ;;  %v14287_v53 = vld [vmem:[#allocation20_spill] sm:$0xff]  ;;  %v4924_v23 = vsel %vm4923_vm2, %v12330_v7, %v4922_v57  ;;  %v4926_v62 = vand.u32 2147483648, %v12330_v7 }
 0x4e4   : > { %v4033_v30 = vpop.f32.mrf.mxu2  ;;  %v4989_v49 = vmul.f32 %v9224_v26, %v12438_v2  ;;  %v4957_v29 = vmul.f32 %v9222_v28, %v4956_v19  ;;  %v8021_v28 = vor.u32 %v8949_v6, %v8018_v13  ;;  %v4520_v58 = vmul.f32 %v14287_v53, %v14287_v53 }
 0x4e5   : > { %9225 = vrsqrt.f32 %v12488_v56  ;;  %v4034_v8 = vadd.f32 %v4033_v30, %v3985_v20  ;;  %v12494_v48 = vpop.f32.mrf.mxu0  ;;  %v3986_v52 = vpop.f32.mrf.mxu1  ;;  %4441 = vmatpush.bf16.msrb.mxu3 %v8045_v41  ;;  %v7826_v20 = vld [vmem:[%s13891_s2 + $0x328] sm:$0xf0]  ;;  %vm5031_vm7 = vcmp.eq.f32.partialorder %v12488_v56, inf  ;;  %vm5033_vm9 = vcmp.eq.f32.partialorder %v12488_v56, 0.0 }
 0x4e6   : > { %v4990_v17 = vmul.f32 %v9224_v26, %v4989_v49  ;;  %v7829_v19 = vor.u32 %v8901_v21, %v7826_v20  ;;  %v4958_v41 = vmul.f32 %v4957_v29, %v12364_v3  ;;  %v14288_v29 = vld [vmem:[#allocation95_spill] sm:$0xff]  ;;  %v12528_v20 = vsel %vm4925_vm4, %v4926_v62, %v4924_v23 }
 0x4e7   : > { %v4083_v37 = vadd.f32 %v4082_v31, %v4034_v8  ;;  %v4084_v43 = vpop.f32.mrf.mxu3  ;;  %4344 = vmatpush.bf16.msra.mxu1 %v7637_v45  ;;  %v4962_v31 = vand.u32 2147483648, %v12364_v3  ;;  %v3987_v45 = vadd.f32 %v3986_v52, %v14288_v29  ;;  %v14289_v23 = vpack.c.bf16 %v12202_v61, %v12200_v5 }
 0x4e8   : > { %v4991_v30 = vmul.f32 0.5, %v4990_v17  ;;  %4393 = vmatpush.bf16.msrb.mxu2 %v7829_v19  ;;  %v4960_v49 = vsel %vm4959_vm3, %v12364_v3, %v4958_v41 }
 0x4e9   : > { %v4568_v47 = vmul.f32 %v4083_v37, %v4083_v37  ;;  %4442 = vmatpush.bf16.msrb.mxu3 %v8021_v28  ;;  %v12530_v6 = vsel %vm4961_vm5, %v4962_v31, %v4960_v49 }
 0x4ea   : > { %v4992_v8 = vsub.f32 1.5, %v4991_v30  ;;  %v5216_v7 = vpack.c.bf16 %v12530_v6, %v12528_v20  ;;  %v14290_v30 = vld [vmem:[#allocation70_spill] sm:$0xff] }
 0x4eb   : > { %v9226_v57 = vpop.eup %9225  ;;  %v12525_v21 = vadd.f32 %v4568_v47, %v4520_v58  ;;  %v4523_v47 = vmul.f32 %v14290_v30, %v14290_v30 }
 0x4ec   : > { %v4035_v13 = vpop.f32.mrf.mxu2  ;;  %4282 = vmatmul.bf16.gmra.mxu3 %v10396_v50  ;;  %v5025_v17 = vmul.f32 %v9226_v57, %v12488_v56  ;;  %v4993_v28 = vmul.f32 %v9224_v26, %v4992_v8 }
 0x4ed   : > { %9227 = vrsqrt.f32 %v12525_v21  ;;  %v4036_v3 = vadd.f32 %v4035_v13, %v3987_v45  ;;  %v12537_v37 = vpop.f32.mrf.mxu0  ;;  %v3989_v19 = vpop.f32.mrf.mxu1  ;;  %vm5067_vm10 = vcmp.eq.f32.partialorder %v12525_v21, inf  ;;  %vm5069_vm12 = vcmp.eq.f32.partialorder %v12525_v21, 0.0 }
 0x4ee   : > { %v5026_v52 = vmul.f32 %v9226_v57, %v5025_v17  ;;  %v4994_v31 = vmul.f32 %v4993_v28, %v12438_v2 }
 0x4ef   : > { %v4085_v53 = vadd.f32 %v4084_v43, %v4036_v3  ;;  %v4087_v58 = vpop.f32.mrf.mxu3  ;;  %v14291_v43 = vld [vmem:[#allocation97_spill] sm:$0xff] }
 0x4f0   : > { %5432 = vmatmul.bf16.vlgmr.msrb.gmra.mxu0 %v14289_v23  ;;  %v5027_v41 = vmul.f32 0.5, %v5026_v52  ;;  %4184 = vmatmul.bf16.gmra.mxu1 %v14188_v36  ;;  %v3990_v29 = vadd.f32 %v3989_v19, %v14291_v43  ;;  %v4996_v28 = vsel %vm4995_vm6, %v12438_v2, %v4994_v31  ;;  %v4998_v19 = vand.u32 2147483648, %v12438_v2 }
 0x4f1   : > { %v4571_v62 = vmul.f32 %v4085_v53, %v4085_v53  ;;  %4233 = vmatmul.bf16.gmra.mxu2 %v14189_v55 }
 0x4f2   : > { %v5028_v49 = vsub.f32 1.5, %v5027_v41  ;;  %v12565_v43 = vsel %vm4997_vm8, %v4998_v19, %v4996_v28 }
 0x4f3   : > { %v9228_v26 = vpop.eup %9227  ;;  %v12547_v8 = vadd.f32 %v4571_v62, %v4523_v47  ;;  %v14292_v62 = vld [vmem:[#allocation26_spill] sm:$0xff] }
 0x4f4   : > { %v4038_v45 = vpop.f32.mrf.mxu2  ;;  %v5029_v5 = vmul.f32 %v9226_v57, %v5028_v49  ;;  %v5061_v61 = vmul.f32 %v9228_v26, %v12525_v21  ;;  %v5034_v57 = vand.u32 2147483648, %v12488_v56  ;;  %v4526_v31 = vmul.f32 %v14292_v62, %v14292_v62 }
 0x4f5   : > { %9229 = vrsqrt.f32 %v12547_v8  ;;  %v4039_v13 = vadd.f32 %v4038_v45, %v3990_v29  ;;  %v12552_v17 = vpop.f32.mrf.mxu0  ;;  %v3991_v3 = vpop.f32.mrf.mxu1  ;;  %vm5103_vm11 = vcmp.eq.f32.partialorder %v12547_v8, inf  ;;  %vm5105_vm13 = vcmp.eq.f32.partialorder %v12547_v8, 0.0 }
 0x4f6   : > { %v5030_v52 = vmul.f32 %v5029_v5, %v12488_v56  ;;  %v5062_v53 = vmul.f32 %v9228_v26, %v5061_v61  ;;  %v3992_v2 = vadd.f32 %v3991_v3, %v12109_v42  ;;  %v14294_v3 = vld [vmem:[#allocation28_spill] sm:$0xff] }
 0x4f7   : > { %v4088_v23 = vadd.f32 %v4087_v58, %v4039_v13  ;;  %v4089_v41 = vpop.f32.mrf.mxu3 }
 0x4f8   : > { %v5032_v30 = vsel %vm5031_vm7, %v12488_v56, %v5030_v52  ;;  %v5063_v47 = vmul.f32 0.5, %v5062_v53 }
 0x4f9   : > { %v4574_v49 = vmul.f32 %v4088_v23, %v4088_v23  ;;  %v12567_v58 = vsel %vm5033_vm9, %v5034_v57, %v5032_v30 }
 0x4fa   : > { %v5219_v29 = vpack.c.bf16 %v12567_v58, %v12565_v43  ;;  %v5064_v45 = vsub.f32 1.5, %v5063_v47  ;;  %v14293_v47 = vpack.c.bf16 %v12258_v15, %v12256_v63 }
 0x4fb   : > { %v9230_v5 = vpop.eup %9229  ;;  %v12571_v61 = vadd.f32 %v4574_v49, %v4526_v31 }
 0x4fc   : > { %v4040_v13 = vpop.f32.mrf.mxu2  ;;  %4443 = vmatmul.bf16.vlgmr.msrb.gmra.mxu3 %v14155_v35  ;;  %v5097_v56 = vmul.f32 %v9230_v5, %v12547_v8  ;;  %v5065_v23 = vmul.f32 %v9228_v26, %v5064_v45  ;;  %v4529_v35 = vmul.f32 %v14294_v3, %v14294_v3 }
 0x4fd   : > { %9231 = vrsqrt.f32 %v12571_v61  ;;  %v4041_v28 = vadd.f32 %v4040_v13, %v3992_v2  ;;  %v12577_v52 = vpop.f32.mrf.mxu0  ;;  %v4150_v53 = vpop.f32.mrf.mxu1  ;;  %vm5139_vm14 = vcmp.eq.f32.partialorder %v12571_v61, inf  ;;  %vm5141_vm0 = vcmp.eq.f32.partialorder %v12571_v61, 0.0 }
 0x4fe   : > { %v5098_v19 = vmul.f32 %v9230_v5, %v5097_v56  ;;  %v5066_v31 = vmul.f32 %v5065_v23, %v12525_v21 }
 0x4ff   : > { %v4090_v57 = vadd.f32 %v4089_v41, %v4041_v28  ;;  %v4248_v30 = vpop.f32.mrf.mxu3  ;;  %v4151_v41 = vadd.f32 %v4150_v53, %v12115_v38  ;;  %v5070_v38 = vand.u32 2147483648, %v12525_v21 }
 0x500   : > { %5437 = vmatmul.bf16.gmra.mxu0 %v14293_v47  ;;  %v5099_v42 = vmul.f32 0.5, %v5098_v19  ;;  %4345 = vmatmul.bf16.vlgmr.msra.gmra.mxu1 %v14156_v11 }
 0x501   : > { %v4577_v62 = vmul.f32 %v4090_v57, %v4090_v57  ;;  %4394 = vmatmul.bf16.vlgmr.msrb.gmra.mxu2 %v14157_v54  ;;  %v5068_v54 = vsel %vm5067_vm10, %v12525_v21, %v5066_v31 }
 0x502   : > { %v5100_v49 = vsub.f32 1.5, %v5099_v42  ;;  %v14295_v42 = vld [vmem:[#allocation32_spill] sm:$0xff] }
 0x503   : > { %v9232_v26 = vpop.eup %9231  ;;  %v12587_v45 = vadd.f32 %v4577_v62, %v4529_v35  ;;  %v4485_v3 = vmul.f32 %v14295_v42, %v14295_v42  ;;  %v12605_v62 = vsel %vm5069_vm12, %v5070_v38, %v5068_v54 }
 0x504   : > { %v4199_v2 = vpop.f32.mrf.mxu2  ;;  %v5101_v63 = vmul.f32 %v9230_v5, %v5100_v49  ;;  %v5133_v15 = vmul.f32 %v9232_v26, %v12571_v61  ;;  %v5106_v5 = vand.u32 2147483648, %v12547_v8 }
 0x505   : > { %9233 = vrsqrt.f32 %v12587_v45  ;;  %v4200_v13 = vadd.f32 %v4199_v2, %v4151_v41  ;;  %v12592_v56 = vpop.f32.mrf.mxu0  ;;  %v4152_v11 = vpop.f32.mrf.mxu1  ;;  %vm5175_vm15 = vcmp.eq.f32.partialorder %v12587_v45, inf  ;;  %vm5177_vm1 = vcmp.eq.f32.partialorder %v12587_v45, 0.0 }
 0x506   : > { %v5102_v28 = vmul.f32 %v5101_v63, %v12547_v8  ;;  %v5134_v23 = vmul.f32 %v9232_v26, %v5133_v15  ;;  %v4153_v21 = vadd.f32 %v4152_v11, %v12123_v22  ;;  %v14297_v11 = vld [vmem:[#allocation33_spill] sm:$0xff] }
 0x507   : > { %v4249_v19 = vadd.f32 %v4248_v30, %v4200_v13  ;;  %v4250_v57 = vpop.f32.mrf.mxu3 }
 0x508   : > { %v5104_v53 = vsel %vm5103_vm11, %v12547_v8, %v5102_v28  ;;  %v5135_v47 = vmul.f32 0.5, %v5134_v23 }
 0x509   : > { %v4533_v35 = vmul.f32 %v4249_v19, %v4249_v19  ;;  %v12607_v30 = vsel %vm5105_vm13, %v5106_v5, %v5104_v53  ;;  %v14296_v5 = vpack.c.bf16 %v12326_v33, %v12324_v46 }
 0x50a   : > { %v5222_v31 = vpack.c.bf16 %v12607_v30, %v12605_v62  ;;  %v5136_v49 = vsub.f32 1.5, %v5135_v47 }
 0x50b   : > { %v9234_v41 = vpop.eup %9233  ;;  %v12611_v2 = vadd.f32 %v4533_v35, %v4485_v3 }
 0x50c   : > { %v4201_v63 = vpop.f32.mrf.mxu2  ;;  %4448 = vmatmul.bf16.gmra.mxu3 %v14162_v25  ;;  %v5169_v8 = vmul.f32 %v9234_v41, %v12587_v45  ;;  %v5137_v28 = vmul.f32 %v9232_v26, %v5136_v49  ;;  %v4488_v25 = vmul.f32 %v14297_v11, %v14297_v11 }
 0x50d   : > { %9235 = vrsqrt.f32 %v12611_v2  ;;  %v4202_v15 = vadd.f32 %v4201_v63, %v4153_v21  ;;  %v12617_v13 = vpop.f32.mrf.mxu0  ;;  %v4155_v54 = vpop.f32.mrf.mxu1  ;;  %vm4647_vm2 = vcmp.eq.f32.partialorder %v12611_v2, inf  ;;  %vm4649_vm4 = vcmp.eq.f32.partialorder %v12611_v2, 0.0 }
 0x50e   : > { %v5170_v23 = vmul.f32 %v9234_v41, %v5169_v8  ;;  %v5138_v47 = vmul.f32 %v5137_v28, %v12571_v61 }
 0x50f   : > { %v4251_v19 = vadd.f32 %v4250_v57, %v4202_v15  ;;  %v4253_v38 = vpop.f32.mrf.mxu3  ;;  %v4156_v57 = vadd.f32 %v4155_v54, %v12129_v51  ;;  %v5142_v51 = vand.u32 2147483648, %v12571_v61 }
 0x510   : > { %5442 = vmatmul.bf16.gmra.mxu0 %v14296_v5  ;;  %v5171_v22 = vmul.f32 0.5, %v5170_v23  ;;  %4350 = vmatmul.bf16.gmra.mxu1 %v14163_v12 }
 0x511   : > { %v4536_v53 = vmul.f32 %v4251_v19, %v4251_v19  ;;  %4399 = vmatmul.bf16.gmra.mxu2 %v14164_v60  ;;  %v5140_v60 = vsel %vm5139_vm14, %v12571_v61, %v5138_v47  ;;  %v14298_v19 = vld [vmem:[#allocation23_spill] sm:$0xff] }
 0x512   : > { %v5172_v42 = vsub.f32 1.5, %v5171_v22  ;;  %v4491_v5 = vmul.f32 %v14298_v19, %v14298_v19  ;;  %v12645_v11 = vsel %vm5141_vm0, %v5142_v51, %v5140_v60 }
 0x513   : > { %v9236_v26 = vpop.eup %9235  ;;  %v12627_v3 = vadd.f32 %v4536_v53, %v4488_v25 }
 0x514   : > { %v4204_v35 = vpop.f32.mrf.mxu2  ;;  %v5173_v46 = vmul.f32 %v9234_v41, %v5172_v42  ;;  %v4641_v33 = vmul.f32 %v9236_v26, %v12611_v2  ;;  %v5178_v41 = vand.u32 2147483648, %v12587_v45 }
 0x515   : > { %9237 = vrsqrt.f32 %v12627_v3  ;;  %v4205_v49 = vadd.f32 %v4204_v35, %v4156_v57  ;;  %v12632_v21 = vpop.f32.mrf.mxu0  ;;  %v4157_v12 = vpop.f32.mrf.mxu1  ;;  %vm4683_vm3 = vcmp.eq.f32.partialorder %v12627_v3, inf  ;;  %vm4685_vm5 = vcmp.eq.f32.partialorder %v12627_v3, 0.0 }
 0x516   : > { %v5174_v63 = vmul.f32 %v5173_v46, %v12587_v45  ;;  %v4642_v8 = vmul.f32 %v9236_v26, %v4641_v33  ;;  %v4158_v61 = vadd.f32 %v4157_v12, %v12137_v16  ;;  %v14300_v12 = vld [vmem:[#allocation54_spill] sm:$0xff] }
 0x517   : > { %v4254_v15 = vadd.f32 %v4253_v38, %v4205_v49  ;;  %v4255_v28 = vpop.f32.mrf.mxu3 }
 0x518   : > { %v5176_v54 = vsel %vm5175_vm15, %v12587_v45, %v5174_v63  ;;  %v4643_v23 = vmul.f32 0.5, %v4642_v8 }
 0x519   : > { %v4539_v22 = vmul.f32 %v4254_v15, %v4254_v15  ;;  %v12647_v38 = vsel %vm5177_vm1, %v5178_v41, %v5176_v54  ;;  %v14299_v15 = vpack.c.bf16 %v12434_v10, %v12421_v59 }
 0x51a   : > { %v5225_v25 = vpack.c.bf16 %v12647_v38, %v12645_v11  ;;  %v4644_v53 = vsub.f32 1.5, %v4643_v23 }
 0x51b   : > { %v9238_v47 = vpop.eup %9237  ;;  %v12651_v42 = vadd.f32 %v4539_v22, %v4491_v5 }
 0x51c   : > { %v4206_v57 = vpop.f32.mrf.mxu2  ;;  %4453 = vmatmul.bf16.gmra.mxu3 %v14166_v9  ;;  %v4677_v45 = vmul.f32 %v9238_v47, %v12627_v3  ;;  %v4645_v49 = vmul.f32 %v9236_v26, %v4644_v53  ;;  %v4494_v9 = vmul.f32 %v14300_v12, %v14300_v12 }
 0x51d   : > { %9239 = vrsqrt.f32 %v12651_v42  ;;  %v4207_v35 = vadd.f32 %v4206_v57, %v4158_v61  ;;  %v12657_v46 = vpop.f32.mrf.mxu0  ;;  %v4160_v33 = vpop.f32.mrf.mxu1  ;;  %vm4719_vm6 = vcmp.eq.f32.partialorder %v12651_v42, inf  ;;  %vm4721_vm8 = vcmp.eq.f32.partialorder %v12651_v42, 0.0 }
 0x51e   : > { %v4678_v60 = vmul.f32 %v9238_v47, %v4677_v45  ;;  %v4646_v41 = vmul.f32 %v4645_v49, %v12611_v2  ;;  %v14301_v49 = vld [vmem:[#allocation64_spill] sm:$0xff] }
 0x51f   : > { %v4256_v63 = vadd.f32 %v4255_v28, %v4207_v35  ;;  %v4258_v8 = vpop.f32.mrf.mxu3  ;;  %v4161_v28 = vadd.f32 %v4160_v33, %v12146_v39  ;;  %v4650_v39 = vand.u32 2147483648, %v12611_v2 }
 0x520   : > { %5447 = vmatmul.bf16.gmra.mxu0 %v14299_v15  ;;  %v4679_v16 = vmul.f32 0.5, %v4678_v60  ;;  %4355 = vmatmul.bf16.gmra.mxu1 %v14167_v34  ;;  %v4497_v60 = vmul.f32 %v14301_v49, %v14301_v49 }
 0x521   : > { %v4542_v51 = vmul.f32 %v4256_v63, %v4256_v63  ;;  %4404 = vmatmul.bf16.gmra.mxu2 %v14168_v1  ;;  %v4648_v1 = vsel %vm4647_vm2, %v12611_v2, %v4646_v41 }
 0x522   : > { %v4680_v54 = vsub.f32 1.5, %v4679_v16  ;;  %v12685_v15 = vsel %vm4649_vm4, %v4650_v39, %v4648_v1 }
 0x523   : > { %v9240_v26 = vpop.eup %9239  ;;  %v12667_v23 = vadd.f32 %v4542_v51, %v4494_v9 }
 0x524   : > { %v4209_v19 = vpop.f32.mrf.mxu2  ;;  %v4681_v59 = vmul.f32 %v9238_v47, %v4680_v54  ;;  %v4713_v10 = vmul.f32 %v9240_v26, %v12651_v42  ;;  %v4686_v47 = vand.u32 2147483648, %v12627_v3 }
 0x525   : > { %9241 = vrsqrt.f32 %v12667_v23  ;;  %v4210_v5 = vadd.f32 %v4209_v19, %v4161_v28  ;;  %v12672_v22 = vpop.f32.mrf.mxu0  ;;  %v4162_v34 = vpop.f32.mrf.mxu1  ;;  %vm4755_vm7 = vcmp.eq.f32.partialorder %v12667_v23, inf  ;;  %vm4757_vm9 = vcmp.eq.f32.partialorder %v12667_v23, 0.0 }
 0x526   : > { %v4682_v53 = vmul.f32 %v4681_v59, %v12627_v3  ;;  %v4714_v61 = vmul.f32 %v9240_v26, %v4713_v10  ;;  %v4163_v2 = vadd.f32 %v4162_v34, %v12158_v14  ;;  %v14303_v34 = vld [vmem:[#allocation24_spill] sm:$0xff] }
 0x527   : > { %v4259_v57 = vadd.f32 %v4258_v8, %v4210_v5  ;;  %v4260_v45 = vpop.f32.mrf.mxu3 }
 0x528   : > { %v4684_v35 = vsel %vm4683_vm3, %v12627_v3, %v4682_v53  ;;  %v4715_v33 = vmul.f32 0.5, %v4714_v61  ;;  %v14302_v3 = vld [vmem:[#allocation69_spill] sm:$0xff]  ;;  %v4500_v61 = vmul.f32 %v14303_v34, %v14303_v34 }
 0x529   : > { %v4545_v63 = vmul.f32 %v4259_v57, %v4259_v57  ;;  %v12687_v8 = vsel %vm4685_vm5, %v4686_v47, %v4684_v35 }
 0x52a   : > { %v5205_v16 = vpack.c.bf16 %v12687_v8, %v12685_v15  ;;  %v4716_v12 = vsub.f32 1.5, %v4715_v33 }
 0x52b   : > { %v9242_v9 = vpop.eup %9241  ;;  %v12691_v51 = vadd.f32 %v4545_v63, %v4497_v60 }
 0x52c   : > { %v4211_v41 = vpop.f32.mrf.mxu2  ;;  %4458 = vmatmul.bf16.gmra.mxu3 %v14302_v3  ;;  %v4749_v54 = vmul.f32 %v9242_v9, %v12667_v23  ;;  %v4717_v10 = vmul.f32 %v9240_v26, %v4716_v12  ;;  %v4722_v3 = vand.u32 2147483648, %v12651_v42 }
 0x52d   : > { %9243 = vrsqrt.f32 %v12691_v51  ;;  %v4212_v28 = vadd.f32 %v4211_v41, %v4163_v2  ;;  %v12697_v19 = vpop.f32.mrf.mxu0  ;;  %v4165_v59 = vpop.f32.mrf.mxu1  ;;  %vm4791_vm10 = vcmp.eq.f32.partialorder %v12691_v51, inf  ;;  %vm4793_vm12 = vcmp.eq.f32.partialorder %v12691_v51, 0.0 }
 0x52e   : > { %v4750_v5 = vmul.f32 %v9242_v9, %v4749_v54  ;;  %v4718_v39 = vmul.f32 %v4717_v10, %v12651_v42 }
 0x52f   : > { %v4261_v1 = vadd.f32 %v4260_v45, %v4212_v28  ;;  %v4263_v53 = vpop.f32.mrf.mxu3  ;;  %v14304_v45 = vld [vmem:[#allocation31_spill] sm:$0xff] }
 0x530   : > { %5452 = vmatmul.bf16.gmra.mxu0 %v5216_v7  ;;  %v4751_v14 = vmul.f32 0.5, %v4750_v5  ;;  %4360 = vmatmul.bf16.gmra.mxu1 %v14170_v24  ;;  %v4166_v33 = vadd.f32 %v4165_v59, %v14304_v45  ;;  %v14305_v59 = vld [vmem:[#allocation75_spill] sm:$0xff] }
 0x531   : > { %v4548_v57 = vmul.f32 %v4261_v1, %v4261_v1  ;;  %4409 = vmatmul.bf16.gmra.mxu2 %v14171_v27  ;;  %v4720_v27 = vsel %vm4719_vm6, %v12651_v42, %v4718_v39  ;;  %v4503_v10 = vmul.f32 %v14305_v59, %v14305_v59  ;;  %v14306_v42 = vld [vmem:[#allocation74_spill] sm:$0xff] }
 0x532   : > { %v4752_v47 = vsub.f32 1.5, %v4751_v14  ;;  %v12725_v1 = vsel %vm4721_vm8, %v4722_v3, %v4720_v27 }
 0x533   : > { %v9244_v26 = vpop.eup %9243  ;;  %v12707_v35 = vadd.f32 %v4548_v57, %v4500_v61 }
 0x534   : > { %v4214_v49 = vpop.f32.mrf.mxu2  ;;  %v4753_v20 = vmul.f32 %v9242_v9, %v4752_v47  ;;  %v4785_v6 = vmul.f32 %v9244_v26, %v12691_v51  ;;  %v4758_v9 = vand.u32 2147483648, %v12667_v23 }
 0x535   : > { %9245 = vrsqrt.f32 %v12707_v35  ;;  %v4215_v7 = vadd.f32 %v4214_v49, %v4166_v33  ;;  %v12712_v60 = vpop.f32.mrf.mxu0  ;;  %v4167_v24 = vpop.f32.mrf.mxu1  ;;  %vm4827_vm11 = vcmp.eq.f32.partialorder %v12707_v35, inf  ;;  %vm4829_vm13 = vcmp.eq.f32.partialorder %v12707_v35, 0.0 }
 0x536   : > { %v4754_v63 = vmul.f32 %v4753_v20, %v12667_v23  ;;  %v4786_v12 = vmul.f32 %v9244_v26, %v4785_v6  ;;  %v4168_v39 = vadd.f32 %v4167_v24, %v14306_v42 }
 0x537   : > { %v4264_v2 = vadd.f32 %v4263_v53, %v4215_v7  ;;  %v4265_v41 = vpop.f32.mrf.mxu3 }
 0x538   : > { %v4756_v54 = vsel %vm4755_vm7, %v12667_v23, %v4754_v63  ;;  %v4787_v28 = vmul.f32 0.5, %v4786_v12  ;;  %v14307_v63 = vld [vmem:[#allocation59_spill] sm:$0xff] }
 0x539   : > { %v4551_v5 = vmul.f32 %v4264_v2, %v4264_v2  ;;  %v12727_v53 = vsel %vm4757_vm9, %v4758_v9, %v4756_v54 }
 0x53a   : > { %v5208_v14 = vpack.c.bf16 %v12727_v53, %v12725_v1  ;;  %v4788_v34 = vsub.f32 1.5, %v4787_v28  ;;  %v9019_v53 = vld [vmem:[%s13020_s27 + $0x4] sm:$0xf] }
 0x53b   : > { %v9246_v61 = vpop.eup %9245  ;;  %v12731_v57 = vadd.f32 %v4551_v5, %v4503_v10 }
 0x53c   : > { %v4216_v47 = vpop.f32.mrf.mxu2  ;;  %4463 = vmatmul.bf16.gmra.mxu3 %v14172_v44  ;;  %v4821_v23 = vmul.f32 %v9246_v61, %v12707_v35  ;;  %v4789_v20 = vmul.f32 %v9244_v26, %v4788_v34  ;;  %v4506_v44 = vmul.f32 %v14307_v63, %v14307_v63 }
 0x53d   : > { %9247 = vrsqrt.f32 %v12731_v57  ;;  %v4217_v45 = vadd.f32 %v4216_v47, %v4168_v39  ;;  %v12737_v33 = vpop.f32.mrf.mxu0  ;;  %v4170_v49 = vpop.f32.mrf.mxu1  ;;  %v4794_v39 = vand.u32 2147483648, %v12691_v51  ;;  %v4830_v47 = vand.u32 2147483648, %v12707_v35 }
 0x53e   : > { %v4822_v6 = vmul.f32 %v9246_v61, %v4821_v23  ;;  %v4790_v2 = vmul.f32 %v4789_v20, %v12691_v51  ;;  %vm4863_vm14 = vcmp.eq.f32.partialorder %v12731_v57, inf  ;;  %vm4865_vm0 = vcmp.eq.f32.partialorder %v12731_v57, 0.0 }
 0x53f   : > { %v4266_v7 = vadd.f32 %v4265_v41, %v4217_v45  ;;  %v4268_v27 = vpop.f32.mrf.mxu3  ;;  %v14308_v41 = vld [vmem:[#allocation61_spill] sm:$0xff] }
 0x540   : > { %5457 = vmatmul.bf16.gmra.mxu0 %v5219_v29  ;;  %v4823_v24 = vmul.f32 0.5, %v4822_v6  ;;  %4365 = vmatmul.bf16.gmra.mxu1 %v14173_v0  ;;  %v4171_v54 = vadd.f32 %v4170_v49, %v14308_v41  ;;  %v9010_v0 = vld [vmem:[%s13894_s5 + $0x78] sm:$0xff]  ;;  %v4792_v10 = vsel %vm4791_vm10, %v12691_v51, %v4790_v2  ;;  %v14309_v49 = vld [vmem:[#allocation76_spill] sm:$0xff] }
 0x541   : > { %v4554_v12 = vmul.f32 %v4266_v7, %v4266_v7  ;;  %4414 = vmatmul.bf16.gmra.mxu2 %v14174_v40  ;;  %5473 = vmatpush.bf16.msrb.mxu1 %v9010_v0  ;;  %v4509_v20 = vmul.f32 %v14309_v49, %v14309_v49  ;;  %v12768_v7 = vsel %vm4793_vm12, %v4794_v39, %v4792_v10  ;;  %v14314_v49 = vld [vmem:[#allocation65_spill] sm:$0xff] }
 0x542   : > { %v4824_v3 = vsub.f32 1.5, %v4823_v24 }
 0x543   : > { %v9248_v26 = vpop.eup %9247  ;;  %v12747_v9 = vadd.f32 %v4554_v12, %v4506_v44 }
 0x544   : > { %v4219_v28 = vpop.f32.mrf.mxu2  ;;  %v4825_v43 = vmul.f32 %v9246_v61, %v4824_v3  ;;  %v4857_v58 = vmul.f32 %v9248_v26, %v12731_v57 }
 0x545   : > { %9249 = vrsqrt.f32 %v12747_v9  ;;  %v4220_v29 = vadd.f32 %v4219_v28, %v4171_v54  ;;  %v12752_v59 = vpop.f32.mrf.mxu0  ;;  %v4172_v40 = vpop.f32.mrf.mxu1  ;;  %v9009_v54 = vld [vmem:[%s13894_s5 + $0x70] sm:$0xff]  ;;  %vm4899_vm15 = vcmp.eq.f32.partialorder %v12747_v9, inf  ;;  %vm4901_vm1 = vcmp.eq.f32.partialorder %v12747_v9, 0.0 }
 0x546   : > { %v4826_v5 = vmul.f32 %v4825_v43, %v12707_v35  ;;  %v4858_v34 = vmul.f32 %v9248_v26, %v4857_v58  ;;  %v4173_v51 = vadd.f32 %v4172_v40, %v12237_v4  ;;  %5474 = vmatpush.bf16.msrb.mxu1 %v9009_v54  ;;  %v9008_v4 = vld [vmem:[%s13894_s5 + $0x68] sm:$0xff] }
 0x547   : > { %v4269_v61 = vadd.f32 %v4268_v27, %v4220_v29  ;;  %v4270_v42 = vpop.f32.mrf.mxu3 }
 0x548   : > { %v4828_v23 = vsel %vm4827_vm11, %v12707_v35, %v4826_v5  ;;  %v4859_v45 = vmul.f32 0.5, %v4858_v34  ;;  %v14310_v35 = vld [vmem:[#allocation71_spill] sm:$0xff]  ;;  %v14311_v5 = vld [vmem:[#allocation78_spill] sm:$0xff] }
 0x549   : > { %v4557_v6 = vmul.f32 %v4269_v61, %v4269_v61  ;;  %v12770_v27 = vsel %vm4829_vm13, %v4830_v47, %v4828_v23  ;;  %v4512_v34 = vmul.f32 %v14311_v5, %v14311_v5 }
 0x54a   : > { %v5211_v24 = vpack.c.bf16 %v12770_v27, %v12768_v7  ;;  %v4860_v63 = vsub.f32 1.5, %v4859_v45  ;;  %5475 = vmatpush.bf16.msrb.mxu1 %v9008_v4  ;;  %v8314_v7 = vld [vmem:[%s13020_s27 + $0x48] sm:$0xf0] }
 0x54b   : > { %v9250_v44 = vpop.eup %9249  ;;  %v12774_v12 = vadd.f32 %v4557_v6, %v4509_v20 }
 0x54c   : > { %v4221_v2 = vpop.f32.mrf.mxu2  ;;  %4468 = vmatmul.bf16.gmra.mxu3 %v14310_v35  ;;  %v4893_v3 = vmul.f32 %v9250_v44, %v12747_v9  ;;  %v4861_v43 = vmul.f32 %v9248_v26, %v4860_v63  ;;  %v14312_v26 = vld [vmem:[#allocation19_spill] sm:$0xff]  ;;  %v9018_v63 = vld [vmem:[%s13894_s5 + $0xb8] sm:$0xff] }
 0x54d   : > { %9251 = vrsqrt.f32 %v12774_v12  ;;  %v4222_v41 = vadd.f32 %v4221_v2, %v4173_v51  ;;  %v4175_v28 = vpop.f32.mrf.mxu1  ;;  %v12783_v0 = vpop.f32.mrf.mxu0  ;;  %v9007_v51 = vld [vmem:[%s13894_s5 + $0x60] sm:$0xff]  ;;  %v9074_v2 = vld [vmem:[%s13896_s7 + $0x38] sm:$0xff]  ;;  %5522 = vmatpush.bf16.msra.mxu2 %v9018_v63  ;;  %v9005_v63 = vld [vmem:[%s13894_s5 + $0x50] sm:$0xff]  ;;  %vm4935_vm2 = vcmp.eq.f32.partialorder %v12774_v12, inf  ;;  %vm4937_vm4 = vcmp.eq.f32.partialorder %v12774_v12, 0.0 }
 0x54e   : > { %v4894_v58 = vmul.f32 %v9250_v44, %v4893_v3  ;;  %v4862_v39 = vmul.f32 %v4861_v43, %v12731_v57  ;;  %v4176_v20 = vadd.f32 %v4175_v28, %v14314_v49  ;;  %5476 = vmatpush.bf16.msrb.mxu1 %v9007_v51  ;;  %v9006_v43 = vld [vmem:[%s13894_s5 + $0x58] sm:$0xff]  ;;  %6264 = vmatpush.bf16.msra.mxu3 %v9074_v2 }
 0x54f   : > { %v4271_v29 = vadd.f32 %v4270_v42, %v4222_v41  ;;  %v4273_v10 = vpop.f32.mrf.mxu3  ;;  %v14313_v42 = vld [vmem:[#allocation15_spill] sm:$0xff]  ;;  %v9082_v51 = vld [vmem:[%s13896_s7 + $0x78] sm:$0xff] }
 0x550   : > { %5462 = vmatmul.bf16.gmra.mxu0 %v5222_v31  ;;  %v4895_v40 = vmul.f32 0.5, %v4894_v58  ;;  %4370 = vmatmul.bf16.gmra.mxu1 %v14312_v26  ;;  %v4864_v35 = vsel %vm4863_vm14, %v12731_v57, %v4862_v39  ;;  %v4866_v58 = vand.u32 2147483648, %v12731_v57 }
 0x551   : > { %v4560_v61 = vmul.f32 %v4271_v29, %v4271_v29  ;;  %4419 = vmatmul.bf16.gmra.mxu2 %v14313_v42  ;;  %v4902_v29 = vand.u32 2147483648, %v12747_v9  ;;  %6313 = vmatpush.bf16.msra.mxu0 %v9082_v51  ;;  %v4938_v51 = vand.u32 2147483648, %v12774_v12 }
 0x552   : > { %v4896_v47 = vsub.f32 1.5, %v4895_v40  ;;  %v14315_v40 = vld [vmem:[#allocation80_spill] sm:$0xff]  ;;  %v12826_v26 = vsel %vm4865_vm0, %v4866_v58, %v4864_v35  ;;  %5477 = vmatpush.bf16.msrb.mxu1 %v9006_v43  ;;  %v14318_v58 = vld [vmem:[#allocation82_spill] sm:$0xff] }
 0x553   : > { %v9252_v23 = vpop.eup %9251  ;;  %v12796_v45 = vadd.f32 %v4560_v61, %v4512_v34  ;;  %v4515_v5 = vmul.f32 %v14315_v40, %v14315_v40 }
 0x554   : > { %v4224_v62 = vpop.f32.mrf.mxu2  ;;  %v4897_v30 = vmul.f32 %v9250_v44, %v4896_v47  ;;  %v4929_v31 = vmul.f32 %v9252_v23, %v12774_v12 }
 0x555   : > { %9253 = vrsqrt.f32 %v12796_v45  ;;  %v4225_v6 = vadd.f32 %v4224_v62, %v4176_v20  ;;  %v4177_v44 = vpop.f32.mrf.mxu1  ;;  %v12824_v61 = vpop.f32.mrf.mxu0  ;;  %v14316_v20 = vld [vmem:[#allocation66_spill] sm:$0xff]  ;;  %vm4971_vm3 = vcmp.eq.f32.partialorder %v12796_v45, inf  ;;  %vm4973_vm5 = vcmp.eq.f32.partialorder %v12796_v45, 0.0 }
 0x556   : > { %v4898_v3 = vmul.f32 %v4897_v30, %v12747_v9  ;;  %v4930_v41 = vmul.f32 %v9252_v23, %v4929_v31  ;;  %v14317_v30 = vld [vmem:[#allocation62_spill] sm:$0xff]  ;;  %5478 = vmatpush.bf16.msrb.mxu1 %v9005_v63 }
 0x557   : > { %v4274_v54 = vadd.f32 %v4273_v10, %v4225_v6  ;;  %v4275_v28 = vpop.f32.mrf.mxu3 }
 0x558   : > { %v4900_v4 = vsel %vm4899_vm15, %v12747_v9, %v4898_v3  ;;  %v4931_v10 = vmul.f32 0.5, %v4930_v41  ;;  %v4178_v9 = vadd.f32 %v4177_v44, %v14316_v20  ;;  %v9003_v20 = vld [vmem:[%s13894_s5 + $0x40] sm:$0xff] }
 0x559   : > { %v4563_v34 = vmul.f32 %v4274_v54, %v4274_v54  ;;  %v12828_v42 = vsel %vm4901_vm1, %v4902_v29, %v4900_v4  ;;  %v9004_v54 = vld [vmem:[%s13894_s5 + $0x48] sm:$0xff]  ;;  %v4518_v29 = vmul.f32 %v14318_v58, %v14318_v58 }
 0x55a   : > { %v5214_v39 = vpack.c.bf16 %v12828_v42, %v12826_v26  ;;  %v4932_v47 = vsub.f32 1.5, %v4931_v10  ;;  %5479 = vmatpush.bf16.msrb.mxu1 %v9004_v54  ;;  %v9031_v26 = vld [vmem:[%s13020_s27 + $0x64] sm:$0xf]  ;;  %v8338_v42 = vld [vmem:[%s13020_s27 + $0x78] sm:$0xf0] }
 0x55b   : > { %v9254_v57 = vpop.eup %9253  ;;  %v12832_v49 = vadd.f32 %v4563_v34, %v4515_v5  ;;  %v14319_v5 = vld [vmem:[#allocation36_spill] sm:$0xff] }
 0x55c   : > { %v4226_v62 = vpop.f32.mrf.mxu2  ;;  %4473 = vmatmul.bf16.gmra.mxu3 %v14317_v30  ;;  %v4965_v31 = vmul.f32 %v9254_v57, %v12796_v45  ;;  %v4933_v35 = vmul.f32 %v9252_v23, %v4932_v47 }
 0x55d   : > { %9255 = vrsqrt.f32 %v12832_v49  ;;  %v4227_v6 = vadd.f32 %v4226_v62, %v4178_v9  ;;  %v4180_v2 = vpop.f32.mrf.mxu1  ;;  %v12858_v47 = vpop.f32.mrf.mxu0  ;;  %v9073_v9 = vld [vmem:[%s13896_s7 + $0x30] sm:$0xff]  ;;  %vm5007_vm6 = vcmp.eq.f32.partialorder %v12832_v49, inf  ;;  %vm5009_vm8 = vcmp.eq.f32.partialorder %v12832_v49, 0.0 }
 0x55e   : > { %v4966_v44 = vmul.f32 %v9254_v57, %v4965_v31  ;;  %v4934_v23 = vmul.f32 %v4933_v35, %v12774_v12  ;;  %v4181_v34 = vadd.f32 %v4180_v2, %v14319_v5  ;;  %5480 = vmatpush.bf16.msrb.mxu1 %v9003_v20  ;;  %v4974_v2 = vand.u32 2147483648, %v12796_v45  ;;  %6265 = vmatpush.bf16.msra.mxu3 %v9073_v9 }
 0x55f   : > { %v4276_v3 = vadd.f32 %v4275_v28, %v4227_v6  ;;  %v4278_v41 = vpop.f32.mrf.mxu3 }
 0x560   : > { %5467 = vmatmul.bf16.gmra.mxu0 %v5225_v25  ;;  %v4967_v43 = vmul.f32 0.5, %v4966_v44  ;;  %4375 = vmatmul.bf16.gmra.mxu1 %v14208_v32  ;;  %v4936_v62 = vsel %vm4935_vm2, %v12774_v12, %v4934_v23  ;;  %v14321_v12 = vld [vmem:[#allocation37_spill] sm:$0xff] }
 0x561   : > { %v4566_v4 = vmul.f32 %v4276_v3, %v4276_v3  ;;  %4424 = vmatmul.bf16.gmra.mxu2 %v14285_v18  ;;  %v9017_v18 = vld [vmem:[%s13894_s5 + $0xb0] sm:$0xff] }
 0x562   : > { %v4968_v28 = vsub.f32 1.5, %v4967_v43  ;;  %5523 = vmatpush.bf16.msra.mxu2 %v9017_v18  ;;  %v14320_v3 = vld [vmem:[#allocation41_spill] sm:$0xff]  ;;  %v12882_v43 = vsel %vm4937_vm4, %v4938_v51, %v4936_v62 }
 0x563   : > { %v9256_v10 = vpop.eup %9255  ;;  %v12855_v40 = vadd.f32 %v4566_v4, %v4518_v29 }
 0x564   : > { %v4229_v11 = vpop.f32.mrf.mxu2  ;;  %v4969_v38 = vmul.f32 %v9254_v57, %v4968_v28  ;;  %v5001_v25 = vmul.f32 %v9256_v10, %v12832_v49 }
 0x565   : > { %9257 = vrsqrt.f32 %v12855_v40  ;;  %v4230_v32 = vadd.f32 %v4229_v11, %v4181_v34  ;;  %v4182_v57 = vpop.f32.mrf.mxu1  ;;  %v12894_v11 = vpop.f32.mrf.mxu0  ;;  %vm5043_vm7 = vcmp.eq.f32.partialorder %v12855_v40, inf  ;;  %vm5045_vm9 = vcmp.eq.f32.partialorder %v12855_v40, 0.0 }
 0x566   : > { %v4970_v30 = vmul.f32 %v4969_v38, %v12796_v45  ;;  %v5002_v31 = vmul.f32 %v9256_v10, %v5001_v25  ;;  %v4183_v5 = vadd.f32 %v4182_v57, %v14321_v12  ;;  %v9081_v25 = vld [vmem:[%s13896_s7 + $0x70] sm:$0xff] }
 0x567   : > { %v4279_v6 = vadd.f32 %v4278_v41, %v4230_v32  ;;  %v4280_v63 = vpop.f32.mrf.mxu3  ;;  %v4521_v41 = vmul.f32 %v14320_v3, %v14320_v3  ;;  %6314 = vmatpush.bf16.msra.mxu0 %v9081_v25  ;;  %v9071_v25 = vld [vmem:[%s13896_s7 + $0x20] sm:$0xff] }
 0x568   : > { %v4972_v35 = vsel %vm4971_vm3, %v12796_v45, %v4970_v30  ;;  %v5003_v44 = vmul.f32 0.5, %v5002_v31  ;;  %v14322_v30 = vld [vmem:[#allocation68_spill] sm:$0xff] }
 0x569   : > { %v4569_v54 = vmul.f32 %v4279_v6, %v4279_v6  ;;  %v12884_v58 = vsel %vm4973_vm5, %v4974_v2, %v4972_v35 }
 0x56a   : > { %v5217_v29 = vpack.c.bf16 %v12884_v58, %v12882_v43  ;;  %v5004_v4 = vsub.f32 1.5, %v5003_v44  ;;  %v8362_v43 = vld [vmem:[%s13020_s27 + $0xa8] sm:$0xf0] }
 0x56b   : > { %v9258_v23 = vpop.eup %9257  ;;  %v12888_v28 = vadd.f32 %v4569_v54, %v4521_v41 }
 0x56c   : > { %v4231_v34 = vpop.f32.mrf.mxu2  ;;  %4478 = vmatmul.bf16.gmra.mxu3 %v10396_v50  ;;  %v5037_v45 = vmul.f32 %v9258_v23, %v12855_v40  ;;  %v5005_v18 = vmul.f32 %v9256_v10, %v5004_v4  ;;  %v4524_v50 = vmul.f32 %v14322_v30, %v14322_v30  ;;  %v14323_v10 = vld [vmem:[#allocation34_spill] sm:$0xff] }
 0x56d   : > { %9259 = vrsqrt.f32 %v12888_v28  ;;  %v4232_v38 = vadd.f32 %v4231_v34, %v4183_v5  ;;  %v4185_v32 = vpop.f32.mrf.mxu1  ;;  %v12918_v34 = vpop.f32.mrf.mxu0  ;;  %vm5079_vm10 = vcmp.eq.f32.partialorder %v12888_v28, inf  ;;  %vm5081_vm12 = vcmp.eq.f32.partialorder %v12888_v28, 0.0 }
 0x56e   : > { %v5038_v20 = vmul.f32 %v9258_v23, %v5037_v45  ;;  %v5006_v6 = vmul.f32 %v5005_v18, %v12832_v49  ;;  %v4186_v44 = vadd.f32 %v4185_v32, %v14323_v10  ;;  %v5010_v32 = vand.u32 2147483648, %v12832_v49 }
 0x56f   : > { %v4281_v9 = vadd.f32 %v4280_v63, %v4232_v38  ;;  %v4283_v62 = vpop.f32.mrf.mxu3  ;;  %v5046_v18 = vand.u32 2147483648, %v12855_v40 }
 0x570   : > { %v5039_v57 = vmul.f32 0.5, %v5038_v20  ;;  %4380 = vmatmul.bf16.gmra.mxu1 %v14188_v36  ;;  %v9016_v36 = vld [vmem:[%s13894_s5 + $0xa8] sm:$0xff]  ;;  %v5008_v12 = vsel %vm5007_vm6, %v12832_v49, %v5006_v6 }
 0x571   : > { %v4572_v31 = vmul.f32 %v4281_v9, %v4281_v9  ;;  %4429 = vmatmul.bf16.gmra.mxu2 %v14189_v55  ;;  %v9072_v55 = vld [vmem:[%s13896_s7 + $0x28] sm:$0xff] }
 0x572   : > { %v5040_v51 = vsub.f32 1.5, %v5039_v57  ;;  %5524 = vmatpush.bf16.msra.mxu2 %v9016_v36  ;;  %6266 = vmatpush.bf16.msra.mxu3 %v9072_v55 }
 0x573   : > { %v9260_v2 = vpop.eup %9259  ;;  %v12904_v35 = vadd.f32 %v4572_v31, %v4524_v50  ;;  %v12931_v50 = vsel %vm5009_vm8, %v5010_v32, %v5008_v12  ;;  %v14326_v32 = vld [vmem:[#allocation83_spill] sm:$0xff] }
 0x574   : > { %v4234_v63 = vpop.f32.mrf.mxu2  ;;  %v5041_v3 = vmul.f32 %v9258_v23, %v5040_v51  ;;  %v5073_v41 = vmul.f32 %v9260_v2, %v12888_v28 }
 0x575   : > { %9261 = vrsqrt.f32 %v12904_v35  ;;  %v4235_v54 = vadd.f32 %v4234_v63, %v4186_v44  ;;  %v4187_v4 = vpop.f32.mrf.mxu1  ;;  %vm5115_vm11 = vcmp.eq.f32.partialorder %v12904_v35, inf  ;;  %vm5117_vm13 = vcmp.eq.f32.partialorder %v12904_v35, 0.0 }
 0x576   : > { %v5042_v23 = vmul.f32 %v5041_v3, %v12855_v40  ;;  %v5074_v5 = vmul.f32 %v9260_v2, %v5073_v41  ;;  %v4188_v49 = vadd.f32 %v4187_v4, %v12494_v48  ;;  %6267 = vmatpush.bf16.msra.mxu3 %v9071_v25  ;;  %v9070_v41 = vld [vmem:[%s13896_s7 + $0x18] sm:$0xff]  ;;  %v9015_v48 = vld [vmem:[%s13894_s5 + $0xa0] sm:$0xff] }
 0x577   : > { %v4284_v45 = vadd.f32 %v4283_v62, %v4235_v54  ;;  %v4285_v38 = vpop.f32.mrf.mxu3  ;;  %v14324_v62 = vld [vmem:[#allocation46_spill] sm:$0xff]  ;;  %v9080_v54 = vld [vmem:[%s13896_s7 + $0x68] sm:$0xff]  ;;  %5525 = vmatpush.bf16.msra.mxu2 %v9015_v48 }
 0x578   : > { %v5044_v20 = vsel %vm5043_vm7, %v12855_v40, %v5042_v23  ;;  %v5075_v9 = vmul.f32 0.5, %v5074_v5  ;;  %v4527_v57 = vmul.f32 %v14324_v62, %v14324_v62  ;;  %6315 = vmatpush.bf16.msra.mxu0 %v9080_v54  ;;  %v9069_v5 = vld [vmem:[%s13896_s7 + $0x10] sm:$0xff] }
 0x579   : > { %v4575_v30 = vmul.f32 %v4284_v45, %v4284_v45  ;;  %v12933_v31 = vsel %vm5045_vm9, %v5046_v18, %v5044_v20  ;;  %v9079_v45 = vld [vmem:[%s13896_s7 + $0x60] sm:$0xff]  ;;  %v4530_v18 = vmul.f32 %v14326_v32, %v14326_v32  ;;  %v12964_v20 = vpop.f32.mrf.mxu0 }
 0x57a   : > { %v5220_v6 = vpack.c.bf16 %v12933_v31, %v12931_v50  ;;  %v5076_v51 = vsub.f32 1.5, %v5075_v9  ;;  %6268 = vmatpush.bf16.msra.mxu3 %v9070_v41  ;;  %v9098_v50 = vld [vmem:[%s13896_s7 + $0xf8] sm:$0xff]  ;;  %v9043_v31 = vld [vmem:[%s13020_s27 + $0xc4] sm:$0xf] }
 0x57b   : > { %v9262_v10 = vpop.eup %9261  ;;  %v12937_v44 = vadd.f32 %v4575_v30, %v4527_v57 }
 0x57c   : > { %v4236_v40 = vpop.f32.mrf.mxu2  ;;  %v5109_v63 = vmul.f32 %v9262_v10, %v12904_v35  ;;  %v5077_v55 = vmul.f32 %v9260_v2, %v5076_v51  ;;  %6316 = vmatpush.bf16.msra.mxu0 %v9079_v45  ;;  %v14327_v45 = vld [vmem:[#allocation84_spill] sm:$0xff] }
 0x57d   : > { %9263 = vrsqrt.f32 %v12937_v44  ;;  %v4237_v3 = vadd.f32 %v4236_v40, %v4188_v49  ;;  %v4346_v36 = vpop.f32.mrf.mxu1  ;;  %v9068_v40 = vld [vmem:[%s13896_s7 + $0x8] sm:$0xff]  ;;  %vm5151_vm14 = vcmp.eq.f32.partialorder %v12937_v44, inf  ;;  %vm5153_vm1 = vcmp.eq.f32.partialorder %v12937_v44, 0.0 }
 0x57e   : > { %v5110_v4 = vmul.f32 %v9262_v10, %v5109_v63  ;;  %v4347_v30 = vadd.f32 %v4346_v36, %v12537_v37  ;;  %6269 = vmatpush.bf16.msra.mxu3 %v9069_v5  ;;  %v9078_v37 = vld [vmem:[%s13896_s7 + $0x58] sm:$0xff]  ;;  %v9013_v36 = vld [vmem:[%s13894_s5 + $0x90] sm:$0xff] }
 0x57f   : > { %v4286_v12 = vadd.f32 %v4285_v38, %v4237_v3  ;;  %v4444_v23 = vpop.f32.mrf.mxu3  ;;  %v5078_v38 = vmul.f32 %v5077_v55, %v12888_v28  ;;  %v5082_v3 = vand.u32 2147483648, %v12888_v28  ;;  %v9067_v55 = vld [vmem:[%s13896_s7] sm:$0xff] }
 0x580   : > { %v5111_v25 = vmul.f32 0.5, %v5110_v4  ;;  %5481 = vmatmul.bf16.vlgmr.msrb.gmra.mxu1 %v5205_v16  ;;  %v9014_v16 = vld [vmem:[%s13894_s5 + $0x98] sm:$0xff]  ;;  %v5118_v4 = vand.u32 2147483648, %v12904_v35  ;;  %6317 = vmatpush.bf16.msra.mxu0 %v9078_v37 }
 0x581   : > { %v4578_v2 = vmul.f32 %v4286_v12, %v4286_v12  ;;  %v5080_v63 = vsel %vm5079_vm10, %v12888_v28, %v5078_v38  ;;  %5526 = vmatpush.bf16.msra.mxu2 %v9014_v16  ;;  %v9012_v16 = vld [vmem:[%s13894_s5 + $0x88] sm:$0xff]  ;;  %v9022_v37 = vld [vmem:[%s13020_s27 + $0x14] sm:$0xf0] }
 0x582   : > { %v5112_v9 = vsub.f32 1.5, %v5111_v25  ;;  %6270 = vmatpush.bf16.msra.mxu3 %v9068_v40  ;;  %v4486_v25 = vmul.f32 %v14327_v45, %v14327_v45  ;;  %v8288_v40 = vld [vmem:[%s13020_s27] sm:$0xf] }
 0x583   : > { %v12974_v62 = vpop.eup %9263  ;;  %v12976_v57 = vadd.f32 %v4578_v2, %v4530_v18  ;;  %v13013_v18 = vsel %vm5081_vm12, %v5082_v3, %v5080_v63  ;;  %v8289_v3 = vor.u32 %v9022_v37, %v8288_v40 }
 0x584   : > { %v4395_v51 = vpop.f32.mrf.mxu2  ;;  %v5113_v49 = vmul.f32 %v9262_v10, %v5112_v9  ;;  %v5145_v15 = vmul.f32 %v12974_v62, %v12937_v44 }
 0x585   : > { %9265 = vrsqrt.f32 %v12976_v57  ;;  %v4396_v8 = vadd.f32 %v4395_v51, %v4347_v30  ;;  %v4348_v10 = vpop.f32.mrf.mxu1  ;;  %5527 = vmatpush.bf16.msra.mxu2 %v9013_v36  ;;  %vm5187_vm15 = vcmp.eq.f32.partialorder %v12976_v57, inf  ;;  %vm5189_vm0 = vcmp.eq.f32.partialorder %v12976_v57, 0.0 }
 0x586   : > { %v5114_v41 = vmul.f32 %v5113_v49, %v12904_v35  ;;  %v5146_v12 = vmul.f32 %v12974_v62, %v5145_v15  ;;  %v4349_v30 = vadd.f32 %v4348_v10, %v12552_v17  ;;  %6271 = vmatpush.bf16.msra.mxu3 %v9067_v55  ;;  %v9076_v17 = vld [vmem:[%s13896_s7 + $0x48] sm:$0xff] }
 0x587   : > { %v4445_v54 = vadd.f32 %v4444_v23, %v4396_v8  ;;  %v4446_v48 = vpop.f32.mrf.mxu3  ;;  %v9077_v23 = vld [vmem:[%s13896_s7 + $0x50] sm:$0xff] }
 0x588   : > { %v5116_v5 = vsel %vm5115_vm11, %v12904_v35, %v5114_v41  ;;  %v13024_v35 = vpop.f32.mrf.mxu0  ;;  %v5147_v51 = vmul.f32 0.5, %v5146_v12  ;;  %6318 = vmatpush.bf16.msra.mxu0 %v9077_v23  ;;  %v14328_v12 = vld [vmem:[#allocation85_spill] sm:$0xff] }
 0x589   : > { %v4534_v32 = vmul.f32 %v4445_v54, %v4445_v54  ;;  %v13015_v2 = vsel %vm5117_vm13, %v5118_v4, %v5116_v5  ;;  %5528 = vmatpush.bf16.msra.mxu2 %v9012_v16  ;;  %v9011_v54 = vld [vmem:[%s13894_s5 + $0x80] sm:$0xff]  ;;  %6272 = vmatmul.bf16.vlgmr.msra.gmra.mxu3 %v8289_v3  ;;  %v4489_v23 = vmul.f32 %v14328_v12, %v14328_v12 }
 0x58a   : > { %v5223_v28 = vpack.c.bf16 %v13015_v2, %v13013_v18  ;;  %v5148_v36 = vsub.f32 1.5, %v5147_v51  ;;  %v9075_v4 = vld [vmem:[%s13896_s7 + $0x40] sm:$0xff]  ;;  %v9097_v2 = vld [vmem:[%s13896_s7 + $0xf0] sm:$0xff] }
 0x58b   : > { %v9266_v38 = vpop.eup %9265  ;;  %v13026_v9 = vadd.f32 %v4534_v32, %v4486_v25 }
 0x58c   : > { %v4397_v49 = vpop.f32.mrf.mxu2  ;;  %v5181_v15 = vmul.f32 %v9266_v38, %v12976_v57  ;;  %6319 = vmatpush.bf16.msra.mxu0 %v9076_v17 }
 0x58d   : > { %9267 = vrsqrt.f32 %v13026_v9  ;;  %v4398_v8 = vadd.f32 %v4397_v49, %v4349_v30  ;;  %v4351_v63 = vpop.f32.mrf.mxu1  ;;  %5529 = vmatpush.bf16.msra.mxu2 %v9011_v54  ;;  %v5149_v30 = vmul.f32 %v12974_v62, %v5148_v36  ;;  %vm4659_vm2 = vcmp.eq.f32.partialorder %v13026_v9, inf }
 0x58e   : > { %v5182_v55 = vmul.f32 %v9266_v38, %v5181_v15  ;;  %v4352_v32 = vadd.f32 %v4351_v63, %v12577_v52  ;;  %vm4661_vm4 = vcmp.eq.f32.partialorder %v13026_v9, 0.0 }
 0x58f   : > { %v4447_v10 = vadd.f32 %v4446_v48, %v4398_v8  ;;  %v4449_v41 = vpop.f32.mrf.mxu3  ;;  %v5150_v63 = vmul.f32 %v5149_v30, %v12937_v44 }
 0x590   : > { %5486 = vmatmul.bf16.gmra.mxu1 %v5208_v14  ;;  %v5183_v48 = vmul.f32 0.5, %v5182_v55  ;;  %6320 = vmatpush.bf16.msra.mxu0 %v9075_v4  ;;  %v13055_v8 = vpop.f32.mrf.mxu0  ;;  %v8290_v14 = vld [vmem:[%s13020_s27 + $0x18] sm:$0xf0] }
 0x591   : > { %v4537_v5 = vmul.f32 %v4447_v10, %v4447_v10  ;;  %v8293_v37 = vor.u32 %v9019_v53, %v8290_v14  ;;  %v14329_v10 = vld [vmem:[#allocation86_spill] sm:$0xff]  ;;  %v9028_v53 = vld [vmem:[%s13020_s27 + $0x44] sm:$0xf0]  ;;  %6411 = vmatpush.bf16.msrb.mxu2 %v9098_v50 }
 0x592   : > { %v5184_v51 = vsub.f32 1.5, %v5183_v48  ;;  %v4492_v54 = vmul.f32 %v14329_v10, %v14329_v10  ;;  %v14330_v10 = vld [vmem:[#allocation87_spill] sm:$0xff] }
 0x593   : > { %v9268_v45 = vpop.eup %9267  ;;  %v13050_v25 = vadd.f32 %v4537_v5, %v4489_v23  ;;  %6321 = vmatmul.bf16.vlgmr.msra.gmra.mxu0 %v8293_v37  ;;  %v5152_v5 = vsel %vm5151_vm14, %v12937_v44, %v5150_v63 }
 0x594   : > { %v4400_v49 = vpop.f32.mrf.mxu2  ;;  %v4653_v15 = vmul.f32 %v9268_v45, %v13026_v9  ;;  %v5185_v62 = vmul.f32 %v9266_v38, %v5184_v51  ;;  %v5154_v51 = vand.u32 2147483648, %v12937_v44  ;;  %v4495_v44 = vmul.f32 %v14330_v10, %v14330_v10 }
 0x595   : > { %9269 = vrsqrt.f32 %v13050_v25  ;;  %v4401_v1 = vadd.f32 %v4400_v49, %v4352_v32  ;;  %v4353_v16 = vpop.f32.mrf.mxu1  ;;  %vm4695_vm3 = vcmp.eq.f32.partialorder %v13050_v25, inf  ;;  %vm4697_vm5 = vcmp.eq.f32.partialorder %v13050_v25, 0.0  ;;  %6412 = vmatpush.bf16.msrb.mxu2 %v9097_v2 }
 0x596   : > { %v4654_v40 = vmul.f32 %v9268_v45, %v4653_v15  ;;  %v5186_v55 = vmul.f32 %v5185_v62, %v12976_v57  ;;  %v4354_v23 = vadd.f32 %v4353_v16, %v12592_v56  ;;  %v13081_v37 = vsel %vm5153_vm1, %v5154_v51, %v5152_v5 }
 0x597   : > { %v4450_v3 = vadd.f32 %v4449_v41, %v4401_v1  ;;  %v4451_v52 = vpop.f32.mrf.mxu3  ;;  %v5190_v41 = vand.u32 2147483648, %v12976_v57  ;;  %v8312_v1 = vld [vmem:[%s13020_s27 + $0x30] sm:$0xf] }
 0x598   : > { %v4655_v17 = vmul.f32 0.5, %v4654_v40  ;;  %v5188_v48 = vsel %vm5187_vm15, %v12976_v57, %v5186_v55  ;;  %v8313_v40 = vor.u32 %v9028_v53, %v8312_v1  ;;  %v13083_v57 = vpop.f32.mrf.mxu0 }
 0x599   : > { %v4540_v36 = vmul.f32 %v4450_v3, %v4450_v3  ;;  %v13075_v49 = vsel %vm5189_vm0, %v5190_v41, %v5188_v48 }
 0x59a   : > { %v4656_v4 = vsub.f32 1.5, %v4655_v17  ;;  %v5226_v62 = vpack.c.bf16 %v13075_v49, %v13081_v37  ;;  %6277 = vmatmul.bf16.gmra.mxu3 %v8313_v40 }
 0x59b   : > { %v9270_v38 = vpop.eup %9269  ;;  %v13068_v12 = vadd.f32 %v4540_v36, %v4492_v54 }
 0x59c   : > { %v4402_v32 = vpop.f32.mrf.mxu2  ;;  %v4689_v30 = vmul.f32 %v9270_v38, %v13050_v25  ;;  %v4657_v56 = vmul.f32 %v9268_v45, %v4656_v4 }
 0x59d   : > { %9271 = vrsqrt.f32 %v13068_v12  ;;  %v4403_v15 = vadd.f32 %v4402_v32, %v4354_v23  ;;  %v4356_v14 = vpop.f32.mrf.mxu1  ;;  %v9025_v32 = vld [vmem:[%s13020_s27 + $0x34] sm:$0xf]  ;;  %vm4731_vm6 = vcmp.eq.f32.partialorder %v13068_v12, inf  ;;  %vm4733_vm8 = vcmp.eq.f32.partialorder %v13068_v12, 0.0 }
 0x59e   : > { %v4690_v16 = vmul.f32 %v9270_v38, %v4689_v30  ;;  %v4658_v45 = vmul.f32 %v4657_v56, %v13026_v9  ;;  %v4357_v4 = vadd.f32 %v4356_v14, %v12617_v13  ;;  %v4662_v30 = vand.u32 2147483648, %v13026_v9 }
 0x59f   : > { %v4452_v3 = vadd.f32 %v4451_v52, %v4403_v15  ;;  %v4454_v63 = vpop.f32.mrf.mxu3  ;;  %v8317_v53 = vor.u32 %v9025_v32, %v8314_v7 }
 0x5a0   : > { %v4691_v17 = vmul.f32 0.5, %v4690_v16  ;;  %5491 = vmatmul.bf16.gmra.mxu1 %v5211_v24  ;;  %v4660_v24 = vsel %vm4659_vm2, %v13026_v9, %v4658_v45  ;;  %v14331_v16 = vld [vmem:[#allocation88_spill] sm:$0xff] }
 0x5a1   : > { %v4543_v54 = vmul.f32 %v4452_v3, %v4452_v3  ;;  %v4498_v40 = vmul.f32 %v14331_v16, %v14331_v16  ;;  %v13111_v3 = vpop.f32.mrf.mxu0 }
 0x5a2   : > { %v4692_v36 = vsub.f32 1.5, %v4691_v17  ;;  %v4663_v17 = vsel %vm4661_vm4, %v4662_v30, %v4660_v24 }
 0x5a3   : > { %v9272_v52 = vpop.eup %9271  ;;  %v13093_v55 = vadd.f32 %v4543_v54, %v4495_v44  ;;  %6326 = vmatmul.bf16.gmra.mxu0 %v8317_v53 }
 0x5a4   : > { %v4405_v41 = vpop.f32.mrf.mxu2  ;;  %v4693_v23 = vmul.f32 %v9270_v38, %v4692_v36  ;;  %v4725_v5 = vmul.f32 %v9272_v52, %v13068_v12  ;;  %v4698_v38 = vand.u32 2147483648, %v13050_v25 }
 0x5a5   : > { %9273 = vrsqrt.f32 %v13093_v55  ;;  %v4406_v48 = vadd.f32 %v4405_v41, %v4357_v4  ;;  %v4358_v27 = vpop.f32.mrf.mxu1  ;;  %vm4767_vm7 = vcmp.eq.f32.partialorder %v13093_v55, inf  ;;  %vm4769_vm9 = vcmp.eq.f32.partialorder %v13093_v55, 0.0 }
 0x5a6   : > { %v4694_v51 = vmul.f32 %v4693_v23, %v13050_v25  ;;  %v4726_v15 = vmul.f32 %v9272_v52, %v4725_v5  ;;  %v4359_v36 = vadd.f32 %v4358_v27, %v12632_v21  ;;  %v8336_v23 = vld [vmem:[%s13020_s27 + $0x60] sm:$0xf]  ;;  %v9034_v5 = vld [vmem:[%s13020_s27 + $0x74] sm:$0xf0] }
 0x5a7   : > { %v4455_v13 = vadd.f32 %v4454_v63, %v4406_v48  ;;  %v4456_v1 = vpop.f32.mrf.mxu3  ;;  %v8337_v24 = vor.u32 %v9034_v5, %v8336_v23  ;;  %v14333_v5 = vld [vmem:[#allocation90_spill] sm:$0xff] }
 0x5a8   : > { %v4696_v14 = vsel %vm4695_vm3, %v13050_v25, %v4694_v51  ;;  %v4727_v56 = vmul.f32 0.5, %v4726_v15 }
 0x5a9   : > { %v4546_v63 = vmul.f32 %v4455_v13, %v4455_v13  ;;  %v4699_v10 = vsel %vm4697_vm5, %v4698_v38, %v4696_v14  ;;  %v14332_v13 = vld [vmem:[#allocation89_spill] sm:$0xff]  ;;  %v13126_v14 = vpop.f32.mrf.mxu0 }
 0x5aa   : > { %v5206_v44 = vpack.c.bf16 %v4699_v10, %v4663_v17  ;;  %v4728_v54 = vsub.f32 1.5, %v4727_v56  ;;  %6282 = vmatmul.bf16.gmra.mxu3 %v8337_v24  ;;  %v4501_v21 = vmul.f32 %v14332_v13, %v14332_v13 }
 0x5ab   : > { %v9274_v45 = vpop.eup %9273  ;;  %v13113_v9 = vadd.f32 %v4546_v63, %v4498_v40 }
 0x5ac   : > { %v4407_v25 = vpop.f32.mrf.mxu2  ;;  %5530 = vmatmul.bf16.vlgmr.msra.gmra.mxu2 %v5206_v44  ;;  %v4761_v4 = vmul.f32 %v9274_v45, %v13093_v55  ;;  %v4729_v32 = vmul.f32 %v9272_v52, %v4728_v54  ;;  %v4734_v44 = vand.u32 2147483648, %v13068_v12 }
 0x5ad   : > { %9275 = vrsqrt.f32 %v13113_v9  ;;  %v4408_v41 = vadd.f32 %v4407_v25, %v4359_v36  ;;  %v4361_v48 = vpop.f32.mrf.mxu1  ;;  %vm4803_vm10 = vcmp.eq.f32.partialorder %v13113_v9, inf  ;;  %vm4805_vm12 = vcmp.eq.f32.partialorder %v13113_v9, 0.0 }
 0x5ae   : > { %v4762_v7 = vmul.f32 %v9274_v45, %v4761_v4  ;;  %v4730_v38 = vmul.f32 %v4729_v32, %v13068_v12  ;;  %v4362_v56 = vadd.f32 %v4361_v48, %v12657_v46  ;;  %v8341_v4 = vor.u32 %v9031_v26, %v8338_v42 }
 0x5af   : > { %v4457_v30 = vadd.f32 %v4456_v1, %v4408_v41  ;;  %v4459_v51 = vpop.f32.mrf.mxu3  ;;  %v4504_v48 = vmul.f32 %v14333_v5, %v14333_v5  ;;  %v9037_v5 = vld [vmem:[%s13020_s27 + $0x94] sm:$0xf] }
 0x5b0   : > { %v4763_v15 = vmul.f32 0.5, %v4762_v7  ;;  %5496 = vmatmul.bf16.gmra.mxu1 %v5214_v39  ;;  %v4732_v10 = vsel %vm4731_vm6, %v13068_v12, %v4730_v38 }
 0x5b1   : > { %v4549_v27 = vmul.f32 %v4457_v30, %v4457_v30  ;;  %v4735_v7 = vsel %vm4733_vm8, %v4734_v44, %v4732_v10 }
 0x5b2   : > { %v4764_v53 = vsub.f32 1.5, %v4763_v15 }
 0x5b3   : > { %v9276_v52 = vpop.eup %9275  ;;  %v13128_v1 = vadd.f32 %v4549_v27, %v4501_v21  ;;  %6331 = vmatmul.bf16.gmra.mxu0 %v8341_v4  ;;  %v13150_v27 = vpop.f32.mrf.mxu0 }
 0x5b4   : > { %v4410_v16 = vpop.f32.mrf.mxu2  ;;  %v4765_v40 = vmul.f32 %v9274_v45, %v4764_v53  ;;  %v4797_v63 = vmul.f32 %v9276_v52, %v13113_v9  ;;  %v4770_v45 = vand.u32 2147483648, %v13093_v55  ;;  %v8360_v53 = vld [vmem:[%s13020_s27 + $0x90] sm:$0xf] }
 0x5b5   : > { %9277 = vrsqrt.f32 %v13128_v1  ;;  %v4411_v17 = vadd.f32 %v4410_v16, %v4362_v56  ;;  %v4363_v39 = vpop.f32.mrf.mxu1  ;;  %v9040_v56 = vld [vmem:[%s13020_s27 + $0xa4] sm:$0xf0]  ;;  %vm4839_vm11 = vcmp.eq.f32.partialorder %v13128_v1, inf  ;;  %vm4841_vm13 = vcmp.eq.f32.partialorder %v13128_v1, 0.0 }
 0x5b6   : > { %v4766_v54 = vmul.f32 %v4765_v40, %v13093_v55  ;;  %v4798_v36 = vmul.f32 %v9276_v52, %v4797_v63  ;;  %v4364_v12 = vadd.f32 %v4363_v39, %v12672_v22  ;;  %v14334_v22 = vld [vmem:[#allocation91_spill] sm:$0xff] }
 0x5b7   : > { %v4460_v46 = vadd.f32 %v4459_v51, %v4411_v17  ;;  %v4461_v25 = vpop.f32.mrf.mxu3  ;;  %v8361_v17 = vor.u32 %v9040_v56, %v8360_v53  ;;  %v4507_v39 = vmul.f32 %v14334_v22, %v14334_v22 }
 0x5b8   : > { %v4768_v41 = vsel %vm4767_vm7, %v13093_v55, %v4766_v54  ;;  %v4799_v23 = vmul.f32 0.5, %v4798_v36 }
 0x5b9   : > { %v4552_v32 = vmul.f32 %v4460_v46, %v4460_v46  ;;  %v4771_v24 = vsel %vm4769_vm9, %v4770_v45, %v4768_v41 }
 0x5ba   : > { %v5209_v30 = vpack.c.bf16 %v4771_v24, %v4735_v7  ;;  %v4800_v51 = vsub.f32 1.5, %v4799_v23  ;;  %6287 = vmatmul.bf16.gmra.mxu3 %v8361_v17 }
 0x5bb   : > { %v9278_v15 = vpop.eup %9277  ;;  %v13146_v13 = vadd.f32 %v4552_v32, %v4504_v48  ;;  %v4806_v48 = vand.u32 2147483648, %v13113_v9  ;;  %v13175_v24 = vpop.f32.mrf.mxu0 }
 0x5bc   : > { %v4412_v21 = vpop.f32.mrf.mxu2  ;;  %5535 = vmatmul.bf16.gmra.mxu2 %v5209_v30  ;;  %v4833_v55 = vmul.f32 %v9278_v15, %v13128_v1  ;;  %v4801_v40 = vmul.f32 %v9276_v52, %v4800_v51 }
 0x5bd   : > { %9279 = vrsqrt.f32 %v13146_v13  ;;  %v4413_v38 = vadd.f32 %v4412_v21, %v4364_v12  ;;  %v4366_v16 = vpop.f32.mrf.mxu1  ;;  %v8365_v12 = vor.u32 %v9037_v5, %v8362_v43  ;;  %v14336_v43 = vld [vmem:[#allocation94_spill] sm:$0xff]  ;;  %vm4875_vm14 = vcmp.eq.f32.partialorder %v13146_v13, inf }
 0x5be   : > { %v4834_v63 = vmul.f32 %v9278_v15, %v4833_v55  ;;  %v4802_v54 = vmul.f32 %v4801_v40, %v13113_v9  ;;  %vm4877_vm0 = vcmp.eq.f32.partialorder %v13146_v13, 0.0 }
 0x5bf   : > { %v4462_v26 = vadd.f32 %v4461_v25, %v4413_v38  ;;  %v4464_v42 = vpop.f32.mrf.mxu3  ;;  %v4367_v25 = vadd.f32 %v4366_v16, %v12697_v19  ;;  %v9090_v19 = vld [vmem:[%s13896_s7 + $0xb8] sm:$0xff]  ;;  %v14335_v38 = vld [vmem:[#allocation92_spill] sm:$0xff] }
 0x5c0   : > { %v4835_v10 = vmul.f32 0.5, %v4834_v63  ;;  %5501 = vmatmul.bf16.gmra.mxu1 %v5217_v29  ;;  %v4804_v29 = vsel %vm4803_vm10, %v13113_v9, %v4802_v54  ;;  %v4510_v53 = vmul.f32 %v14335_v38, %v14335_v38  ;;  %v9089_v54 = vld [vmem:[%s13896_s7 + $0xb0] sm:$0xff]  ;;  %v4878_v38 = vand.u32 2147483648, %v13146_v13 }
 0x5c1   : > { %v4555_v44 = vmul.f32 %v4462_v26, %v4462_v26  ;;  %6362 = vmatpush.bf16.msra.mxu1 %v9090_v19  ;;  %v4807_v16 = vsel %vm4805_vm12, %v4806_v48, %v4804_v29 }
 0x5c2   : > { %v4836_v36 = vsub.f32 1.5, %v4835_v10 }
 0x5c3   : > { %v9280_v52 = vpop.eup %9279  ;;  %v13161_v46 = vadd.f32 %v4555_v44, %v4507_v39  ;;  %6336 = vmatmul.bf16.gmra.mxu0 %v8365_v12  ;;  %v8384_v39 = vld [vmem:[%s13020_s27 + $0xc0] sm:$0xf]  ;;  %v9046_v44 = vld [vmem:[%s13020_s27 + $0xd4] sm:$0xf0]  ;;  %v13199_v29 = vpop.f32.mrf.mxu0 }
 0x5c4   : > { %v4415_v45 = vpop.f32.mrf.mxu2  ;;  %v4837_v4 = vmul.f32 %v9278_v15, %v4836_v36  ;;  %v4869_v41 = vmul.f32 %v9280_v52, %v13146_v13  ;;  %v4842_v15 = vand.u32 2147483648, %v13128_v1 }
 0x5c5   : > { %9281 = vrsqrt.f32 %v13161_v46  ;;  %v4416_v23 = vadd.f32 %v4415_v45, %v4367_v25  ;;  %v4368_v58 = vpop.f32.mrf.mxu1  ;;  %6363 = vmatpush.bf16.msra.mxu1 %v9089_v54  ;;  %vm4911_vm15 = vcmp.eq.f32.partialorder %v13161_v46, inf  ;;  %vm4913_vm1 = vcmp.eq.f32.partialorder %v13161_v46, 0.0 }
 0x5c6   : > { %v4838_v32 = vmul.f32 %v4837_v4, %v13128_v1  ;;  %v4870_v7 = vmul.f32 %v9280_v52, %v4869_v41  ;;  %v4369_v9 = vadd.f32 %v4368_v58, %v12712_v60  ;;  %v8385_v4 = vor.u32 %v9046_v44, %v8384_v39  ;;  %v9088_v60 = vld [vmem:[%s13896_s7 + $0xa8] sm:$0xff] }
 0x5c7   : > { %v4465_v30 = vadd.f32 %v4464_v42, %v4416_v23  ;;  %v4466_v51 = vpop.f32.mrf.mxu3  ;;  %v4513_v58 = vmul.f32 %v14336_v43, %v14336_v43  ;;  %v14337_v39 = vld [vmem:[#allocation96_spill] sm:$0xff] }
 0x5c8   : > { %v4840_v21 = vsel %vm4839_vm11, %v13128_v1, %v4838_v32  ;;  %v4871_v55 = vmul.f32 0.5, %v4870_v7  ;;  %v4516_v44 = vmul.f32 %v14337_v39, %v14337_v39 }
 0x5c9   : > { %v4558_v56 = vmul.f32 %v4465_v30, %v4465_v30  ;;  %v4843_v40 = vsel %vm4841_vm13, %v4842_v15, %v4840_v21  ;;  %6364 = vmatpush.bf16.msra.mxu1 %v9088_v60 }
 0x5ca   : > { %v5212_v63 = vpack.c.bf16 %v4843_v40, %v4807_v16  ;;  %v4872_v17 = vsub.f32 1.5, %v4871_v55  ;;  %6292 = vmatmul.bf16.gmra.mxu3 %v8385_v4  ;;  %v8386_v16 = vld [vmem:[%s13020_s27 + $0xd8] sm:$0xf0] }
 0x5cb   : > { %v9282_v26 = vpop.eup %9281  ;;  %v13184_v42 = vadd.f32 %v4558_v56, %v4510_v53  ;;  %v9106_v40 = vld [vmem:[%s13896_s7 + $0x138] sm:$0xff] }
 0x5cc   : > { %v4417_v10 = vpop.f32.mrf.mxu2  ;;  %5540 = vmatmul.bf16.gmra.mxu2 %v5212_v63  ;;  %v4905_v1 = vmul.f32 %v9282_v26, %v13161_v46  ;;  %v4873_v25 = vmul.f32 %v9280_v52, %v4872_v17  ;;  %6460 = vmatpush.bf16.msrb.mxu3 %v9106_v40 }
 0x5cd   : > { %9283 = vrsqrt.f32 %v13184_v42  ;;  %v4418_v22 = vadd.f32 %v4417_v10, %v4369_v9  ;;  %v4371_v36 = vpop.f32.mrf.mxu1  ;;  %v8389_v9 = vor.u32 %v9043_v31, %v8386_v16  ;;  %v9086_v10 = vld [vmem:[%s13896_s7 + $0x98] sm:$0xff]  ;;  %vm4947_vm2 = vcmp.eq.f32.partialorder %v13184_v42, inf }
 0x5ce   : > { %v4906_v45 = vmul.f32 %v9282_v26, %v4905_v1  ;;  %v4874_v52 = vmul.f32 %v4873_v25, %v13146_v13  ;;  %v4372_v30 = vadd.f32 %v4371_v36, %v12737_v33  ;;  %v9087_v33 = vld [vmem:[%s13896_s7 + $0xa0] sm:$0xff]  ;;  %vm4949_vm4 = vcmp.eq.f32.partialorder %v13184_v42, 0.0 }
 0x5cf   : > { %v4467_v41 = vadd.f32 %v4466_v51, %v4418_v22  ;;  %v4469_v23 = vpop.f32.mrf.mxu3  ;;  %6365 = vmatpush.bf16.msra.mxu1 %v9087_v33  ;;  %v14338_v33 = vld [vmem:[#allocation98_spill] sm:$0xff] }
 0x5d0   : > { %v4907_v5 = vmul.f32 0.5, %v4906_v45  ;;  %5506 = vmatmul.bf16.gmra.mxu1 %v5220_v6  ;;  %v4876_v55 = vsel %vm4875_vm14, %v13146_v13, %v4874_v52  ;;  %v9085_v52 = vld [vmem:[%s13896_s7 + $0x90] sm:$0xff] }
 0x5d1   : > { %v4561_v48 = vmul.f32 %v4467_v41, %v4467_v41  ;;  %v4879_v36 = vsel %vm4877_vm0, %v4878_v38, %v4876_v55 }
 0x5d2   : > { %v4908_v32 = vsub.f32 1.5, %v4907_v5 }
 0x5d3   : > { %v9284_v7 = vpop.eup %9283  ;;  %v13205_v19 = vadd.f32 %v4561_v48, %v4513_v58  ;;  %6341 = vmatmul.bf16.gmra.mxu0 %v8389_v9  ;;  %6366 = vmatpush.bf16.msra.mxu1 %v9086_v10  ;;  %v8408_v58 = vld [vmem:[%s13020_s27 + $0xf0] sm:$0xf]  ;;  %v9052_v48 = vld [vmem:[%s13020_s27 + $0x104] sm:$0xf0] }
 0x5d4   : > { %v4420_v51 = vpop.f32.mrf.mxu2  ;;  %v4909_v15 = vmul.f32 %v9282_v26, %v4908_v32  ;;  %v4941_v12 = vmul.f32 %v9284_v7, %v13184_v42  ;;  %v4914_v26 = vand.u32 2147483648, %v13161_v46 }
 0x5d5   : > { %9285 = vrsqrt.f32 %v13205_v19  ;;  %v4421_v21 = vadd.f32 %v4420_v51, %v4372_v30  ;;  %v4373_v6 = vpop.f32.mrf.mxu1  ;;  %vm4983_vm3 = vcmp.eq.f32.partialorder %v13205_v19, inf  ;;  %vm4985_vm5 = vcmp.eq.f32.partialorder %v13205_v19, 0.0 }
 0x5d6   : > { %v4910_v53 = vmul.f32 %v4909_v15, %v13161_v46  ;;  %v4942_v56 = vmul.f32 %v9284_v7, %v4941_v12  ;;  %v8409_v15 = vor.u32 %v9052_v48, %v8408_v58  ;;  %v8432_v48 = vld [vmem:[%s13020_s27 + $0x120] sm:$0xf] }
 0x5d7   : > { %v4470_v63 = vadd.f32 %v4469_v23, %v4421_v21  ;;  %v4471_v17 = vpop.f32.mrf.mxu3  ;;  %v13235_v23 = vpop.f32.mrf.mxu0  ;;  %6367 = vmatpush.bf16.msra.mxu1 %v9085_v52  ;;  %v9084_v21 = vld [vmem:[%s13896_s7 + $0x88] sm:$0xff]  ;;  %v9058_v52 = vld [vmem:[%s13020_s27 + $0x134] sm:$0xf0] }
 0x5d8   : > { %v4912_v1 = vsel %vm4911_vm15, %v13161_v46, %v4910_v53  ;;  %v4943_v22 = vmul.f32 0.5, %v4942_v56  ;;  %v4374_v46 = vadd.f32 %v4373_v6, %v12752_v59  ;;  %v9110_v59 = vld [vmem:[%s13896_s7 + $0x158] sm:$0xff]  ;;  %v4519_v6 = vmul.f32 %v14338_v33, %v14338_v33 }
 0x5d9   : > { %v4564_v54 = vmul.f32 %v4470_v63, %v4470_v63  ;;  %v4915_v25 = vsel %vm4913_vm1, %v4914_v26, %v4912_v1  ;;  %6513 = vmatpush.bf16.msrb.mxu0 %v9110_v59  ;;  %v4950_v1 = vand.u32 2147483648, %v13184_v42  ;;  %vm6239_vm15 = vcmask 523264  }
 0x5da   : > { %v5215_v45 = vpack.c.bf16 %v4915_v25, %v4879_v36  ;;  %v4944_v4 = vsub.f32 1.5, %v4943_v22  ;;  %6297 = vmatmul.bf16.gmra.mxu3 %v8409_v15  ;;  %v4986_v25 = vand.u32 2147483648, %v13205_v19 }
 0x5db   : > { %v9286_v41 = vpop.eup %9285  ;;  %v13237_v13 = vadd.f32 %v4564_v54, %v4516_v44  ;;  %6368 = vmatpush.bf16.msra.mxu1 %v9084_v21  ;;  %v8410_v44 = vld [vmem:[%s13020_s27 + $0x108] sm:$0xf0]  ;;  %v9105_v54 = vld [vmem:[%s13896_s7 + $0x130] sm:$0xff]  ;;  %v8433_v21 = vor.u32 %v9058_v52, %v8432_v48 }
 0x5dc   : > { %v4422_v60 = vpop.f32.mrf.mxu2  ;;  %5545 = vmatmul.bf16.gmra.mxu2 %v5215_v45  ;;  %v4977_v5 = vmul.f32 %v9286_v41, %v13205_v19  ;;  %v4945_v30 = vmul.f32 %v9284_v7, %v4944_v4  ;;  %6461 = vmatpush.bf16.msrb.mxu3 %v9105_v54  ;;  %v14341_v54 = vld [vmem:[#allocation81_spill] sm:$0xff] }
 0x5dd   : > { %9287 = vrsqrt.f32 %v13237_v13  ;;  %v4423_v43 = vadd.f32 %v4422_v60, %v4374_v46  ;;  %v4376_v32 = vpop.f32.mrf.mxu1  ;;  %v14339_v46 = vld [vmem:[#allocation77_spill] sm:$0xff]  ;;  %vm5019_vm6 = vcmp.eq.f32.partialorder %v13237_v13, inf  ;;  %vm5021_vm8 = vcmp.eq.f32.partialorder %v13237_v13, 0.0 }
 0x5de   : > { %v4978_v51 = vmul.f32 %v9286_v41, %v4977_v5  ;;  %v4946_v55 = vmul.f32 %v4945_v30, %v13184_v42  ;;  %v4377_v16 = vadd.f32 %v4376_v32, %v12783_v0  ;;  %v9083_v0 = vld [vmem:[%s13896_s7 + $0x80] sm:$0xff]  ;;  %v4522_v60 = vmul.f32 %v14339_v46, %v14339_v46  ;;  %v9109_v52 = vld [vmem:[%s13896_s7 + $0x150] sm:$0xff] }
 0x5df   : > { %v4472_v12 = vadd.f32 %v4471_v17, %v4423_v43  ;;  %v4474_v50 = vpop.f32.mrf.mxu3  ;;  %v13263_v26 = vpop.f32.mrf.mxu0  ;;  %6369 = vmatpush.bf16.msra.mxu1 %v9083_v0  ;;  %v8434_v0 = vld [vmem:[%s13020_s27 + $0x138] sm:$0xf0]  ;;  %6514 = vmatpush.bf16.msrb.mxu0 %v9109_v52 }
 0x5e0   : > { %v4979_v31 = vmul.f32 0.5, %v4978_v51  ;;  %5511 = vmatmul.bf16.gmra.mxu1 %v5223_v28  ;;  %v9049_v28 = vld [vmem:[%s13020_s27 + $0xf4] sm:$0xf]  ;;  %v4948_v10 = vsel %vm4947_vm2, %v13184_v42, %v4946_v55 }
 0x5e1   : > { %v4567_v7 = vmul.f32 %v4472_v12, %v4472_v12  ;;  %v8413_v45 = vor.u32 %v9049_v28, %v8410_v44  ;;  %v4951_v43 = vsel %vm4949_vm4, %v4950_v1, %v4948_v10  ;;  %v9055_v28 = vld [vmem:[%s13020_s27 + $0x124] sm:$0xf]  ;;  %vm7142_vm4 = vcmask 261120  }
 0x5e2   : > { %v4980_v38 = vsub.f32 1.5, %v4979_v31 }
 0x5e3   : > { %v9288_v53 = vpop.eup %9287  ;;  %v13259_v56 = vadd.f32 %v4567_v7, %v4519_v6  ;;  %6346 = vmatmul.bf16.gmra.mxu0 %v8413_v45 }
 0x5e4   : > { %v4425_v40 = vpop.f32.mrf.mxu2  ;;  %v4981_v63 = vmul.f32 %v9286_v41, %v4980_v38  ;;  %v5013_v17 = vmul.f32 %v9288_v53, %v13237_v13  ;;  %v9104_v38 = vld [vmem:[%s13896_s7 + $0x128] sm:$0xff] }
 0x5e5   : > { %9289 = vrsqrt.f32 %v13259_v56  ;;  %v4426_v18 = vadd.f32 %v4425_v40, %v4377_v16  ;;  %v4378_v9 = vpop.f32.mrf.mxu1  ;;  %v14340_v40 = vld [vmem:[#allocation79_spill] sm:$0xff]  ;;  %6462 = vmatpush.bf16.msrb.mxu3 %v9104_v38  ;;  %vm5055_vm7 = vcmp.eq.f32.partialorder %v13259_v56, inf  ;;  %vm5057_vm9 = vcmp.eq.f32.partialorder %v13259_v56, 0.0 }
 0x5e6   : > { %v4982_v22 = vmul.f32 %v4981_v63, %v13205_v19  ;;  %v5014_v39 = vmul.f32 %v9288_v53, %v5013_v17  ;;  %v4379_v59 = vadd.f32 %v4378_v9, %v12824_v61  ;;  %v4525_v63 = vmul.f32 %v14340_v40, %v14340_v40  ;;  %v9094_v40 = vld [vmem:[%s13896_s7 + $0xd8] sm:$0xff] }
 0x5e7   : > { %v4475_v36 = vadd.f32 %v4474_v50, %v4426_v18  ;;  %v4476_v32 = vpop.f32.mrf.mxu3  ;;  %v9096_v50 = vld [vmem:[%s13896_s7 + $0xe8] sm:$0xff]  ;;  %v13298_v55 = vpop.f32.mrf.mxu0 }
 0x5e8   : > { %v4984_v4 = vsel %vm4983_vm3, %v13205_v19, %v4982_v22  ;;  %v5015_v41 = vmul.f32 0.5, %v5014_v39  ;;  %6413 = vmatpush.bf16.msrb.mxu2 %v9096_v50  ;;  %v9023_v50 = vld [vmem:[%s13020_s27 + $0x1c] sm:$0xf0]  ;;  %vm6637_vm3 = vcmask 392192  }
 0x5e9   : > { %v4570_v5 = vmul.f32 %v4475_v36, %v4475_v36  ;;  %v4987_v58 = vsel %vm4985_vm5, %v4986_v25, %v4984_v4  ;;  %v4528_v36 = vmul.f32 %v14341_v54, %v14341_v54 }
 0x5ea   : > { %v5218_v30 = vpack.c.bf16 %v4987_v58, %v4951_v43  ;;  %v5016_v51 = vsub.f32 1.5, %v5015_v41  ;;  %6302 = vmatmul.bf16.gmra.mxu3 %v8433_v21  ;;  %v13327_v41 = vld [vmem:[%s13895_s6] ss:$0 sm:$0xff]  ;;  %v9102_v43 = vld [vmem:[%s13896_s7 + $0x118] sm:$0xff]  ;;  %v8296_v21 = vld [vmem:[%s13020_s27 + $0x8] sm:$0xf] }
 0x5eb   : > { %v9290_v15 = vpop.eup %9289  ;;  %v13290_v42 = vadd.f32 %v4570_v5, %v4522_v60  ;;  %v5022_v60 = vand.u32 2147483648, %v13237_v13  ;;  %v5058_v5 = vand.u32 2147483648, %v13259_v56 }
 0x5ec   : > { %v4427_v19 = vpop.f32.mrf.mxu2  ;;  %5550 = vmatmul.bf16.gmra.mxu2 %v5218_v30  ;;  %v5049_v12 = vmul.f32 %v9290_v15, %v13259_v56  ;;  %v5017_v6 = vmul.f32 %v9288_v53, %v5016_v51  ;;  %v9103_v53 = vld [vmem:[%s13896_s7 + $0x120] sm:$0xff] }
 0x5ed   : > { %9291 = vrsqrt.f32 %v13290_v42  ;;  %v4428_v31 = vadd.f32 %v4427_v19, %v4379_v59  ;;  %v4381_v33 = vpop.f32.mrf.mxu1  ;;  %6463 = vmatpush.bf16.msrb.mxu3 %v9103_v53  ;;  %v8456_v59 = vld [vmem:[%s13020_s27 + $0x150] sm:$0xf]  ;;  %v9064_v19 = vld [vmem:[%s13020_s27 + $0x164] sm:$0xf0]  ;;  %v8297_v53 = vor.u32 %v9023_v50, %v8296_v21  ;;  %vm5091_vm10 = vcmp.eq.f32.partialorder %v13290_v42, inf }
 0x5ee   : > { %v5050_v7 = vmul.f32 %v9290_v15, %v5049_v12  ;;  %v5018_v18 = vmul.f32 %v5017_v6, %v13237_v13  ;;  %v4382_v1 = vadd.f32 %v4381_v33, %v12858_v47  ;;  %vm5093_vm12 = vcmp.eq.f32.partialorder %v13290_v42, 0.0  ;;  %v8304_v50 = vld [vmem:[%s13020_s27 + $0x10] sm:$0xf] }
 0x5ef   : > { %v4477_v61 = vadd.f32 %v4476_v32, %v4428_v31  ;;  %v4479_v39 = vpop.f32.mrf.mxu3  ;;  %v9095_v32 = vld [vmem:[%s13896_s7 + $0xe0] sm:$0xff]  ;;  %v13344_v30 = vpop.f32.mrf.mxu0 }
 0x5f0   : > { %v5051_v16 = vmul.f32 0.5, %v5050_v7  ;;  %5516 = vmatmul.bf16.gmra.mxu1 %v5226_v62  ;;  %v8437_v62 = vor.u32 %v9055_v28, %v8434_v0  ;;  %v5020_v45 = vsel %vm5019_vm6, %v13237_v13, %v5018_v18  ;;  %6414 = vmatpush.bf16.msrb.mxu2 %v9095_v32 }
 0x5f1   : > { %v4573_v17 = vmul.f32 %v4477_v61, %v4477_v61  ;;  %6464 = vmatpush.bf16.msrb.mxu3 %v9102_v43 }
 0x5f2   : > { %v5052_v2 = vsub.f32 1.5, %v5051_v16  ;;  %v8457_v16 = vor.u32 %v9064_v19, %v8456_v59 }
 0x5f3   : > { %v9292_v9 = vpop.eup %9291  ;;  %v13314_v10 = vadd.f32 %v4573_v17, %v4525_v63  ;;  %6351 = vmatmul.bf16.gmra.mxu0 %v8437_v62  ;;  %v5434_v63 = vadd.f32 %v13327_v41, %v12918_v34 }
 0x5f4   : > { %v4430_v22 = vpop.f32.mrf.mxu2  ;;  %v5053_v44 = vmul.f32 %v9290_v15, %v5052_v2  ;;  %v5085_v49 = vmul.f32 %v9292_v9, %v13290_v42  ;;  %v5023_v15 = vsel %vm5021_vm8, %v5022_v60, %v5020_v45  ;;  %6415 = vmatpush.bf16.msrb.mxu2 %v9094_v40 }
 0x5f5   : > { %9293 = vrsqrt.f32 %v13314_v10  ;;  %v4431_v37 = vadd.f32 %v4430_v22, %v4382_v1  ;;  %v4383_v25 = vpop.f32.mrf.mxu1  ;;  %v9100_v22 = vld [vmem:[%s13896_s7 + $0x108] sm:$0xff]  ;;  %vm5127_vm11 = vcmp.eq.f32.partialorder %v13314_v10, inf  ;;  %vm5129_vm13 = vcmp.eq.f32.partialorder %v13314_v10, 0.0 }
 0x5f6   : > { %v5054_v47 = vmul.f32 %v5053_v44, %v13259_v56  ;;  %v5086_v4 = vmul.f32 %v9292_v9, %v5085_v49  ;;  %v4384_v7 = vadd.f32 %v4383_v25, %v12894_v11  ;;  %v8458_v25 = vld [vmem:[%s13020_s27 + $0x168] sm:$0xf0] }
 0x5f7   : > { %v4480_v46 = vadd.f32 %v4479_v39, %v4431_v37  ;;  %v4481_v18 = vpop.f32.mrf.mxu3  ;;  %v14342_v39 = vld [vmem:[#allocation99_spill] sm:$0xff] }
 0x5f8   : > { %v5056_v58 = vsel %vm5055_vm7, %v13259_v56, %v5054_v47  ;;  %v5087_v48 = vmul.f32 0.5, %v5086_v4  ;;  %v9101_v56 = vld [vmem:[%s13896_s7 + $0x110] sm:$0xff]  ;;  %v4531_v44 = vmul.f32 %v14342_v39, %v14342_v39  ;;  %v9099_v37 = vld [vmem:[%s13896_s7 + $0x100] sm:$0xff]  ;;  %v13379_v47 = vpop.f32.mrf.mxu0 }
 0x5f9   : > { %v4576_v51 = vmul.f32 %v4480_v46, %v4480_v46  ;;  %v5059_v13 = vsel %vm5057_vm9, %v5058_v5, %v5056_v58  ;;  %6465 = vmatpush.bf16.msrb.mxu3 %v9101_v56  ;;  %v9092_v46 = vld [vmem:[%s13896_s7 + $0xc8] sm:$0xff]  ;;  %v9091_v56 = vld [vmem:[%s13896_s7 + $0xc0] sm:$0xff]  ;;  %v9021_v39 = vld [vmem:[%s13020_s27 + $0x14] sm:$0xf] }
 0x5fa   : > { %v5221_v12 = vpack.c.bf16 %v5059_v13, %v5023_v15  ;;  %v5088_v31 = vsub.f32 1.5, %v5087_v48  ;;  %6307 = vmatmul.bf16.gmra.mxu3 %v8457_v16  ;;  %v5130_v15 = vand.u32 2147483648, %v13314_v10  ;;  %v9108_v13 = vld [vmem:[%s13896_s7 + $0x148] sm:$0xff] }
 0x5fb   : > { %v9294_v33 = vpop.eup %9293  ;;  %v13353_v6 = vadd.f32 %v4576_v51, %v4528_v36  ;;  %v9061_v36 = vld [vmem:[%s13020_s27 + $0x154] sm:$0xf]  ;;  %v5094_v51 = vand.u32 2147483648, %v13290_v42  ;;  %6515 = vmatpush.bf16.msrb.mxu0 %v9108_v13  ;;  %v8344_v13 = vld [vmem:[%s13020_s27 + $0x68] sm:$0xf] }
 0x5fc   : > { %v4432_v61 = vpop.f32.mrf.mxu2  ;;  %5555 = vmatmul.bf16.gmra.mxu2 %v5221_v12  ;;  %v5121_v38 = vmul.f32 %v9294_v33, %v13314_v10  ;;  %v5089_v11 = vmul.f32 %v9292_v9, %v5088_v31  ;;  %v9093_v9 = vld [vmem:[%s13896_s7 + $0xd0] sm:$0xff]  ;;  %v8461_v43 = vor.u32 %v9061_v36, %v8458_v25  ;;  %v9024_v31 = vld [vmem:[%s13020_s27 + $0x24] sm:$0xf0] }
 0x5fd   : > { %9295 = vrsqrt.f32 %v13353_v6  ;;  %v4433_v17 = vadd.f32 %v4432_v61, %v4384_v7  ;;  %v5482_v2 = vpop.f32.mrf.mxu1  ;;  %6466 = vmatpush.bf16.msrb.mxu3 %v9100_v22  ;;  %6416 = vmatpush.bf16.msrb.mxu2 %v9093_v9  ;;  %v8320_v7 = vld [vmem:[%s13020_s27 + $0x38] sm:$0xf]  ;;  %v9029_v61 = vld [vmem:[%s13020_s27 + $0x4c] sm:$0xf0]  ;;  %v8305_v40 = vor.u32 %v9024_v31, %v8304_v50  ;;  %v13422_v22 = vld [vmem:[%s13897_s8] ss:$0 sm:$0xff] }
 0x5fe   : > { %v5122_v28 = vmul.f32 %v9294_v33, %v5121_v38  ;;  %v13363_v1 = vadd.f32 %v5482_v2, %v5434_v63  ;;  %v5090_v62 = vmul.f32 %v5089_v11, %v13290_v42  ;;  %v5439_v63 = vadd.f32 %v13327_v41, %v13024_v35 }
 0x5ff   : > { %v4482_v0 = vadd.f32 %v4481_v18, %v4433_v17  ;;  %vm5163_vm14 = vcmp.eq.f32.partialorder %v13353_v6, inf  ;;  %vm5165_vm1 = vcmp.eq.f32.partialorder %v13353_v6, 0.0 }
 0x600   : > { %v5123_v34 = vmul.f32 0.5, %v5122_v28  ;;  %6370 = vmatmul.bf16.vlgmr.msra.gmra.mxu1 %v8297_v53  ;;  %v5092_v48 = vsel %vm5091_vm10, %v13290_v42, %v5090_v62  ;;  %v9107_v42 = vld [vmem:[%s13896_s7 + $0x140] sm:$0xff]  ;;  %v13415_v17 = vpop.f32.mrf.mxu0  ;;  %v8321_v53 = vor.u32 %v9029_v61, %v8320_v7  ;;  %v8330_v61 = vld [vmem:[%s13020_s27 + $0x58] sm:$0xf0] }
 0x601   : > { %v4579_v49 = vmul.f32 %v4482_v0, %v4482_v0  ;;  %6467 = vmatpush.bf16.msrb.mxu3 %v9099_v37  ;;  %6417 = vmatpush.bf16.msrb.mxu2 %v9092_v46  ;;  %v5095_v12 = vsel %vm5093_vm12, %v5094_v51, %v5092_v48  ;;  %v9030_v51 = vld [vmem:[%s13020_s27 + $0x54] sm:$0xf0]  ;;  %v9027_v7 = vld [vmem:[%s13020_s27 + $0x44] sm:$0xf] }
 0x602   : > { %v5124_v54 = vsub.f32 1.5, %v5123_v34  ;;  %6516 = vmatpush.bf16.msrb.mxu0 %v9107_v42 }
 0x603   : > { %v9296_v45 = vpop.eup %9295  ;;  %v13381_v4 = vadd.f32 %v4579_v49, %v4531_v44  ;;  %6356 = vmatmul.bf16.gmra.mxu0 %v8461_v43  ;;  %v8306_v44 = vld [vmem:[%s13020_s27 + $0x28] sm:$0xf0] }
 0x604   : > { %v5125_v60 = vmul.f32 %v9294_v33, %v5124_v54  ;;  %v5157_v5 = vmul.f32 %v9296_v45, %v13353_v6  ;;  %v8309_v54 = vor.u32 %v9021_v39, %v8306_v44 }
 0x605   : > { %9297 = vrsqrt.f32 %v13381_v4  ;;  %v13389_v58 = vpop.f32.mrf.mxu1  ;;  %6418 = vmatpush.bf16.msrb.mxu2 %v9091_v56  ;;  %vm5199_vm0 = vcmp.eq.f32.partialorder %v13381_v4, inf  ;;  %vm5201_vm2 = vcmp.eq.f32.partialorder %v13381_v4, 0.0 }
 0x606   : > { %v5126_v52 = vmul.f32 %v5125_v60, %v13314_v10  ;;  %v5158_v32 = vmul.f32 %v9296_v45, %v5157_v5  ;;  %v5166_v60 = vand.u32 2147483648, %v13353_v6  ;;  %v5202_v5 = vand.u32 2147483648, %v13381_v4 }
 0x608   : > { %v5128_v59 = vsel %vm5127_vm11, %v13314_v10, %v5126_v52  ;;  %v5159_v19 = vmul.f32 0.5, %v5158_v32  ;;  %v8328_v32 = vld [vmem:[%s13020_s27 + $0x40] sm:$0xf] }
 0x609   : > { %v5131_v21 = vsel %vm5129_vm13, %v5130_v15, %v5128_v59  ;;  %v9035_v59 = vld [vmem:[%s13020_s27 + $0x7c] sm:$0xf0]  ;;  %v8329_v56 = vor.u32 %v9030_v51, %v8328_v32  ;;  %v9026_v32 = vld [vmem:[%s13020_s27 + $0x3c] sm:$0xf]  ;;  %v8322_v51 = vld [vmem:[%s13020_s27 + $0x50] sm:$0xf0] }
 0x60a   : > { %v5224_v33 = vpack.c.bf16 %v5131_v21, %v5095_v12  ;;  %v5160_v38 = vsub.f32 1.5, %v5159_v19  ;;  %6468 = vmatmul.bf16.vlgmr.msrb.gmra.mxu3 %v8305_v40  ;;  %v8345_v12 = vor.u32 %v9035_v59, %v8344_v13 }
 0x60b   : > { %v9298_v10 = vpop.eup %9297 }
 0x60c   : > { %5560 = vmatmul.bf16.gmra.mxu2 %v5224_v33  ;;  %v5193_v16 = vmul.f32 %v9298_v10, %v13381_v4  ;;  %v5161_v2 = vmul.f32 %v9296_v45, %v5160_v38  ;;  %v6273_v49 = vpop.f32.mrf.mxu3 }
 0x60d   : > { %v5487_v18 = vpop.f32.mrf.mxu1  ;;  %v6274_v37 = vadd.f32 %v13422_v22, %v6273_v49  ;;  %v5449_v49 = vadd.f32 %v13327_v41, %v13126_v14  ;;  %v5436_v14 = vadd.f32 %v13327_v41, %v12964_v20  ;;  %v8376_v20 = vld [vmem:[%s13020_s27 + $0xa0] sm:$0xf] }
 0x60e   : > { %v5194_v11 = vmul.f32 %v9298_v10, %v5193_v16  ;;  %v13417_v28 = vadd.f32 %v5487_v18, %v5439_v63  ;;  %v5162_v34 = vmul.f32 %v5161_v2, %v13353_v6  ;;  %v8333_v16 = vor.u32 %v9027_v7, %v8330_v61  ;;  %v8352_v2 = vld [vmem:[%s13020_s27 + $0x70] sm:$0xf]  ;;  %v8392_v7 = vld [vmem:[%s13020_s27 + $0xc8] sm:$0xf]  ;;  %v9047_v61 = vld [vmem:[%s13020_s27 + $0xdc] sm:$0xf0] }
 0x60f   : > { %v5485_v13 = vadd.f32 %v13389_v58, %v5436_v14 }
 0x610   : > { %v5195_v0 = vmul.f32 0.5, %v5194_v11  ;;  %6375 = vmatmul.bf16.gmra.mxu1 %v8321_v53  ;;  %v6322_v62 = vpop.f32.mrf.mxu0  ;;  %v5164_v25 = vsel %vm5163_vm14, %v13353_v6, %v5162_v34  ;;  %v9036_v11 = vld [vmem:[%s13020_s27 + $0x84] sm:$0xf0]  ;;  %v9041_v34 = vld [vmem:[%s13020_s27 + $0xac] sm:$0xf0] }
 0x611   : > { %v13433_v46 = vadd.f32 %v6322_v62, %v6274_v37  ;;  %v5167_v48 = vsel %vm5165_vm1, %v5166_v60, %v5164_v25  ;;  %v8353_v44 = vor.u32 %v9036_v11, %v8352_v2 }
 0x612   : > { %v5196_v35 = vsub.f32 1.5, %v5195_v0  ;;  %v8368_v0 = vld [vmem:[%s13020_s27 + $0x98] sm:$0xf] }
 0x613   : > { %8654 = vmatmul.msk.bf16.vlgmr.msrb.gmra.mxu0 %vm6239_vm15, %v8309_v54 }
 0x614   : > { %v5197_v9 = vmul.f32 %v9298_v10, %v5196_v35  ;;  %v6275_v19 = vpop.f32.mrf.mxu3  ;;  %v9020_v10 = vld [vmem:[%s13020_s27 + $0xc] sm:$0xf] }
 0x615   : > { %v13429_v36 = vpop.f32.mrf.mxu1  ;;  %v6276_v6 = vadd.f32 %v13422_v22, %v6275_v19 }
 0x616   : > { %v5198_v45 = vmul.f32 %v5197_v9, %v13381_v4  ;;  %v8369_v9 = vor.u32 %v9041_v34, %v8368_v0 }
 0x618   : > { %v5200_v43 = vsel %vm5199_vm0, %v13381_v4, %v5198_v45  ;;  %v5444_v4 = vadd.f32 %v13327_v41, %v13083_v57  ;;  %v6324_v21 = vpop.f32.mrf.mxu0  ;;  %v8298_v57 = vld [vmem:[%s13020_s27 + $0x20] sm:$0xf0] }
 0x619   : > { %v5203_v52 = vsel %vm5201_vm2, %v5202_v5, %v5200_v43  ;;  %v13449_v31 = vadd.f32 %v6324_v21, %v6276_v6  ;;  %v8301_v18 = vor.u32 %v9020_v10, %v8298_v57  ;;  %v9033_v5 = vld [vmem:[%s13020_s27 + $0x74] sm:$0xf]  ;;  %v8354_v43 = vld [vmem:[%s13020_s27 + $0x88] sm:$0xf0]  ;;  %v9042_v21 = vld [vmem:[%s13020_s27 + $0xb4] sm:$0xf0] }
 0x61a   : > { %v5227_v15 = vpack.c.bf16 %v5203_v52, %v5167_v48  ;;  %6473 = vmatmul.bf16.gmra.mxu3 %v8329_v56  ;;  %v8377_v57 = vor.u32 %v9042_v21, %v8376_v20  ;;  %v5459_v21 = vadd.f32 %v13327_v41, %v13235_v23  ;;  %v5446_v23 = vadd.f32 %v13327_v41, %v13111_v3  ;;  %v9116_v3 = vld [vmem:[%s13898_s9 + $0x28] sm:$0xff] }
 0x61b   : > { %6667 = vmatpush.bf16.msrb.mxu1 %v9116_v3  ;;  %v8448_v3 = vld [vmem:[%s13020_s27 + $0x130] sm:$0xf] }
 0x61c   : > { %5565 = vmatmul.bf16.gmra.mxu2 %v5227_v15  ;;  %v8357_v15 = vor.u32 %v9033_v5, %v8354_v43 }
 0x61d   : > { %v5492_v50 = vpop.f32.mrf.mxu1  ;;  %v6278_v38 = vpop.f32.mrf.mxu3 }
 0x61e   : > { %v13451_v33 = vadd.f32 %v5492_v50, %v5444_v4  ;;  %v6279_v42 = vadd.f32 %v13422_v22, %v6278_v38 }
 0x620   : > { %6380 = vmatmul.bf16.gmra.mxu1 %v8345_v12  ;;  %v6327_v63 = vpop.f32.mrf.mxu0  ;;  %v8325_v12 = vor.u32 %v9026_v32, %v8322_v51 }
 0x621   : > { %v13460_v53 = vadd.f32 %v6327_v63, %v6279_v42  ;;  %v8393_v63 = vor.u32 %v9047_v61, %v8392_v7 }
 0x623   : > { %8655 = vmatmul.msk.bf16.gmra.mxu0 %vm6239_vm15, %v8333_v16  ;;  %v5454_v16 = vadd.f32 %v13327_v41, %v13175_v24 }
 0x625   : > { %v13458_v40 = vpop.f32.mrf.mxu1  ;;  %v6280_v35 = vpop.f32.mrf.mxu3 }
 0x626   : > { %v6281_v39 = vadd.f32 %v13422_v22, %v6280_v35 }
 0x628   : > { %v6329_v62 = vpop.f32.mrf.mxu0 }
 0x629   : > { %v13472_v45 = vadd.f32 %v6329_v62, %v6281_v39  ;;  %v9032_v62 = vld [vmem:[%s13020_s27 + $0x6c] sm:$0xf] }
 0x62a   : > { %6478 = vmatmul.bf16.gmra.mxu3 %v8353_v44  ;;  %v9039_v44 = vld [vmem:[%s13020_s27 + $0xa4] sm:$0xf] }
 0x62c   : > { %6419 = vmatmul.bf16.vlgmr.msrb.gmra.mxu2 %v8301_v18 }
 0x62d   : > { %v5497_v37 = vpop.f32.mrf.mxu1  ;;  %v6283_v48 = vpop.f32.mrf.mxu3 }
 0x62e   : > { %v13470_v54 = vadd.f32 %v5497_v37, %v5449_v49  ;;  %v6284_v52 = vadd.f32 %v13422_v22, %v6283_v48  ;;  %v8378_v49 = vld [vmem:[%s13020_s27 + $0xb8] sm:$0xf0] }
 0x62f   : > { %v5531_v25 = vpop.f32.mrf.mxu2 }
 0x630   : > { %v5532_v60 = vadd.f32 %v5531_v25, %v13363_v1  ;;  %6385 = vmatmul.bf16.gmra.mxu1 %v8369_v9  ;;  %v6332_v59 = vpop.f32.mrf.mxu0  ;;  %v5441_v9 = vadd.f32 %v13327_v41, %v13055_v8  ;;  %v8346_v25 = vld [vmem:[%s13020_s27 + $0x80] sm:$0xf0]  ;;  %v8400_v8 = vld [vmem:[%s13020_s27 + $0xd0] sm:$0xf] }
 0x631   : > { %v13485_v6 = vadd.f32 %v6332_v59, %v6284_v52  ;;  %v8349_v51 = vor.u32 %v9032_v62, %v8346_v25  ;;  %v8416_v59 = vld [vmem:[%s13020_s27 + $0xf8] sm:$0xf] }
 0x632   : > { %v5571_v56 = vmul.f32 0.02, %v5532_v60  ;;  %v5490_v5 = vadd.f32 %v13429_v36, %v5441_v9 }
 0x633   : > { %8656 = vmatmul.msk.bf16.gmra.mxu0 %vm6239_vm15, %v8357_v15  ;;  %v9048_v15 = vld [vmem:[%s13020_s27 + $0xe4] sm:$0xf0] }
 0x634   : > { %v5587_v42 = vmax.f32 %v5532_v60, %v5571_v56  ;;  %v8381_v60 = vor.u32 %v9039_v44, %v8378_v49  ;;  %v8401_v20 = vor.u32 %v9048_v15, %v8400_v8  ;;  %v5495_v49 = vadd.f32 %v13458_v40, %v5446_v23  ;;  %v8440_v40 = vld [vmem:[%s13020_s27 + $0x128] sm:$0xf] }
 0x635   : > { %v13483_v1 = vpop.f32.mrf.mxu1  ;;  %v6285_v38 = vpop.f32.mrf.mxu3 }
 0x636   : > { %v6286_v10 = vadd.f32 %v13422_v22, %v6285_v38 }
 0x637   : > { %v5533_v19 = vpop.f32.mrf.mxu2 }
 0x638   : > { %v5534_v4 = vadd.f32 %v5533_v19, %v5485_v13  ;;  %v6334_v11 = vpop.f32.mrf.mxu0  ;;  %v9053_v19 = vld [vmem:[%s13020_s27 + $0x10c] sm:$0xf0] }
 0x639   : > { %v13499_v35 = vadd.f32 %v6334_v11, %v6286_v10 }
 0x63a   : > { %v5572_v50 = vmul.f32 0.02, %v5534_v4  ;;  %6483 = vmatmul.bf16.gmra.mxu3 %v8377_v57 }
 0x63c   : > { %v5588_v58 = vmax.f32 %v5534_v4, %v5572_v50  ;;  %6424 = vmatmul.bf16.gmra.mxu2 %v8325_v12  ;;  %v8417_v50 = vor.u32 %v9053_v19, %v8416_v59 }
 0x63d   : > { %v5502_v2 = vpop.f32.mrf.mxu1  ;;  %v6288_v24 = vpop.f32.mrf.mxu3 }
 0x63e   : > { %v13495_v18 = vpack.c.bf16 %v5588_v58, %v5587_v42  ;;  %v13497_v0 = vadd.f32 %v5502_v2, %v5454_v16  ;;  %v6289_v37 = vadd.f32 %v13422_v22, %v6288_v24  ;;  %v9045_v16 = vld [vmem:[%s13020_s27 + $0xd4] sm:$0xf] }
 0x63f   : > { %v5536_v34 = vpop.f32.mrf.mxu2 }
 0x640   : > { %v5537_v39 = vadd.f32 %v5536_v34, %v13417_v28  ;;  %6390 = vmatmul.bf16.gmra.mxu1 %v8393_v63  ;;  %v6337_v43 = vpop.f32.mrf.mxu0  ;;  %v8402_v63 = vld [vmem:[%s13020_s27 + $0xe8] sm:$0xf0]  ;;  %v9038_v34 = vld [vmem:[%s13020_s27 + $0x9c] sm:$0xf] }
 0x641   : > { %v13512_v14 = vadd.f32 %v6337_v43, %v6289_v37  ;;  %v8405_v44 = vor.u32 %v9045_v16, %v8402_v63  ;;  %v9054_v43 = vld [vmem:[%s13020_s27 + $0x114] sm:$0xf0]  ;;  %v9119_v16 = vld [vmem:[%s13898_s9 + $0x40] sm:$0xff]  ;;  %v9044_v63 = vld [vmem:[%s13020_s27 + $0xcc] sm:$0xf] }
 0x642   : > { %v5573_v52 = vmul.f32 0.02, %v5537_v39  ;;  %6864 = vmatpush.bf16.msra.mxu3 %v9119_v16 }
 0x643   : > { %8657 = vmatmul.msk.bf16.gmra.mxu0 %vm6239_vm15, %v8381_v60 }
 0x644   : > { %v5589_v4 = vmax.f32 %v5537_v39, %v5573_v52  ;;  %v8370_v39 = vld [vmem:[%s13020_s27 + $0xb0] sm:$0xf0]  ;;  %v9059_v52 = vld [vmem:[%s13020_s27 + $0x13c] sm:$0xf0] }
 0x645   : > { %v13510_v28 = vpop.f32.mrf.mxu1  ;;  %v6290_v56 = vpop.f32.mrf.mxu3  ;;  %v8373_v60 = vor.u32 %v9038_v34, %v8370_v39  ;;  %v8441_v59 = vor.u32 %v9059_v52, %v8440_v40  ;;  %v5469_v52 = vadd.f32 %v13327_v41, %v13379_v47  ;;  %v5456_v47 = vadd.f32 %v13327_v41, %v13199_v29 }
 0x646   : > { %v6291_v12 = vadd.f32 %v13422_v22, %v6290_v56 }
 0x647   : > { %v5538_v48 = vpop.f32.mrf.mxu2 }
 0x648   : > { %v5539_v32 = vadd.f32 %v5538_v48, %v5490_v5  ;;  %v6339_v38 = vpop.f32.mrf.mxu0  ;;  %v8424_v5 = vld [vmem:[%s13020_s27 + $0x100] sm:$0xf] }
 0x649   : > { %v13526_v10 = vadd.f32 %v6339_v38, %v6291_v12  ;;  %v8425_v15 = vor.u32 %v9054_v43, %v8424_v5  ;;  %v9065_v5 = vld [vmem:[%s13020_s27 + $0x16c] sm:$0xf0] }
 0x64a   : > { %v5574_v13 = vmul.f32 0.02, %v5539_v32  ;;  %6488 = vmatmul.bf16.gmra.mxu3 %v8401_v20 }
 0x64c   : > { %v5590_v36 = vmax.f32 %v5539_v32, %v5574_v13  ;;  %6429 = vmatmul.bf16.gmra.mxu2 %v8349_v51  ;;  %v5464_v13 = vadd.f32 %v13327_v41, %v13298_v55  ;;  %v9114_v55 = vld [vmem:[%s13898_s9 + $0x18] sm:$0xff] }
 0x64d   : > { %v5507_v61 = vpop.f32.mrf.mxu1  ;;  %v6293_v2 = vpop.f32.mrf.mxu3 }
 0x64e   : > { %v13522_v7 = vpack.c.bf16 %v5590_v36, %v5589_v4  ;;  %v13524_v42 = vadd.f32 %v5507_v61, %v5459_v21  ;;  %v6294_v11 = vadd.f32 %v13422_v22, %v6293_v2  ;;  %v9115_v36 = vld [vmem:[%s13898_s9 + $0x20] sm:$0xff]  ;;  %v8426_v61 = vld [vmem:[%s13020_s27 + $0x118] sm:$0xf0] }
 0x64f   : > { %v5541_v58 = vpop.f32.mrf.mxu2  ;;  %6668 = vmatpush.bf16.msrb.mxu1 %v9115_v36  ;;  %v8394_v2 = vld [vmem:[%s13020_s27 + $0xe0] sm:$0xf0] }
 0x650   : > { %v5542_v57 = vadd.f32 %v5541_v58, %v13451_v33  ;;  %6395 = vmatmul.bf16.gmra.mxu1 %v8417_v50  ;;  %v6342_v24 = vpop.f32.mrf.mxu0  ;;  %v9051_v50 = vld [vmem:[%s13020_s27 + $0x104] sm:$0xf]  ;;  %v5451_v58 = vadd.f32 %v13327_v41, %v13150_v27 }
 0x651   : > { %v13539_v37 = vadd.f32 %v6342_v24, %v6294_v11  ;;  %v8429_v23 = vor.u32 %v9051_v50, %v8426_v61  ;;  %v9050_v61 = vld [vmem:[%s13020_s27 + $0xfc] sm:$0xf] }
 0x652   : > { %v5575_v62 = vmul.f32 0.02, %v5542_v57  ;;  %v5500_v27 = vadd.f32 %v13483_v1, %v5451_v58 }
 0x653   : > { %8658 = vmatmul.msk.bf16.gmra.mxu0 %vm6239_vm15, %v8405_v44  ;;  %6669 = vmatpush.bf16.msrb.mxu1 %v9114_v55 }
 0x654   : > { %v5591_v51 = vmax.f32 %v5542_v57, %v5575_v62  ;;  %v9060_v62 = vld [vmem:[%s13020_s27 + $0x144] sm:$0xf0] }
 0x655   : > { %v13537_v33 = vpop.f32.mrf.mxu1  ;;  %v13549_v32 = vpop.f32.mrf.mxu3  ;;  %v8449_v40 = vor.u32 %v9060_v62, %v8448_v3 }
 0x657   : > { %v5543_v9 = vpop.f32.mrf.mxu2 }
 0x658   : > { %v5544_v25 = vadd.f32 %v5543_v9, %v5495_v49  ;;  %v13555_v4 = vpop.f32.mrf.mxu0  ;;  %v8397_v9 = vor.u32 %v9044_v63, %v8394_v2 }
 0x65a   : > { %v5576_v48 = vmul.f32 0.02, %v5544_v25  ;;  %6493 = vmatmul.bf16.gmra.mxu3 %v8425_v15 }
 0x65c   : > { %v5592_v8 = vmax.f32 %v5544_v25, %v5576_v48  ;;  %6434 = vmatmul.bf16.gmra.mxu2 %v8373_v60  ;;  %v8464_v60 = vld [vmem:[%s13020_s27 + $0x158] sm:$0xf] }
 0x65d   : > { %v5512_v56 = vpop.f32.mrf.mxu1  ;;  %v6298_v38 = vpop.f32.mrf.mxu3 }
 0x65e   : > { %v13553_v19 = vpack.c.bf16 %v5592_v8, %v5591_v51  ;;  %v13560_v12 = vadd.f32 %v5512_v56, %v5464_v13  ;;  %v6299_v57 = vadd.f32 %v13422_v22, %v6298_v38  ;;  %v8465_v51 = vor.u32 %v9065_v5, %v8464_v60  ;;  %v8418_v38 = vld [vmem:[%s13020_s27 + $0x110] sm:$0xf0]  ;;  %v9063_v5 = vld [vmem:[%s13020_s27 + $0x164] sm:$0xf] }
 0x65f   : > { %v5546_v20 = vpop.f32.mrf.mxu2 }
 0x660   : > { %v5547_v21 = vadd.f32 %v5546_v20, %v13470_v54  ;;  %6400 = vmatmul.bf16.gmra.mxu1 %v8441_v59  ;;  %v9113_v54 = vld [vmem:[%s13898_s9 + $0x10] sm:$0xff]  ;;  %v6347_v34 = vpop.f32.mrf.mxu0 }
 0x661   : > { %6758 = vmatpush.bf16.msra.mxu2 %v9113_v54  ;;  %v13582_v44 = vadd.f32 %v6347_v34, %v6299_v57  ;;  %v9057_v20 = vld [vmem:[%s13020_s27 + $0x134] sm:$0xf]  ;;  %v5505_v57 = vadd.f32 %v13510_v28, %v5456_v47  ;;  %v9066_v34 = vld [vmem:[%s13020_s27 + $0x174] sm:$0xf0] }
 0x662   : > { %v5577_v49 = vmul.f32 0.02, %v5547_v21 }
 0x663   : > { %8659 = vmatmul.msk.bf16.gmra.mxu0 %vm6239_vm15, %v8429_v23  ;;  %v8421_v23 = vor.u32 %v9050_v61, %v8418_v38 }
 0x664   : > { %v5593_v43 = vmax.f32 %v5547_v21, %v5577_v49  ;;  %v8450_v21 = vld [vmem:[%s13020_s27 + $0x148] sm:$0xf0] }
 0x665   : > { %v13580_v11 = vpop.f32.mrf.mxu1  ;;  %v13589_v1 = vpop.f32.mrf.mxu3  ;;  %v8453_v58 = vor.u32 %v9057_v20, %v8450_v21 }
 0x667   : > { %v5548_v39 = vpop.f32.mrf.mxu2 }
 0x668   : > { %v5549_v24 = vadd.f32 %v5548_v39, %v5500_v27  ;;  %v13595_v13 = vpop.f32.mrf.mxu0  ;;  %v8472_v27 = vld [vmem:[%s13020_s27 + $0x160] sm:$0xf] }
 0x66a   : > { %v5578_v25 = vmul.f32 0.02, %v5549_v24  ;;  %6498 = vmatmul.bf16.gmra.mxu3 %v8449_v40  ;;  %v5461_v40 = vadd.f32 %v13327_v41, %v13263_v26 }
 0x66c   : > { %v5594_v48 = vmax.f32 %v5549_v24, %v5578_v25  ;;  %6439 = vmatmul.bf16.gmra.mxu2 %v8397_v9  ;;  %v8473_v9 = vor.u32 %v9066_v34, %v8472_v27  ;;  %v13657_v34 = vld [vmem:[%s13893_s4] ss:$0 sm:$0xff] }
 0x66d   : > { %v5517_v15 = vpop.f32.mrf.mxu1  ;;  %v6303_v55 = vpop.f32.mrf.mxu3 }
 0x66e   : > { %v13593_v8 = vpack.c.bf16 %v5594_v48, %v5593_v43  ;;  %v13597_v59 = vadd.f32 %v5517_v15, %v5469_v52  ;;  %v6304_v50 = vadd.f32 %v13422_v22, %v6303_v55  ;;  %v8474_v43 = vld [vmem:[%s13020_s27 + $0x178] sm:$0xf0]  ;;  %v9056_v15 = vld [vmem:[%s13020_s27 + $0x12c] sm:$0xf] }
 0x66f   : > { %v5551_v56 = vpop.f32.mrf.mxu2 }
 0x670   : > { %v5552_v36 = vadd.f32 %v5551_v56, %v13497_v0  ;;  %6405 = vmatmul.bf16.gmra.mxu1 %v8465_v51  ;;  %v6352_v54 = vpop.f32.mrf.mxu0  ;;  %v9112_v51 = vld [vmem:[%s13898_s9 + $0x8] sm:$0xff]  ;;  %v8442_v56 = vld [vmem:[%s13020_s27 + $0x140] sm:$0xf0] }
 0x671   : > { %v13608_v0 = vadd.f32 %v6352_v54, %v6304_v50  ;;  %6759 = vmatpush.bf16.msra.mxu2 %v9112_v51  ;;  %v8445_v50 = vor.u32 %v9056_v15, %v8442_v56  ;;  %v9118_v51 = vld [vmem:[%s13898_s9 + $0x38] sm:$0xff] }
 0x672   : > { %v5579_v63 = vmul.f32 0.02, %v5552_v36  ;;  %v14345_v15 = vld [vmem:[#allocation29_spill] sm:$0xff]  ;;  %6865 = vmatpush.bf16.msra.mxu3 %v9118_v51 }
 0x673   : > { %8660 = vmatmul.msk.bf16.gmra.mxu0 %vm6239_vm15, %v8453_v58 }
 0x674   : > { %v5595_v49 = vmax.f32 %v5552_v36, %v5579_v63  ;;  %v8477_v36 = vor.u32 %v9063_v5, %v8474_v43  ;;  %v14344_v43 = vld [vmem:[#allocation21_spill] sm:$0xff] }
 0x675   : > { %v13613_v39 = vpop.f32.mrf.mxu3  ;;  %v13615_v24 = vpop.f32.mrf.mxu1 }
 0x677   : > { %v5553_v16 = vpop.f32.mrf.mxu2 }
 0x678   : > { %v5554_v2 = vadd.f32 %v5553_v16, %v5505_v57  ;;  %v13619_v62 = vpop.f32.mrf.mxu0  ;;  %v9111_v16 = vld [vmem:[%s13898_s9] sm:$0xff] }
 0x679   : > { %6760 = vmatpush.bf16.msra.mxu2 %v9111_v16  ;;  %v14347_v16 = vld [vmem:[#allocation22_spill] sm:$0xff] }
 0x67a   : > { %v5580_v29 = vmul.f32 0.02, %v5554_v2  ;;  %6503 = vmatmul.bf16.gmra.mxu3 %v8473_v9  ;;  %v9062_v9 = vld [vmem:[%s13020_s27 + $0x15c] sm:$0xf] }
 0x67c   : > { %v5596_v28 = vmax.f32 %v5554_v2, %v5580_v29  ;;  %6444 = vmatmul.bf16.gmra.mxu2 %v8421_v23  ;;  %v14343_v29 = vld [vmem:[#allocation45_spill] sm:$0xff] }
 0x67d   : > { %v6308_v48 = vpop.f32.mrf.mxu3  ;;  %v13635_v20 = vpop.f32.mrf.mxu1 }
 0x67e   : > { %v13617_v3 = vpack.c.bf16 %v5596_v28, %v5595_v49  ;;  %v6309_v52 = vadd.f32 %v13422_v22, %v6308_v48  ;;  %v1908_v49 = vadd.f32 %v13657_v34, %v14343_v29  ;;  %v5466_v28 = vadd.f32 %v13327_v41, %v13344_v30  ;;  %v14348_v29 = vld [vmem:[#allocation50_spill] sm:$0xff] }
 0x67f   : > { %v5556_v25 = vpop.f32.mrf.mxu2 }
 0x680   : > { %v5557_v60 = vadd.f32 %v5556_v25, %v13524_v42  ;;  %8680 = vmatmul.msk.bf16.vlgmr.msrb.gmra.mxu1 %vm6637_vm3, %v13495_v18  ;;  %v5510_v42 = vadd.f32 %v13537_v33, %v5461_v40  ;;  %v6357_v18 = vpop.f32.mrf.mxu0  ;;  %v8466_v25 = vld [vmem:[%s13020_s27 + $0x170] sm:$0xf0] }
 0x681   : > { %v13637_v55 = vadd.f32 %v6357_v18, %v6309_v52  ;;  %v8469_v52 = vor.u32 %v9062_v9, %v8466_v25 }
 0x682   : > { %v5581_v47 = vmul.f32 0.02, %v5557_v60 }
 0x683   : > { %8661 = vmatmul.msk.bf16.gmra.mxu0 %vm6239_vm15, %v8477_v36 }
 0x684   : > { %v5597_v58 = vmax.f32 %v5557_v60, %v5581_v47 }
 0x685   : > { %v13640_v38 = vpop.f32.mrf.mxu3  ;;  %v13649_v2 = vpop.f32.mrf.mxu1 }
 0x687   : > { %v5558_v21 = vpop.f32.mrf.mxu2 }
 0x688   : > { %v5559_v26 = vadd.f32 %v5558_v21, %v5510_v42  ;;  %v13644_v54 = vpop.f32.mrf.mxu0  ;;  %v14346_v21 = vld [vmem:[#allocation30_spill] sm:$0xff] }
 0x68a   : > { %v5582_v61 = vmul.f32 0.02, %v5559_v26 }
 0x68c   : > { %v5598_v57 = vmax.f32 %v5559_v26, %v5582_v61  ;;  %6449 = vmatmul.bf16.gmra.mxu2 %v8445_v50 }
 0x68d   : > { %v6469_v27 = vpop.f32.mrf.mxu3  ;;  %v6376_v36 = vpop.f32.mrf.mxu1 }
 0x68e   : > { %v13642_v33 = vpack.c.bf16 %v5598_v57, %v5597_v58 }
 0x68f   : > { %v5561_v63 = vpop.f32.mrf.mxu2 }
 0x690   : > { %v5562_v23 = vadd.f32 %v5561_v63, %v13560_v12  ;;  %8681 = vmatmul.msk.bf16.gmra.mxu1 %vm6637_vm3, %v13522_v7  ;;  %v5515_v12 = vadd.f32 %v13580_v11, %v5466_v28  ;;  %v6518_v60 = vpop.f32.mrf.mxu0  ;;  %v1957_v7 = vadd.f32 %v14344_v43, %v1908_v49  ;;  %v2092_v63 = vmul.f32 0.02, %v14347_v16  ;;  %v14349_v43 = vld [vmem:[#allocation58_spill] sm:$0xff] }
 0x691   : > { %v5471_v49 = vadd.f32 %v13327_v41, %v13415_v17 }
 0x692   : > { %v5583_v48 = vmul.f32 0.02, %v5562_v23  ;;  %v2006_v56 = vadd.f32 %v14345_v15, %v1957_v7  ;;  %v14350_v15 = vld [vmem:[#allocation49_spill] sm:$0xff] }
 0x693   : > { %v5520_v25 = vadd.f32 %v13615_v24, %v5471_v49 }
 0x694   : > { %v5599_v30 = vmax.f32 %v5562_v23, %v5583_v48  ;;  %v2055_v47 = vadd.f32 %v14346_v21, %v2006_v56  ;;  %v1913_v23 = vadd.f32 %v13657_v34, %v14348_v29 }
 0x695   : > { %v6471_v11 = vpop.f32.mrf.mxu3  ;;  %v6378_v28 = vpop.f32.mrf.mxu1 }
 0x696   : > { %v2093_v57 = vmul.f32 0.02, %v2055_v47  ;;  %v1962_v7 = vadd.f32 %v14349_v43, %v1913_v23 }
 0x697   : > { %v5563_v5 = vpop.f32.mrf.mxu2 }
 0x698   : > { %v5564_v40 = vadd.f32 %v5563_v5, %v5515_v12  ;;  %v6520_v61 = vpop.f32.mrf.mxu0  ;;  %v2109_v9 = vmax.f32 %v2055_v47, %v2093_v57  ;;  %v2011_v41 = vadd.f32 %v14350_v15, %v1962_v7 }
 0x69a   : > { %v5584_v42 = vmul.f32 0.02, %v5564_v40 }
 0x69c   : > { %v5600_v18 = vmax.f32 %v5564_v40, %v5584_v42  ;;  %6454 = vmatmul.bf16.gmra.mxu2 %v8469_v52  ;;  %v9117_v40 = vld [vmem:[%s13898_s9 + $0x30] sm:$0xff]  ;;  %v14351_v42 = vld [vmem:[#allocation47_spill] sm:$0xff] }
 0x69d   : > { %v6474_v5 = vpop.f32.mrf.mxu3  ;;  %6866 = vmatpush.bf16.msra.mxu3 %v9117_v40  ;;  %v6381_v21 = vpop.f32.mrf.mxu1 }
 0x69e   : > { %v13672_v26 = vpack.c.bf16 %v5600_v18, %v5599_v30  ;;  %v2060_v30 = vadd.f32 %v14351_v42, %v2011_v41  ;;  %v6372_v18 = vadd.f32 %v13635_v20, %v13433_v46 }
 0x69f   : > { %v5566_v50 = vpop.f32.mrf.mxu2 }
 0x6a0   : > { %v5567_v58 = vadd.f32 %v5566_v50, %v13597_v59  ;;  %8682 = vmatmul.msk.bf16.gmra.mxu1 %vm6637_vm3, %v13553_v19  ;;  %v2108_v59 = vmax.f32 %v14347_v16, %v2092_v63  ;;  %v6523_v52 = vpop.f32.mrf.mxu0  ;;  %v2095_v63 = vmul.f32 0.02, %v2060_v30 }
 0x6a2   : > { %v5585_v19 = vmul.f32 0.02, %v5567_v58  ;;  %v6590_v51 = vpack.c.bf16 %v2109_v9, %v2108_v59  ;;  %v2111_v9 = vmax.f32 %v2060_v30, %v2095_v63  ;;  %v14354_v30 = vld [vmem:[#allocation35_spill] sm:$0xff] }
 0x6a4   : > { %v5601_v56 = vmax.f32 %v5567_v58, %v5585_v19  ;;  %v14352_v58 = vld [vmem:[#allocation48_spill] sm:$0xff] }
 0x6a5   : > { %v6476_v16 = vpop.f32.mrf.mxu3  ;;  %v2094_v23 = vmul.f32 0.02, %v14352_v58  ;;  %v6383_v20 = vpop.f32.mrf.mxu1 }
 0x6a7   : > { %v5568_v12 = vpop.f32.mrf.mxu2  ;;  %v2110_v46 = vmax.f32 %v14352_v58, %v2094_v23  ;;  %v14355_v58 = vld [vmem:[#allocation57_spill] sm:$0xff] }
 0x6a8   : > { %v5569_v48 = vadd.f32 %v5568_v12, %v5520_v25  ;;  %v6525_v29 = vpop.f32.mrf.mxu0  ;;  %v6374_v25 = vadd.f32 %v13649_v2, %v13449_v31 }
 0x6a9   : > { %v6591_v7 = vpack.c.bf16 %v2111_v9, %v2110_v46 }
 0x6aa   : > { %v5586_v17 = vmul.f32 0.02, %v5569_v48 }
 0x6ac   : > { %v5602_v24 = vmax.f32 %v5569_v48, %v5586_v17  ;;  %8700 = vmatmul.msk.bf16.vlgmr.msra.gmra.mxu2 %vm6637_vm3, %v6590_v51 }
 0x6ad   : > { %v6479_v48 = vpop.f32.mrf.mxu3 }
 0x6ae   : > { %v13693_v47 = vpack.c.bf16 %v5602_v24, %v5601_v56  ;;  %v14353_v24 = vld [vmem:[#allocation43_spill] sm:$0xff] }
 0x6af   : > { %v6420_v50 = vpop.f32.mrf.mxu2 }
 0x6b0   : > { %v6421_v57 = vadd.f32 %v6420_v50, %v6372_v18  ;;  %8683 = vmatmul.msk.bf16.gmra.mxu1 %vm6637_vm3, %v13593_v8  ;;  %v6528_v51 = vpop.f32.mrf.mxu0 }
 0x6b2   : > { %v6470_v49 = vadd.f32 %v6469_v27, %v6421_v57  ;;  %v6377_v27 = vadd.f32 %v6376_v36, %v13460_v53  ;;  %v6379_v53 = vadd.f32 %v6378_v28, %v13472_v45 }
 0x6b4   : > { %v6519_v59 = vadd.f32 %v6518_v60, %v6470_v49  ;;  %v6386_v60 = vpop.f32.mrf.mxu1 }
 0x6b6   : > { %v6558_v8 = vmul.f32 0.02, %v6519_v59 }
 0x6b7   : > { %v6422_v12 = vpop.f32.mrf.mxu2 }
 0x6b8   : > { %v6423_v43 = vadd.f32 %v6422_v12, %v6374_v25  ;;  %v6574_v17 = vmax.f32 %v6519_v59, %v6558_v8  ;;  %v6530_v50 = vpop.f32.mrf.mxu0  ;;  %v14356_v12 = vld [vmem:[#allocation51_spill] sm:$0xff]  ;;  %v6382_v59 = vadd.f32 %v6381_v21, %v13485_v6  ;;  %v14360_v21 = vld [vmem:[#allocation40_spill] sm:$0xff] }
 0x6ba   : > { %v6472_v19 = vadd.f32 %v6471_v11, %v6423_v43  ;;  %v1923_v11 = vadd.f32 %v13657_v34, %v14353_v24 }
 0x6bc   : > { %v6521_v40 = vadd.f32 %v6520_v61, %v6472_v19  ;;  %8701 = vmatmul.msk.bf16.gmra.mxu2 %vm6637_vm3, %v6591_v7  ;;  %v6481_v61 = vpop.f32.mrf.mxu3  ;;  %v1972_v18 = vadd.f32 %v14354_v30, %v1923_v11  ;;  %v6388_v49 = vpop.f32.mrf.mxu1 }
 0x6be   : > { %v6559_v15 = vmul.f32 0.02, %v6521_v40  ;;  %v2021_v23 = vadd.f32 %v14355_v58, %v1972_v18  ;;  %v14361_v18 = vld [vmem:[#allocation73_spill] sm:$0xff] }
 0x6bf   : > { %v6425_v41 = vpop.f32.mrf.mxu2 }
 0x6c0   : > { %v6575_v31 = vmax.f32 %v6521_v40, %v6559_v15  ;;  %v6426_v2 = vadd.f32 %v6425_v41, %v6377_v27  ;;  %8684 = vmatmul.msk.bf16.gmra.mxu1 %vm6637_vm3, %v13617_v3  ;;  %v14359_v15 = vld [vmem:[#allocation52_spill] sm:$0xff] }
 0x6c1   : > { %v2098_v41 = vmul.f32 0.02, %v14359_v15 }
 0x6c2   : > { %v6802_v56 = vpack.c.bf16 %v6575_v31, %v6574_v17  ;;  %v6475_v42 = vadd.f32 %v6474_v5, %v6426_v2  ;;  %v14357_v5 = vld [vmem:[#allocation55_spill] sm:$0xff]  ;;  %v6384_v2 = vadd.f32 %v6383_v20, %v13499_v35  ;;  %v6387_v35 = vadd.f32 %v6386_v60, %v13512_v14 }
 0x6c3   : > { %v2070_v46 = vadd.f32 %v14357_v5, %v2021_v23  ;;  %v14362_v23 = vld [vmem:[#allocation72_spill] sm:$0xff] }
 0x6c4   : > { %8726 = vmatmul.msk.bf16.vlgmr.msra.gmra.mxu3 %vm6637_vm3, %v6802_v56  ;;  %v6524_v57 = vadd.f32 %v6523_v52, %v6475_v42  ;;  %v6484_v45 = vpop.f32.mrf.mxu3  ;;  %v6391_v56 = vpop.f32.mrf.mxu1 }
 0x6c5   : > { %v2099_v8 = vmul.f32 0.02, %v2070_v46 }
 0x6c6   : > { %v6560_v9 = vmul.f32 0.02, %v6524_v57 }
 0x6c7   : > { %v6427_v36 = vpop.f32.mrf.mxu2  ;;  %v2115_v6 = vmax.f32 %v2070_v46, %v2099_v8 }
 0x6c8   : > { %v6428_v63 = vadd.f32 %v6427_v36, %v6379_v53  ;;  %v6576_v28 = vmax.f32 %v6524_v57, %v6560_v9 }
 0x6ca   : > { %v6477_v3 = vadd.f32 %v6476_v16, %v6428_v63  ;;  %v6533_v16 = vpop.f32.mrf.mxu0 }
 0x6cc   : > { %v6526_v25 = vadd.f32 %v6525_v29, %v6477_v3  ;;  %8702 = vmatmul.msk.bf16.gmra.mxu2 %vm6637_vm3, %v14356_v12  ;;  %v14358_v29 = vld [vmem:[#allocation44_spill] sm:$0xff]  ;;  %v6486_v30 = vpop.f32.mrf.mxu3 }
 0x6cd   : > { %v1928_v27 = vadd.f32 %v13657_v34, %v14358_v29 }
 0x6ce   : > { %v6561_v43 = vmul.f32 0.02, %v6526_v25 }
 0x6cf   : > { %v6430_v7 = vpop.f32.mrf.mxu2  ;;  %v1977_v31 = vadd.f32 %v14360_v21, %v1928_v27 }
 0x6d0   : > { %v6577_v19 = vmax.f32 %v6526_v25, %v6561_v43  ;;  %v6431_v52 = vadd.f32 %v6430_v7, %v6382_v59  ;;  %8685 = vmatmul.msk.bf16.gmra.mxu1 %vm6637_vm3, %v13642_v33  ;;  %v2114_v33 = vmax.f32 %v14359_v15, %v2098_v41  ;;  %v6393_v25 = vpop.f32.mrf.mxu1  ;;  %v14363_v43 = vld [vmem:[#allocation42_spill] sm:$0xff]  ;;  %v14364_v7 = vld [vmem:[#allocation63_spill] sm:$0xff]  ;;  %v14366_v41 = vld [vmem:[#allocation16_spill] sm:$0xff] }
 0x6d1   : > { %v2026_v53 = vadd.f32 %v14361_v18, %v1977_v31 }
 0x6d2   : > { %v6803_v40 = vpack.c.bf16 %v6577_v19, %v6576_v28  ;;  %v6480_v17 = vadd.f32 %v6479_v48, %v6431_v52  ;;  %v6593_v57 = vpack.c.bf16 %v2115_v6, %v2114_v33  ;;  %v6535_v63 = vpop.f32.mrf.mxu0  ;;  %v2100_v28 = vmul.f32 0.02, %v14364_v7  ;;  %v14365_v52 = vld [vmem:[#allocation18_spill] sm:$0xff] }
 0x6d3   : > { %v2075_v3 = vadd.f32 %v14362_v23, %v2026_v53 }
 0x6d4   : > { %8727 = vmatmul.msk.bf16.gmra.mxu3 %vm6637_vm3, %v6803_v40  ;;  %v6529_v11 = vadd.f32 %v6528_v51, %v6480_v17  ;;  %v6489_v59 = vpop.f32.mrf.mxu3  ;;  %v6389_v40 = vadd.f32 %v6388_v49, %v13526_v10 }
 0x6d6   : > { %v6562_v48 = vmul.f32 0.02, %v6529_v11 }
 0x6d7   : > { %v6432_v24 = vpop.f32.mrf.mxu2 }
 0x6d8   : > { %v6433_v42 = vadd.f32 %v6432_v24, %v6384_v2  ;;  %v6578_v12 = vmax.f32 %v6529_v11, %v6562_v48  ;;  %v6396_v6 = vpop.f32.mrf.mxu1  ;;  %v14367_v24 = vld [vmem:[#allocation27_spill] sm:$0xff]  ;;  %v6392_v11 = vadd.f32 %v6391_v56, %v13539_v37 }
 0x6da   : > { %v6482_v36 = vadd.f32 %v6481_v61, %v6433_v42  ;;  %v2101_v61 = vmul.f32 0.02, %v2075_v3  ;;  %v6538_v14 = vpop.f32.mrf.mxu0 }
 0x6dc   : > { %v6531_v58 = vadd.f32 %v6530_v50, %v6482_v36  ;;  %8703 = vmatmul.msk.bf16.gmra.mxu2 %vm6637_vm3, %v6593_v57  ;;  %v1933_v50 = vadd.f32 %v13657_v34, %v14363_v43  ;;  %v2117_v60 = vmax.f32 %v2075_v3, %v2101_v61  ;;  %v6491_v2 = vpop.f32.mrf.mxu3 }
 0x6de   : > { %v6563_v20 = vmul.f32 0.02, %v6531_v58  ;;  %v1982_v8 = vadd.f32 %v14365_v52, %v1933_v50 }
 0x6df   : > { %v6435_v9 = vpop.f32.mrf.mxu2 }
 0x6e0   : > { %v6579_v51 = vmax.f32 %v6531_v58, %v6563_v20  ;;  %v6436_v5 = vadd.f32 %v6435_v9, %v6387_v35  ;;  %8686 = vmatmul.msk.bf16.gmra.mxu1 %vm6637_vm3, %v13672_v26  ;;  %v2116_v26 = vmax.f32 %v14364_v7, %v2100_v28  ;;  %v2031_v17 = vadd.f32 %v14366_v41, %v1982_v8  ;;  %v6398_v23 = vpop.f32.mrf.mxu1 }
 0x6e2   : > { %v6804_v46 = vpack.c.bf16 %v6579_v51, %v6578_v12  ;;  %v6485_v19 = vadd.f32 %v6484_v45, %v6436_v5  ;;  %v6594_v21 = vpack.c.bf16 %v2117_v60, %v2116_v26  ;;  %v2080_v33 = vadd.f32 %v14367_v24, %v2031_v17  ;;  %v6540_v42 = vpop.f32.mrf.mxu0 }
 0x6e4   : > { %8728 = vmatmul.msk.bf16.gmra.mxu3 %vm6637_vm3, %v6804_v46  ;;  %v6534_v27 = vadd.f32 %v6533_v16, %v6485_v19  ;;  %v6296_v16 = vadd.f32 %v13422_v22, %v13549_v32  ;;  %v6494_v32 = vpop.f32.mrf.mxu3 }
 0x6e6   : > { %v6564_v31 = vmul.f32 0.02, %v6534_v27  ;;  %v6345_v58 = vadd.f32 %v13555_v4, %v6296_v16  ;;  %v6397_v4 = vadd.f32 %v6396_v6, %v13582_v44 }
 0x6e7   : > { %v6437_v29 = vpop.f32.mrf.mxu2 }
 0x6e8   : > { %v6438_v15 = vadd.f32 %v6437_v29, %v6389_v40  ;;  %v6580_v18 = vmax.f32 %v6534_v27, %v6564_v31  ;;  %v6394_v3 = vadd.f32 %v6393_v25, %v6345_v58  ;;  %v6301_v25 = vadd.f32 %v13422_v22, %v13589_v1 }
 0x6ea   : > { %v6487_v34 = vadd.f32 %v6486_v30, %v6438_v15  ;;  %v2103_v30 = vmul.f32 0.02, %v2080_v33  ;;  %v6543_v51 = vpop.f32.mrf.mxu0  ;;  %v6350_v40 = vadd.f32 %v13595_v13, %v6301_v25 }
 0x6ec   : > { %v6536_v45 = vadd.f32 %v6535_v63, %v6487_v34  ;;  %8704 = vmatmul.msk.bf16.gmra.mxu2 %vm6637_vm3, %v6594_v21  ;;  %v14368_v63 = vld [vmem:[#allocation53_spill] sm:$0xff]  ;;  %v2119_v56 = vmax.f32 %v2080_v33, %v2103_v30  ;;  %v6496_v60 = vpop.f32.mrf.mxu3  ;;  %v6399_v29 = vadd.f32 %v6398_v23, %v6350_v40  ;;  %v14369_v34 = vld [vmem:[#allocation56_spill] sm:$0xff] }
 0x6ed   : > { %v2102_v48 = vmul.f32 0.02, %v14368_v63 }
 0x6ee   : > { %v6565_v10 = vmul.f32 0.02, %v6536_v45 }
 0x6ef   : > { %v6440_v49 = vpop.f32.mrf.mxu2  ;;  %v2118_v20 = vmax.f32 %v14368_v63, %v2102_v48  ;;  %v9125_v48 = vld [vmem:[%s13900_s11 + $0x28] sm:$0xff] }
 0x6f0   : > { %v6581_v53 = vmax.f32 %v6536_v45, %v6565_v10  ;;  %v6441_v36 = vadd.f32 %v6440_v49, %v6392_v11  ;;  %8687 = vmatmul.msk.bf16.gmra.mxu1 %vm6637_vm3, %v13693_v47  ;;  %v9126_v49 = vld [vmem:[%s13900_s11 + $0x30] sm:$0xff] }
 0x6f1   : > { %v6595_v5 = vpack.c.bf16 %v2119_v56, %v2118_v20 }
 0x6f2   : > { %v6805_v57 = vpack.c.bf16 %v6581_v53, %v6580_v18  ;;  %v6490_v37 = vadd.f32 %v6489_v59, %v6441_v36  ;;  %v6401_v59 = vpop.f32.mrf.mxu1  ;;  %v6545_v8 = vpop.f32.mrf.mxu0 }
 0x6f3   : > { %v6402_v31 = vadd.f32 %v6401_v59, %v13608_v0 }
 0x6f4   : > { %8729 = vmatmul.msk.bf16.gmra.mxu3 %vm6637_vm3, %v6805_v57  ;;  %v6539_v9 = vadd.f32 %v6538_v14, %v6490_v37  ;;  %v9127_v14 = vld [vmem:[%s13900_s11 + $0x38] sm:$0xff]  ;;  %v6499_v41 = vpop.f32.mrf.mxu3 }
 0x6f5   : > { %7052 = vmatpush.bf16.msra.mxu0 %v9127_v14 }
 0x6f6   : > { %v6566_v61 = vmul.f32 0.02, %v6539_v9 }
 0x6f7   : > { %v6442_v35 = vpop.f32.mrf.mxu2 }
 0x6f8   : > { %v6443_v12 = vadd.f32 %v6442_v35, %v6394_v3  ;;  %v6582_v7 = vmax.f32 %v6539_v9, %v6566_v61  ;;  %v14370_v3 = vld [vmem:[#allocation60_spill] sm:$0xff] }
 0x6f9   : > { %7053 = vmatpush.bf16.msra.mxu0 %v9126_v49 }
 0x6fa   : > { %v6492_v47 = vadd.f32 %v6491_v2, %v6443_v12  ;;  %v6403_v27 = vpop.f32.mrf.mxu1  ;;  %v6548_v21 = vpop.f32.mrf.mxu0  ;;  %v9321_v2 = vld [vmem:[%s13897_s8] ss:$0 sm:$0xff] }
 0x6fb   : > { %v6306_v24 = vadd.f32 %v9321_v2, %v13613_v39  ;;  %v6311_v9 = vadd.f32 %v9321_v2, %v13640_v38 }
 0x6fc   : > { %v6541_v46 = vadd.f32 %v6540_v42, %v6492_v47  ;;  %8705 = vmatmul.msk.bf16.gmra.mxu2 %vm6637_vm3, %v6595_v5  ;;  %v6501_v53 = vpop.f32.mrf.mxu3 }
 0x6fd   : > { %v6355_v0 = vadd.f32 %v13619_v62, %v6306_v24  ;;  %7054 = vmatpush.bf16.msra.mxu0 %v9125_v48 }
 0x6fe   : > { %v6567_v43 = vmul.f32 0.02, %v6541_v46 }
 0x6ff   : > { %v6445_v50 = vpop.f32.mrf.mxu2  ;;  %v6404_v36 = vadd.f32 %v6403_v27, %v6355_v0 }
 0x700   : > { %v6583_v28 = vmax.f32 %v6541_v46, %v6567_v43  ;;  %v6446_v19 = vadd.f32 %v6445_v50, %v6397_v4  ;;  %v6360_v46 = vadd.f32 %v13644_v54, %v6311_v9 }
 0x702   : > { %v6806_v52 = vpack.c.bf16 %v6583_v28, %v6582_v7  ;;  %v6495_v44 = vadd.f32 %v6494_v32, %v6446_v19  ;;  %v6406_v42 = vpop.f32.mrf.mxu1  ;;  %v6550_v30 = vpop.f32.mrf.mxu0 }
 0x703   : > { %v6407_v62 = vadd.f32 %v6406_v42, %v13637_v55 }
 0x704   : > { %8730 = vmatmul.msk.bf16.gmra.mxu3 %vm6637_vm3, %v6806_v52  ;;  %v6544_v22 = vadd.f32 %v6543_v51, %v6495_v44  ;;  %v6504_v32 = vpop.f32.mrf.mxu3  ;;  %v9124_v52 = vld [vmem:[%s13900_s11 + $0x20] sm:$0xff] }
 0x705   : > { %7055 = vmatpush.bf16.msra.mxu0 %v9124_v52 }
 0x706   : > { %v6568_v17 = vmul.f32 0.02, %v6544_v22 }
 0x707   : > { %v6447_v26 = vpop.f32.mrf.mxu2 }
 0x708   : > { %v6448_v1 = vadd.f32 %v6447_v26, %v6399_v29  ;;  %v6584_v33 = vmax.f32 %v6544_v22, %v6568_v17  ;;  %v9123_v29 = vld [vmem:[%s13900_s11 + $0x18] sm:$0xff]  ;;  %v9122_v22 = vld [vmem:[%s13900_s11 + $0x10] sm:$0xff] }
 0x709   : > { %7056 = vmatpush.bf16.msra.mxu0 %v9123_v29 }
 0x70a   : > { %v6497_v15 = vadd.f32 %v6496_v60, %v6448_v1  ;;  %v6408_v23 = vpop.f32.mrf.mxu1  ;;  %v6553_v5 = vpop.f32.mrf.mxu0 }
 0x70b   : > { %v6409_v59 = vadd.f32 %v6408_v23, %v6360_v46 }
 0x70c   : > { %v6546_v6 = vadd.f32 %v6545_v8, %v6497_v15  ;;  %8706 = vmatmul.msk.bf16.gmra.mxu2 %vm6637_vm3, %v14369_v34  ;;  %v6506_v7 = vpop.f32.mrf.mxu3  ;;  %v9121_v15 = vld [vmem:[%s13900_s11 + $0x8] sm:$0xff] }
 0x70d   : > { %7057 = vmatpush.bf16.msra.mxu0 %v9122_v22 }
 0x70e   : > { %v6569_v45 = vmul.f32 0.02, %v6546_v6 }
 0x70f   : > { %v6450_v13 = vpop.f32.mrf.mxu2 }
 0x710   : > { %v6585_v11 = vmax.f32 %v6546_v6, %v6569_v45  ;;  %v6451_v10 = vadd.f32 %v6450_v13, %v6402_v31  ;;  %v13798_v13 = vld [vmem:[%s13899_s10] ss:$0 sm:$0xff] }
 0x711   : > { %7058 = vmatpush.bf16.msra.mxu0 %v9121_v15 }
 0x712   : > { %v6807_v16 = vpack.c.bf16 %v6585_v11, %v6584_v33  ;;  %v6500_v18 = vadd.f32 %v6499_v41, %v6451_v10  ;;  %v6671_v43 = vpop.f32.mrf.mxu1  ;;  %v6555_v19 = vpop.f32.mrf.mxu0  ;;  %v9120_v41 = vld [vmem:[%s13900_s11] sm:$0xff] }
 0x714   : > { %8731 = vmatmul.msk.bf16.gmra.mxu3 %vm6637_vm3, %v6807_v16  ;;  %v6549_v39 = vadd.f32 %v6548_v21, %v6500_v18 }
 0x715   : > { %7059 = vmatpush.bf16.msra.mxu0 %v9120_v41 }
 0x716   : > { %v6570_v37 = vmul.f32 0.02, %v6549_v39 }
 0x717   : > { %v6452_v57 = vpop.f32.mrf.mxu2 }
 0x718   : > { %v6453_v63 = vadd.f32 %v6452_v57, %v6404_v36  ;;  %v6586_v12 = vmax.f32 %v6549_v39, %v6570_v37 }
 0x71a   : > { %v6502_v58 = vadd.f32 %v6501_v53, %v6453_v63  ;;  %v6673_v54 = vpop.f32.mrf.mxu1 }
 0x71c   : > { %v6551_v56 = vadd.f32 %v6550_v30, %v6502_v58  ;;  %8707 = vmatmul.msk.bf16.gmra.mxu2 %vm6637_vm3, %v14370_v3 }
 0x71e   : > { %v6571_v35 = vmul.f32 0.02, %v6551_v56 }
 0x71f   : > { %v6455_v20 = vpop.f32.mrf.mxu2 }
 0x720   : > { %v6587_v51 = vmax.f32 %v6551_v56, %v6571_v35  ;;  %v6456_v47 = vadd.f32 %v6455_v20, %v6407_v62 }
 0x722   : > { %v6808_v61 = vpack.c.bf16 %v6587_v51, %v6586_v12  ;;  %v6505_v4 = vadd.f32 %v6504_v32, %v6456_v47  ;;  %v6676_v1 = vpop.f32.mrf.mxu1 }
 0x724   : > { %8732 = vmatmul.msk.bf16.gmra.mxu3 %vm6637_vm3, %v6808_v61  ;;  %v6554_v25 = vadd.f32 %v6553_v5, %v6505_v4 }
 0x726   : > { %v6572_v14 = vmul.f32 0.02, %v6554_v25 }
 0x727   : > { %v6457_v50 = vpop.f32.mrf.mxu2 }
 0x728   : > { %v6458_v55 = vadd.f32 %v6457_v50, %v6409_v59  ;;  %v6588_v40 = vmax.f32 %v6554_v25, %v6572_v14 }
 0x72a   : > { %v6507_v28 = vadd.f32 %v6506_v7, %v6458_v55  ;;  %v6678_v6 = vpop.f32.mrf.mxu1 }
 0x72c   : > { %v6556_v38 = vadd.f32 %v6555_v19, %v6507_v28 }
 0x72e   : > { %v6573_v60 = vmul.f32 0.02, %v6556_v38 }
 0x72f   : > { %v6762_v8 = vpop.f32.mrf.mxu2 }
 0x730   : > { %v6589_v44 = vmax.f32 %v6556_v38, %v6573_v60  ;;  %v6763_v31 = vadd.f32 %v6762_v8, %v6671_v43 }
 0x732   : > { %v6809_v26 = vpack.c.bf16 %v6589_v44, %v6588_v40  ;;  %v6681_v2 = vpop.f32.mrf.mxu1 }
 0x734   : > { %8733 = vmatmul.msk.bf16.gmra.mxu3 %vm6637_vm3, %v6809_v26 }
 0x737   : > { %v6764_v27 = vpop.f32.mrf.mxu2 }
 0x738   : > { %v6765_v24 = vadd.f32 %v6764_v27, %v6673_v54 }
 0x73a   : > { %v6683_v63 = vpop.f32.mrf.mxu1 }
 0x73f   : > { %v6767_v17 = vpop.f32.mrf.mxu2 }
 0x740   : > { %v6768_v57 = vadd.f32 %v6767_v17, %v6676_v1 }
 0x742   : > { %v6686_v32 = vpop.f32.mrf.mxu1 }
 0x747   : > { %v6769_v34 = vpop.f32.mrf.mxu2  ;;  %v6868_v21 = vpop.f32.mrf.mxu3 }
 0x748   : > { %v6908_v45 = vadd.f32 %v6868_v21, %v6763_v31  ;;  %v6770_v58 = vadd.f32 %v6769_v34, %v6678_v6 }
 0x74a   : > { %v6928_v33 = vadd.f32 %v13798_v13, %v6908_v45  ;;  %v6688_v4 = vpop.f32.mrf.mxu1 }
 0x74c   : > { %v6944_v42 = vmul.f32 0.02, %v6928_v33 }
 0x74e   : > { %v6960_v18 = vmax.f32 %v6928_v33, %v6944_v42 }
 0x74f   : > { %v6772_v11 = vpop.f32.mrf.mxu2  ;;  %v6870_v10 = vpop.f32.mrf.mxu3 }
 0x750   : > { %v6909_v49 = vadd.f32 %v6870_v10, %v6765_v24  ;;  %v6773_v47 = vadd.f32 %v6772_v11, %v6681_v2 }
 0x752   : > { %v6929_v16 = vadd.f32 %v13798_v13, %v6909_v49  ;;  %v6691_v60 = vpop.f32.mrf.mxu1 }
 0x754   : > { %v6945_v0 = vmul.f32 0.02, %v6929_v16 }
 0x756   : > { %v6961_v53 = vmax.f32 %v6929_v16, %v6945_v0 }
 0x757   : > { %v6774_v36 = vpop.f32.mrf.mxu2  ;;  %v6873_v30 = vpop.f32.mrf.mxu3 }
 0x758   : > { %v6976_v39 = vpack.c.bf16 %v6961_v53, %v6960_v18  ;;  %v6910_v48 = vadd.f32 %v6873_v30, %v6768_v57  ;;  %v6775_v59 = vadd.f32 %v6774_v36, %v6683_v63 }
 0x75a   : > { %7060 = vmatmul.bf16.vlgmr.msra.gmra.mxu0 %v6976_v39  ;;  %v6930_v23 = vadd.f32 %v13798_v13, %v6910_v48  ;;  %v6693_v1 = vpop.f32.mrf.mxu1 }
 0x75c   : > { %v6946_v62 = vmul.f32 0.02, %v6930_v23 }
 0x75e   : > { %v6962_v9 = vmax.f32 %v6930_v23, %v6946_v62 }
 0x75f   : > { %v6875_v37 = vpop.f32.mrf.mxu3  ;;  %v6777_v3 = vpop.f32.mrf.mxu2 }
 0x760   : > { %v6911_v56 = vadd.f32 %v6875_v37, %v6770_v58  ;;  %v6778_v8 = vadd.f32 %v6777_v3, %v6686_v32 }
 0x762   : > { %v6931_v35 = vadd.f32 %v13798_v13, %v6911_v56  ;;  %v6696_v33 = vpop.f32.mrf.mxu1 }
 0x764   : > { %v6947_v20 = vmul.f32 0.02, %v6931_v35 }
 0x766   : > { %v6963_v12 = vmax.f32 %v6931_v35, %v6947_v20 }
 0x767   : > { %v6878_v51 = vpop.f32.mrf.mxu3  ;;  %v6779_v46 = vpop.f32.mrf.mxu2 }
 0x768   : > { %v6977_v5 = vpack.c.bf16 %v6963_v12, %v6962_v9  ;;  %v6912_v61 = vadd.f32 %v6878_v51, %v6773_v47  ;;  %v6780_v44 = vadd.f32 %v6779_v46, %v6688_v4 }
 0x76a   : > { %7065 = vmatmul.bf16.gmra.mxu0 %v6977_v5  ;;  %v6932_v43 = vadd.f32 %v13798_v13, %v6912_v61  ;;  %v6698_v36 = vpop.f32.mrf.mxu1 }
 0x76c   : > { %v6948_v55 = vmul.f32 0.02, %v6932_v43 }
 0x76e   : > { %v6964_v14 = vmax.f32 %v6932_v43, %v6948_v55 }
 0x76f   : > { %v6880_v50 = vpop.f32.mrf.mxu3  ;;  %v6782_v19 = vpop.f32.mrf.mxu2 }
 0x770   : > { %v6913_v25 = vadd.f32 %v6880_v50, %v6775_v59  ;;  %v6783_v31 = vadd.f32 %v6782_v19, %v6691_v60 }
 0x772   : > { %v6933_v7 = vadd.f32 %v13798_v13, %v6913_v25  ;;  %v6701_v3 = vpop.f32.mrf.mxu1 }
 0x774   : > { %v6949_v28 = vmul.f32 0.02, %v6933_v7 }
 0x776   : > { %v6965_v38 = vmax.f32 %v6933_v7, %v6949_v28 }
 0x777   : > { %v6883_v52 = vpop.f32.mrf.mxu3  ;;  %v6784_v26 = vpop.f32.mrf.mxu2 }
 0x778   : > { %v6978_v54 = vpack.c.bf16 %v6965_v38, %v6964_v14  ;;  %v6914_v40 = vadd.f32 %v6883_v52, %v6778_v8  ;;  %v6785_v11 = vadd.f32 %v6784_v26, %v6693_v1 }
 0x77a   : > { %7070 = vmatmul.bf16.gmra.mxu0 %v6978_v54  ;;  %v6934_v29 = vadd.f32 %v13798_v13, %v6914_v40  ;;  %v6703_v4 = vpop.f32.mrf.mxu1 }
 0x77c   : > { %v6950_v15 = vmul.f32 0.02, %v6934_v29 }
 0x77e   : > { %v6966_v6 = vmax.f32 %v6934_v29, %v6950_v15 }
 0x77f   : > { %v6885_v27 = vpop.f32.mrf.mxu3  ;;  %v6787_v2 = vpop.f32.mrf.mxu2 }
 0x780   : > { %v6915_v22 = vadd.f32 %v6885_v27, %v6780_v44  ;;  %v6788_v63 = vadd.f32 %v6787_v2, %v6696_v33  ;;  %v13819_v2 = vld [vmem:[%s13901_s12] ss:$0 sm:$0xff] }
 0x782   : > { %v6935_v41 = vadd.f32 %v13798_v13, %v6915_v22  ;;  %v6706_v14 = vpop.f32.mrf.mxu1 }
 0x784   : > { %v6951_v17 = vmul.f32 0.02, %v6935_v41 }
 0x786   : > { %v6967_v34 = vmax.f32 %v6935_v41, %v6951_v17 }
 0x787   : > { %v6888_v21 = vpop.f32.mrf.mxu3  ;;  %v6789_v18 = vpop.f32.mrf.mxu2 }
 0x788   : > { %v6979_v45 = vpack.c.bf16 %v6967_v34, %v6966_v6  ;;  %v6916_v24 = vadd.f32 %v6888_v21, %v6783_v31  ;;  %v6790_v37 = vadd.f32 %v6789_v18, %v6698_v36 }
 0x78a   : > { %7075 = vmatmul.bf16.gmra.mxu0 %v6979_v45  ;;  %v6936_v10 = vadd.f32 %v13798_v13, %v6916_v24  ;;  %v6708_v26 = vpop.f32.mrf.mxu1 }
 0x78c   : > { %v6952_v16 = vmul.f32 0.02, %v6936_v10 }
 0x78e   : > { %v6968_v30 = vmax.f32 %v6936_v10, %v6952_v16 }
 0x78f   : > { %v6890_v49 = vpop.f32.mrf.mxu3  ;;  %v6792_v23 = vpop.f32.mrf.mxu2 }
 0x790   : > { %v6917_v42 = vadd.f32 %v6890_v49, %v6785_v11  ;;  %v6793_v61 = vadd.f32 %v6792_v23, %v6701_v3 }
 0x792   : > { %v6937_v0 = vadd.f32 %v13798_v13, %v6917_v42 }
 0x794   : > { %v6953_v53 = vmul.f32 0.02, %v6937_v0 }
 0x796   : > { %v6969_v57 = vmax.f32 %v6937_v0, %v6953_v53 }
 0x797   : > { %v6893_v39 = vpop.f32.mrf.mxu3  ;;  %v6794_v47 = vpop.f32.mrf.mxu2 }
 0x798   : > { %v6980_v48 = vpack.c.bf16 %v6969_v57, %v6968_v30  ;;  %v6918_v58 = vadd.f32 %v6893_v39, %v6788_v63  ;;  %v6795_v43 = vadd.f32 %v6794_v47, %v6703_v4 }
 0x79a   : > { %7080 = vmatmul.bf16.gmra.mxu0 %v6980_v48  ;;  %v6938_v56 = vadd.f32 %v13798_v13, %v6918_v58 }
 0x79c   : > { %v6954_v32 = vmul.f32 0.02, %v6938_v56 }
 0x79e   : > { %v6970_v12 = vmax.f32 %v6938_v56, %v6954_v32 }
 0x79f   : > { %v6895_v62 = vpop.f32.mrf.mxu3  ;;  %v6797_v7 = vpop.f32.mrf.mxu2 }
 0x7a0   : > { %v6919_v35 = vadd.f32 %v6895_v62, %v6790_v37  ;;  %v6798_v54 = vadd.f32 %v6797_v7, %v6706_v14 }
 0x7a2   : > { %v6939_v20 = vadd.f32 %v13798_v13, %v6919_v35 }
 0x7a4   : > { %v6955_v9 = vmul.f32 0.02, %v6939_v20 }
 0x7a6   : > { %v6971_v51 = vmax.f32 %v6939_v20, %v6955_v9 }
 0x7a7   : > { %v6898_v5 = vpop.f32.mrf.mxu3  ;;  %v6799_v29 = vpop.f32.mrf.mxu2 }
 0x7a8   : > { %v6981_v46 = vpack.c.bf16 %v6971_v51, %v6970_v12  ;;  %v6920_v59 = vadd.f32 %v6898_v5, %v6793_v61  ;;  %v6800_v27 = vadd.f32 %v6799_v29, %v6708_v26 }
 0x7aa   : > { %7085 = vmatmul.bf16.gmra.mxu0 %v6981_v46  ;;  %v6940_v50 = vadd.f32 %v13798_v13, %v6920_v59 }
 0x7ac   : > { %v6956_v28 = vmul.f32 0.02, %v6940_v50 }
 0x7ae   : > { %v6972_v60 = vmax.f32 %v6940_v50, %v6956_v28 }
 0x7af   : > { %v6900_v25 = vpop.f32.mrf.mxu3 }
 0x7b0   : > { %v6921_v55 = vadd.f32 %v6900_v25, %v6795_v43 }
 0x7b2   : > { %v6941_v19 = vadd.f32 %v13798_v13, %v6921_v55 }
 0x7b4   : > { %v6957_v38 = vmul.f32 0.02, %v6941_v19 }
 0x7b6   : > { %v6973_v52 = vmax.f32 %v6941_v19, %v6957_v38 }
 0x7b7   : > { %v6903_v8 = vpop.f32.mrf.mxu3 }
 0x7b8   : > { %v6982_v40 = vpack.c.bf16 %v6973_v52, %v6972_v60  ;;  %v6922_v44 = vadd.f32 %v6903_v8, %v6798_v54 }
 0x7ba   : > { %7090 = vmatmul.bf16.gmra.mxu0 %v6982_v40  ;;  %v6942_v22 = vadd.f32 %v13798_v13, %v6922_v44 }
 0x7bc   : > { %v6958_v41 = vmul.f32 0.02, %v6942_v22 }
 0x7be   : > { %v6974_v34 = vmax.f32 %v6942_v22, %v6958_v41 }
 0x7bf   : > { %v6905_v1 = vpop.f32.mrf.mxu3 }
 0x7c0   : > { %v6923_v15 = vadd.f32 %v6905_v1, %v6800_v27 }
 0x7c2   : > { %v6943_v17 = vadd.f32 %v13798_v13, %v6923_v15 }
 0x7c4   : > { %v6959_v6 = vmul.f32 0.02, %v6943_v17 }
 0x7c6   : > { %v6975_v21 = vmax.f32 %v6943_v17, %v6959_v6 }
 0x7c8   : > { %v6983_v31 = vpack.c.bf16 %v6975_v21, %v6974_v34 }
 0x7ca   : > { %7095 = vmatmul.bf16.gmra.mxu0 %v6983_v31 }
 0x7d7   : > { %v7061_v45 = vpop.f32.mrf.mxu0 }
 0x7d8   : > { %v7062_v24 = vadd.f32 %v13819_v2, %v7061_v45 }
 0x7da   : > { %v7101_v11 = vmul.f32 0.02, %v7062_v24 }
 0x7dc   : > { %v7117_v42 = vmax.f32 %v7062_v24, %v7101_v11 }
 0x7df   : > { %v7063_v33 = vpop.f32.mrf.mxu0 }
 0x7e0   : > { %v7064_v10 = vadd.f32 %v13819_v2, %v7063_v33 }
 0x7e2   : > { %v7102_v49 = vmul.f32 0.02, %v7064_v10 }
 0x7e4   : > { %v7118_v13 = vmax.f32 %v7064_v10, %v7102_v49 }
 0x7e6   : > { %v13823_v16 = vpack.c.bf16 %v7118_v13, %v7117_v42 }
 0x7e7   : > { %v7066_v0 = vpop.f32.mrf.mxu0 }
 0x7e8   : > { %v7067_v18 = vadd.f32 %v13819_v2, %v7066_v0 }
 0x7ea   : > { %v7103_v36 = vmul.f32 0.02, %v7067_v18 }
 0x7ec   : > { %v7119_v39 = vmax.f32 %v7067_v18, %v7103_v36 }
 0x7ef   : > { %v7068_v53 = vpop.f32.mrf.mxu0 }
 0x7f0   : > { %v7069_v30 = vadd.f32 %v13819_v2, %v7068_v53 }
 0x7f2   : > { %v7104_v57 = vmul.f32 0.02, %v7069_v30 }
 0x7f4   : > { %v7120_v63 = vmax.f32 %v7069_v30, %v7104_v57 }
 0x7f6   : > { %v13827_v48 = vpack.c.bf16 %v7120_v63, %v7119_v39  ;;  %v9424_v39 = vmov 0  }
 0x7f7   : > { %v7071_v58 = vpop.f32.mrf.mxu0  ;;  %9196 = vset.pattern.permute.xlu1 %v9424_v39  ;;  %9197 = vset.pattern.permute.xlu0 %v9424_v39 }
 0x7f8   : > { %v7072_v23 = vadd.f32 %v13819_v2, %v7071_v58  ;;  %v7150_v58 = vsel %vm7142_vm4, %v13827_v48, 0 }
 0x7fa   : > { %v7105_v56 = vmul.f32 0.02, %v7072_v23 }
 0x7fc   : > { %v7121_v35 = vmax.f32 %v7072_v23, %v7105_v56  ;;  %v7147_v23 = vsel %vm7142_vm4, %v13823_v16, 0 }
 0x7ff   : > { %v7073_v37 = vpop.f32.mrf.mxu0 }
 0x800   : > { %v7074_v3 = vadd.f32 %v13819_v2, %v7073_v37  ;;  %v7133_v37 = vld [vmem:[%s14371_s29] sm:$0xf] }
 0x802   : > { %v7106_v62 = vmul.f32 0.02, %v7074_v3 }
 0x804   : > { %v7122_v32 = vmax.f32 %v7074_v3, %v7106_v62 }
 0x806   : > { %v7136_v20 = vpack.c.bf16 %v7122_v32, %v7121_v35 }
 0x807   : > { %v7076_v9 = vpop.f32.mrf.mxu0 }
 0x808   : > { %v7077_v12 = vadd.f32 %v13819_v2, %v7076_v9  ;;  %v7153_v63 = vsel %vm7142_vm4, %v7136_v20, 0 }
 0x80a   : > { %v7107_v47 = vmul.f32 0.02, %v7077_v12 }
 0x80c   : > { %v7123_v46 = vmax.f32 %v7077_v12, %v7107_v47 }
 0x80f   : > { %v7078_v51 = vpop.f32.mrf.mxu0 }
 0x810   : > { %v7079_v5 = vadd.f32 %v13819_v2, %v7078_v51 }
 0x812   : > { %v7108_v61 = vmul.f32 0.02, %v7079_v5 }
 0x814   : > { %v7124_v4 = vmax.f32 %v7079_v5, %v7108_v61 }
 0x816   : > { %v7137_v59 = vpack.c.bf16 %v7124_v4, %v7123_v46 }
 0x817   : > { %v7081_v43 = vpop.f32.mrf.mxu0 }
 0x818   : > { %v7082_v50 = vadd.f32 %v13819_v2, %v7081_v43  ;;  %v7156_v57 = vsel %vm7142_vm4, %v7137_v59, 0 }
 0x81a   : > { %v7109_v55 = vmul.f32 0.02, %v7082_v50 }
 0x81c   : > { %v7125_v19 = vmax.f32 %v7082_v50, %v7109_v55 }
 0x81f   : > { %v7083_v25 = vpop.f32.mrf.mxu0 }
 0x820   : > { %v7084_v7 = vadd.f32 %v13819_v2, %v7083_v25 }
 0x822   : > { %v7110_v28 = vmul.f32 0.02, %v7084_v7 }
 0x824   : > { %v7126_v14 = vmax.f32 %v7084_v7, %v7110_v28 }
 0x826   : > { %v7138_v38 = vpack.c.bf16 %v7126_v14, %v7125_v19 }
 0x827   : > { %v7086_v60 = vpop.f32.mrf.mxu0 }
 0x828   : > { %v7087_v33 = vadd.f32 %v13819_v2, %v7086_v60  ;;  %v7159_v30 = vsel %vm7142_vm4, %v7138_v38, 0 }
 0x82a   : > { %v7111_v42 = vmul.f32 0.02, %v7087_v33 }
 0x82c   : > { %v7127_v18 = vmax.f32 %v7087_v33, %v7111_v42 }
 0x82f   : > { %v7088_v52 = vpop.f32.mrf.mxu0 }
 0x830   : > { %v7089_v31 = vadd.f32 %v13819_v2, %v7088_v52 }
 0x832   : > { %v7112_v10 = vmul.f32 0.02, %v7089_v31 }
 0x834   : > { %v7128_v13 = vmax.f32 %v7089_v31, %v7112_v10 }
 0x836   : > { %v7139_v53 = vpack.c.bf16 %v7128_v13, %v7127_v18 }
 0x837   : > { %v7091_v8 = vpop.f32.mrf.mxu0 }
 0x838   : > { %v7092_v1 = vadd.f32 %v13819_v2, %v7091_v8  ;;  %v7162_v36 = vsel %vm7142_vm4, %v7139_v53, 0 }
 0x83a   : > { %v7113_v34 = vmul.f32 0.02, %v7092_v1 }
 0x83c   : > { %v7129_v11 = vmax.f32 %v7092_v1, %v7113_v34 }
 0x83f   : > { %v7093_v54 = vpop.f32.mrf.mxu0 }
 0x840   : > { %v7094_v26 = vadd.f32 %v13819_v2, %v7093_v54 }
 0x842   : > { %v7114_v41 = vmul.f32 0.02, %v7094_v26 }
 0x844   : > { %v7130_v45 = vmax.f32 %v7094_v26, %v7114_v41 }
 0x846   : > { %v7140_v49 = vpack.c.bf16 %v7130_v45, %v7129_v11 }
 0x847   : > { %v7096_v40 = vpop.f32.mrf.mxu0 }
 0x848   : > { %v7097_v44 = vadd.f32 %v13819_v2, %v7096_v40  ;;  %v7165_v0 = vsel %vm7142_vm4, %v7140_v49, 0 }
 0x84a   : > { %v7115_v27 = vmul.f32 0.02, %v7097_v44 }
 0x84c   : > { %v7131_v17 = vmax.f32 %v7097_v44, %v7115_v27 }
 0x84f   : > { %v7098_v29 = vpop.f32.mrf.mxu0 }
 0x850   : > { %v7099_v22 = vadd.f32 %v13819_v2, %v7098_v29  ;;  %v7183_v2 = vld [vmem:[#allocation2] sm:$0x1] }
 0x851   : > { %7186 = vperm.xlu1 %9196, %v7183_v2  }
 0x852   : > { %v7116_v15 = vmul.f32 0.02, %v7099_v22 }
 0x854   : > { %v7132_v6 = vmax.f32 %v7099_v22, %v7116_v15 }
 0x856   : > { %v7141_v21 = vpack.c.bf16 %v7132_v6, %v7131_v17 }
 0x858   : > { %v7168_v24 = vsel %vm7142_vm4, %v7141_v21, 0 }
 0x859   : > { %7170 = vmatpush.bf16.xpose.msra.mxu1 %v7168_v24 }
 0x861   : > { %7171 = vmatpush.bf16.xpose.msra.mxu1 %v7165_v0 }
 0x869   : > { %7172 = vmatpush.bf16.xpose.msra.mxu1 %v7162_v36 }
 0x871   : > { %7173 = vmatpush.bf16.xpose.msra.mxu1 %v7159_v30 }
 0x879   : > { %7174 = vmatpush.bf16.xpose.msra.mxu1 %v7156_v57 }
 0x881   : > { %7175 = vmatpush.bf16.xpose.msra.mxu1 %v7153_v63 }
 0x889   : > { %7176 = vmatpush.bf16.xpose.msra.mxu1 %v7150_v58 }
 0x891   : > { %7177 = vmatpush.bf16.xpose.msra.mxu1 %v7147_v23 }
 0x898   : > { %8766 = vmatmul.msk.bf16.vlgmr.msra.gmra.mxu1 %vm7142_vm4, %v7133_v37 }
 0x8c3   : > { %v7187_v56 = vpop.permute.xlu1 %7186 }
 0x8c4   : > { %v7189_v3 = vperm.slane %v7187_v56, 0 }
 0x915   : > { %v7179_v48 = vpop.f32.mrf.mxu1 }
 0x916   : > { %v7190_v62 = vadd.f32 %v7189_v3, %v7179_v48 }
 0x918   : > { %7191 = vst [vmem:[%s534_s26] sm:$0x1] %v7190_v62 }
 0x919   : > { %9379 = shalt.err (!%p9376_p7)
}
 0x91a   : > { %9147 = dma.vmem_to_hbm [thread:$0]  (%p9558_p11), %s7204_s18, 16, %s7206_s16, %s7193_s17  }
 0x91d   : > { %v7181_v16 = vpop.f32.mrf.mxu1 }
 0x91e PF: > { %s14374_s24 = sld [smem:[#allocation9_spill]]  ;;  %p14376_p5 = scmp.ge.s32.totalorder %s9418_s23, 2 }
 0x920   : > { %p9154_p8 = pnand %p14376_p5, %p9562_p12 }
 0x922   : > { %p9155_p10 = pneg %p9154_p8 }
 0x924   : > { %s7217_s15 = sand.u32 1, %s14374_s24  }
 0x925   : > { %s7218_s26 = scalar_lea.sflag [#allocation5], %s7217_s15 }
 0x926   : > { %9401 = dma.done.wait (%p9155_p10), %s7218_s26, 16  }
 0x927   : > { %9403 = vsyncadd (%p9155_p10), %s7218_s26, 4294967280  ;;  %s14377_s23 = sld [smem:[#allocation11_spill]]  ;;  %s14380_s20 = smov %s9410_s21 }
 0x928   : > { %s14378_s22 = sld [smem:[#allocation10_spill]] }
 0x929   : > { %s14379_s30 = sld [smem:[#allocation12_spill]] }
 0x92d   : > { %p30_p2 = scmp.ge.s32.totalorder %s14377_s23, 4  }
 0x92e   : > { %s14381_s21 = smov %s14378_s22 }
 0x92f   : > { %s14382_s22 = smov %s14379_s30  ;;  %32 = sbr.rel (!%p30_p2) target bundleno = 8 (0x8), region = 130 }
 0x934   :  { %7223 = vsyncpa [#allocation4], 1 }
 0x935   :  { %7225 = vsyncpa [#allocation4 + $0x1], 1 }
 0x936   :  { %7226 = vsyncpa [#allocation5], 1 }
 0x937   :  { %7228 = vsyncpa [#allocation5 + $0x1], 1 }

</bundles_post_ra>
